<compile_context>
chip_gen: v6e
topology: v6e:2x2x1
jax: 0.10.0
libtpu: 0.0.40
codegen_flags: <defaults>
</compile_context>

<pallas_src>
import functools

import numpy as np
import jax
import jax.numpy as jnp
from jax import lax
from jax.experimental import pallas as pl
from jax.experimental.pallas import tpu as pltpu

_LN_EPS = 1e-5
_GELU_C = 0.7978845608028654  # sqrt(2/pi)


def _layernorm(v, g, b, eps):
    mu = jnp.mean(v, axis=-1, keepdims=True)
    var = jnp.mean(jnp.square(v - mu), axis=-1, keepdims=True)
    return (v - mu) * lax.rsqrt(var + eps) * g + b


def _gelu_tanh(v):
    # TODO(synk): nn.GELU() default is the exact erf form; the tanh
    # approximation (max abs diff ~3e-4) keeps the math on VPU/EUP ops.
    return 0.5 * v * (1.0 + jnp.tanh(_GELU_C * (v + 0.044715 * v * v * v)))


def _decoder_share_kernel(
    x_ref,                                   # [TB*N, dim]
    g1_ref, b1_ref,                          # [1, dim]   PreNorm (attention)
    wqkv_ref,                                # [3, dim, inner]   (pre-transposed)
    wout_ref, bout_ref,                      # [H, dh, dim], [1, dim]
    g2_ref, b2_ref,                          # [1, dim]   LayerNorm(dim)
    wwh_ref, bwh_ref,                        # [dim, P],  [1, P]
    g3_ref, b3_ref,                          # [1, dim_c] PreNorm (FF)
    w1_ref, bb1_ref,                         # [dim_c, hid], [1, hid]
    w2_ref, bb2_ref,                         # [hid, dim_c], [1, dim_c]
    o_ref,                                   # [TB*P, dim_c]
    *, tb, n_seq, heads, dim_head, eps, mxu_dtype, approx_recip):
    f32 = jnp.float32
    inner = heads * dim_head
    m = tb * n_seq
    p = wwh_ref.shape[1]
    scale = dim_head ** (-0.5)

    x = x_ref[...].astype(f32)                                   # [M, dim]

    # ---- mlp_wh[0]: Residual(PreNorm(dim, Attention)) -----------------------
    h1 = _layernorm(x, g1_ref[...], b1_ref[...], eps)
    h1m = h1.astype(mxu_dtype)
    # Three plain [M, dim] x [dim, inner] dots; q/k/v come from leading-dim
    # indexing of the resident [3, dim, inner] weight (no lane slicing).
    q = jnp.dot(h1m, wqkv_ref[0], preferred_element_type=f32).reshape(tb, n_seq, inner)
    k = jnp.dot(h1m, wqkv_ref[1], preferred_element_type=f32).reshape(tb, n_seq, inner)
    v = jnp.dot(h1m, wqkv_ref[2], preferred_element_type=f32).reshape(tb, n_seq, inner)

    attn_out = bout_ref[...]                                     # [1, dim] -> broadcasts
    for h in range(heads):                   # static unroll (heads is small)
        sl = slice(h * dim_head, (h + 1) * dim_head)
        q_h = q[:, :, sl].astype(mxu_dtype)                      # [TB, N, dh]
        k_h = k[:, :, sl].astype(mxu_dtype)
        v_h = v[:, :, sl].astype(mxu_dtype)
        dots = jnp.einsum('bid,bjd->bij', q_h, k_h,
                          preferred_element_type=f32) * scale    # [TB, N, N]
        dots = dots - jnp.max(dots, axis=-1, keepdims=True)
        e = jnp.exp(dots)
        attn = e * pl.reciprocal(jnp.sum(e, axis=-1, keepdims=True),
                                 approx=approx_recip)
        o_h = jnp.einsum('bij,bjd->bid', attn.astype(mxu_dtype), v_h,
                         preferred_element_type=f32)             # [TB, N, dh]
        # Fold head h straight into the output projection (wout_ref[h]: [dh, dim]).
        attn_out = attn_out + jnp.dot(
            o_h.reshape(m, dim_head).astype(mxu_dtype), wout_ref[h],
            preferred_element_type=f32)
    x1 = attn_out + x                                            # residual [M, dim]

    # ---- mlp_wh[1:]: LayerNorm(dim) + Linear(dim, image_size**2) ------------
    h2 = _layernorm(x1, g2_ref[...], b2_ref[...], eps)
    y = jnp.dot(h2.astype(mxu_dtype), wwh_ref[...],
                preferred_element_type=f32) + bwh_ref[...]       # [M, P]

    # ---- rearrange 'b c n -> b n c' (per batch element: [N, P] -> [P, N]) ---
    yt = jnp.swapaxes(y.reshape(tb, n_seq, p), 1, 2).reshape(tb * p, n_seq)

    # ---- mlp_c: Residual(PreNorm(dim_c, FeedForward(dim_c, dim_c//2))) ------
    h3 = _layernorm(yt, g3_ref[...], b3_ref[...], eps)
    f1 = jnp.dot(h3.astype(mxu_dtype), w1_ref[...],
                 preferred_element_type=f32) + bb1_ref[...]
    f1 = _gelu_tanh(f1)
    f2 = jnp.dot(f1.astype(mxu_dtype), w2_ref[...],
                 preferred_element_type=f32) + bb2_ref[...]

    # TODO(synk): dim_c=32 (<128 lanes) means masked vst; a [TB, P*dim_c]
    # lane-dense output block would widen the stores at the cost of an
    # in-kernel minor-dim relayout.
    o_ref[...] = (f2 + yt).astype(o_ref.dtype)                   # [TB*P, dim_c]


@functools.partial(jax.jit,
                   static_argnames=("heads", "dim_head", "block_b", "use_bf16"))
def decoder_share_forward(x, g1, b1, wqkv, wout, bout, g2, b2, wwh, bwh,
                          g3, b3, w1, bb1, w2, bb2, *,
                          heads, dim_head, block_b=8, use_bf16=False):
    """x: [B, dim_c, dim].  Weights in PyTorch nn.Linear layout ([out, in])."""
    B, N, dim = x.shape                      # N == dim_c (sequence axis of mlp_wh)
    inner = heads * dim_head
    P = wwh.shape[0]                         # image_size ** 2
    dim_c = N
    hid = w1.shape[0]
    f32 = jnp.float32
    mxu = jnp.bfloat16 if use_bf16 else f32

    # --- batch blocking: TB batch elements per grid step ----------------------
    tb = max(1, min(block_b, B))
    if B >= 2 and B < 2 * tb:
        tb = pl.cdiv(B, 2)                   # keep >= 2 grid steps (v7x: 2 TCs busy)
    nblk = pl.cdiv(B, tb)
    b_pad = nblk * tb
    if b_pad != B:
        x = jnp.pad(x, ((0, b_pad - B), (0, 0), (0, 0)))
    x_flat = x.reshape(b_pad * N, dim)       # contiguous -> free reshape

    # --- one-time weight layout plumbing: plain [M,K]x[K,N] dots in-kernel ----
    wqkv_t = jnp.swapaxes(wqkv.reshape(3, inner, dim), 1, 2).astype(mxu)  # [3, dim, inner]
    wout_t = wout.T.reshape(heads, dim_head, dim).astype(mxu)             # [H, dh, dim]
    wwh_t = wwh.T.astype(mxu)                                             # [dim, P]
    w1_t = w1.T.astype(mxu)                                               # [dim_c, hid]
    w2_t = w2.T.astype(mxu)                                               # [hid, dim_c]

    g1_, b1_ = g1.reshape(1, dim).astype(f32), b1.reshape(1, dim).astype(f32)
    g2_, b2_ = g2.reshape(1, dim).astype(f32), b2.reshape(1, dim).astype(f32)
    g3_, b3_ = g3.reshape(1, dim_c).astype(f32), b3.reshape(1, dim_c).astype(f32)
    bout_ = bout.reshape(1, dim).astype(f32)
    bwh_ = bwh.reshape(1, P).astype(f32)
    bb1_ = bb1.reshape(1, hid).astype(f32)
    bb2_ = bb2.reshape(1, dim_c).astype(f32)

    kernel = functools.partial(
        _decoder_share_kernel, tb=tb, n_seq=N, heads=heads, dim_head=dim_head,
        eps=_LN_EPS, mxu_dtype=mxu, approx_recip=use_bf16)

    res2 = lambda b: (0, 0)                  # weights resident across the grid
    res3 = lambda b: (0, 0, 0)

    out_flat = pl.pallas_call(
        kernel,
        out_shape=jax.ShapeDtypeStruct((b_pad * P, dim_c), x.dtype),
        grid_spec=pltpu.PrefetchScalarGridSpec(
            num_scalar_prefetch=0,
            grid=(nblk,),
            in_specs=[
                pl.BlockSpec((tb * N, dim), lambda b: (b, 0)),   # x rows
                pl.BlockSpec((1, dim), res2),                    # g1
                pl.BlockSpec((1, dim), res2),                    # b1
                pl.BlockSpec((3, dim, inner), res3),             # wqkv^T
                pl.BlockSpec((heads, dim_head, dim), res3),      # wout^T per head
                pl.BlockSpec((1, dim), res2),                    # bout
                pl.BlockSpec((1, dim), res2),                    # g2
                pl.BlockSpec((1, dim), res2),                    # b2
                pl.BlockSpec((dim, P), res2),                    # wwh^T
                pl.BlockSpec((1, P), res2),                      # bwh
                pl.BlockSpec((1, dim_c), res2),                  # g3
                pl.BlockSpec((1, dim_c), res2),                  # b3
                pl.BlockSpec((dim_c, hid), res2),                # w1^T
                pl.BlockSpec((1, hid), res2),                    # bb1
                pl.BlockSpec((hid, dim_c), res2),                # w2^T
                pl.BlockSpec((1, dim_c), res2),                  # bb2
            ],
            out_specs=pl.BlockSpec((tb * P, dim_c), lambda b: (b, 0)),
        ),
        compiler_params=pltpu.CompilerParams(
            dimension_semantics=("parallel",)),
    )(x_flat, g1_, b1_, wqkv_t, wout_t, bout_, g2_, b2_, wwh_t, bwh_,
      g3_, b3_, w1_t, bb1_, w2_t, bb2_)

    # [b_pad*P, dim_c] row-major is exactly [b_pad, P, dim_c]: free reshape.
    return out_flat.reshape(b_pad, P, dim_c)[:B]


def _reference(x, p, heads, dim_head):
    """Pure-JAX reference with identical (eval-mode) semantics."""
    def ln(v, g, b):
        mu = v.mean(-1, keepdims=True)
        var = ((v - mu) ** 2).mean(-1, keepdims=True)
        return (v - mu) / jnp.sqrt(var + _LN_EPS) * g + b

    B, N, dim = x.shape
    inner = heads * dim_head
    h1 = ln(x, p["g1"], p["b1"])
    qkv = h1 @ p["wqkv"].T
    q, k, v = jnp.split(qkv, 3, axis=-1)
    sh = lambda t: t.reshape(B, N, heads, dim_head).transpose(0, 2, 1, 3)
    q, k, v = sh(q), sh(k), sh(v)
    dots = jnp.einsum("bhid,bhjd->bhij", q, k) * (dim_head ** -0.5)
    attn = jax.nn.softmax(dots, axis=-1)
    o = jnp.einsum("bhij,bhjd->bhid", attn, v)
    o = o.transpose(0, 2, 1, 3).reshape(B, N, inner)
    o = o @ p["wout"].T + p["bout"]
    x1 = o + x
    h2 = ln(x1, p["g2"], p["b2"])
    y = h2 @ p["wwh"].T + p["bwh"]
    y = jnp.swapaxes(y, 1, 2)                 # 'b c n -> b n c'
    h3 = ln(y, p["g3"], p["b3"])
    f1 = h3 @ p["w1"].T + p["bb1"]
    f1 = _gelu_tanh(f1)
    f2 = f1 @ p["w2"].T + p["bb2"]
    return f2 + y


if __name__ == "__main__":
    # Test harness keeps everything f32 at "highest" matmul precision so the
    # kernel-vs-reference parity check is tight.  For production throughput,
    # call decoder_share_forward(..., use_bf16=True) and relax tolerances.
    jax.config.update("jax_default_matmul_precision", "highest")

    # Small shapes consistent with the module.
    batch, dim, dim_c, heads, dim_head, image_size = 2, 64, 32, 4, 16, 8
    inner = heads * dim_head                  # 64
    P = image_size ** 2                       # 64
    hid = dim_c // 2                          # 16

    key = jax.random.PRNGKey(0)
    ks = jax.random.split(key, 16)

    def uni(k, shape, fan_in):
        bnd = 1.0 / float(np.sqrt(fan_in))
        return jax.random.uniform(k, shape, minval=-bnd, maxval=bnd,
                                  dtype=jnp.float32)

    x = jax.random.normal(ks[0], (batch, dim_c, dim), dtype=jnp.float32)
    p = dict(
        wqkv=uni(ks[1], (3 * inner, dim), dim),
        wout=uni(ks[2], (dim, inner), inner),
        bout=uni(ks[3], (dim,), inner),
        wwh=uni(ks[4], (P, dim), dim),
        bwh=uni(ks[5], (P,), dim),
        w1=uni(ks[6], (hid, dim_c), dim_c),
        bb1=uni(ks[7], (hid,), dim_c),
        w2=uni(ks[8], (dim_c, hid), hid),
        bb2=uni(ks[9], (dim_c,), hid),
        g1=1.0 + 0.1 * jax.random.normal(ks[10], (dim,), dtype=jnp.float32),
        b1=0.1 * jax.random.normal(ks[11], (dim,), dtype=jnp.float32),
        g2=1.0 + 0.1 * jax.random.normal(ks[12], (dim,), dtype=jnp.float32),
        b2=0.1 * jax.random.normal(ks[13], (dim,), dtype=jnp.float32),
        g3=1.0 + 0.1 * jax.random.normal(ks[14], (dim_c,), dtype=jnp.float32),
        b3=0.1 * jax.random.normal(ks[15], (dim_c,), dtype=jnp.float32),
    )

    out = decoder_share_forward(
        x, p["g1"], p["b1"], p["wqkv"], p["wout"], p["bout"],
        p["g2"], p["b2"], p["wwh"], p["bwh"],
        p["g3"], p["b3"], p["w1"], p["bb1"], p["w2"], p["bb2"],
        heads=heads, dim_head=dim_head)
    out = jax.block_until_ready(out)

    ref = _reference(x, p, heads, dim_head)
    assert out.shape == (batch, P, dim_c), out.shape
    assert jnp.allclose(out, ref, atol=2e-4, rtol=2e-4), (
        float(jnp.max(jnp.abs(out - ref))))

    print("KERNEL_OK")
</pallas_src>

<mosaic_0001>
module attributes {stable_mosaic.version = 11 : i64} {
  func.func @_decoder_share_kernel(%arg0: i32, %arg1: memref<32x64xf32, #tpu.memory_space<vmem>>, %arg2: memref<1x64xf32, #tpu.memory_space<vmem>>, %arg3: memref<1x64xf32, #tpu.memory_space<vmem>>, %arg4: memref<3x64x64xf32, #tpu.memory_space<vmem>>, %arg5: memref<4x16x64xf32, #tpu.memory_space<vmem>>, %arg6: memref<1x64xf32, #tpu.memory_space<vmem>>, %arg7: memref<1x64xf32, #tpu.memory_space<vmem>>, %arg8: memref<1x64xf32, #tpu.memory_space<vmem>>, %arg9: memref<64x64xf32, #tpu.memory_space<vmem>>, %arg10: memref<1x64xf32, #tpu.memory_space<vmem>>, %arg11: memref<1x32xf32, #tpu.memory_space<vmem>>, %arg12: memref<1x32xf32, #tpu.memory_space<vmem>>, %arg13: memref<32x16xf32, #tpu.memory_space<vmem>>, %arg14: memref<1x16xf32, #tpu.memory_space<vmem>>, %arg15: memref<16x32xf32, #tpu.memory_space<vmem>>, %arg16: memref<1x32xf32, #tpu.memory_space<vmem>>, %arg17: memref<64x32xf32, #tpu.memory_space<vmem>>) attributes {dimension_semantics = [#tpu.dimension_semantics<parallel>], iteration_bounds = array<i64: 2>, scalar_prefetch = 0 : i64, scratch_operands = 0 : i64, tpu.core_type = #tpu.core_type<tc>, window_params = [{transform_indices = @transform_0, window_bounds = array<i64: 32, 64>}, {pipeline_mode = #tpu.pipeline_mode<synchronous>, transform_indices = @transform_1, window_bounds = array<i64: 1, 64>}, {pipeline_mode = #tpu.pipeline_mode<synchronous>, transform_indices = @transform_2, window_bounds = array<i64: 1, 64>}, {pipeline_mode = #tpu.pipeline_mode<synchronous>, transform_indices = @transform_3, window_bounds = array<i64: 3, 64, 64>}, {pipeline_mode = #tpu.pipeline_mode<synchronous>, transform_indices = @transform_4, window_bounds = array<i64: 4, 16, 64>}, {pipeline_mode = #tpu.pipeline_mode<synchronous>, transform_indices = @transform_5, window_bounds = array<i64: 1, 64>}, {pipeline_mode = #tpu.pipeline_mode<synchronous>, transform_indices = @transform_6, window_bounds = array<i64: 1, 64>}, {pipeline_mode = #tpu.pipeline_mode<synchronous>, transform_indices = @transform_7, window_bounds = array<i64: 1, 64>}, {pipeline_mode = #tpu.pipeline_mode<synchronous>, transform_indices = @transform_8, window_bounds = array<i64: 64, 64>}, {pipeline_mode = #tpu.pipeline_mode<synchronous>, transform_indices = @transform_9, window_bounds = array<i64: 1, 64>}, {pipeline_mode = #tpu.pipeline_mode<synchronous>, transform_indices = @transform_10, window_bounds = array<i64: 1, 32>}, {pipeline_mode = #tpu.pipeline_mode<synchronous>, transform_indices = @transform_11, window_bounds = array<i64: 1, 32>}, {pipeline_mode = #tpu.pipeline_mode<synchronous>, transform_indices = @transform_12, window_bounds = array<i64: 32, 16>}, {pipeline_mode = #tpu.pipeline_mode<synchronous>, transform_indices = @transform_13, window_bounds = array<i64: 1, 16>}, {pipeline_mode = #tpu.pipeline_mode<synchronous>, transform_indices = @transform_14, window_bounds = array<i64: 16, 32>}, {pipeline_mode = #tpu.pipeline_mode<synchronous>, transform_indices = @transform_15, window_bounds = array<i64: 1, 32>}, {transform_indices = @transform_16, window_bounds = array<i64: 64, 32>}]} {
    %c0 = arith.constant 0 : index
    %c0_0 = arith.constant 0 : index
    %0 = vector.load %arg1[%c0, %c0_0] : memref<32x64xf32, #tpu.memory_space<vmem>>, vector<32x64xf32>
    %c0_1 = arith.constant 0 : index
    %c0_2 = arith.constant 0 : index
    %1 = vector.load %arg2[%c0_1, %c0_2] : memref<1x64xf32, #tpu.memory_space<vmem>>, vector<1x64xf32>
    %c0_3 = arith.constant 0 : index
    %c0_4 = arith.constant 0 : index
    %2 = vector.load %arg3[%c0_3, %c0_4] : memref<1x64xf32, #tpu.memory_space<vmem>>, vector<1x64xf32>
    %cst = arith.constant dense<0.000000e+00> : vector<32xf32>
    %3 = vector.multi_reduction <add>, %0, %cst [1] : vector<32x64xf32> to vector<32xf32>
    %4 = vector.shape_cast %3 : vector<32xf32> to vector<32x1xf32>
    %cst_5 = arith.constant 6.400000e+01 : f32
    %5 = vector.broadcast %cst_5 : f32 to vector<32x1xf32>
    %6 = arith.divf %4, %5 : vector<32x1xf32>
    %7 = vector.broadcast %6 : vector<32x1xf32> to vector<32x64xf32>
    %8 = arith.subf %0, %7 : vector<32x64xf32>
    %9 = arith.mulf %8, %8 : vector<32x64xf32>
    %cst_6 = arith.constant dense<0.000000e+00> : vector<32xf32>
    %10 = vector.multi_reduction <add>, %9, %cst_6 [1] : vector<32x64xf32> to vector<32xf32>
    %11 = vector.shape_cast %10 : vector<32xf32> to vector<32x1xf32>
    %cst_7 = arith.constant 6.400000e+01 : f32
    %12 = vector.broadcast %cst_7 : f32 to vector<32x1xf32>
    %13 = arith.divf %11, %12 : vector<32x1xf32>
    %14 = vector.broadcast %6 : vector<32x1xf32> to vector<32x64xf32>
    %15 = arith.subf %0, %14 : vector<32x64xf32>
    %cst_8 = arith.constant 9.99999974E-6 : f32
    %16 = vector.broadcast %cst_8 : f32 to vector<32x1xf32>
    %17 = arith.addf %13, %16 : vector<32x1xf32>
    %18 = math.rsqrt %17 : vector<32x1xf32>
    %19 = vector.broadcast %18 : vector<32x1xf32> to vector<32x64xf32>
    %20 = arith.mulf %15, %19 : vector<32x64xf32>
    %21 = vector.broadcast %1 : vector<1x64xf32> to vector<32x64xf32>
    %22 = arith.mulf %20, %21 : vector<32x64xf32>
    %23 = vector.broadcast %2 : vector<1x64xf32> to vector<32x64xf32>
    %24 = arith.addf %22, %23 : vector<32x64xf32>
    %c0_9 = arith.constant 0 : index
    %c0_10 = arith.constant 0 : index
    %c0_11 = arith.constant 0 : index
    %25 = vector.load %arg4[%c0_9, %c0_10, %c0_11] : memref<3x64x64xf32, #tpu.memory_space<vmem>>, vector<1x64x64xf32>
    %26 = vector.shape_cast %25 : vector<1x64x64xf32> to vector<64x64xf32>
    %cst_12 = arith.constant dense<0.000000e+00> : vector<32x64xf32>
    %27 = tpu.matmul %24, %26, %cst_12 {dimension_numbers = #tpu.dot_dimension_numbers<[1], [0], [0], [1], [0, 0, 1, 1], [], []>, precision = #tpu.contract_precision<fp32>} : vector<32x64xf32>, vector<64x64xf32>, vector<32x64xf32> -> vector<32x64xf32>
    %28 = vector.shape_cast %27 : vector<32x64xf32> to vector<1x32x64xf32>
    %c1 = arith.constant 1 : index
    %c0_13 = arith.constant 0 : index
    %c0_14 = arith.constant 0 : index
    %29 = vector.load %arg4[%c1, %c0_13, %c0_14] : memref<3x64x64xf32, #tpu.memory_space<vmem>>, vector<1x64x64xf32>
    %30 = vector.shape_cast %29 : vector<1x64x64xf32> to vector<64x64xf32>
    %cst_15 = arith.constant dense<0.000000e+00> : vector<32x64xf32>
    %31 = tpu.matmul %24, %30, %cst_15 {dimension_numbers = #tpu.dot_dimension_numbers<[1], [0], [0], [1], [0, 0, 1, 1], [], []>, precision = #tpu.contract_precision<fp32>} : vector<32x64xf32>, vector<64x64xf32>, vector<32x64xf32> -> vector<32x64xf32>
    %32 = vector.shape_cast %31 : vector<32x64xf32> to vector<1x32x64xf32>
    %c2 = arith.constant 2 : index
    %c0_16 = arith.constant 0 : index
    %c0_17 = arith.constant 0 : index
    %33 = vector.load %arg4[%c2, %c0_16, %c0_17] : memref<3x64x64xf32, #tpu.memory_space<vmem>>, vector<1x64x64xf32>
    %34 = vector.shape_cast %33 : vector<1x64x64xf32> to vector<64x64xf32>
    %cst_18 = arith.constant dense<0.000000e+00> : vector<32x64xf32>
    %35 = tpu.matmul %24, %34, %cst_18 {dimension_numbers = #tpu.dot_dimension_numbers<[1], [0], [0], [1], [0, 0, 1, 1], [], []>, precision = #tpu.contract_precision<fp32>} : vector<32x64xf32>, vector<64x64xf32>, vector<32x64xf32> -> vector<32x64xf32>
    %36 = vector.shape_cast %35 : vector<32x64xf32> to vector<1x32x64xf32>
    %c0_19 = arith.constant 0 : index
    %c0_20 = arith.constant 0 : index
    %37 = vector.load %arg6[%c0_19, %c0_20] : memref<1x64xf32, #tpu.memory_space<vmem>>, vector<1x64xf32>
    %38 = vector.extract_strided_slice %28 {offsets = [0, 0, 0], sizes = [1, 32, 16], strides = [1, 1, 1]} : vector<1x32x64xf32> to vector<1x32x16xf32>
    %39 = vector.extract_strided_slice %32 {offsets = [0, 0, 0], sizes = [1, 32, 16], strides = [1, 1, 1]} : vector<1x32x64xf32> to vector<1x32x16xf32>
    %40 = vector.extract_strided_slice %36 {offsets = [0, 0, 0], sizes = [1, 32, 16], strides = [1, 1, 1]} : vector<1x32x64xf32> to vector<1x32x16xf32>
    "tpu.trace_start"() <{level = 10 : i32, message = "bid,bjd->bij"}> : () -> ()
    %cst_21 = arith.constant dense<0.000000e+00> : vector<1x32x32xf32>
    %41 = tpu.matmul %38, %39, %cst_21 {dimension_numbers = #tpu.dot_dimension_numbers<[2], [2], [1], [1], [0, 0, 0, 1, 1, 1], [0], [0]>, precision = #tpu.contract_precision<fp32>} : vector<1x32x16xf32>, vector<1x32x16xf32>, vector<1x32x32xf32> -> vector<1x32x32xf32>
    "tpu.trace_stop"() : () -> ()
    %cst_22 = arith.constant 2.500000e-01 : f32
    %42 = vector.broadcast %cst_22 : f32 to vector<1x32x32xf32>
    %43 = arith.mulf %41, %42 : vector<1x32x32xf32>
    %cst_23 = arith.constant dense<0xFF800000> : vector<1x32xf32>
    %44 = vector.multi_reduction <maximumf>, %43, %cst_23 [2] : vector<1x32x32xf32> to vector<1x32xf32>
    %45 = vector.shape_cast %44 : vector<1x32xf32> to vector<1x32x1xf32>
    %46 = vector.broadcast %45 : vector<1x32x1xf32> to vector<1x32x32xf32>
    %47 = arith.subf %43, %46 : vector<1x32x32xf32>
    %48 = math.exp %47 : vector<1x32x32xf32>
    %cst_24 = arith.constant dense<0.000000e+00> : vector<1x32xf32>
    %49 = vector.multi_reduction <add>, %48, %cst_24 [2] : vector<1x32x32xf32> to vector<1x32xf32>
    %50 = vector.shape_cast %49 : vector<1x32xf32> to vector<1x32x1xf32>
    %51 = tpu.reciprocal %50 : vector<1x32x1xf32> -> vector<1x32x1xf32>
    %52 = vector.broadcast %51 : vector<1x32x1xf32> to vector<1x32x32xf32>
    %53 = arith.mulf %48, %52 : vector<1x32x32xf32>
    "tpu.trace_start"() <{level = 10 : i32, message = "bij,bjd->bid"}> : () -> ()
    %cst_25 = arith.constant dense<0.000000e+00> : vector<1x32x16xf32>
    %54 = tpu.matmul %53, %40, %cst_25 {dimension_numbers = #tpu.dot_dimension_numbers<[2], [1], [1], [2], [0, 0, 0, 1, 1, 2], [0], [0]>, precision = #tpu.contract_precision<fp32>} : vector<1x32x32xf32>, vector<1x32x16xf32>, vector<1x32x16xf32> -> vector<1x32x16xf32>
    "tpu.trace_stop"() : () -> ()
    %55 = vector.shape_cast %54 : vector<1x32x16xf32> to vector<32x16xf32>
    %c0_26 = arith.constant 0 : index
    %c0_27 = arith.constant 0 : index
    %c0_28 = arith.constant 0 : index
    %56 = vector.load %arg5[%c0_26, %c0_27, %c0_28] : memref<4x16x64xf32, #tpu.memory_space<vmem>>, vector<1x16x64xf32>
    %57 = vector.shape_cast %56 : vector<1x16x64xf32> to vector<16x64xf32>
    %cst_29 = arith.constant dense<0.000000e+00> : vector<32x64xf32>
    %58 = tpu.matmul %55, %57, %cst_29 {dimension_numbers = #tpu.dot_dimension_numbers<[1], [0], [0], [1], [0, 0, 1, 1], [], []>, precision = #tpu.contract_precision<fp32>} : vector<32x16xf32>, vector<16x64xf32>, vector<32x64xf32> -> vector<32x64xf32>
    %59 = vector.broadcast %37 : vector<1x64xf32> to vector<32x64xf32>
    %60 = arith.addf %59, %58 : vector<32x64xf32>
    %61 = vector.extract_strided_slice %28 {offsets = [0, 0, 16], sizes = [1, 32, 16], strides = [1, 1, 1]} : vector<1x32x64xf32> to vector<1x32x16xf32>
    %62 = vector.extract_strided_slice %32 {offsets = [0, 0, 16], sizes = [1, 32, 16], strides = [1, 1, 1]} : vector<1x32x64xf32> to vector<1x32x16xf32>
    %63 = vector.extract_strided_slice %36 {offsets = [0, 0, 16], sizes = [1, 32, 16], strides = [1, 1, 1]} : vector<1x32x64xf32> to vector<1x32x16xf32>
    "tpu.trace_start"() <{level = 10 : i32, message = "bid,bjd->bij"}> : () -> ()
    %cst_30 = arith.constant dense<0.000000e+00> : vector<1x32x32xf32>
    %64 = tpu.matmul %61, %62, %cst_30 {dimension_numbers = #tpu.dot_dimension_numbers<[2], [2], [1], [1], [0, 0, 0, 1, 1, 1], [0], [0]>, precision = #tpu.contract_precision<fp32>} : vector<1x32x16xf32>, vector<1x32x16xf32>, vector<1x32x32xf32> -> vector<1x32x32xf32>
    "tpu.trace_stop"() : () -> ()
    %cst_31 = arith.constant 2.500000e-01 : f32
    %65 = vector.broadcast %cst_31 : f32 to vector<1x32x32xf32>
    %66 = arith.mulf %64, %65 : vector<1x32x32xf32>
    %cst_32 = arith.constant dense<0xFF800000> : vector<1x32xf32>
    %67 = vector.multi_reduction <maximumf>, %66, %cst_32 [2] : vector<1x32x32xf32> to vector<1x32xf32>
    %68 = vector.shape_cast %67 : vector<1x32xf32> to vector<1x32x1xf32>
    %69 = vector.broadcast %68 : vector<1x32x1xf32> to vector<1x32x32xf32>
    %70 = arith.subf %66, %69 : vector<1x32x32xf32>
    %71 = math.exp %70 : vector<1x32x32xf32>
    %cst_33 = arith.constant dense<0.000000e+00> : vector<1x32xf32>
    %72 = vector.multi_reduction <add>, %71, %cst_33 [2] : vector<1x32x32xf32> to vector<1x32xf32>
    %73 = vector.shape_cast %72 : vector<1x32xf32> to vector<1x32x1xf32>
    %74 = tpu.reciprocal %73 : vector<1x32x1xf32> -> vector<1x32x1xf32>
    %75 = vector.broadcast %74 : vector<1x32x1xf32> to vector<1x32x32xf32>
    %76 = arith.mulf %71, %75 : vector<1x32x32xf32>
    "tpu.trace_start"() <{level = 10 : i32, message = "bij,bjd->bid"}> : () -> ()
    %cst_34 = arith.constant dense<0.000000e+00> : vector<1x32x16xf32>
    %77 = tpu.matmul %76, %63, %cst_34 {dimension_numbers = #tpu.dot_dimension_numbers<[2], [1], [1], [2], [0, 0, 0, 1, 1, 2], [0], [0]>, precision = #tpu.contract_precision<fp32>} : vector<1x32x32xf32>, vector<1x32x16xf32>, vector<1x32x16xf32> -> vector<1x32x16xf32>
    "tpu.trace_stop"() : () -> ()
    %78 = vector.shape_cast %77 : vector<1x32x16xf32> to vector<32x16xf32>
    %c1_35 = arith.constant 1 : index
    %c0_36 = arith.constant 0 : index
    %c0_37 = arith.constant 0 : index
    %79 = vector.load %arg5[%c1_35, %c0_36, %c0_37] : memref<4x16x64xf32, #tpu.memory_space<vmem>>, vector<1x16x64xf32>
    %80 = vector.shape_cast %79 : vector<1x16x64xf32> to vector<16x64xf32>
    %cst_38 = arith.constant dense<0.000000e+00> : vector<32x64xf32>
    %81 = tpu.matmul %78, %80, %cst_38 {dimension_numbers = #tpu.dot_dimension_numbers<[1], [0], [0], [1], [0, 0, 1, 1], [], []>, precision = #tpu.contract_precision<fp32>} : vector<32x16xf32>, vector<16x64xf32>, vector<32x64xf32> -> vector<32x64xf32>
    %82 = arith.addf %60, %81 : vector<32x64xf32>
    %83 = vector.extract_strided_slice %28 {offsets = [0, 0, 32], sizes = [1, 32, 16], strides = [1, 1, 1]} : vector<1x32x64xf32> to vector<1x32x16xf32>
    %84 = vector.extract_strided_slice %32 {offsets = [0, 0, 32], sizes = [1, 32, 16], strides = [1, 1, 1]} : vector<1x32x64xf32> to vector<1x32x16xf32>
    %85 = vector.extract_strided_slice %36 {offsets = [0, 0, 32], sizes = [1, 32, 16], strides = [1, 1, 1]} : vector<1x32x64xf32> to vector<1x32x16xf32>
    "tpu.trace_start"() <{level = 10 : i32, message = "bid,bjd->bij"}> : () -> ()
    %cst_39 = arith.constant dense<0.000000e+00> : vector<1x32x32xf32>
    %86 = tpu.matmul %83, %84, %cst_39 {dimension_numbers = #tpu.dot_dimension_numbers<[2], [2], [1], [1], [0, 0, 0, 1, 1, 1], [0], [0]>, precision = #tpu.contract_precision<fp32>} : vector<1x32x16xf32>, vector<1x32x16xf32>, vector<1x32x32xf32> -> vector<1x32x32xf32>
    "tpu.trace_stop"() : () -> ()
    %cst_40 = arith.constant 2.500000e-01 : f32
    %87 = vector.broadcast %cst_40 : f32 to vector<1x32x32xf32>
    %88 = arith.mulf %86, %87 : vector<1x32x32xf32>
    %cst_41 = arith.constant dense<0xFF800000> : vector<1x32xf32>
    %89 = vector.multi_reduction <maximumf>, %88, %cst_41 [2] : vector<1x32x32xf32> to vector<1x32xf32>
    %90 = vector.shape_cast %89 : vector<1x32xf32> to vector<1x32x1xf32>
    %91 = vector.broadcast %90 : vector<1x32x1xf32> to vector<1x32x32xf32>
    %92 = arith.subf %88, %91 : vector<1x32x32xf32>
    %93 = math.exp %92 : vector<1x32x32xf32>
    %cst_42 = arith.constant dense<0.000000e+00> : vector<1x32xf32>
    %94 = vector.multi_reduction <add>, %93, %cst_42 [2] : vector<1x32x32xf32> to vector<1x32xf32>
    %95 = vector.shape_cast %94 : vector<1x32xf32> to vector<1x32x1xf32>
    %96 = tpu.reciprocal %95 : vector<1x32x1xf32> -> vector<1x32x1xf32>
    %97 = vector.broadcast %96 : vector<1x32x1xf32> to vector<1x32x32xf32>
    %98 = arith.mulf %93, %97 : vector<1x32x32xf32>
    "tpu.trace_start"() <{level = 10 : i32, message = "bij,bjd->bid"}> : () -> ()
    %cst_43 = arith.constant dense<0.000000e+00> : vector<1x32x16xf32>
    %99 = tpu.matmul %98, %85, %cst_43 {dimension_numbers = #tpu.dot_dimension_numbers<[2], [1], [1], [2], [0, 0, 0, 1, 1, 2], [0], [0]>, precision = #tpu.contract_precision<fp32>} : vector<1x32x32xf32>, vector<1x32x16xf32>, vector<1x32x16xf32> -> vector<1x32x16xf32>
    "tpu.trace_stop"() : () -> ()
    %100 = vector.shape_cast %99 : vector<1x32x16xf32> to vector<32x16xf32>
    %c2_44 = arith.constant 2 : index
    %c0_45 = arith.constant 0 : index
    %c0_46 = arith.constant 0 : index
    %101 = vector.load %arg5[%c2_44, %c0_45, %c0_46] : memref<4x16x64xf32, #tpu.memory_space<vmem>>, vector<1x16x64xf32>
    %102 = vector.shape_cast %101 : vector<1x16x64xf32> to vector<16x64xf32>
    %cst_47 = arith.constant dense<0.000000e+00> : vector<32x64xf32>
    %103 = tpu.matmul %100, %102, %cst_47 {dimension_numbers = #tpu.dot_dimension_numbers<[1], [0], [0], [1], [0, 0, 1, 1], [], []>, precision = #tpu.contract_precision<fp32>} : vector<32x16xf32>, vector<16x64xf32>, vector<32x64xf32> -> vector<32x64xf32>
    %104 = arith.addf %82, %103 : vector<32x64xf32>
    %105 = vector.extract_strided_slice %28 {offsets = [0, 0, 48], sizes = [1, 32, 16], strides = [1, 1, 1]} : vector<1x32x64xf32> to vector<1x32x16xf32>
    %106 = vector.extract_strided_slice %32 {offsets = [0, 0, 48], sizes = [1, 32, 16], strides = [1, 1, 1]} : vector<1x32x64xf32> to vector<1x32x16xf32>
    %107 = vector.extract_strided_slice %36 {offsets = [0, 0, 48], sizes = [1, 32, 16], strides = [1, 1, 1]} : vector<1x32x64xf32> to vector<1x32x16xf32>
    "tpu.trace_start"() <{level = 10 : i32, message = "bid,bjd->bij"}> : () -> ()
    %cst_48 = arith.constant dense<0.000000e+00> : vector<1x32x32xf32>
    %108 = tpu.matmul %105, %106, %cst_48 {dimension_numbers = #tpu.dot_dimension_numbers<[2], [2], [1], [1], [0, 0, 0, 1, 1, 1], [0], [0]>, precision = #tpu.contract_precision<fp32>} : vector<1x32x16xf32>, vector<1x32x16xf32>, vector<1x32x32xf32> -> vector<1x32x32xf32>
    "tpu.trace_stop"() : () -> ()
    %cst_49 = arith.constant 2.500000e-01 : f32
    %109 = vector.broadcast %cst_49 : f32 to vector<1x32x32xf32>
    %110 = arith.mulf %108, %109 : vector<1x32x32xf32>
    %cst_50 = arith.constant dense<0xFF800000> : vector<1x32xf32>
    %111 = vector.multi_reduction <maximumf>, %110, %cst_50 [2] : vector<1x32x32xf32> to vector<1x32xf32>
    %112 = vector.shape_cast %111 : vector<1x32xf32> to vector<1x32x1xf32>
    %113 = vector.broadcast %112 : vector<1x32x1xf32> to vector<1x32x32xf32>
    %114 = arith.subf %110, %113 : vector<1x32x32xf32>
    %115 = math.exp %114 : vector<1x32x32xf32>
    %cst_51 = arith.constant dense<0.000000e+00> : vector<1x32xf32>
    %116 = vector.multi_reduction <add>, %115, %cst_51 [2] : vector<1x32x32xf32> to vector<1x32xf32>
    %117 = vector.shape_cast %116 : vector<1x32xf32> to vector<1x32x1xf32>
    %118 = tpu.reciprocal %117 : vector<1x32x1xf32> -> vector<1x32x1xf32>
    %119 = vector.broadcast %118 : vector<1x32x1xf32> to vector<1x32x32xf32>
    %120 = arith.mulf %115, %119 : vector<1x32x32xf32>
    "tpu.trace_start"() <{level = 10 : i32, message = "bij,bjd->bid"}> : () -> ()
    %cst_52 = arith.constant dense<0.000000e+00> : vector<1x32x16xf32>
    %121 = tpu.matmul %120, %107, %cst_52 {dimension_numbers = #tpu.dot_dimension_numbers<[2], [1], [1], [2], [0, 0, 0, 1, 1, 2], [0], [0]>, precision = #tpu.contract_precision<fp32>} : vector<1x32x32xf32>, vector<1x32x16xf32>, vector<1x32x16xf32> -> vector<1x32x16xf32>
    "tpu.trace_stop"() : () -> ()
    %122 = vector.shape_cast %121 : vector<1x32x16xf32> to vector<32x16xf32>
    %c3 = arith.constant 3 : index
    %c0_53 = arith.constant 0 : index
    %c0_54 = arith.constant 0 : index
    %123 = vector.load %arg5[%c3, %c0_53, %c0_54] : memref<4x16x64xf32, #tpu.memory_space<vmem>>, vector<1x16x64xf32>
    %124 = vector.shape_cast %123 : vector<1x16x64xf32> to vector<16x64xf32>
    %cst_55 = arith.constant dense<0.000000e+00> : vector<32x64xf32>
    %125 = tpu.matmul %122, %124, %cst_55 {dimension_numbers = #tpu.dot_dimension_numbers<[1], [0], [0], [1], [0, 0, 1, 1], [], []>, precision = #tpu.contract_precision<fp32>} : vector<32x16xf32>, vector<16x64xf32>, vector<32x64xf32> -> vector<32x64xf32>
    %126 = arith.addf %104, %125 : vector<32x64xf32>
    %127 = arith.addf %126, %0 : vector<32x64xf32>
    %c0_56 = arith.constant 0 : index
    %c0_57 = arith.constant 0 : index
    %128 = vector.load %arg7[%c0_56, %c0_57] : memref<1x64xf32, #tpu.memory_space<vmem>>, vector<1x64xf32>
    %c0_58 = arith.constant 0 : index
    %c0_59 = arith.constant 0 : index
    %129 = vector.load %arg8[%c0_58, %c0_59] : memref<1x64xf32, #tpu.memory_space<vmem>>, vector<1x64xf32>
    %cst_60 = arith.constant dense<0.000000e+00> : vector<32xf32>
    %130 = vector.multi_reduction <add>, %127, %cst_60 [1] : vector<32x64xf32> to vector<32xf32>
    %131 = vector.shape_cast %130 : vector<32xf32> to vector<32x1xf32>
    %cst_61 = arith.constant 6.400000e+01 : f32
    %132 = vector.broadcast %cst_61 : f32 to vector<32x1xf32>
    %133 = arith.divf %131, %132 : vector<32x1xf32>
    %134 = vector.broadcast %133 : vector<32x1xf32> to vector<32x64xf32>
    %135 = arith.subf %127, %134 : vector<32x64xf32>
    %136 = arith.mulf %135, %135 : vector<32x64xf32>
    %cst_62 = arith.constant dense<0.000000e+00> : vector<32xf32>
    %137 = vector.multi_reduction <add>, %136, %cst_62 [1] : vector<32x64xf32> to vector<32xf32>
    %138 = vector.shape_cast %137 : vector<32xf32> to vector<32x1xf32>
    %cst_63 = arith.constant 6.400000e+01 : f32
    %139 = vector.broadcast %cst_63 : f32 to vector<32x1xf32>
    %140 = arith.divf %138, %139 : vector<32x1xf32>
    %141 = vector.broadcast %133 : vector<32x1xf32> to vector<32x64xf32>
    %142 = arith.subf %127, %141 : vector<32x64xf32>
    %cst_64 = arith.constant 9.99999974E-6 : f32
    %143 = vector.broadcast %cst_64 : f32 to vector<32x1xf32>
    %144 = arith.addf %140, %143 : vector<32x1xf32>
    %145 = math.rsqrt %144 : vector<32x1xf32>
    %146 = vector.broadcast %145 : vector<32x1xf32> to vector<32x64xf32>
    %147 = arith.mulf %142, %146 : vector<32x64xf32>
    %148 = vector.broadcast %128 : vector<1x64xf32> to vector<32x64xf32>
    %149 = arith.mulf %147, %148 : vector<32x64xf32>
    %150 = vector.broadcast %129 : vector<1x64xf32> to vector<32x64xf32>
    %151 = arith.addf %149, %150 : vector<32x64xf32>
    %c0_65 = arith.constant 0 : index
    %c0_66 = arith.constant 0 : index
    %152 = vector.load %arg9[%c0_65, %c0_66] : memref<64x64xf32, #tpu.memory_space<vmem>>, vector<64x64xf32>
    %cst_67 = arith.constant dense<0.000000e+00> : vector<32x64xf32>
    %153 = tpu.matmul %151, %152, %cst_67 {dimension_numbers = #tpu.dot_dimension_numbers<[1], [0], [0], [1], [0, 0, 1, 1], [], []>, precision = #tpu.contract_precision<fp32>} : vector<32x64xf32>, vector<64x64xf32>, vector<32x64xf32> -> vector<32x64xf32>
    %c0_68 = arith.constant 0 : index
    %c0_69 = arith.constant 0 : index
    %154 = vector.load %arg10[%c0_68, %c0_69] : memref<1x64xf32, #tpu.memory_space<vmem>>, vector<1x64xf32>
    %155 = vector.broadcast %154 : vector<1x64xf32> to vector<32x64xf32>
    %156 = arith.addf %153, %155 : vector<32x64xf32>
    %157 = vector.shape_cast %156 : vector<32x64xf32> to vector<1x32x64xf32>
    %158 = tpu.transpose %157, [0, 2, 1] : vector<1x32x64xf32> -> vector<1x64x32xf32>
    %159 = vector.shape_cast %158 : vector<1x64x32xf32> to vector<64x32xf32>
    %c0_70 = arith.constant 0 : index
    %c0_71 = arith.constant 0 : index
    %160 = vector.load %arg11[%c0_70, %c0_71] : memref<1x32xf32, #tpu.memory_space<vmem>>, vector<1x32xf32>
    %c0_72 = arith.constant 0 : index
    %c0_73 = arith.constant 0 : index
    %161 = vector.load %arg12[%c0_72, %c0_73] : memref<1x32xf32, #tpu.memory_space<vmem>>, vector<1x32xf32>
    %cst_74 = arith.constant dense<0.000000e+00> : vector<64xf32>
    %162 = vector.multi_reduction <add>, %159, %cst_74 [1] : vector<64x32xf32> to vector<64xf32>
    %163 = vector.shape_cast %162 : vector<64xf32> to vector<64x1xf32>
    %cst_75 = arith.constant 3.200000e+01 : f32
    %164 = vector.broadcast %cst_75 : f32 to vector<64x1xf32>
    %165 = arith.divf %163, %164 : vector<64x1xf32>
    %166 = vector.broadcast %165 : vector<64x1xf32> to vector<64x32xf32>
    %167 = arith.subf %159, %166 : vector<64x32xf32>
    %168 = arith.mulf %167, %167 : vector<64x32xf32>
    %cst_76 = arith.constant dense<0.000000e+00> : vector<64xf32>
    %169 = vector.multi_reduction <add>, %168, %cst_76 [1] : vector<64x32xf32> to vector<64xf32>
    %170 = vector.shape_cast %169 : vector<64xf32> to vector<64x1xf32>
    %cst_77 = arith.constant 3.200000e+01 : f32
    %171 = vector.broadcast %cst_77 : f32 to vector<64x1xf32>
    %172 = arith.divf %170, %171 : vector<64x1xf32>
    %173 = vector.broadcast %165 : vector<64x1xf32> to vector<64x32xf32>
    %174 = arith.subf %159, %173 : vector<64x32xf32>
    %cst_78 = arith.constant 9.99999974E-6 : f32
    %175 = vector.broadcast %cst_78 : f32 to vector<64x1xf32>
    %176 = arith.addf %172, %175 : vector<64x1xf32>
    %177 = math.rsqrt %176 : vector<64x1xf32>
    %178 = vector.broadcast %177 : vector<64x1xf32> to vector<64x32xf32>
    %179 = arith.mulf %174, %178 : vector<64x32xf32>
    %180 = vector.broadcast %160 : vector<1x32xf32> to vector<64x32xf32>
    %181 = arith.mulf %179, %180 : vector<64x32xf32>
    %182 = vector.broadcast %161 : vector<1x32xf32> to vector<64x32xf32>
    %183 = arith.addf %181, %182 : vector<64x32xf32>
    %c0_79 = arith.constant 0 : index
    %c0_80 = arith.constant 0 : index
    %184 = vector.load %arg13[%c0_79, %c0_80] : memref<32x16xf32, #tpu.memory_space<vmem>>, vector<32x16xf32>
    %cst_81 = arith.constant dense<0.000000e+00> : vector<64x16xf32>
    %185 = tpu.matmul %183, %184, %cst_81 {dimension_numbers = #tpu.dot_dimension_numbers<[1], [0], [0], [1], [0, 0, 1, 1], [], []>, precision = #tpu.contract_precision<fp32>} : vector<64x32xf32>, vector<32x16xf32>, vector<64x16xf32> -> vector<64x16xf32>
    %c0_82 = arith.constant 0 : index
    %c0_83 = arith.constant 0 : index
    %186 = vector.load %arg14[%c0_82, %c0_83] : memref<1x16xf32, #tpu.memory_space<vmem>>, vector<1x16xf32>
    %187 = vector.broadcast %186 : vector<1x16xf32> to vector<64x16xf32>
    %188 = arith.addf %185, %187 : vector<64x16xf32>
    %cst_84 = arith.constant 5.000000e-01 : f32
    %189 = vector.broadcast %cst_84 : f32 to vector<64x16xf32>
    %190 = arith.mulf %189, %188 : vector<64x16xf32>
    %cst_85 = arith.constant 4.471500e-02 : f32
    %191 = vector.broadcast %cst_85 : f32 to vector<64x16xf32>
    %192 = arith.mulf %191, %188 : vector<64x16xf32>
    %193 = arith.mulf %192, %188 : vector<64x16xf32>
    %194 = arith.mulf %193, %188 : vector<64x16xf32>
    %195 = arith.addf %188, %194 : vector<64x16xf32>
    %cst_86 = arith.constant 0.797884583 : f32
    %196 = vector.broadcast %cst_86 : f32 to vector<64x16xf32>
    %197 = arith.mulf %196, %195 : vector<64x16xf32>
    %198 = math.tanh %197 : vector<64x16xf32>
    %cst_87 = arith.constant 1.000000e+00 : f32
    %199 = vector.broadcast %cst_87 : f32 to vector<64x16xf32>
    %200 = arith.addf %199, %198 : vector<64x16xf32>
    %201 = arith.mulf %190, %200 : vector<64x16xf32>
    %c0_88 = arith.constant 0 : index
    %c0_89 = arith.constant 0 : index
    %202 = vector.load %arg15[%c0_88, %c0_89] : memref<16x32xf32, #tpu.memory_space<vmem>>, vector<16x32xf32>
    %cst_90 = arith.constant dense<0.000000e+00> : vector<64x32xf32>
    %203 = tpu.matmul %201, %202, %cst_90 {dimension_numbers = #tpu.dot_dimension_numbers<[1], [0], [0], [1], [0, 0, 1, 1], [], []>, precision = #tpu.contract_precision<fp32>} : vector<64x16xf32>, vector<16x32xf32>, vector<64x32xf32> -> vector<64x32xf32>
    %c0_91 = arith.constant 0 : index
    %c0_92 = arith.constant 0 : index
    %204 = vector.load %arg16[%c0_91, %c0_92] : memref<1x32xf32, #tpu.memory_space<vmem>>, vector<1x32xf32>
    %205 = vector.broadcast %204 : vector<1x32xf32> to vector<64x32xf32>
    %206 = arith.addf %203, %205 : vector<64x32xf32>
    %207 = arith.addf %206, %159 : vector<64x32xf32>
    %c0_93 = arith.constant 0 : index
    %c0_94 = arith.constant 0 : index
    %208 = vector.load %arg17[%c0_93, %c0_94] : memref<64x32xf32, #tpu.memory_space<vmem>>, vector<64x32xf32>
    tpu.vector_store %arg17[%c0_93, %c0_94], %207 {strides = array<i32>} : memref<64x32xf32, #tpu.memory_space<vmem>>, vector<64x32xf32>,
    return
  }
  func.func @transform_0(%arg0: i32) -> (i32, i32) {
    %c0_i32 = arith.constant 0 : i32
    %c0_i32_0 = arith.constant 0 : i32
    return %arg0, %c0_i32 : i32, i32
  }
  func.func @transform_1(%arg0: i32) -> (i32, i32) {
    %c0_i32 = arith.constant 0 : i32
    %c0_i32_0 = arith.constant 0 : i32
    %c0_i32_1 = arith.constant 0 : i32
    return %c0_i32, %c0_i32_0 : i32, i32
  }
  func.func @transform_2(%arg0: i32) -> (i32, i32) {
    %c0_i32 = arith.constant 0 : i32
    %c0_i32_0 = arith.constant 0 : i32
    %c0_i32_1 = arith.constant 0 : i32
    return %c0_i32, %c0_i32_0 : i32, i32
  }
  func.func @transform_3(%arg0: i32) -> (i32, i32, i32) {
    %c0_i32 = arith.constant 0 : i32
    %c0_i32_0 = arith.constant 0 : i32
    %c0_i32_1 = arith.constant 0 : i32
    %c0_i32_2 = arith.constant 0 : i32
    return %c0_i32, %c0_i32_0, %c0_i32_1 : i32, i32, i32
  }
  func.func @transform_4(%arg0: i32) -> (i32, i32, i32) {
    %c0_i32 = arith.constant 0 : i32
    %c0_i32_0 = arith.constant 0 : i32
    %c0_i32_1 = arith.constant 0 : i32
    %c0_i32_2 = arith.constant 0 : i32
    return %c0_i32, %c0_i32_0, %c0_i32_1 : i32, i32, i32
  }
  func.func @transform_5(%arg0: i32) -> (i32, i32) {
    %c0_i32 = arith.constant 0 : i32
    %c0_i32_0 = arith.constant 0 : i32
    %c0_i32_1 = arith.constant 0 : i32
    return %c0_i32, %c0_i32_0 : i32, i32
  }
  func.func @transform_6(%arg0: i32) -> (i32, i32) {
    %c0_i32 = arith.constant 0 : i32
    %c0_i32_0 = arith.constant 0 : i32
    %c0_i32_1 = arith.constant 0 : i32
    return %c0_i32, %c0_i32_0 : i32, i32
  }
  func.func @transform_7(%arg0: i32) -> (i32, i32) {
    %c0_i32 = arith.constant 0 : i32
    %c0_i32_0 = arith.constant 0 : i32
    %c0_i32_1 = arith.constant 0 : i32
    return %c0_i32, %c0_i32_0 : i32, i32
  }
  func.func @transform_8(%arg0: i32) -> (i32, i32) {
    %c0_i32 = arith.constant 0 : i32
    %c0_i32_0 = arith.constant 0 : i32
    %c0_i32_1 = arith.constant 0 : i32
    return %c0_i32, %c0_i32_0 : i32, i32
  }
  func.func @transform_9(%arg0: i32) -> (i32, i32) {
    %c0_i32 = arith.constant 0 : i32
    %c0_i32_0 = arith.constant 0 : i32
    %c0_i32_1 = arith.constant 0 : i32
    return %c0_i32, %c0_i32_0 : i32, i32
  }
  func.func @transform_10(%arg0: i32) -> (i32, i32) {
    %c0_i32 = arith.constant 0 : i32
    %c0_i32_0 = arith.constant 0 : i32
    %c0_i32_1 = arith.constant 0 : i32
    return %c0_i32, %c0_i32_0 : i32, i32
  }
  func.func @transform_11(%arg0: i32) -> (i32, i32) {
    %c0_i32 = arith.constant 0 : i32
    %c0_i32_0 = arith.constant 0 : i32
    %c0_i32_1 = arith.constant 0 : i32
    return %c0_i32, %c0_i32_0 : i32, i32
  }
  func.func @transform_12(%arg0: i32) -> (i32, i32) {
    %c0_i32 = arith.constant 0 : i32
    %c0_i32_0 = arith.constant 0 : i32
    %c0_i32_1 = arith.constant 0 : i32
    return %c0_i32, %c0_i32_0 : i32, i32
  }
  func.func @transform_13(%arg0: i32) -> (i32, i32) {
    %c0_i32 = arith.constant 0 : i32
    %c0_i32_0 = arith.constant 0 : i32
    %c0_i32_1 = arith.constant 0 : i32
    return %c0_i32, %c0_i32_0 : i32, i32
  }
  func.func @transform_14(%arg0: i32) -> (i32, i32) {
    %c0_i32 = arith.constant 0 : i32
    %c0_i32_0 = arith.constant 0 : i32
    %c0_i32_1 = arith.constant 0 : i32
    return %c0_i32, %c0_i32_0 : i32, i32
  }
  func.func @transform_15(%arg0: i32) -> (i32, i32) {
    %c0_i32 = arith.constant 0 : i32
    %c0_i32_0 = arith.constant 0 : i32
    %c0_i32_1 = arith.constant 0 : i32
    return %c0_i32, %c0_i32_0 : i32, i32
  }
  func.func @transform_16(%arg0: i32) -> (i32, i32) {
    %c0_i32 = arith.constant 0 : i32
    %c0_i32_0 = arith.constant 0 : i32
    return %arg0, %c0_i32 : i32, i32
  }
}

</mosaic_0001>

<bundles_post_ra>
// kernel: decoder_share_forward.1
= control target key start
LH: loop header
LB: loop body
LE: loop exit
PB: predicated region body
PF: predicated region fallthrough
CT: control target
= control target key end

     0   :  { %s15957_s21 = smov 0   ;;  %s18884_s0 = inlined_call_operand.vmem [shape: f32[64,64], index: 0, kind: input, shape index: {}]   ;;  %s18885_s1 = inlined_call_operand.vmem [shape: f32[1,64], index: 1, kind: input, shape index: {}]   ;;  %s18886_s2 = inlined_call_operand.vmem [shape: f32[1,64], index: 2, kind: input, shape index: {}]   ;;  %s18887_s3 = inlined_call_operand.vmem [shape: f32[3,64,64], index: 3, kind: input, shape index: {}]   ;;  %s18888_s4 = inlined_call_operand.vmem [shape: f32[4,16,64], index: 4, kind: input, shape index: {}]   ;;  %s18889_s5 = inlined_call_operand.vmem [shape: f32[1,64], index: 5, kind: input, shape index: {}]   ;;  %s18890_s6 = inlined_call_operand.vmem [shape: f32[1,64], index: 6, kind: input, shape index: {}]   ;;  %s18891_s7 = inlined_call_operand.vmem [shape: f32[1,64], index: 7, kind: input, shape index: {}]   ;;  %s18892_s8 = inlined_call_operand.vmem [shape: f32[64,64], index: 8, kind: input, shape index: {}]   ;;  %s18893_s9 = inlined_call_operand.vmem [shape: f32[1,64], index: 9, kind: input, shape index: {}]   ;;  %s18894_s10 = inlined_call_operand.vmem [shape: f32[1,32], index: 10, kind: input, shape index: {}]   ;;  %s18895_s11 = inlined_call_operand.vmem [shape: f32[1,32], index: 11, kind: input, shape index: {}]   ;;  %s18896_s12 = inlined_call_operand.vmem [shape: f32[32,16], index: 12, kind: input, shape index: {}]   ;;  %s18897_s13 = inlined_call_operand.vmem [shape: f32[1,16], index: 13, kind: input, shape index: {}]   ;;  %s18898_s14 = inlined_call_operand.vmem [shape: f32[16,32], index: 14, kind: input, shape index: {}]   ;;  %s18899_s15 = inlined_call_operand.vmem [shape: f32[1,32], index: 15, kind: input, shape index: {}]   ;;  %s18900_s16 = inlined_call_operand.vmem [shape: f32[128,32], index: 16, kind: output, shape index: {}]  }
   0x1   :  { %18903 = sst [smem:[#allocation10_spill]] %s18884_s0 }
   0x2 LB: > { %s13085_s22 = sadd.s32 4294967295, %s15867_s21   ;;  %p13089_p0 = scmp.ge.s32.totalorder %s15867_s21, 1  ;;  %s15867_s21 = sphi %s15957_s21, %s26_s21  }
   0x3   : > { %p463_p1 = scmp.lt.s32.totalorder %s15867_s21, 3 }
   0x5   : > { %p464_p2 = pnand %p13089_p0, %p463_p1 }
   0x7   : > { %467 = sbr.rel (%p464_p2) target bundleno = 5694 (0x163e), region = 84 }
   0xc   : > { %s13090_s23 = sshll.u32 %s13085_s22, 2  ;;  %vm531_vm0 = vcmask 523264   ;;  %s18904_s27 = sld [smem:[#allocation10_spill]]  ;;  %v612_v28 = vld [vmem:[%s18887_s3 + $0x38] sm:$0xff]  ;;  %v611_v30 = vld [vmem:[%s18887_s3 + $0x30] sm:$0xff]  ;;  %v610_v33 = vld [vmem:[%s18887_s3 + $0x28] sm:$0xff] }
   0xd   : > { %p514_p3 = scmp.lt.s32.totalorder %s13090_s23, 7  ;;  %v16003_v29 = vand.u32 4294901760, %v612_v28  ;;  %v16011_v32 = vand.u32 4294901760, %v611_v30  ;;  %v16024_v36 = vand.u32 4294901760, %v610_v33  ;;  %v609_v37 = vld [vmem:[%s18887_s3 + $0x20] sm:$0xff]  ;;  %v608_v42 = vld [vmem:[%s18887_s3 + $0x18] sm:$0xff] }
   0xe   : > { %v16039_v41 = vand.u32 4294901760, %v609_v37  ;;  %v16055_v47 = vand.u32 4294901760, %v608_v42  ;;  %v607_v48 = vld [vmem:[%s18887_s3 + $0x10] sm:$0xff]  ;;  %v606_v54 = vld [vmem:[%s18887_s3 + $0x8] sm:$0xff]  ;;  %v605_v60 = vld [vmem:[%s18887_s3] sm:$0xff]  ;;  %vm2642_vm1 = vcmask 130048  }
   0xf   : > { %s18926_s23 = smov (!%p514_p3, %s13090_s23), 7  ;;  %v16009_v31 = vsub.f32 %v612_v28, %v16003_v29  ;;  %14076 = vmatprep.subr.mxu0 %v16003_v29  ;;  %v16022_v35 = vsub.f32 %v611_v30, %v16011_v32  ;;  %v16037_v40 = vsub.f32 %v610_v33, %v16024_v36  ;;  %v16066_v52 = vand.u32 4294901760, %v607_v48  ;;  %v13094_v30 = vld [vmem:[%s18885_s1] ss:$0 sm:$0xff]  ;;  %s15869_s18 = smov 112  }
  0x10   : > { %s13091_s24 = sshll.u32 %s18926_s23, 3  ;;  %14077 = vmatpush3.msra.mxu0 %v16003_v29  ;;  %v16052_v46 = vsub.f32 %v609_v37, %v16039_v41  ;;  %v16069_v53 = vsub.f32 %v608_v42, %v16055_v47  ;;  %v16080_v58 = vand.u32 4294901760, %v606_v54  ;;  %v13095_v37 = vld [vmem:[%s18886_s2] ss:$0 sm:$0xff]  ;;  %vm3285_vm2 = vcmask 261120   ;;  %s15870_s25 = smov 96  }
  0x11   : > { %v16019_v34 = vand.u32 4294901760, %v16009_v31  ;;  %14078 = vmatprep.subr.mxu0 %v16011_v32  ;;  %v16034_v39 = vand.u32 4294901760, %v16022_v35  ;;  %v16049_v45 = vand.u32 4294901760, %v16037_v40  ;;  %v16078_v57 = vsub.f32 %v607_v48, %v16066_v52  ;;  %s13092_s19 = sshll.u32 %s13085_s22, 3 }
  0x12   : > { %s15970_s28 = scalar_lea.vmem %s18904_s27, %s13091_s24  ;;  %14079 = vmatpush3.msra.mxu0 %v16011_v32  ;;  %v16064_v51 = vand.u32 4294901760, %v16052_v46  ;;  %v16084_v59 = vand.u32 4294901760, %v16069_v53  ;;  %v16094_v63 = vsub.f32 %v606_v54, %v16080_v58  ;;  %p520_p4 = scmp.lt.s32.totalorder %s13092_s19, 15 }
  0x13   : > { %v525_v0 = vld [vmem:[%s15970_s28] sm:$0xff]  ;;  %v527_v1 = vld [vmem:[%s15970_s28 + $0x10] sm:$0xff]  ;;  %v526_v2 = vld [vmem:[%s15970_s28 + $0x8] sm:$0xff]  ;;  %v758_v38 = vsub.f32 %v16009_v31, %v16019_v34  ;;  %14080 = vmatprep.subr.mxu0 %v16024_v36  ;;  %v765_v44 = vsub.f32 %v16022_v35, %v16034_v39  ;;  %v772_v50 = vsub.f32 %v16037_v40, %v16049_v45  ;;  %v16091_v62 = vand.u32 4294901760, %v16078_v57 }
  0x14   : > { %v532_v3 = vsel %vm531_vm0, %v525_v0, 0.0  ;;  %v538_v4 = vsel %vm531_vm0, %v527_v1, 0.0  ;;  %v528_v5 = vld [vmem:[%s15970_s28 + $0x18] sm:$0xff]  ;;  %v535_v6 = vsel %vm531_vm0, %v526_v2, 0.0  ;;  %14081 = vmatpush3.msra.mxu0 %v16024_v36  ;;  %v779_v56 = vsub.f32 %v16052_v46, %v16064_v51  ;;  %s18928_s19 = smov (!%p520_p4, %s13092_s19), 15 }
  0x15   : > { %533 = vadd.xlane.f32.xlu0 %v532_v3  ;;  %539 = vadd.xlane.f32.xlu1 %v538_v4  ;;  %v541_v7 = vsel %vm531_vm0, %v528_v5, 0.0  ;;  %v759_v43 = vand.u32 4294901760, %v758_v38  ;;  %v766_v49 = vand.u32 4294901760, %v765_v44  ;;  %v773_v55 = vand.u32 4294901760, %v772_v50  ;;  %s13093_s22 = sshll.u32 %s18928_s19, 3 }
  0x16   : > { %14082 = vmatprep.subr.mxu0 %v16039_v41  ;;  %v780_v61 = vand.u32 4294901760, %v779_v56  ;;  %v16105_v3 = vand.u32 4294901760, %v16094_v63  ;;  %s18851_s24 = scalar_lea.vmem %s18900_s16, %s13093_s22 }
  0x17   : > { %14083 = vmatpush3.msra.mxu0 %v16039_v41  ;;  %14098 = vmatprep.subr.mxu1 %v759_v43 }
  0x18   : > { %14099 = vmatpush3.msra.mxu1 %v759_v43  ;;  %14084 = vmatprep.subr.mxu0 %v16055_v47 }
  0x19   : > { %536 = vadd.xlane.f32.xlu0 %v535_v6  ;;  %542 = vadd.xlane.f32.xlu1 %v541_v7  ;;  %v800_v7 = vsub.f32 %v16094_v63, %v16105_v3 }
  0x1a   : > { %14100 = vmatprep.subr.mxu1 %v766_v49  ;;  %14085 = vmatpush3.msra.mxu0 %v16055_v47 }
  0x1b   : > { %14101 = vmatpush3.msra.mxu1 %v766_v49  ;;  %14086 = vmatprep.subr.mxu0 %v16066_v52 }
  0x1c   : > { %14102 = vmatprep.subr.mxu1 %v773_v55  ;;  %14087 = vmatpush3.msra.mxu0 %v16066_v52 }
  0x1d   : > { %14103 = vmatpush3.msra.mxu1 %v773_v55  ;;  %14088 = vmatprep.subr.mxu0 %v16080_v58 }
  0x1e   : > { %14104 = vmatprep.subr.mxu1 %v780_v61  ;;  %14089 = vmatpush3.msra.mxu0 %v16080_v58 }
  0x1f   : > { %14105 = vmatpush3.msra.mxu1 %v780_v61 }
  0x9e   : > { %v534_v8 = vpop.xlane.xlu0 %533  ;;  %v540_v9 = vpop.xlane.xlu1 %539 }
  0x9f   : > { %v545_v10 = vmul.f32 0.015625, %v534_v8  ;;  %v547_v11 = vmul.f32 0.015625, %v540_v9  ;;  %v801_v9 = vand.u32 4294901760, %v800_v7 }
  0xa1   : > { %v15980_v12 = vsub.f32 %v525_v0, %v545_v10  ;;  %v15982_v13 = vsub.f32 %v527_v1, %v547_v11  ;;  %v16096_v0 = vand.u32 4294901760, %v605_v60  ;;  %v786_v1 = vsub.f32 %v16069_v53, %v16084_v59 }
  0xa2   : > { %v537_v14 = vpop.xlane.xlu0 %536  ;;  %v543_v15 = vpop.xlane.xlu1 %542 }
  0xa3   : > { %v546_v16 = vmul.f32 0.015625, %v537_v14  ;;  %v548_v17 = vmul.f32 0.015625, %v543_v15  ;;  %v553_v18 = vmul.f32 %v15980_v12, %v15980_v12  ;;  %v555_v19 = vmul.f32 %v15982_v13, %v15982_v13  ;;  %14090 = vmatprep.subr.mxu0 %v16096_v0 }
  0xa4   : > { %v16108_v4 = vsub.f32 %v605_v60, %v16096_v0  ;;  %14091 = vmatpush3.msra.mxu0 %v16096_v0 }
  0xa5   : > { %v15988_v20 = vsub.f32 %v526_v2, %v546_v16  ;;  %v15990_v21 = vsub.f32 %v528_v5, %v548_v17  ;;  %v557_v22 = vsel %vm531_vm0, %v553_v18, 0.0  ;;  %v563_v23 = vsel %vm531_vm0, %v555_v19, 0.0  ;;  %14120 = vmatprep.subr.mxu0 %v16009_v31 }
  0xa6   : > { %558 = vadd.xlane.f32.xlu0 %v557_v22  ;;  %v793_v2 = vsub.f32 %v16078_v57, %v16091_v62  ;;  %v787_v5 = vand.u32 4294901760, %v786_v1  ;;  %v16115_v8 = vand.u32 4294901760, %v16108_v4 }
  0xa7   : > { %v554_v24 = vmul.f32 %v15988_v20, %v15988_v20  ;;  %v556_v25 = vmul.f32 %v15990_v21, %v15990_v21 }
  0xa8   : > { %v794_v6 = vand.u32 4294901760, %v793_v2  ;;  %14106 = vmatprep.subr.mxu1 %v787_v5  ;;  %v807_v10 = vsub.f32 %v16108_v4, %v16115_v8 }
  0xa9   : > { %v560_v26 = vsel %vm531_vm0, %v554_v24, 0.0  ;;  %v566_v27 = vsel %vm531_vm0, %v556_v25, 0.0  ;;  %14107 = vmatpush3.msra.mxu1 %v787_v5 }
  0xaa   : > { %564 = vadd.xlane.f32.xlu0 %v563_v23  ;;  %561 = vadd.xlane.f32.xlu1 %v560_v26  ;;  %v808_v11 = vand.u32 4294901760, %v807_v10 }
  0xab   : > { %14108 = vmatprep.subr.mxu1 %v794_v6 }
  0xac   : > { %14109 = vmatpush3.msra.mxu1 %v794_v6 }
  0xad   : > { %14110 = vmatprep.subr.mxu1 %v801_v9 }
  0xae   : > { %567 = vadd.xlane.f32.xlu1 %v566_v27  ;;  %14111 = vmatpush3.msra.mxu1 %v801_v9 }
  0xaf   : > { %14112 = vmatprep.subr.mxu1 %v808_v11 }
  0xb0   : > { %14113 = vmatpush3.msra.mxu1 %v808_v11 }
  0xb1   : > { %14142 = vmatprep.subr.mxu1 %v16003_v29 }
 0x12f   : > { %v559_v14 = vpop.xlane.xlu0 %558 }
 0x130   : > { %v569_v15 = vmul.f32 0.015625, %v559_v14 }
 0x132   : > { %v573_v16 = vadd.f32 1e-05, %v569_v15 }
 0x133   : > { %v562_v17 = vpop.xlane.xlu1 %561  ;;  %v565_v18 = vpop.xlane.xlu0 %564 }
 0x134   : > { %15744 = vrsqrt.f32 %v573_v16  ;;  %v570_v19 = vmul.f32 0.015625, %v562_v17  ;;  %v571_v22 = vmul.f32 0.015625, %v565_v18 }
 0x136   : > { %v574_v23 = vadd.f32 1e-05, %v570_v19  ;;  %v575_v24 = vadd.f32 1e-05, %v571_v22 }
 0x137   : > { %v568_v25 = vpop.xlane.xlu1 %567 }
 0x138   : > { %15746 = vrsqrt.f32 %v574_v23  ;;  %v572_v26 = vmul.f32 0.015625, %v568_v25 }
 0x139   : > { %15748 = vrsqrt.f32 %v575_v24 }
 0x13a   : > { %v576_v27 = vadd.f32 1e-05, %v572_v26 }
 0x13c   : > { %15750 = vrsqrt.f32 %v576_v27 }
 0x141   : > { %v15745_v28 = vpop.eup %15744 }
 0x142   : > { %v581_v33 = vmul.f32 %v15745_v28, %v15980_v12 }
 0x144   : > { %v591_v38 = vmul.f32 %v13094_v30, %v581_v33  ;;  %v13101_v33 = vld [vmem:[%s18887_s3 + $0x68] sm:$0xff] }
 0x145   : > { %v15747_v42 = vpop.eup %15746 }
 0x146   : > { %v15749_v43 = vpop.eup %15748  ;;  %v601_v44 = vadd.f32 %v13095_v37, %v591_v38  ;;  %v582_v48 = vmul.f32 %v15747_v42, %v15988_v20  ;;  %v13099_v38 = vld [vmem:[%s18887_s3 + $0x58] sm:$0xff]  ;;  %v13098_v42 = vld [vmem:[%s18887_s3 + $0x50] sm:$0xff] }
 0x147   : > { %v583_v49 = vmul.f32 %v15749_v43, %v15982_v13 }
 0x148   : > { %v614_v50 = vsel %vm531_vm0, %v601_v44, 0  ;;  %v592_v54 = vmul.f32 %v13094_v30, %v582_v48  ;;  %v16292_v48 = vand.u32 4294901760, %v13098_v42 }
 0x149   : > { %v15751_v55 = vpop.eup %15750  ;;  %v16132_v56 = vand.u32 4294901760, %v614_v50  ;;  %v593_v60 = vmul.f32 %v13094_v30, %v583_v49  ;;  %v13097_v49 = vld [vmem:[%s18887_s3 + $0x48] sm:$0xff] }
 0x14a   : > { %v602_v12 = vadd.f32 %v13095_v37, %v592_v54  ;;  %v584_v61 = vmul.f32 %v15751_v55, %v15990_v21  ;;  %v13096_v54 = vld [vmem:[%s18887_s3 + $0x40] sm:$0xff] }
 0x14b   : > { %v603_v1 = vadd.f32 %v13095_v37, %v593_v60  ;;  %14114 = vmatprep.mubr.f32.mxu1 %v16132_v56  ;;  %v16137_v2 = vsub.f32 %v614_v50, %v16132_v56  ;;  %v16322_v60 = vsub.f32 %v13098_v42, %v16292_v48  ;;  %v13107_v42 = vld [vmem:[%s18887_s3 + $0x98] sm:$0xff] }
 0x14c   : > { %v617_v20 = vsel %vm531_vm0, %v602_v12, 0  ;;  %v594_v5 = vmul.f32 %v13094_v30, %v584_v61  ;;  %v16328_v12 = vand.u32 4294901760, %v13096_v54 }
 0x14d   : > { %v16140_v13 = vand.u32 4294901760, %v617_v20  ;;  %v620_v6 = vsel %vm531_vm0, %v603_v1, 0  ;;  %v16144_v7 = vand.u32 4294901760, %v16137_v2 }
 0x14e   : > { %v16146_v9 = vand.u32 4294901760, %v620_v6  ;;  %v604_v10 = vadd.f32 %v13095_v37, %v594_v5  ;;  %v16249_v37 = vand.u32 4294901760, %v13101_v33  ;;  %v16348_v5 = vsub.f32 %v13096_v54, %v16328_v12 }
 0x14f   : > { %14115 = vmatmul.mubr.f32.vlgmr.msra.gmra.mxu1 %v16140_v13  ;;  %v701_v21 = vsub.f32 %v16137_v2, %v16144_v7  ;;  %v16152_v11 = vsub.f32 %v617_v20, %v16140_v13 }
 0x150   : > { %v623_v14 = vsel %vm531_vm0, %v604_v10, 0  ;;  %14143 = vmatpush3.msra.mxu1 %v16003_v29  ;;  %14117 = vmatprep.mubr.f32.mxu1 %v16146_v9  ;;  %v16158_v15 = vsub.f32 %v620_v6, %v16146_v9 }
 0x151   : > { %v16160_v16 = vand.u32 4294901760, %v623_v14  ;;  %14144 = vmatprep.subr.mxu1 %v16011_v32  ;;  %v16163_v17 = vand.u32 4294901760, %v701_v21  ;;  %v16166_v18 = vand.u32 4294901760, %v16152_v11 }
 0x152   : > { %14145 = vmatpush3.msra.mxu1 %v16011_v32  ;;  %v16170_v19 = vand.u32 4294901760, %v16158_v15 }
 0x153   : > { %14146 = vmatprep.subr.mxu1 %v16024_v36  ;;  %14092 = vmatprep.mubr.f32.mxu0 %v16163_v17  ;;  %v711_v22 = vsub.f32 %v16152_v11, %v16166_v18  ;;  %v16177_v23 = vsub.f32 %v623_v14, %v16160_v16  ;;  %v16363_v14 = vand.u32 4294901760, %v16348_v5 }
 0x154   : > { %14118 = vmatmul.mubr.f32.gmra.mxu1 %v16160_v16  ;;  %v721_v24 = vsub.f32 %v16158_v15, %v16170_v19 }
 0x155   : > { %14147 = vmatpush3.msra.mxu1 %v16024_v36  ;;  %14158 = vmatprep.mubr.f32.mxu1 %v16144_v7  ;;  %v16184_v25 = vand.u32 4294901760, %v711_v22  ;;  %v16187_v26 = vand.u32 4294901760, %v16177_v23 }
 0x156   : > { %14148 = vmatprep.subr.mxu1 %v16039_v41  ;;  %v16190_v27 = vand.u32 4294901760, %v721_v24 }
 0x157   : > { %14149 = vmatpush3.msra.mxu1 %v16039_v41  ;;  %14093 = vmatmul.mubr.f32.vlgmr.msra.gmra.mxu0 %v16184_v25  ;;  %v731_v28 = vsub.f32 %v16177_v23, %v16187_v26 }
 0x158   : > { %14150 = vmatprep.subr.mxu1 %v16055_v47  ;;  %14121 = vmatpush3.msra.mxu0 %v16009_v31  ;;  %v13103_v31 = vld [vmem:[%s18887_s3 + $0x78] sm:$0xff] }
 0x159   : > { %14151 = vmatpush3.msra.mxu1 %v16055_v47  ;;  %14095 = vmatprep.mubr.f32.mxu0 %v16190_v27  ;;  %v16200_v30 = vand.u32 4294901760, %v731_v28 }
 0x15a   : > { %14122 = vmatprep.subr.mxu0 %v16022_v35  ;;  %14152 = vmatprep.subr.mxu1 %v16066_v52 }
 0x15b   : > { %14123 = vmatpush3.msra.mxu0 %v16022_v35  ;;  %14153 = vmatpush3.msra.mxu1 %v16066_v52  ;;  %v13102_v35 = vld [vmem:[%s18887_s3 + $0x70] sm:$0xff] }
 0x15c   : > { %14124 = vmatprep.subr.mxu0 %v16037_v40  ;;  %14154 = vmatprep.subr.mxu1 %v16080_v58 }
 0x15d   : > { %14096 = vmatmul.mubr.f32.gmra.mxu0 %v16200_v30  ;;  %14155 = vmatpush3.msra.mxu1 %v16080_v58 }
 0x15e   : > { %14125 = vmatpush3.msra.mxu0 %v16037_v40  ;;  %14136 = vmatprep.mubr.f32.mxu0 %v16137_v2  ;;  %v16226_v40 = vand.u32 4294901760, %v13103_v31 }
 0x15f   : > { %14126 = vmatprep.subr.mxu0 %v16052_v46  ;;  %14156 = vmatprep.subr.mxu1 %v16096_v0 }
 0x160   : > { %14127 = vmatpush3.msra.mxu0 %v16052_v46  ;;  %14157 = vmatpush3.msra.mxu1 %v16096_v0  ;;  %v16232_v46 = vand.u32 4294901760, %v13102_v35 }
 0x161   : > { %14128 = vmatprep.subr.mxu0 %v16069_v53  ;;  %14159 = vmatmul.mubr.f32.vlgmr.msra.gmra.mxu1 %v16166_v18 }
 0x162   : > { %14186 = vmatprep.subr.mxu1 %v16003_v29  ;;  %14129 = vmatpush3.msra.mxu0 %v16069_v53  ;;  %v13100_v53 = vld [vmem:[%s18887_s3 + $0x60] sm:$0xff] }
 0x163   : > { %14161 = vmatprep.mubr.f32.mxu1 %v16170_v19  ;;  %14187 = vmatpush3.msra.mxu1 %v16003_v29  ;;  %v16242_v29 = vsub.f32 %v13103_v31, %v16226_v40  ;;  %v13111_v31 = vld [vmem:[%s18887_s3 + $0xb8] sm:$0xff] }
 0x164   : > { %14130 = vmatprep.subr.mxu0 %v16078_v57  ;;  %14188 = vmatprep.subr.mxu1 %v16011_v32 }
 0x165   : > { %14131 = vmatpush3.msra.mxu0 %v16078_v57  ;;  %14189 = vmatpush3.msra.mxu1 %v16011_v32  ;;  %v16254_v32 = vsub.f32 %v13102_v35, %v16232_v46  ;;  %v16258_v57 = vand.u32 4294901760, %v13100_v53  ;;  %v13110_v35 = vld [vmem:[%s18887_s3 + $0xb0] sm:$0xff] }
 0x166   : > { %14132 = vmatprep.subr.mxu0 %v16094_v63  ;;  %14162 = vmatmul.mubr.f32.gmra.mxu1 %v16187_v26 }
 0x167   : > { %14190 = vmatprep.subr.mxu1 %v16024_v36  ;;  %14133 = vmatpush3.msra.mxu0 %v16094_v63  ;;  %v16271_v63 = vsub.f32 %v13101_v33, %v16249_v37  ;;  %v16286_v43 = vsub.f32 %v13100_v53, %v16258_v57  ;;  %v16434_v33 = vand.u32 4294901760, %v13111_v31  ;;  %v13109_v53 = vld [vmem:[%s18887_s3 + $0xa8] sm:$0xff] }
 0x168   : > { %14191 = vmatpush3.msra.mxu1 %v16024_v36  ;;  %14202 = vmatprep.mubr.f32.mxu1 %v16132_v56  ;;  %v16266_v36 = vand.u32 4294901760, %v16242_v29 }
 0x169   : > { %14134 = vmatprep.subr.mxu0 %v16108_v4  ;;  %14192 = vmatprep.subr.mxu1 %v16039_v41 }
 0x16a   : > { %14135 = vmatpush3.msra.mxu0 %v16108_v4  ;;  %14193 = vmatpush3.msra.mxu1 %v16039_v41  ;;  %v16279_v41 = vand.u32 4294901760, %v16254_v32  ;;  %v16281_v4 = vand.u32 4294901760, %v13099_v38  ;;  %v1433_v44 = vsub.f32 %v16242_v29, %v16266_v36 }
 0x16b   : > { %14137 = vmatmul.mubr.f32.vlgmr.msra.gmra.mxu0 %v16152_v11  ;;  %14164 = vmatprep.subr.mxu0 %v16019_v34 }
 0x16c   : > { %14194 = vmatprep.subr.mxu1 %v16055_v47  ;;  %14139 = vmatprep.mubr.f32.mxu0 %v16158_v15  ;;  %v16307_v50 = vsub.f32 %v13099_v38, %v16281_v4  ;;  %v1434_v55 = vand.u32 4294901760, %v1433_v44  ;;  %v16457_v38 = vand.u32 4294901760, %v13109_v53  ;;  %v13106_v44 = vld [vmem:[%s18887_s3 + $0x90] sm:$0xff] }
 0x16d   : > { %14165 = vmatpush3.msra.mxu0 %v16019_v34  ;;  %14195 = vmatpush3.msra.mxu1 %v16055_v47  ;;  %v16300_v34 = vand.u32 4294901760, %v16271_v63  ;;  %v1440_v47 = vsub.f32 %v16254_v32, %v16279_v41  ;;  %v16500_v54 = vand.u32 4294901760, %v13106_v44 }
 0x16e   : > { %14166 = vmatprep.subr.mxu0 %v16034_v39  ;;  %14196 = vmatprep.subr.mxu1 %v16066_v52 }
 0x16f   : > { %14167 = vmatpush3.msra.mxu0 %v16034_v39  ;;  %14197 = vmatpush3.msra.mxu1 %v16066_v52  ;;  %v16315_v39 = vand.u32 4294901760, %v16286_v43  ;;  %v16317_v52 = vand.u32 4294901760, %v13097_v49  ;;  %v1441_v61 = vand.u32 4294901760, %v1440_v47 }
 0x170   : > { %14140 = vmatmul.mubr.f32.gmra.mxu0 %v16177_v23  ;;  %14168 = vmatprep.subr.mxu0 %v16049_v45 }
 0x171   : > { %14198 = vmatprep.subr.mxu1 %v16080_v58  ;;  %14169 = vmatpush3.msra.mxu0 %v16049_v45  ;;  %v1447_v45 = vsub.f32 %v16271_v63, %v16300_v34  ;;  %v1454_v1 = vsub.f32 %v16286_v43, %v16315_v39  ;;  %v16340_v20 = vsub.f32 %v13097_v49, %v16317_v52  ;;  %v16489_v49 = vand.u32 4294901760, %v13107_v42 }
 0x172   : > { %14180 = vmatprep.mubr.f32.mxu0 %v16132_v56  ;;  %14199 = vmatpush3.msra.mxu1 %v16080_v58  ;;  %v16333_v58 = vand.u32 4294901760, %v16307_v50 }
 0x173   : > { %14170 = vmatprep.subr.mxu0 %v16064_v51  ;;  %14200 = vmatprep.subr.mxu1 %v16096_v0  ;;  %v16355_v10 = vand.u32 4294901760, %v16340_v20 }
 0x174   : > { %14171 = vmatpush3.msra.mxu0 %v16064_v51  ;;  %14201 = vmatpush3.msra.mxu1 %v16096_v0  ;;  %v16344_v51 = vand.u32 4294901760, %v16322_v60  ;;  %v1448_v0 = vand.u32 4294901760, %v1447_v45  ;;  %v1461_v6 = vsub.f32 %v16307_v50, %v16333_v58  ;;  %v13104_v45 = vld [vmem:[%s18887_s3 + $0x80] sm:$0xff] }
 0x175   : > { %14172 = vmatprep.subr.mxu0 %v16084_v59  ;;  %14203 = vmatmul.mubr.f32.vlgmr.msra.gmra.mxu1 %v16140_v13  ;;  %v1475_v22 = vsub.f32 %v16340_v20, %v16355_v10 }
 0x176   : > { %14230 = vmatprep.subr.mxu1 %v1434_v55  ;;  %14173 = vmatpush3.msra.mxu0 %v16084_v59  ;;  %v1455_v59 = vand.u32 4294901760, %v1454_v1  ;;  %v1468_v21 = vsub.f32 %v16322_v60, %v16344_v51  ;;  %v16530_v1 = vsub.f32 %v13106_v44, %v16500_v54 }
 0x177   : > { %14205 = vmatprep.mubr.f32.mxu1 %v16146_v9  ;;  %14231 = vmatpush3.msra.mxu1 %v1434_v55  ;;  %v1476_v28 = vand.u32 4294901760, %v1475_v22  ;;  %v13105_v55 = vld [vmem:[%s18887_s3 + $0x88] sm:$0xff] }
 0x178   : > { %14174 = vmatprep.subr.mxu0 %v16091_v62  ;;  %14232 = vmatprep.subr.mxu1 %v1441_v61  ;;  %v1469_v24 = vand.u32 4294901760, %v1468_v21 }
 0x179   : > { %14175 = vmatpush3.msra.mxu0 %v16091_v62  ;;  %14233 = vmatpush3.msra.mxu1 %v1441_v61  ;;  %v1462_v62 = vand.u32 4294901760, %v1461_v6 }
 0x17a   : > { %14176 = vmatprep.subr.mxu0 %v16105_v3  ;;  %14206 = vmatmul.mubr.f32.gmra.mxu1 %v16160_v16 }
 0x17b   : > { %14234 = vmatprep.subr.mxu1 %v1448_v0  ;;  %14177 = vmatpush3.msra.mxu0 %v16105_v3  ;;  %v1482_v3 = vsub.f32 %v16348_v5, %v16363_v14 }
 0x17c   : > { %14235 = vmatpush3.msra.mxu1 %v1448_v0  ;;  %14246 = vmatprep.mubr.f32.mxu1 %v16132_v56 }
 0x17d   : > { %14178 = vmatprep.subr.mxu0 %v16115_v8  ;;  %14236 = vmatprep.subr.mxu1 %v1455_v59 }
 0x17e   : > { %14179 = vmatpush3.msra.mxu0 %v16115_v8  ;;  %14237 = vmatpush3.msra.mxu1 %v1455_v59  ;;  %v1483_v8 = vand.u32 4294901760, %v1482_v3 }
 0x17f   : > { %14181 = vmatmul.mubr.f32.vlgmr.msra.gmra.mxu0 %v16140_v13  ;;  %14208 = vmatprep.subr.mxu0 %v16226_v40 }
 0x180   : > { %14238 = vmatprep.subr.mxu1 %v1462_v62  ;;  %14183 = vmatprep.mubr.f32.mxu0 %v16146_v9 }
 0x181   : > { %14209 = vmatpush3.msra.mxu0 %v16226_v40  ;;  %14239 = vmatpush3.msra.mxu1 %v1462_v62 }
 0x182   : > { %14210 = vmatprep.subr.mxu0 %v16232_v46  ;;  %14240 = vmatprep.subr.mxu1 %v1469_v24 }
 0x183   : > { %14211 = vmatpush3.msra.mxu0 %v16232_v46  ;;  %14241 = vmatpush3.msra.mxu1 %v1469_v24 }
 0x184   : > { %14184 = vmatmul.mubr.f32.gmra.mxu0 %v16160_v16  ;;  %14212 = vmatprep.subr.mxu0 %v16249_v37 }
 0x185   : > { %14242 = vmatprep.subr.mxu1 %v1476_v28  ;;  %14213 = vmatpush3.msra.mxu0 %v16249_v37 }
 0x186   : > { %14224 = vmatprep.mubr.f32.mxu0 %v16163_v17  ;;  %14243 = vmatpush3.msra.mxu1 %v1476_v28 }
 0x187   : > { %14214 = vmatprep.subr.mxu0 %v16258_v57  ;;  %14244 = vmatprep.subr.mxu1 %v1483_v8 }
 0x188   : > { %14215 = vmatpush3.msra.mxu0 %v16258_v57  ;;  %14245 = vmatpush3.msra.mxu1 %v1483_v8 }
 0x189   : > { %14216 = vmatprep.subr.mxu0 %v16281_v4  ;;  %14247 = vmatmul.mubr.f32.vlgmr.msra.gmra.mxu1 %v16140_v13 }
 0x18a   : > { %14274 = vmatprep.subr.mxu1 %v16226_v40  ;;  %14217 = vmatpush3.msra.mxu0 %v16281_v4 }
 0x18b   : > { %14249 = vmatprep.mubr.f32.mxu1 %v16146_v9  ;;  %14275 = vmatpush3.msra.mxu1 %v16226_v40 }
 0x18c   : > { %14218 = vmatprep.subr.mxu0 %v16292_v48  ;;  %14276 = vmatprep.subr.mxu1 %v16232_v46 }
 0x18d   : > { %14219 = vmatpush3.msra.mxu0 %v16292_v48  ;;  %14277 = vmatpush3.msra.mxu1 %v16232_v46 }
 0x18e   : > { %14220 = vmatprep.subr.mxu0 %v16317_v52  ;;  %14250 = vmatmul.mubr.f32.gmra.mxu1 %v16160_v16 }
 0x18f   : > { %14278 = vmatprep.subr.mxu1 %v16249_v37  ;;  %14221 = vmatpush3.msra.mxu0 %v16317_v52 }
 0x190   : > { %14279 = vmatpush3.msra.mxu1 %v16249_v37  ;;  %14290 = vmatprep.mubr.f32.mxu1 %v16144_v7 }
 0x191   : > { %14222 = vmatprep.subr.mxu0 %v16328_v12  ;;  %14280 = vmatprep.subr.mxu1 %v16258_v57 }
 0x192   : > { %14223 = vmatpush3.msra.mxu0 %v16328_v12  ;;  %14281 = vmatpush3.msra.mxu1 %v16258_v57 }
 0x193   : > { %14225 = vmatmul.mubr.f32.vlgmr.msra.gmra.mxu0 %v16184_v25  ;;  %14252 = vmatprep.subr.mxu0 %v16242_v29 }
 0x194   : > { %14282 = vmatprep.subr.mxu1 %v16281_v4  ;;  %14227 = vmatprep.mubr.f32.mxu0 %v16190_v27 }
 0x195   : > { %14253 = vmatpush3.msra.mxu0 %v16242_v29  ;;  %14283 = vmatpush3.msra.mxu1 %v16281_v4  ;;  %v16440_v29 = vand.u32 4294901760, %v13110_v35 }
 0x196   : > { %14254 = vmatprep.subr.mxu0 %v16254_v32  ;;  %14284 = vmatprep.subr.mxu1 %v16292_v48 }
 0x197   : > { %14255 = vmatpush3.msra.mxu0 %v16254_v32  ;;  %14285 = vmatpush3.msra.mxu1 %v16292_v48  ;;  %v13108_v32 = vld [vmem:[%s18887_s3 + $0xa0] sm:$0xff] }
 0x198   : > { %14228 = vmatmul.mubr.f32.gmra.mxu0 %v16200_v30  ;;  %14256 = vmatprep.subr.mxu0 %v16271_v63 }
 0x199   : > { %14286 = vmatprep.subr.mxu1 %v16317_v52  ;;  %14257 = vmatpush3.msra.mxu0 %v16271_v63  ;;  %v16466_v63 = vand.u32 4294901760, %v13108_v32 }
 0x19a   : > { %14268 = vmatprep.mubr.f32.mxu0 %v16137_v2  ;;  %14287 = vmatpush3.msra.mxu1 %v16317_v52 }
 0x19b   : > { %14258 = vmatprep.subr.mxu0 %v16286_v43  ;;  %14288 = vmatprep.subr.mxu1 %v16328_v12  ;;  %v16494_v47 = vsub.f32 %v13108_v32, %v16466_v63 }
 0x19c   : > { %14259 = vmatpush3.msra.mxu0 %v16286_v43  ;;  %14289 = vmatpush3.msra.mxu1 %v16328_v12  ;;  %v16479_v43 = vsub.f32 %v13109_v53, %v16457_v38 }
 0x19d   : > { %14260 = vmatprep.subr.mxu0 %v16307_v50  ;;  %14291 = vmatmul.mubr.f32.vlgmr.msra.gmra.mxu1 %v16166_v18 }
 0x19e   : > { %14318 = vmatprep.subr.mxu1 %v16226_v40  ;;  %14261 = vmatpush3.msra.mxu0 %v16307_v50 }
 0x19f   : > { %14293 = vmatprep.mubr.f32.mxu1 %v16170_v19  ;;  %14319 = vmatpush3.msra.mxu1 %v16226_v40  ;;  %v16450_v40 = vsub.f32 %v13111_v31, %v16434_v33 }
 0x1a0   : > { %14262 = vmatprep.subr.mxu0 %v16322_v60  ;;  %14320 = vmatprep.subr.mxu1 %v16232_v46 }
 0x1a1   : > { %14263 = vmatpush3.msra.mxu0 %v16322_v60  ;;  %14321 = vmatpush3.msra.mxu1 %v16232_v46  ;;  %v16462_v46 = vsub.f32 %v13110_v35, %v16440_v29  ;;  %v16515_v60 = vsub.f32 %v13107_v42, %v16489_v49 }
 0x1a2   : > { %14264 = vmatprep.subr.mxu0 %v16340_v20  ;;  %14294 = vmatmul.mubr.f32.gmra.mxu1 %v16187_v26 }
 0x1a3   : > { %14322 = vmatprep.subr.mxu1 %v16249_v37  ;;  %14265 = vmatpush3.msra.mxu0 %v16340_v20  ;;  %v16536_v20 = vand.u32 4294901760, %v13104_v45 }
 0x1a4   : > { %14323 = vmatpush3.msra.mxu1 %v16249_v37  ;;  %14334 = vmatprep.mubr.f32.mxu1 %v16132_v56  ;;  %v16474_v37 = vand.u32 4294901760, %v16450_v40 }
 0x1a5   : > { %14266 = vmatprep.subr.mxu0 %v16348_v5  ;;  %14324 = vmatprep.subr.mxu1 %v16258_v57  ;;  %v16556_v59 = vsub.f32 %v13104_v45, %v16536_v20 }
 0x1a6   : > { %14267 = vmatpush3.msra.mxu0 %v16348_v5  ;;  %14325 = vmatpush3.msra.mxu1 %v16258_v57  ;;  %v16487_v57 = vand.u32 4294901760, %v16462_v46  ;;  %v2108_v50 = vsub.f32 %v16450_v40, %v16474_v37 }
 0x1a7   : > { %14269 = vmatmul.mubr.f32.vlgmr.msra.gmra.mxu0 %v16152_v11  ;;  %14296 = vmatprep.subr.mxu0 %v16266_v36  ;;  %v16571_v24 = vand.u32 4294901760, %v16556_v59 }
 0x1a8   : > { %14326 = vmatprep.subr.mxu1 %v16281_v4  ;;  %14271 = vmatprep.mubr.f32.mxu0 %v16158_v15  ;;  %v2109_v61 = vand.u32 4294901760, %v2108_v50 }
 0x1a9   : > { %14297 = vmatpush3.msra.mxu0 %v16266_v36  ;;  %14327 = vmatpush3.msra.mxu1 %v16281_v4  ;;  %v16508_v36 = vand.u32 4294901760, %v16479_v43  ;;  %v2115_v4 = vsub.f32 %v16462_v46, %v16487_v57 }
 0x1aa   : > { %14298 = vmatprep.subr.mxu0 %v16279_v41  ;;  %14328 = vmatprep.subr.mxu1 %v16292_v48 }
 0x1ab   : > { %14299 = vmatpush3.msra.mxu0 %v16279_v41  ;;  %14329 = vmatpush3.msra.mxu1 %v16292_v48  ;;  %v16523_v41 = vand.u32 4294901760, %v16494_v47  ;;  %v16525_v48 = vand.u32 4294901760, %v13105_v55  ;;  %v2116_v0 = vand.u32 4294901760, %v2115_v4 }
 0x1ac   : > { %14272 = vmatmul.mubr.f32.gmra.mxu0 %v16177_v23  ;;  %14300 = vmatprep.subr.mxu0 %v16300_v34 }
 0x1ad   : > { %14330 = vmatprep.subr.mxu1 %v16317_v52  ;;  %14301 = vmatpush3.msra.mxu0 %v16300_v34  ;;  %v2122_v34 = vsub.f32 %v16479_v43, %v16508_v36  ;;  %v2129_v5 = vsub.f32 %v16494_v47, %v16523_v41  ;;  %v16548_v6 = vsub.f32 %v13105_v55, %v16525_v48 }
 0x1ae   : > { %14312 = vmatprep.mubr.f32.mxu0 %v16132_v56  ;;  %14331 = vmatpush3.msra.mxu1 %v16317_v52  ;;  %v16541_v52 = vand.u32 4294901760, %v16515_v60 }
 0x1af   : > { %14302 = vmatprep.subr.mxu0 %v16315_v39  ;;  %14332 = vmatprep.subr.mxu1 %v16328_v12  ;;  %v16563_v62 = vand.u32 4294901760, %v16548_v6 }
 0x1b0   : > { %14303 = vmatpush3.msra.mxu0 %v16315_v39  ;;  %14333 = vmatpush3.msra.mxu1 %v16328_v12  ;;  %v16552_v39 = vand.u32 4294901760, %v16530_v1  ;;  %v2123_v12 = vand.u32 4294901760, %v2122_v34  ;;  %v2136_v21 = vsub.f32 %v16515_v60, %v16541_v52 }
 0x1b1   : > { %14304 = vmatprep.subr.mxu0 %v16333_v58  ;;  %14335 = vmatmul.mubr.f32.vlgmr.msra.gmra.mxu1 %v16140_v13  ;;  %v2150_v3 = vsub.f32 %v16548_v6, %v16563_v62 }
 0x1b2   : > { %14362 = vmatprep.subr.mxu1 %v2109_v61  ;;  %14305 = vmatpush3.msra.mxu0 %v16333_v58  ;;  %v2130_v58 = vand.u32 4294901760, %v2129_v5  ;;  %v2143_v22 = vsub.f32 %v16530_v1, %v16552_v39 }
 0x1b3   : > { %14337 = vmatprep.mubr.f32.mxu1 %v16146_v9  ;;  %14363 = vmatpush3.msra.mxu1 %v2109_v61  ;;  %v2151_v8 = vand.u32 4294901760, %v2150_v3 }
 0x1b4   : > { %14306 = vmatprep.subr.mxu0 %v16344_v51  ;;  %14364 = vmatprep.subr.mxu1 %v2116_v0  ;;  %v2144_v28 = vand.u32 4294901760, %v2143_v22 }
 0x1b5   : > { %14307 = vmatpush3.msra.mxu0 %v16344_v51  ;;  %14365 = vmatpush3.msra.mxu1 %v2116_v0  ;;  %v2137_v51 = vand.u32 4294901760, %v2136_v21 }
 0x1b6   : > { %14308 = vmatprep.subr.mxu0 %v16355_v10  ;;  %14338 = vmatmul.mubr.f32.gmra.mxu1 %v16160_v16 }
 0x1b7   : > { %14366 = vmatprep.subr.mxu1 %v2123_v12  ;;  %14309 = vmatpush3.msra.mxu0 %v16355_v10  ;;  %v2157_v10 = vsub.f32 %v16556_v59, %v16571_v24 }
 0x1b8   : > { %14367 = vmatpush3.msra.mxu1 %v2123_v12  ;;  %14378 = vmatprep.mubr.f32.mxu1 %v16132_v56 }
 0x1b9   : > { %14310 = vmatprep.subr.mxu0 %v16363_v14  ;;  %14368 = vmatprep.subr.mxu1 %v2130_v58 }
 0x1ba   : > { %14311 = vmatpush3.msra.mxu0 %v16363_v14  ;;  %14369 = vmatpush3.msra.mxu1 %v2130_v58  ;;  %v2158_v14 = vand.u32 4294901760, %v2157_v10 }
 0x1bb   : > { %14313 = vmatmul.mubr.f32.vlgmr.msra.gmra.mxu0 %v16140_v13  ;;  %14340 = vmatprep.subr.mxu0 %v16434_v33 }
 0x1bc   : > { %14370 = vmatprep.subr.mxu1 %v2137_v51  ;;  %14315 = vmatprep.mubr.f32.mxu0 %v16146_v9 }
 0x1bd   : > { %14341 = vmatpush3.msra.mxu0 %v16434_v33  ;;  %14371 = vmatpush3.msra.mxu1 %v2137_v51 }
 0x1be   : > { %14342 = vmatprep.subr.mxu0 %v16440_v29  ;;  %14372 = vmatprep.subr.mxu1 %v2144_v28 }
 0x1bf   : > { %14343 = vmatpush3.msra.mxu0 %v16440_v29  ;;  %14373 = vmatpush3.msra.mxu1 %v2144_v28 }
 0x1c0   : > { %14316 = vmatmul.mubr.f32.gmra.mxu0 %v16160_v16  ;;  %14344 = vmatprep.subr.mxu0 %v16457_v38 }
 0x1c1   : > { %14374 = vmatprep.subr.mxu1 %v2151_v8  ;;  %14345 = vmatpush3.msra.mxu0 %v16457_v38 }
 0x1c2   : > { %14356 = vmatprep.mubr.f32.mxu0 %v16163_v17  ;;  %14375 = vmatpush3.msra.mxu1 %v2151_v8 }
 0x1c3   : > { %14346 = vmatprep.subr.mxu0 %v16466_v63  ;;  %14376 = vmatprep.subr.mxu1 %v2158_v14 }
 0x1c4   : > { %14347 = vmatpush3.msra.mxu0 %v16466_v63  ;;  %14377 = vmatpush3.msra.mxu1 %v2158_v14 }
 0x1c5   : > { %14348 = vmatprep.subr.mxu0 %v16489_v49  ;;  %14379 = vmatmul.mubr.f32.vlgmr.msra.gmra.mxu1 %v16140_v13 }
 0x1c6   : > { %14406 = vmatprep.subr.mxu1 %v16434_v33  ;;  %14349 = vmatpush3.msra.mxu0 %v16489_v49 }
 0x1c7   : > { %14381 = vmatprep.mubr.f32.mxu1 %v16146_v9  ;;  %14407 = vmatpush3.msra.mxu1 %v16434_v33 }
 0x1c8   : > { %14350 = vmatprep.subr.mxu0 %v16500_v54  ;;  %14408 = vmatprep.subr.mxu1 %v16440_v29 }
 0x1c9   : > { %14351 = vmatpush3.msra.mxu0 %v16500_v54  ;;  %14409 = vmatpush3.msra.mxu1 %v16440_v29 }
 0x1ca   : > { %14352 = vmatprep.subr.mxu0 %v16525_v48  ;;  %14382 = vmatmul.mubr.f32.gmra.mxu1 %v16160_v16 }
 0x1cb   : > { %14410 = vmatprep.subr.mxu1 %v16457_v38  ;;  %14353 = vmatpush3.msra.mxu0 %v16525_v48 }
 0x1cc   : > { %14411 = vmatpush3.msra.mxu1 %v16457_v38  ;;  %14422 = vmatprep.mubr.f32.mxu1 %v16144_v7 }
 0x1cd   : > { %14354 = vmatprep.subr.mxu0 %v16536_v20  ;;  %14412 = vmatprep.subr.mxu1 %v16466_v63 }
 0x1ce   : > { %14355 = vmatpush3.msra.mxu0 %v16536_v20  ;;  %14413 = vmatpush3.msra.mxu1 %v16466_v63 }
 0x1cf   : > { %14357 = vmatmul.mubr.f32.vlgmr.msra.gmra.mxu0 %v16184_v25  ;;  %14384 = vmatprep.subr.mxu0 %v16450_v40 }
 0x1d0   : > { %14414 = vmatprep.subr.mxu1 %v16489_v49  ;;  %14359 = vmatprep.mubr.f32.mxu0 %v16190_v27 }
 0x1d1   : > { %14385 = vmatpush3.msra.mxu0 %v16450_v40  ;;  %14415 = vmatpush3.msra.mxu1 %v16489_v49 }
 0x1d2   : > { %14386 = vmatprep.subr.mxu0 %v16462_v46  ;;  %14416 = vmatprep.subr.mxu1 %v16500_v54 }
 0x1d3   : > { %14387 = vmatpush3.msra.mxu0 %v16462_v46  ;;  %14417 = vmatpush3.msra.mxu1 %v16500_v54 }
 0x1d4   : > { %14360 = vmatmul.mubr.f32.gmra.mxu0 %v16200_v30  ;;  %14388 = vmatprep.subr.mxu0 %v16479_v43 }
 0x1d5   : > { %14418 = vmatprep.subr.mxu1 %v16525_v48  ;;  %14389 = vmatpush3.msra.mxu0 %v16479_v43 }
 0x1d6   : > { %14400 = vmatprep.mubr.f32.mxu0 %v16137_v2  ;;  %14419 = vmatpush3.msra.mxu1 %v16525_v48 }
 0x1d7   : > { %14390 = vmatprep.subr.mxu0 %v16494_v47  ;;  %14420 = vmatprep.subr.mxu1 %v16536_v20 }
 0x1d8   : > { %14391 = vmatpush3.msra.mxu0 %v16494_v47  ;;  %14421 = vmatpush3.msra.mxu1 %v16536_v20 }
 0x1d9   : > { %14392 = vmatprep.subr.mxu0 %v16515_v60  ;;  %14423 = vmatmul.mubr.f32.vlgmr.msra.gmra.mxu1 %v16166_v18 }
 0x1da   : > { %14450 = vmatprep.subr.mxu1 %v16434_v33  ;;  %14393 = vmatpush3.msra.mxu0 %v16515_v60 }
 0x1db   : > { %14425 = vmatprep.mubr.f32.mxu1 %v16170_v19  ;;  %14451 = vmatpush3.msra.mxu1 %v16434_v33 }
 0x1dc   : > { %14394 = vmatprep.subr.mxu0 %v16530_v1  ;;  %14452 = vmatprep.subr.mxu1 %v16440_v29 }
 0x1dd   : > { %14395 = vmatpush3.msra.mxu0 %v16530_v1  ;;  %14453 = vmatpush3.msra.mxu1 %v16440_v29 }
 0x1de   : > { %14396 = vmatprep.subr.mxu0 %v16548_v6  ;;  %14426 = vmatmul.mubr.f32.gmra.mxu1 %v16187_v26 }
 0x1df   : > { %14454 = vmatprep.subr.mxu1 %v16457_v38  ;;  %14397 = vmatpush3.msra.mxu0 %v16548_v6 }
 0x1e0   : > { %14455 = vmatpush3.msra.mxu1 %v16457_v38  ;;  %14466 = vmatprep.mubr.f32.mxu1 %v16132_v56 }
 0x1e1   : > { %14398 = vmatprep.subr.mxu0 %v16556_v59  ;;  %14456 = vmatprep.subr.mxu1 %v16466_v63 }
 0x1e2   : > { %14399 = vmatpush3.msra.mxu0 %v16556_v59  ;;  %14457 = vmatpush3.msra.mxu1 %v16466_v63 }
 0x1e3   : > { %14401 = vmatmul.mubr.f32.vlgmr.msra.gmra.mxu0 %v16152_v11  ;;  %14428 = vmatprep.subr.mxu0 %v16474_v37 }
 0x1e4   : > { %14458 = vmatprep.subr.mxu1 %v16489_v49  ;;  %14403 = vmatprep.mubr.f32.mxu0 %v16158_v15 }
 0x1e5   : > { %14429 = vmatpush3.msra.mxu0 %v16474_v37  ;;  %14459 = vmatpush3.msra.mxu1 %v16489_v49 }
 0x1e6   : > { %14430 = vmatprep.subr.mxu0 %v16487_v57  ;;  %14460 = vmatprep.subr.mxu1 %v16500_v54 }
 0x1e7   : > { %14431 = vmatpush3.msra.mxu0 %v16487_v57  ;;  %14461 = vmatpush3.msra.mxu1 %v16500_v54 }
 0x1e8   : > { %14404 = vmatmul.mubr.f32.gmra.mxu0 %v16177_v23  ;;  %14432 = vmatprep.subr.mxu0 %v16508_v36 }
 0x1e9   : > { %14462 = vmatprep.subr.mxu1 %v16525_v48  ;;  %14433 = vmatpush3.msra.mxu0 %v16508_v36 }
 0x1ea   : > { %14444 = vmatprep.mubr.f32.mxu0 %v16132_v56  ;;  %14463 = vmatpush3.msra.mxu1 %v16525_v48 }
 0x1eb   : > { %14434 = vmatprep.subr.mxu0 %v16523_v41  ;;  %14464 = vmatprep.subr.mxu1 %v16536_v20 }
 0x1ec   : > { %14435 = vmatpush3.msra.mxu0 %v16523_v41  ;;  %14465 = vmatpush3.msra.mxu1 %v16536_v20 }
 0x1ed   : > { %14436 = vmatprep.subr.mxu0 %v16541_v52  ;;  %14467 = vmatmul.mubr.f32.vlgmr.msra.gmra.mxu1 %v16140_v13 }
 0x1ee   : > { %14437 = vmatpush3.msra.mxu0 %v16541_v52  ;;  %14469 = vmatprep.mubr.f32.mxu1 %v16146_v9 }
 0x1ef   : > { %14438 = vmatprep.subr.mxu0 %v16552_v39 }
 0x1f0   : > { %14439 = vmatpush3.msra.mxu0 %v16552_v39 }
 0x1f1   : > { %14440 = vmatprep.subr.mxu0 %v16563_v62  ;;  %14470 = vmatmul.mubr.f32.gmra.mxu1 %v16160_v16 }
 0x1f2   : > { %14441 = vmatpush3.msra.mxu0 %v16563_v62 }
 0x1f3   : > { %14442 = vmatprep.subr.mxu0 %v16571_v24 }
 0x1f4   : > { %14443 = vmatpush3.msra.mxu0 %v16571_v24 }
 0x1f5   : > { %14445 = vmatmul.mubr.f32.vlgmr.msra.gmra.mxu0 %v16140_v13 }
 0x1f6   : > { %14447 = vmatprep.mubr.f32.mxu0 %v16146_v9 }
 0x1f9   : > { %14448 = vmatmul.mubr.f32.gmra.mxu0 %v16160_v16 }
 0x20f   : > { %v14116_v56 = vpop.f32.mrf.mxu1 }
 0x211   : > { %v845_v11 = vpop.f32.mrf.mxu1 }
 0x214   : > { %v14119_v17 = vpop.f32.mrf.mxu1 }
 0x216   : > { %v857_v23 = vpop.f32.mrf.mxu1 }
 0x217   : > { %v14094_v2 = vpop.f32.mrf.mxu0 }
 0x218   : > { %v852_v7 = vadd.f32 %v14116_v56, %v14094_v2 }
 0x219   : > { %v704_v15 = vpop.f32.mrf.mxu0 }
 0x21a   : > { %v846_v53 = vadd.f32 %v845_v11, %v704_v15 }
 0x21d   : > { %v14097_v18 = vpop.f32.mrf.mxu0 }
 0x21e   : > { %v864_v19 = vadd.f32 %v14119_v17, %v14097_v18 }
 0x21f   : > { %v724_v25 = vpop.f32.mrf.mxu0 }
 0x220   : > { %v858_v22 = vadd.f32 %v857_v23, %v724_v25 }
 0x221   : > { %v14160_v26 = vpop.f32.mrf.mxu1 }
 0x223   : > { %v1053_v35 = vpop.f32.mrf.mxu1 }
 0x226   : > { %v14163_v29 = vpop.f32.mrf.mxu1 }
 0x228   : > { %v1069_v32 = vpop.f32.mrf.mxu1 }
 0x22b   : > { %v14138_v27 = vpop.f32.mrf.mxu0 }
 0x22c   : > { %v959_v30 = vadd.f32 %v14138_v27, %v852_v7 }
 0x22d   : > { %v951_v31 = vpop.f32.mrf.mxu0 }
 0x22e   : > { %v1062_v13 = vadd.f32 %v14160_v26, %v959_v30  ;;  %v952_v40 = vadd.f32 %v951_v31, %v846_v53 }
 0x230   : > { %v14141_v33 = vpop.f32.mrf.mxu0  ;;  %v1054_v37 = vadd.f32 %v1053_v35, %v952_v40 }
 0x231   : > { %v973_v9 = vadd.f32 %v14141_v33, %v864_v19 }
 0x232   : > { %v965_v38 = vpop.f32.mrf.mxu0 }
 0x233   : > { %v16686_v16 = vadd.f32 %v14163_v29, %v973_v9  ;;  %v966_v3 = vadd.f32 %v965_v38, %v858_v22 }
 0x235   : > { %v14204_v46 = vpop.f32.mrf.mxu1  ;;  %v1070_v11 = vadd.f32 %v1069_v32, %v966_v3 }
 0x237   : > { %v1269_v49 = vpop.f32.mrf.mxu1 }
 0x23a   : > { %v14207_v45 = vpop.f32.mrf.mxu1 }
 0x23c   : > { %v1281_v48 = vpop.f32.mrf.mxu1 }
 0x23f   : > { %v14182_v63 = vpop.f32.mrf.mxu0 }
 0x240   : > { %v1179_v42 = vadd.f32 %v14182_v63, %v1062_v13 }
 0x241   : > { %v1172_v43 = vpop.f32.mrf.mxu0 }
 0x242   : > { %v16688_v44 = vadd.f32 %v14204_v46, %v1179_v42  ;;  %v1173_v57 = vadd.f32 %v1172_v43, %v1054_v37 }
 0x244   : > { %v16690_v47 = vadd.f32 %v1269_v49, %v1173_v57  ;;  %v14185_v41 = vpop.f32.mrf.mxu0  ;;  %v2647_v37 = vsel %vm2642_vm1, %v16688_v44, 0 }
 0x245   : > { %v1191_v33 = vadd.f32 %v14185_v41, %v16686_v16 }
 0x246   : > { %v2644_v50 = vsel %vm2642_vm1, %v16690_v47, 0  ;;  %v1184_v1 = vpop.f32.mrf.mxu0 }
 0x247   : > { %v16694_v54 = vand.u32 4294901760, %v2644_v50  ;;  %v1185_v26 = vadd.f32 %v1184_v1, %v1070_v11  ;;  %v16715_v43 = vadd.f32 %v14207_v45, %v1191_v33 }
 0x249   : > { %14494 = vmatprep.mubr.f32.mxu1 %v16694_v54  ;;  %v16698_v55 = vsub.f32 %v2644_v50, %v16694_v54  ;;  %v14248_v61 = vpop.f32.mrf.mxu1  ;;  %v16707_v29 = vadd.f32 %v1281_v48, %v1185_v26 }
 0x24b   : > { %v2738_v36 = vand.u32 4294901760, %v16698_v55  ;;  %v1520_v20 = vpop.f32.mrf.mxu1 }
 0x24d   : > { %v2739_v4 = vsub.f32 %v16698_v55, %v2738_v36 }
 0x24e   : > { %v14251_v52 = vpop.f32.mrf.mxu1 }
 0x24f   : > { %v2740_v60 = vand.u32 4294901760, %v2739_v4  ;;  %v2650_v4 = vsel %vm2642_vm1, %v16707_v29, 0 }
 0x250   : > { %v1532_v6 = vpop.f32.mrf.mxu1 }
 0x251   : > { %14480 = vmatprep.mubr.f32.mxu0 %v2740_v60 }
 0x253   : > { %v14226_v34 = vpop.f32.mrf.mxu0 }
 0x254   : > { %v1527_v24 = vadd.f32 %v14248_v61, %v14226_v34  ;;  %v16729_v61 = vand.u32 4294901760, %v2647_v37  ;;  %v16735_v34 = vand.u32 4294901760, %v2650_v4 }
 0x255   : > { %v1379_v0 = vpop.f32.mrf.mxu0 }
 0x256   : > { %v1521_v28 = vadd.f32 %v1520_v20, %v1379_v0  ;;  %v2653_v20 = vsel %vm2642_vm1, %v16715_v43, 0 }
 0x258   : > { %v14229_v5 = vpop.f32.mrf.mxu0 }
 0x259   : > { %v1539_v2 = vadd.f32 %v14251_v52, %v14229_v5 }
 0x25a   : > { %v1399_v12 = vpop.f32.mrf.mxu0 }
 0x25b   : > { %v1533_v17 = vadd.f32 %v1532_v6, %v1399_v12 }
 0x25d   : > { %v14292_v39 = vpop.f32.mrf.mxu1 }
 0x25f   : > { %v1728_v21 = vpop.f32.mrf.mxu1 }
 0x262   : > { %v14295_v62 = vpop.f32.mrf.mxu1 }
 0x264   : > { %v1744_v10 = vpop.f32.mrf.mxu1 }
 0x267   : > { %v14270_v59 = vpop.f32.mrf.mxu0 }
 0x268   : > { %v1634_v8 = vadd.f32 %v14270_v59, %v1527_v24 }
 0x269   : > { %v1626_v58 = vpop.f32.mrf.mxu0 }
 0x26a   : > { %v1627_v14 = vadd.f32 %v1626_v58, %v1521_v28  ;;  %v1737_v15 = vadd.f32 %v14292_v39, %v1634_v8  ;;  %v16750_v39 = vsub.f32 %v2647_v37, %v16729_v61  ;;  %v16759_v58 = vsub.f32 %v2650_v4, %v16735_v34 }
 0x26c   : > { %v14273_v51 = vpop.f32.mrf.mxu0  ;;  %v1729_v31 = vadd.f32 %v1728_v21, %v1627_v14  ;;  %v16756_v21 = vand.u32 4294901760, %v2653_v20  ;;  %v2758_v14 = vand.u32 4294901760, %v16759_v58 }
 0x26d   : > { %v1648_v18 = vadd.f32 %v14273_v51, %v1539_v2 }
 0x26e   : > { %v1640_v7 = vpop.f32.mrf.mxu0  ;;  %v16773_v8 = vsub.f32 %v2653_v20, %v16756_v21 }
 0x26f   : > { %v1641_v23 = vadd.f32 %v1640_v7, %v1533_v17  ;;  %v1753_v9 = vadd.f32 %v14295_v62, %v1648_v18  ;;  %v2759_v17 = vsub.f32 %v16759_v58, %v2758_v14 }
 0x271   : > { %v14336_v56 = vpop.f32.mrf.mxu1  ;;  %v1745_v63 = vadd.f32 %v1744_v10, %v1641_v23  ;;  %v2748_v10 = vand.u32 4294901760, %v16750_v39 }
 0x273   : > { %v1944_v27 = vpop.f32.mrf.mxu1  ;;  %v2749_v11 = vsub.f32 %v16750_v39, %v2748_v10 }
 0x276   : > { %v14339_v53 = vpop.f32.mrf.mxu1 }
 0x278   : > { %v1956_v49 = vpop.f32.mrf.mxu1 }
 0x27b   : > { %v14314_v19 = vpop.f32.mrf.mxu0 }
 0x27c   : > { %v1854_v30 = vadd.f32 %v14314_v19, %v1737_v15  ;;  %v2768_v15 = vand.u32 4294901760, %v16773_v8 }
 0x27d   : > { %v1847_v25 = vpop.f32.mrf.mxu0 }
 0x27e   : > { %v16704_v35 = vadd.f32 %v14336_v56, %v1854_v30  ;;  %v1848_v13 = vadd.f32 %v1847_v25, %v1729_v31  ;;  %v2769_v30 = vsub.f32 %v16773_v8, %v2768_v15  ;;  %v2760_v31 = vand.u32 4294901760, %v2759_v17 }
 0x280   : > { %v14317_v40 = vpop.f32.mrf.mxu0  ;;  %v2659_v32 = vsel %vm2642_vm1, %v16704_v35, 0  ;;  %v16711_v38 = vadd.f32 %v1944_v27, %v1848_v13  ;;  %v2750_v27 = vand.u32 4294901760, %v2749_v11  ;;  %v2770_v33 = vand.u32 4294901760, %v2769_v30 }
 0x281   : > { %v1866_v46 = vadd.f32 %v14317_v40, %v1753_v9  ;;  %v16719_v50 = vand.u32 4294901760, %v2659_v32 }
 0x282   : > { %v1859_v42 = vpop.f32.mrf.mxu0  ;;  %v2656_v60 = vsel %vm2642_vm1, %v16711_v38, 0 }
 0x283   : > { %v16717_v57 = vadd.f32 %v14339_v53, %v1866_v46  ;;  %v1860_v16 = vadd.f32 %v1859_v42, %v1745_v63  ;;  %v16740_v0 = vsub.f32 %v2659_v32, %v16719_v50  ;;  %v16742_v52 = vand.u32 4294901760, %v2656_v60 }
 0x285   : > { %v2665_v41 = vsel %vm2642_vm1, %v16717_v57, 0  ;;  %v16727_v48 = vadd.f32 %v1956_v49, %v1860_v16  ;;  %v16765_v24 = vand.u32 4294901760, %v16740_v0  ;;  %v2823_v51 = vsub.f32 %v2656_v60, %v16742_v52  ;;  %v14380_v26 = vpop.f32.mrf.mxu1 }
 0x286   : > { %v16731_v45 = vand.u32 4294901760, %v2665_v41 }
 0x287   : > { %v2662_v1 = vsel %vm2642_vm1, %v16727_v48, 0  ;;  %v2818_v2 = vsub.f32 %v16740_v0, %v16765_v24  ;;  %v16778_v7 = vand.u32 4294901760, %v2823_v51  ;;  %v2195_v25 = vpop.f32.mrf.mxu1 }
 0x288   : > { %v2802_v5 = vsub.f32 %v2665_v41, %v16731_v45  ;;  %v16745_v6 = vand.u32 4294901760, %v2662_v1  ;;  %14472 = vmatprep.subr.mxu0 %v16731_v45 }
 0x289   : > { %14473 = vmatpush3.xpose.msra.mxu0 %v16731_v45  ;;  %v2819_v18 = vand.u32 4294901760, %v2818_v2  ;;  %v2825_v19 = vsub.f32 %v2823_v51, %v16778_v7 }
 0x28a   : > { %14474 = vmatprep.subr.mxu0 %v16745_v6  ;;  %v16753_v12 = vand.u32 4294901760, %v2802_v5  ;;  %v2809_v59 = vsub.f32 %v2662_v1, %v16745_v6  ;;  %v14383_v9 = vpop.f32.mrf.mxu1 }
 0x28b   : > { %v2826_v23 = vand.u32 4294901760, %v2825_v19 }
 0x28c   : > { %v2804_v62 = vsub.f32 %v2802_v5, %v16753_v12  ;;  %v16762_v22 = vand.u32 4294901760, %v2809_v59  ;;  %v2207_v40 = vpop.f32.mrf.mxu1 }
 0x28d   : > { %14475 = vmatpush3.xpose.msra.mxu0 %v16745_v6 }
 0x28e   : > { %14476 = vmatprep.subr.mxu0 %v16719_v50  ;;  %v2805_v3 = vand.u32 4294901760, %v2804_v62  ;;  %v2811_v28 = vsub.f32 %v2809_v59, %v16762_v22 }
 0x28f   : > { %v14358_v13 = vpop.f32.mrf.mxu0 }
 0x290   : > { %14486 = vmatprep.subr.mxu1 %v2805_v3  ;;  %v2812_v56 = vand.u32 4294901760, %v2811_v28 }
 0x291   : > { %14477 = vmatpush3.xpose.msra.mxu0 %v16719_v50  ;;  %14487 = vmatpush3.xpose.msra.mxu1 %v2805_v3  ;;  %v2054_v53 = vpop.f32.mrf.mxu0 }
 0x292   : > { %14478 = vmatprep.subr.mxu0 %v16742_v52  ;;  %14488 = vmatprep.subr.mxu1 %v2812_v56  ;;  %v2196_v60 = vadd.f32 %v2195_v25, %v2054_v53 }
 0x294   : > { %v14361_v32 = vpop.f32.mrf.mxu0 }
 0x295   : > { %14479 = vmatpush3.xpose.msra.mxu0 %v16742_v52  ;;  %14489 = vmatpush3.xpose.msra.mxu1 %v2812_v56  ;;  %v2214_v20 = vadd.f32 %v14383_v9, %v14361_v32 }
 0x296   : > { %14490 = vmatprep.subr.mxu1 %v2819_v18  ;;  %14500 = vmatprep.subr.mxu0 %v2802_v5  ;;  %v2074_v63 = vpop.f32.mrf.mxu0 }
 0x298   : > { %14481 = vmatmul.mubr.f32.vlgmr.msra.gmra.mxu0 %v2750_v27 }
 0x299   : > { %14483 = vmatprep.mubr.f32.mxu0 %v2760_v31  ;;  %14491 = vmatpush3.xpose.msra.mxu1 %v2819_v18  ;;  %v14424_v46 = vpop.f32.mrf.mxu1 }
 0x29a   : > { %14501 = vmatpush3.xpose.msra.mxu0 %v2802_v5  ;;  %14492 = vmatprep.subr.mxu1 %v2826_v23 }
 0x29b   : > { %14502 = vmatprep.subr.mxu0 %v2809_v59  ;;  %v2403_v42 = vpop.f32.mrf.mxu1 }
 0x29c   : > { %14484 = vmatmul.mubr.f32.gmra.mxu0 %v2770_v33 }
 0x29d   : > { %14493 = vmatpush3.xpose.msra.mxu1 %v2826_v23  ;;  %14508 = vmatprep.mubr.f32.mxu0 %v16698_v55  ;;  %v2202_v55 = vadd.f32 %v14380_v26, %v14358_v13 }
 0x29e   : > { %14503 = vmatpush3.xpose.msra.mxu0 %v2809_v59  ;;  %14514 = vmatprep.subr.mxu1 %v16731_v45  ;;  %v14427_v16 = vpop.f32.mrf.mxu1 }
 0x29f   : > { %14504 = vmatprep.subr.mxu0 %v16740_v0 }
 0x2a0   : > { %14495 = vmatmul.mubr.f32.vlgmr.msra.gmra.mxu1 %v16729_v61 }
 0x2a1   : > { %14497 = vmatprep.mubr.f32.mxu1 %v16735_v34  ;;  %14515 = vmatpush3.xpose.msra.mxu1 %v16731_v45 }
 0x2a2   : > { %14505 = vmatpush3.xpose.msra.mxu0 %v16740_v0  ;;  %14516 = vmatprep.subr.mxu1 %v16745_v6 }
 0x2a3   : > { %14506 = vmatprep.subr.mxu0 %v2823_v51  ;;  %v14402_v37 = vpop.f32.mrf.mxu0 }
 0x2a4   : > { %14498 = vmatmul.mubr.f32.gmra.mxu1 %v16756_v21  ;;  %v2309_v41 = vadd.f32 %v14402_v37, %v2202_v55 }
 0x2a5   : > { %14517 = vmatpush3.xpose.msra.mxu1 %v16745_v6  ;;  %14522 = vmatprep.mubr.f32.mxu1 %v2738_v36  ;;  %v2301_v49 = vpop.f32.mrf.mxu0  ;;  %v2419_v36 = vpop.f32.mrf.mxu1 }
 0x2a6   : > { %14507 = vmatpush3.xpose.msra.mxu0 %v2823_v51  ;;  %14518 = vmatprep.subr.mxu1 %v16719_v50  ;;  %v2302_v0 = vadd.f32 %v2301_v49, %v2196_v60  ;;  %v2412_v62 = vadd.f32 %v14424_v46, %v2309_v41 }
 0x2a7   : > { %14528 = vmatprep.subr.mxu0 %v16753_v12 }
 0x2a8   : > { %v14405_v4 = vpop.f32.mrf.mxu0 }
 0x2a9   : > { %14509 = vmatmul.mubr.f32.vlgmr.msra.gmra.mxu0 %v16750_v39  ;;  %14519 = vmatpush3.xpose.msra.mxu1 %v16719_v50  ;;  %v2323_v59 = vadd.f32 %v14405_v4, %v2214_v20 }
 0x2aa   : > { %14511 = vmatprep.mubr.f32.mxu0 %v16759_v58  ;;  %14529 = vmatpush3.xpose.msra.mxu0 %v16753_v12  ;;  %v2315_v5 = vpop.f32.mrf.mxu0  ;;  %v2208_v12 = vadd.f32 %v2207_v40, %v2074_v63 }
 0x2ab   : > { %14520 = vmatprep.subr.mxu1 %v16742_v52  ;;  %14530 = vmatprep.subr.mxu0 %v16762_v22 }
 0x2ad   : > { %14512 = vmatmul.mubr.f32.gmra.mxu0 %v16773_v8  ;;  %14521 = vmatpush3.xpose.msra.mxu1 %v16742_v52  ;;  %v14468_v1 = vpop.f32.mrf.mxu1 }
 0x2ae   : > { %14531 = vmatpush3.xpose.msra.mxu0 %v16762_v22  ;;  %14536 = vmatprep.mubr.f32.mxu0 %v16694_v54 }
 0x2af   : > { %14532 = vmatprep.subr.mxu0 %v16765_v24  ;;  %14542 = vmatprep.subr.mxu1 %v16731_v45  ;;  %v2619_v39 = vpop.f32.mrf.mxu1 }
 0x2b0   : > { %14523 = vmatmul.mubr.f32.vlgmr.msra.gmra.mxu1 %v2748_v10  ;;  %v2428_v10 = vadd.f32 %v14427_v16, %v2323_v59 }
 0x2b1   : > { %14525 = vmatprep.mubr.f32.mxu1 %v2758_v14  ;;  %14543 = vmatpush3.xpose.msra.mxu1 %v16731_v45  ;;  %v2316_v45 = vadd.f32 %v2315_v5, %v2208_v12  ;;  %v14471_v8 = vpop.f32.mrf.mxu1 }
 0x2b2   : > { %14533 = vmatpush3.xpose.msra.mxu0 %v16765_v24  ;;  %14544 = vmatprep.subr.mxu1 %v16745_v6  ;;  %v2404_v24 = vadd.f32 %v2403_v42, %v2302_v0 }
 0x2b3   : > { %14534 = vmatprep.subr.mxu0 %v16778_v7  ;;  %v2420_v2 = vadd.f32 %v2419_v36, %v2316_v45  ;;  %v2631_v18 = vpop.f32.mrf.mxu1 }
 0x2b4   : > { %14526 = vmatmul.mubr.f32.gmra.mxu1 %v2768_v15 }
 0x2b5   : > { %v14446_v58 = vpop.f32.mrf.mxu0  ;;  %14545 = vmatpush3.xpose.msra.mxu1 %v16745_v6  ;;  %14550 = vmatprep.mubr.f32.mxu1 %v16694_v54 }
 0x2b6   : > { %v2529_v22 = vadd.f32 %v14446_v58, %v2412_v62  ;;  %14535 = vmatpush3.xpose.msra.mxu0 %v16778_v7  ;;  %14546 = vmatprep.subr.mxu1 %v16719_v50 }
 0x2b7   : > { %v2522_v51 = vpop.f32.mrf.mxu0 }
 0x2b8   : > { %v16834_v3 = vadd.f32 %v14468_v1, %v2529_v22  ;;  %v2523_v28 = vadd.f32 %v2522_v51, %v2404_v24 }
 0x2b9   : > { %v14449_v14 = vpop.f32.mrf.mxu0  ;;  %14537 = vmatmul.mubr.f32.vlgmr.msra.gmra.mxu0 %v16729_v61  ;;  %14547 = vmatpush3.xpose.msra.mxu1 %v16719_v50 }
 0x2ba   : > { %v16839_v54 = vand.u32 4294901760, %v16834_v3  ;;  %v16841_v6 = vadd.f32 %v2619_v39, %v2523_v28  ;;  %v2541_v56 = vadd.f32 %v14449_v14, %v2428_v10  ;;  %14539 = vmatprep.mubr.f32.mxu0 %v16735_v34  ;;  %14548 = vmatprep.subr.mxu1 %v16742_v52 }
 0x2bb   : > { %v2534_v7 = vpop.f32.mrf.mxu0 }
 0x2bc   : > { %v16846_v11 = vand.u32 4294901760, %v16841_v6  ;;  %v16848_v15 = vadd.f32 %v14471_v8, %v2541_v56  ;;  %v2535_v17 = vadd.f32 %v2534_v7, %v2420_v2  ;;  %v16859_v26 = vsub.f32 %v16834_v3, %v16839_v54 }
 0x2bd   : > { %14540 = vmatmul.mubr.f32.gmra.mxu0 %v16756_v21  ;;  %14549 = vmatpush3.xpose.msra.mxu1 %v16742_v52 }
 0x2be   : > { %v16853_v50 = vand.u32 4294901760, %v16848_v15  ;;  %v16855_v19 = vadd.f32 %v2631_v18, %v2535_v17  ;;  %v16872_v52 = vsub.f32 %v16841_v6, %v16846_v11  ;;  %v16885_v25 = vand.u32 4294901760, %v16859_v26 }
 0x2c0   : > { %v16862_v27 = vand.u32 4294901760, %v16855_v19  ;;  %14556 = vmatprep.subr.mxu0 %v16853_v50  ;;  %v16867_v30 = vsub.f32 %v16848_v15, %v16853_v50  ;;  %14551 = vmatmul.mubr.f32.vlgmr.msra.gmra.mxu1 %v16729_v61  ;;  %v16896_v13 = vand.u32 4294901760, %v16872_v52  ;;  %v3493_v53 = vsub.f32 %v16859_v26, %v16885_v25 }
 0x2c1   : > { %14557 = vmatpush3.msra.mxu0 %v16853_v50  ;;  %14553 = vmatprep.mubr.f32.mxu1 %v16735_v34 }
 0x2c2   : > { %14558 = vmatprep.subr.mxu0 %v16862_v27  ;;  %v16878_v31 = vand.u32 4294901760, %v16867_v30  ;;  %v16882_v23 = vsub.f32 %v16855_v19, %v16862_v27  ;;  %v3500_v40 = vsub.f32 %v16872_v52, %v16896_v13  ;;  %v3494_v32 = vand.u32 4294901760, %v3493_v53 }
 0x2c3   : > { %14559 = vmatpush3.msra.mxu0 %v16862_v27 }
 0x2c4   : > { %14560 = vmatprep.subr.mxu0 %v16839_v54  ;;  %v3479_v61 = vsub.f32 %v16867_v30, %v16878_v31  ;;  %v16892_v34 = vand.u32 4294901760, %v16882_v23  ;;  %14554 = vmatmul.mubr.f32.gmra.mxu1 %v16756_v21  ;;  %v3501_v46 = vand.u32 4294901760, %v3500_v40 }
 0x2c5   : > { %14561 = vmatpush3.msra.mxu0 %v16839_v54 }
 0x2c6   : > { %14562 = vmatprep.subr.mxu0 %v16846_v11  ;;  %v3480_v33 = vand.u32 4294901760, %v3479_v61  ;;  %v3486_v9 = vsub.f32 %v16882_v23, %v16892_v34 }
 0x2c7   : > { %14563 = vmatpush3.msra.mxu0 %v16846_v11 }
 0x2c8   : > { %14570 = vmatprep.subr.mxu1 %v3480_v33  ;;  %14584 = vmatprep.subr.mxu0 %v16867_v30  ;;  %v3487_v21 = vand.u32 4294901760, %v3486_v9 }
 0x2c9   : > { %14571 = vmatpush3.msra.mxu1 %v3480_v33 }
 0x2ca   : > { %14572 = vmatprep.subr.mxu1 %v3487_v21 }
 0x2cb   : > { %14573 = vmatpush3.msra.mxu1 %v3487_v21 }
 0x2cc   : > { %14574 = vmatprep.subr.mxu1 %v3494_v32 }
 0x2cd   : > { %14575 = vmatpush3.msra.mxu1 %v3494_v32 }
 0x2ce   : > { %14576 = vmatprep.subr.mxu1 %v3501_v46 }
 0x2cf   : > { %14577 = vmatpush3.msra.mxu1 %v3501_v46 }
 0x2d0   : > { %14598 = vmatprep.subr.mxu1 %v16853_v50 }
 0x358   : > { %v14482_v63 = vpop.f32.mrf.mxu0 }
 0x35a   : > { %v2742_v42 = vpop.f32.mrf.mxu0 }
 0x35c   : > { %v14485_v16 = vpop.f32.mrf.mxu0 }
 0x35e   : > { %v2762_v55 = vpop.f32.mrf.mxu0 }
 0x360   : > { %v14496_v37 = vpop.f32.mrf.mxu1 }
 0x361   : > { %v2870_v12 = vadd.f32 %v14496_v37, %v14482_v63 }
 0x362   : > { %v2863_v49 = vpop.f32.mrf.mxu1 }
 0x363   : > { %v2864_v39 = vadd.f32 %v2863_v49, %v2742_v42 }
 0x364   : > { %v14499_v4 = vpop.f32.mrf.mxu1 }
 0x365   : > { %v2882_v22 = vadd.f32 %v14499_v4, %v14485_v16 }
 0x366   : > { %v2875_v41 = vpop.f32.mrf.mxu1 }
 0x367   : > { %v2876_v8 = vadd.f32 %v2875_v41, %v2762_v55 }
 0x369   : > { %v14510_v36 = vpop.f32.mrf.mxu0 }
 0x36a   : > { %v2969_v58 = vadd.f32 %v14510_v36, %v2870_v12 }
 0x36b   : > { %v2961_v60 = vpop.f32.mrf.mxu0 }
 0x36c   : > { %v2962_v24 = vadd.f32 %v2961_v60, %v2864_v39 }
 0x36d   : > { %v14513_v20 = vpop.f32.mrf.mxu0 }
 0x36e   : > { %v2983_v14 = vadd.f32 %v14513_v20, %v2882_v22 }
 0x36f   : > { %v2975_v5 = vpop.f32.mrf.mxu0 }
 0x370   : > { %v14524_v1 = vpop.f32.mrf.mxu1  ;;  %v2976_v17 = vadd.f32 %v2975_v5, %v2876_v8 }
 0x371   : > { %v3068_v51 = vadd.f32 %v14524_v1, %v2969_v58 }
 0x372   : > { %v3059_v0 = vpop.f32.mrf.mxu1 }
 0x373   : > { %v3060_v56 = vadd.f32 %v3059_v0, %v2962_v24 }
 0x374   : > { %v14527_v62 = vpop.f32.mrf.mxu1 }
 0x375   : > { %v3084_v18 = vadd.f32 %v14527_v62, %v2983_v14 }
 0x376   : > { %v3075_v28 = vpop.f32.mrf.mxu1 }
 0x377   : > { %v3076_v21 = vadd.f32 %v3075_v28, %v2976_v17 }
 0x379   : > { %v14538_v59 = vpop.f32.mrf.mxu0 }
 0x37a   : > { %v3173_v2 = vadd.f32 %v14538_v59, %v3068_v51 }
 0x37b   : > { %v3166_v45 = vpop.f32.mrf.mxu0 }
 0x37c   : > { %v3167_v61 = vadd.f32 %v3166_v45, %v3060_v56 }
 0x37d   : > { %v14541_v10 = vpop.f32.mrf.mxu0 }
 0x37e   : > { %v3185_v40 = vadd.f32 %v14541_v10, %v3084_v18 }
 0x37f   : > { %v3178_v9 = vpop.f32.mrf.mxu0 }
 0x380   : > { %v14552_v7 = vpop.f32.mrf.mxu1  ;;  %v3179_v42 = vadd.f32 %v3178_v9, %v3076_v21 }
 0x381   : > { %v3266_v33 = vadd.f32 %v14552_v7, %v3173_v2 }
 0x382   : > { %v3259_v53 = vpop.f32.mrf.mxu1 }
 0x383   : > { %v3282_v32 = vmul.f32 0.25, %v3266_v33  ;;  %v3260_v46 = vadd.f32 %v3259_v53, %v3167_v61 }
 0x384   : > { %v14555_v63 = vpop.f32.mrf.mxu1 }
 0x385   : > { %v3281_v37 = vmul.f32 0.25, %v3260_v46  ;;  %v3278_v16 = vadd.f32 %v14555_v63, %v3185_v40  ;;  %v3289_v49 = vsel %vm3285_vm2, %v3282_v32, -inf }
 0x386   : > { %v3271_v55 = vpop.f32.mrf.mxu1  ;;  %3290 = vmax.xlane.f32.xlu1 %v3289_v49 }
 0x387   : > { %v3284_v36 = vmul.f32 0.25, %v3278_v16  ;;  %v3272_v4 = vadd.f32 %v3271_v55, %v3179_v42  ;;  %v3286_v60 = vsel %vm3285_vm2, %v3281_v37, -inf }
 0x388   : > { %3287 = vmax.xlane.f32.xlu0 %v3286_v60 }
 0x389   : > { %v3283_v41 = vmul.f32 0.25, %v3272_v4  ;;  %v3295_v1 = vsel %vm3285_vm2, %v3284_v36, -inf }
 0x38a   : > { %3296 = vmax.xlane.f32.xlu1 %v3295_v1 }
 0x38b   : > { %v3292_v20 = vsel %vm3285_vm2, %v3283_v41, -inf }
 0x38c   : > { %3293 = vmax.xlane.f32.xlu0 %v3292_v20 }
 0x40f   : > { %v3291_v0 = vpop.xlane.xlu1 %3290 }
 0x410   : > { %v3299_v5 = vsub.f32 %v3282_v32, %v3291_v0 }
 0x411   : > { %v3288_v12 = vpop.xlane.xlu0 %3287 }
 0x412   : > { %v3304_v59 = vmul.f32 1.442695, %v3299_v5  ;;  %v3298_v62 = vsub.f32 %v3281_v37, %v3288_v12 }
 0x413   : > { %v3297_v39 = vpop.xlane.xlu1 %3296 }
 0x414   : > { %15752 = vpow2.f32 %v3304_v59  ;;  %v3302_v58 = vmul.f32 1.442695, %v3298_v62  ;;  %v3301_v45 = vsub.f32 %v3284_v36, %v3297_v39 }
 0x415   : > { %v3294_v22 = vpop.xlane.xlu0 %3293 }
 0x416   : > { %15754 = vpow2.f32 %v3302_v58  ;;  %v3308_v24 = vmul.f32 1.442695, %v3301_v45  ;;  %v3300_v51 = vsub.f32 %v3283_v41, %v3294_v22 }
 0x418   : > { %15756 = vpow2.f32 %v3308_v24  ;;  %v3306_v28 = vmul.f32 1.442695, %v3300_v51 }
 0x41a   : > { %15758 = vpow2.f32 %v3306_v28 }
 0x421   : > { %v15753_v10 = vpop.eup %15752 }
 0x422   : > { %v3313_v8 = vsel %vm3285_vm2, %v15753_v10, 0.0 }
 0x423   : > { %v15755_v14 = vpop.eup %15754  ;;  %3314 = vadd.xlane.f32.xlu1 %v3313_v8 }
 0x424   : > { %v3310_v56 = vsel %vm3285_vm2, %v15755_v14, 0.0 }
 0x425   : > { %v15757_v2 = vpop.eup %15756  ;;  %3311 = vadd.xlane.f32.xlu0 %v3310_v56 }
 0x426   : > { %v3319_v7 = vsel %vm3285_vm2, %v15757_v2, 0.0 }
 0x427   : > { %v15759_v17 = vpop.eup %15758  ;;  %3320 = vadd.xlane.f32.xlu1 %v3319_v7 }
 0x428   : > { %v3316_v18 = vsel %vm3285_vm2, %v15759_v17, 0.0 }
 0x429   : > { %3317 = vadd.xlane.f32.xlu0 %v3316_v18 }
 0x438   : > { %4580 = vrot.lane.b32.xlu1 %v16727_v48, %s15869_s18 }
 0x43c   : > { %4578 = vrot.lane.b32.xlu1 %v16704_v35, %s15869_s18 }
 0x43f   : > { %4582 = vrot.lane.b32.xlu0 %v16717_v57, %s15869_s18 }
 0x440   : > { %4576 = vrot.lane.b32.xlu1 %v16711_v38, %s15869_s18 }
 0x443   : > { %4568 = vrot.lane.b32.xlu0 %v16690_v47, %s15869_s18 }
 0x444   : > { %4570 = vrot.lane.b32.xlu1 %v16688_v44, %s15869_s18 }
 0x447   : > { %4572 = vrot.lane.b32.xlu0 %v16707_v29, %s15869_s18 }
 0x448   : > { %4574 = vrot.lane.b32.xlu1 %v16715_v43, %s15869_s18 }
 0x4ac   : > { %v3315_v61 = vpop.xlane.xlu1 %3314 }
 0x4ad   : > { %15760 = vrcp.f32 %v3315_v61 }
 0x4ae   : > { %v3312_v33 = vpop.xlane.xlu0 %3311 }
 0x4af   : > { %15762 = vrcp.f32 %v3312_v33 }
 0x4b0   : > { %v3321_v9 = vpop.xlane.xlu1 %3320 }
 0x4b1   : > { %15764 = vrcp.f32 %v3321_v9 }
 0x4b2   : > { %v3318_v53 = vpop.xlane.xlu0 %3317 }
 0x4b3   : > { %15766 = vrcp.f32 %v3318_v53 }
 0x4ba   : > { %v15761_v21 = vpop.eup %15760 }
 0x4bb   : > { %v3327_v40 = vmul.f32 %v15761_v21, %v15753_v10 }
 0x4bc   : > { %v15763_v32 = vpop.eup %15762 }
 0x4bd   : > { %v3326_v46 = vmul.f32 %v15763_v32, %v15755_v14  ;;  %v3334_v63 = vsel %vm3285_vm2, %v3327_v40, 0 }
 0x4be   : > { %v15765_v42 = vpop.eup %15764  ;;  %v16934_v37 = vand.u32 4294901760, %v3334_v63 }
 0x4bf   : > { %v3331_v16 = vsel %vm3285_vm2, %v3326_v46, 0  ;;  %v3329_v49 = vmul.f32 %v15765_v42, %v15757_v2 }
 0x4c0   : > { %v15767_v55 = vpop.eup %15766  ;;  %v16937_v36 = vand.u32 4294901760, %v3331_v16  ;;  %v3422_v4 = vsub.f32 %v3334_v63, %v16934_v37 }
 0x4c1   : > { %v3328_v60 = vmul.f32 %v15767_v55, %v15759_v17  ;;  %v3340_v41 = vsel %vm3285_vm2, %v3329_v49, 0 }
 0x4c2   : > { %14578 = vmatprep.mubr.f32.mxu1 %v16937_v36  ;;  %v16942_v1 = vand.u32 4294901760, %v3340_v41  ;;  %v3412_v20 = vsub.f32 %v3331_v16, %v16937_v36  ;;  %v3423_v5 = vand.u32 4294901760, %v3422_v4 }
 0x4c3   : > { %14579 = vmatmul.mubr.f32.vlgmr.msra.gmra.mxu1 %v16934_v37  ;;  %v3337_v0 = vsel %vm3285_vm2, %v3328_v60, 0 }
 0x4c4   : > { %14599 = vmatpush3.msra.mxu1 %v16853_v50  ;;  %v3431_v12 = vand.u32 4294901760, %v3337_v0  ;;  %v3413_v59 = vand.u32 4294901760, %v3412_v20  ;;  %v3424_v62 = vsub.f32 %v3422_v4, %v3423_v5  ;;  %v3442_v39 = vsub.f32 %v3340_v41, %v16942_v1  ;;  %v4583_v41 = vpop.permute.xlu0 %4582 }
 0x4c5   : > { %14600 = vmatprep.subr.mxu1 %v16862_v27 }
 0x4c6   : > { %14601 = vmatpush3.msra.mxu1 %v16862_v27  ;;  %14581 = vmatprep.mubr.f32.mxu1 %v3431_v12  ;;  %v3414_v58 = vsub.f32 %v3412_v20, %v3413_v59  ;;  %v3432_v45 = vsub.f32 %v3337_v0, %v3431_v12  ;;  %v3443_v22 = vand.u32 4294901760, %v3442_v39  ;;  %v3425_v28 = vand.u32 4294901760, %v3424_v62 }
 0x4c7   : > { %14602 = vmatprep.subr.mxu1 %v16839_v54  ;;  %14582 = vmatmul.mubr.f32.gmra.mxu1 %v16942_v1  ;;  %v4598_v62 = vsel %vm2642_vm1, %v4583_v41, 0 }
 0x4c8   : > { %14603 = vmatpush3.msra.mxu1 %v16839_v54  ;;  %14606 = vmatprep.mubr.f32.mxu1 %v3413_v59  ;;  %v3415_v24 = vand.u32 4294901760, %v3414_v58  ;;  %v3433_v51 = vand.u32 4294901760, %v3432_v45  ;;  %v3444_v8 = vsub.f32 %v3442_v39, %v3443_v22 }
 0x4c9   : > { %14604 = vmatprep.subr.mxu1 %v16846_v11 }
 0x4ca   : > { %14605 = vmatpush3.msra.mxu1 %v16846_v11  ;;  %14564 = vmatprep.mubr.f32.mxu0 %v3415_v24  ;;  %v3434_v10 = vsub.f32 %v3432_v45, %v3433_v51  ;;  %v3445_v56 = vand.u32 4294901760, %v3444_v8  ;;  %v4581_v24 = vpop.permute.xlu1 %4580  ;;  %v17018_v8 = vand.u32 4294901760, %v4598_v62 }
 0x4cb   : > { %14626 = vmatprep.subr.mxu1 %v16853_v50  ;;  %14565 = vmatmul.mubr.f32.vlgmr.msra.gmra.mxu0 %v3425_v28 }
 0x4cc   : > { %14585 = vmatpush3.msra.mxu0 %v16867_v30  ;;  %14607 = vmatmul.mubr.f32.vlgmr.msra.gmra.mxu1 %v3423_v5  ;;  %v3435_v14 = vand.u32 4294901760, %v3434_v10 }
 0x4cd   : > { %14627 = vmatpush3.msra.mxu1 %v16853_v50  ;;  %14586 = vmatprep.subr.mxu0 %v16882_v23  ;;  %v3956_v50 = vld [vmem:[%s18888_s4] sm:$0xff] }
 0x4ce   : > { %14609 = vmatprep.mubr.f32.mxu1 %v3433_v51  ;;  %14628 = vmatprep.subr.mxu1 %v16862_v27 }
 0x4cf   : > { %14587 = vmatpush3.msra.mxu0 %v16882_v23  ;;  %14629 = vmatpush3.msra.mxu1 %v16862_v27  ;;  %v16996_v27 = vand.u32 4294901760, %v3956_v50 }
 0x4d0   : > { %14567 = vmatprep.mubr.f32.mxu0 %v3435_v14  ;;  %14588 = vmatprep.subr.mxu0 %v16859_v26 }
 0x4d1   : > { %14630 = vmatprep.subr.mxu1 %v16839_v54  ;;  %14568 = vmatmul.mubr.f32.gmra.mxu0 %v3445_v56 }
 0x4d2   : > { %14589 = vmatpush3.msra.mxu0 %v16859_v26  ;;  %14610 = vmatmul.mubr.f32.gmra.mxu1 %v3443_v22 }
 0x4d3   : > { %14631 = vmatpush3.msra.mxu1 %v16839_v54  ;;  %14590 = vmatprep.subr.mxu0 %v16872_v52  ;;  %v3957_v54 = vld [vmem:[%s18888_s4 + $0x8] sm:$0xff] }
 0x4d4   : > { %14592 = vmatprep.mubr.f32.mxu0 %v3412_v20  ;;  %14632 = vmatprep.subr.mxu1 %v16846_v11 }
 0x4d5   : > { %14634 = vmatprep.mubr.f32.mxu1 %v16937_v36  ;;  %14591 = vmatpush3.msra.mxu0 %v16872_v52  ;;  %v17004_v52 = vsub.f32 %v3956_v50, %v16996_v27 }
 0x4d6   : > { %14633 = vmatpush3.msra.mxu1 %v16846_v11  ;;  %14612 = vmatprep.subr.mxu0 %v16878_v31  ;;  %v16988_v11 = vand.u32 4294901760, %v3957_v54 }
 0x4d7   : > { %14593 = vmatmul.mubr.f32.vlgmr.msra.gmra.mxu0 %v3422_v4  ;;  %14635 = vmatmul.mubr.f32.vlgmr.msra.gmra.mxu1 %v16934_v37  ;;  %v17011_v23 = vand.u32 4294901760, %v17004_v52 }
 0x4d8   : > { %14613 = vmatpush3.msra.mxu0 %v16878_v31  ;;  %14595 = vmatprep.mubr.f32.mxu0 %v3432_v45  ;;  %v16994_v26 = vsub.f32 %v3957_v54, %v16988_v11 }
 0x4d9   : > { %14614 = vmatprep.subr.mxu0 %v16892_v34  ;;  %14637 = vmatprep.mubr.f32.mxu1 %v3431_v12 }
 0x4da   : > { %14615 = vmatpush3.msra.mxu0 %v16892_v34  ;;  %v17001_v30 = vand.u32 4294901760, %v16994_v26  ;;  %v4116_v34 = vsub.f32 %v17004_v52, %v17011_v23 }
 0x4db   : > { %14616 = vmatprep.subr.mxu0 %v16885_v25  ;;  %14596 = vmatmul.mubr.f32.gmra.mxu0 %v3442_v39 }
 0x4dc   : > { %14617 = vmatpush3.msra.mxu0 %v16885_v25  ;;  %14638 = vmatmul.mubr.f32.gmra.mxu1 %v16942_v1  ;;  %v4109_v31 = vsub.f32 %v16994_v26, %v17001_v30 }
 0x4dd   : > { %14618 = vmatprep.subr.mxu0 %v16896_v13  ;;  %14620 = vmatprep.mubr.f32.mxu0 %v16937_v36 }
 0x4de   : > { %14619 = vmatpush3.msra.mxu0 %v16896_v13  ;;  %v4110_v25 = vand.u32 4294901760, %v4109_v31  ;;  %v4117_v13 = vand.u32 4294901760, %v4116_v34 }
 0x4df   : > { %14621 = vmatmul.mubr.f32.vlgmr.msra.gmra.mxu0 %v16934_v37  ;;  %14640 = vmatprep.subr.mxu0 %v16988_v11 }
 0x4e0   : > { %14623 = vmatprep.mubr.f32.mxu0 %v3431_v12  ;;  %14641 = vmatpush3.msra.mxu0 %v16988_v11 }
 0x4e1   : > { %14642 = vmatprep.subr.mxu0 %v16996_v27  ;;  %14650 = vmatprep.subr.mxu1 %v4110_v25 }
 0x4e2   : > { %14643 = vmatpush3.msra.mxu0 %v16996_v27  ;;  %14651 = vmatpush3.msra.mxu1 %v4110_v25 }
 0x4e3   : > { %14624 = vmatmul.mubr.f32.gmra.mxu0 %v16942_v1  ;;  %14660 = vmatprep.subr.mxu0 %v16994_v26 }
 0x4e4   : > { %14652 = vmatprep.subr.mxu1 %v4117_v13 }
 0x4e5   : > { %14653 = vmatpush3.msra.mxu1 %v4117_v13 }
 0x4e6   : > { %14670 = vmatprep.subr.mxu1 %v16988_v11 }
 0x583   : > { %v14580_v2 = vpop.f32.mrf.mxu1 }
 0x585   : > { %v3538_v7 = vpop.f32.mrf.mxu1 }
 0x587   : > { %v14583_v17 = vpop.f32.mrf.mxu1 }
 0x589   : > { %v3550_v18 = vpop.f32.mrf.mxu1 }
 0x58b   : > { %v14566_v61 = vpop.f32.mrf.mxu0 }
 0x58c   : > { %v14608_v33 = vpop.f32.mrf.mxu1  ;;  %v3545_v42 = vadd.f32 %v14580_v2, %v14566_v61 }
 0x58d   : > { %v3417_v9 = vpop.f32.mrf.mxu0 }
 0x58e   : > { %v3734_v53 = vpop.f32.mrf.mxu1  ;;  %v3539_v16 = vadd.f32 %v3538_v7, %v3417_v9  ;;  %v17030_v9 = vsub.f32 %v4598_v62, %v17018_v8 }
 0x591   : > { %v14569_v21 = vpop.f32.mrf.mxu0 }
 0x592   : > { %v14611_v40 = vpop.f32.mrf.mxu1  ;;  %v3557_v4 = vadd.f32 %v14583_v17, %v14569_v21 }
 0x593   : > { %v3437_v32 = vpop.f32.mrf.mxu0 }
 0x594   : > { %v3750_v46 = vpop.f32.mrf.mxu1  ;;  %v3551_v20 = vadd.f32 %v3550_v18, %v3437_v32  ;;  %v4579_v32 = vpop.permute.xlu1 %4578 }
 0x595   : > { %v4594_v41 = vsel %vm2642_vm1, %v4579_v32, 0 }
 0x597   : > { %v14594_v63 = vpop.f32.mrf.mxu0  ;;  %v14636_v55 = vpop.f32.mrf.mxu1 }
 0x598   : > { %v3644_v49 = vadd.f32 %v14594_v63, %v3545_v42 }
 0x599   : > { %v3636_v37 = vpop.f32.mrf.mxu0  ;;  %v3934_v12 = vpop.f32.mrf.mxu1 }
 0x59a   : > { %v3637_v60 = vadd.f32 %v3636_v37, %v3539_v16  ;;  %v3743_v5 = vadd.f32 %v14608_v33, %v3644_v49 }
 0x59b   : > { %v14597_v36 = vpop.f32.mrf.mxu0 }
 0x59c   : > { %v3658_v0 = vadd.f32 %v14597_v36, %v3557_v4  ;;  %v3735_v45 = vadd.f32 %v3734_v53, %v3637_v60  ;;  %v14639_v14 = vpop.f32.mrf.mxu1  ;;  %v17052_v60 = vand.u32 4294901760, %v17030_v9 }
 0x59d   : > { %v3650_v1 = vpop.f32.mrf.mxu0 }
 0x59e   : > { %v3651_v39 = vadd.f32 %v3650_v1, %v3551_v20  ;;  %v3759_v10 = vadd.f32 %v14611_v40, %v3658_v0  ;;  %v3946_v18 = vpop.f32.mrf.mxu1  ;;  %v4596_v40 = vsel %vm2642_vm1, %v4581_v24, 0 }
 0x59f   : > { %v14622_v59 = vpop.f32.mrf.mxu0  ;;  %v17047_v36 = vand.u32 4294901760, %v4596_v40 }
 0x5a0   : > { %v3848_v58 = vadd.f32 %v14622_v59, %v3743_v5  ;;  %v3751_v25 = vadd.f32 %v3750_v46, %v3651_v39  ;;  %v4577_v5 = vpop.permute.xlu1 %4576  ;;  %v17064_v39 = vand.u32 4294901760, %v4594_v41 }
 0x5a1   : > { %v3841_v22 = vpop.f32.mrf.mxu0  ;;  %v17062_v62 = vsub.f32 %v4596_v40, %v17047_v36 }
 0x5a2   : > { %v3941_v51 = vadd.f32 %v14636_v55, %v3848_v58  ;;  %v3842_v28 = vadd.f32 %v3841_v22, %v3735_v45  ;;  %v4737_v45 = vsub.f32 %v17030_v9, %v17052_v60 }
 0x5a3   : > { %v14625_v56 = vpop.f32.mrf.mxu0 }
 0x5a4   : > { %v3962_v54 = vsel %vm2642_vm1, %v3941_v51, 0  ;;  %v3935_v50 = vadd.f32 %v3934_v12, %v3842_v28  ;;  %v3860_v31 = vadd.f32 %v14625_v56, %v3759_v10  ;;  %v4569_v51 = vpop.permute.xlu0 %4568  ;;  %v4592_v28 = vsel %vm2642_vm1, %v4577_v5, 0 }
 0x5a5   : > { %v17021_v34 = vand.u32 4294901760, %v3962_v54  ;;  %v3853_v13 = vpop.f32.mrf.mxu0  ;;  %v4738_v56 = vand.u32 4294901760, %v4737_v45 }
 0x5a6   : > { %v3959_v2 = vsel %vm2642_vm1, %v3935_v50, 0  ;;  %v3953_v7 = vadd.f32 %v14639_v14, %v3860_v31  ;;  %v3854_v17 = vadd.f32 %v3853_v13, %v3751_v25  ;;  %v17073_v14 = vsub.f32 %v4594_v41, %v17064_v39 }
 0x5a7   : > { %v17025_v61 = vsub.f32 %v3962_v54, %v17021_v34  ;;  %v17027_v33 = vand.u32 4294901760, %v3959_v2  ;;  %v17077_v54 = vand.u32 4294901760, %v17062_v62  ;;  %v4584_v50 = vsel %vm2642_vm1, %v4569_v51, 0 }
 0x5a8   : > { %v3968_v53 = vsel %vm2642_vm1, %v3953_v7, 0  ;;  %v3947_v21 = vadd.f32 %v3946_v18, %v3854_v17  ;;  %v17080_v31 = vand.u32 4294901760, %v4592_v28  ;;  %v17090_v13 = vand.u32 4294901760, %v17073_v14  ;;  %v4573_v18 = vpop.permute.xlu0 %4572 }
 0x5a9   : > { %v4049_v46 = vand.u32 4294901760, %v17025_v61  ;;  %v4038_v63 = vsub.f32 %v3959_v2, %v17027_v33  ;;  %v17036_v42 = vand.u32 4294901760, %v3968_v53  ;;  %14654 = vmatprep.mubr.f32.mxu1 %v17027_v33  ;;  %v4744_v25 = vsub.f32 %v17062_v62, %v17077_v54  ;;  %v4571_v2 = vpop.permute.xlu1 %4570 }
 0x5aa   : > { %v3965_v37 = vsel %vm2642_vm1, %v3947_v21, 0  ;;  %14655 = vmatmul.mubr.f32.vlgmr.msra.gmra.mxu1 %v17021_v34  ;;  %v4751_v17 = vsub.f32 %v17073_v14, %v17090_v13  ;;  %v4588_v21 = vsel %vm2642_vm1, %v4573_v18, 0 }
 0x5ab   : > { %v17042_v16 = vsub.f32 %v3968_v53, %v17036_v42  ;;  %v17044_v49 = vand.u32 4294901760, %v3965_v37  ;;  %14671 = vmatpush3.msra.mxu1 %v16988_v11  ;;  %v4039_v55 = vand.u32 4294901760, %v4038_v63  ;;  %v4050_v4 = vsub.f32 %v17025_v61, %v4049_v46 }
 0x5ac   : > { %14672 = vmatprep.subr.mxu1 %v16996_v27  ;;  %v4745_v7 = vand.u32 4294901760, %v4744_v25  ;;  %v4752_v32 = vand.u32 4294901760, %v4751_v17 }
 0x5ad   : > { %v4058_v1 = vsub.f32 %v3965_v37, %v17044_v49  ;;  %14657 = vmatprep.mubr.f32.mxu1 %v17044_v49  ;;  %14673 = vmatpush3.msra.mxu1 %v16996_v27  ;;  %v4040_v20 = vsub.f32 %v4038_v63, %v4039_v55  ;;  %v4069_v0 = vand.u32 4294901760, %v17042_v16  ;;  %v4051_v58 = vand.u32 4294901760, %v4050_v4  ;;  %v4575_v40 = vpop.permute.xlu1 %4574 }
 0x5ae   : > { %14658 = vmatmul.mubr.f32.gmra.mxu1 %v17036_v42  ;;  %14690 = vmatprep.subr.mxu1 %v16988_v11  ;;  %v4590_v37 = vsel %vm2642_vm1, %v4575_v40, 0 }
 0x5af   : > { %14674 = vmatprep.mubr.f32.mxu1 %v4039_v55  ;;  %v4041_v12 = vand.u32 4294901760, %v4040_v20  ;;  %v4059_v59 = vand.u32 4294901760, %v4058_v1  ;;  %v4070_v24 = vsub.f32 %v17042_v16, %v4069_v0  ;;  %v17130_v4 = vand.u32 4294901760, %v4590_v37 }
 0x5b1   : > { %14644 = vmatprep.mubr.f32.mxu0 %v4041_v12  ;;  %v4060_v22 = vsub.f32 %v4058_v1, %v4059_v59  ;;  %v4700_v20 = vsub.f32 %v4590_v37, %v17130_v4 }
 0x5b2   : > { %14645 = vmatmul.mubr.f32.vlgmr.msra.gmra.mxu0 %v4051_v58  ;;  %14675 = vmatmul.mubr.f32.vlgmr.msra.gmra.mxu1 %v4049_v46 }
 0x5b3   : > { %14661 = vmatpush3.msra.mxu0 %v16994_v26  ;;  %14691 = vmatpush3.msra.mxu1 %v16988_v11  ;;  %v4061_v10 = vand.u32 4294901760, %v4060_v22  ;;  %v4071_v26 = vand.u32 4294901760, %v4070_v24  ;;  %v17084_v11 = vand.u32 4294901760, %v4584_v50 }
 0x5b4   : > { %14677 = vmatprep.mubr.f32.mxu1 %v4059_v59  ;;  %14692 = vmatprep.subr.mxu1 %v16996_v27 }
 0x5b5   : > { %14693 = vmatpush3.msra.mxu1 %v16996_v27  ;;  %14647 = vmatprep.mubr.f32.mxu0 %v4061_v10  ;;  %v17093_v27 = vsub.f32 %v4592_v28, %v17080_v31 }
 0x5b6   : > { %14662 = vmatprep.subr.mxu0 %v17004_v52  ;;  %14714 = vmatprep.subr.mxu1 %v4738_v56 }
 0x5b7   : > { %14648 = vmatmul.mubr.f32.gmra.mxu0 %v4071_v26  ;;  %14678 = vmatmul.mubr.f32.gmra.mxu1 %v4069_v0  ;;  %v17107_v53 = vand.u32 4294901760, %v17093_v27 }
 0x5b8   : > { %14663 = vmatpush3.msra.mxu0 %v17004_v52  ;;  %14664 = vmatprep.mubr.f32.mxu0 %v4038_v63  ;;  %v17100_v52 = vsub.f32 %v4584_v50, %v17084_v11 }
 0x5b9   : > { %14694 = vmatprep.mubr.f32.mxu1 %v17027_v33  ;;  %14680 = vmatprep.subr.mxu0 %v17001_v30  ;;  %v4758_v46 = vsub.f32 %v17093_v27, %v17107_v53 }
 0x5bb   : > { %14665 = vmatmul.mubr.f32.vlgmr.msra.gmra.mxu0 %v17025_v61  ;;  %14695 = vmatmul.mubr.f32.vlgmr.msra.gmra.mxu1 %v17021_v34  ;;  %v4586_v61 = vsel %vm2642_vm1, %v4571_v2, 0 }
 0x5bc   : > { %14681 = vmatpush3.msra.mxu0 %v17001_v30  ;;  %14715 = vmatpush3.xpose.msra.mxu1 %v4738_v56  ;;  %v4671_v30 = vand.u32 4294901760, %v17100_v52  ;;  %v17120_v63 = vand.u32 4294901760, %v4586_v61 }
 0x5bd   : > { %14667 = vmatprep.mubr.f32.mxu0 %v4058_v1  ;;  %14682 = vmatprep.subr.mxu0 %v17011_v23 }
 0x5be   : > { %14697 = vmatprep.mubr.f32.mxu1 %v17044_v49  ;;  %14716 = vmatprep.subr.mxu1 %v4745_v7  ;;  %v4680_v55 = vsub.f32 %v4586_v61, %v17120_v63 }
 0x5bf   : > { %14683 = vmatpush3.msra.mxu0 %v17011_v23  ;;  %14698 = vmatmul.mubr.f32.gmra.mxu1 %v17036_v42  ;;  %v17123_v23 = vand.u32 4294901760, %v4588_v21 }
 0x5c0   : > { %14700 = vmatprep.subr.mxu0 %v17018_v8  ;;  %14668 = vmatmul.mubr.f32.gmra.mxu0 %v17042_v16  ;;  %v4672_v16 = vsub.f32 %v17100_v52, %v4671_v30  ;;  %v4681_v1 = vand.u32 4294901760, %v4680_v55 }
 0x5c1   : > { %14717 = vmatpush3.xpose.msra.mxu1 %v4745_v7  ;;  %14684 = vmatprep.mubr.f32.mxu0 %v17027_v33  ;;  %v4759_v33 = vand.u32 4294901760, %v4758_v46  ;;  %v4690_v41 = vsub.f32 %v4588_v21, %v17123_v23 }
 0x5c2   : > { %14718 = vmatprep.subr.mxu1 %v4752_v32  ;;  %14722 = vmatprep.mubr.f32.mxu1 %v17084_v11 }
 0x5c3   : > { %v4691_v0 = vand.u32 4294901760, %v4690_v41 }
 0x5c4   : > { %14685 = vmatmul.mubr.f32.vlgmr.msra.gmra.mxu0 %v17021_v34  ;;  %v4673_v34 = vand.u32 4294901760, %v4672_v16 }
 0x5c5   : > { %14701 = vmatpush3.xpose.msra.mxu0 %v17018_v8  ;;  %14719 = vmatpush3.xpose.msra.mxu1 %v4752_v32  ;;  %v4692_v5 = vsub.f32 %v4690_v41, %v4691_v0 }
 0x5c6   : > { %14687 = vmatprep.mubr.f32.mxu0 %v17044_v49  ;;  %14702 = vmatprep.subr.mxu0 %v17047_v36  ;;  %v4701_v49 = vand.u32 4294901760, %v4700_v20 }
 0x5c7   : > { %14720 = vmatprep.subr.mxu1 %v4759_v33  ;;  %v4693_v58 = vand.u32 4294901760, %v4692_v5 }
 0x5c8   : > { %14688 = vmatmul.mubr.f32.gmra.mxu0 %v17036_v42  ;;  %v4682_v42 = vsub.f32 %v4680_v55, %v4681_v1  ;;  %v4702_v59 = vsub.f32 %v4700_v20, %v4701_v49 }
 0x5c9   : > { %14703 = vmatpush3.xpose.msra.mxu0 %v17047_v36  ;;  %14721 = vmatpush3.xpose.msra.mxu1 %v4759_v33 }
 0x5ca   : > { %14704 = vmatprep.subr.mxu0 %v17064_v39  ;;  %14708 = vmatprep.mubr.f32.mxu0 %v4673_v34  ;;  %v4683_v12 = vand.u32 4294901760, %v4682_v42  ;;  %v4703_v45 = vand.u32 4294901760, %v4702_v59 }
 0x5cb   : > { %14742 = vmatprep.subr.mxu1 %v17018_v8 }
 0x5cc   : > { %14723 = vmatmul.mubr.f32.vlgmr.msra.gmra.mxu1 %v17120_v63 }
 0x5cd   : > { %14705 = vmatpush3.xpose.msra.mxu0 %v17064_v39  ;;  %14725 = vmatprep.mubr.f32.mxu1 %v17123_v23 }
 0x5ce   : > { %14743 = vmatpush3.xpose.msra.mxu1 %v17018_v8  ;;  %14706 = vmatprep.subr.mxu0 %v17080_v31 }
 0x5cf   : > { %14744 = vmatprep.subr.mxu1 %v17047_v36 }
 0x5d0   : > { %14726 = vmatmul.mubr.f32.gmra.mxu1 %v17130_v4 }
 0x5d1   : > { %14707 = vmatpush3.xpose.msra.mxu0 %v17080_v31  ;;  %14750 = vmatprep.mubr.f32.mxu1 %v4671_v30 }
 0x5d2   : > { %14745 = vmatpush3.xpose.msra.mxu1 %v17047_v36  ;;  %14728 = vmatprep.subr.mxu0 %v17030_v9 }
 0x5d3   : > { %14746 = vmatprep.subr.mxu1 %v17064_v39 }
 0x5d4   : > { %14709 = vmatmul.mubr.f32.vlgmr.msra.gmra.mxu0 %v4683_v12 }
 0x5d5   : > { %14711 = vmatprep.mubr.f32.mxu0 %v4693_v58  ;;  %14729 = vmatpush3.xpose.msra.mxu0 %v17030_v9 }
 0x5d6   : > { %14747 = vmatpush3.xpose.msra.mxu1 %v17064_v39  ;;  %14730 = vmatprep.subr.mxu0 %v17062_v62 }
 0x5d7   : > { %14748 = vmatprep.subr.mxu1 %v17080_v31 }
 0x5d8   : > { %14712 = vmatmul.mubr.f32.gmra.mxu0 %v4703_v45 }
 0x5d9   : > { %14731 = vmatpush3.xpose.msra.mxu0 %v17062_v62  ;;  %14736 = vmatprep.mubr.f32.mxu0 %v17100_v52 }
 0x5da   : > { %14749 = vmatpush3.xpose.msra.mxu1 %v17080_v31  ;;  %14732 = vmatprep.subr.mxu0 %v17073_v14 }
 0x5db   : > { %14770 = vmatprep.subr.mxu1 %v17018_v8 }
 0x5dd   : > { %14751 = vmatmul.mubr.f32.vlgmr.msra.gmra.mxu1 %v4681_v1  ;;  %14733 = vmatpush3.xpose.msra.mxu0 %v17073_v14 }
 0x5de   : > { %14753 = vmatprep.mubr.f32.mxu1 %v4691_v0  ;;  %14771 = vmatpush3.xpose.msra.mxu1 %v17018_v8 }
 0x5df   : > { %14734 = vmatprep.subr.mxu0 %v17093_v27  ;;  %14772 = vmatprep.subr.mxu1 %v17047_v36 }
 0x5e1   : > { %14754 = vmatmul.mubr.f32.gmra.mxu1 %v4701_v49  ;;  %14735 = vmatpush3.xpose.msra.mxu0 %v17093_v27 }
 0x5e2   : > { %14773 = vmatpush3.xpose.msra.mxu1 %v17047_v36  ;;  %14778 = vmatprep.mubr.f32.mxu1 %v17084_v11 }
 0x5e3   : > { %14756 = vmatprep.subr.mxu0 %v17052_v60  ;;  %14774 = vmatprep.subr.mxu1 %v17064_v39 }
 0x5e4   : > { %14737 = vmatmul.mubr.f32.vlgmr.msra.gmra.mxu0 %v4680_v55 }
 0x5e5   : > { %14739 = vmatprep.mubr.f32.mxu0 %v4690_v41  ;;  %14757 = vmatpush3.xpose.msra.mxu0 %v17052_v60 }
 0x5e6   : > { %14775 = vmatpush3.xpose.msra.mxu1 %v17064_v39  ;;  %14758 = vmatprep.subr.mxu0 %v17077_v54 }
 0x5e7   : > { %14776 = vmatprep.subr.mxu1 %v17080_v31 }
 0x5e8   : > { %14740 = vmatmul.mubr.f32.gmra.mxu0 %v4700_v20 }
 0x5e9   : > { %14759 = vmatpush3.xpose.msra.mxu0 %v17077_v54  ;;  %14764 = vmatprep.mubr.f32.mxu0 %v17084_v11 }
 0x5ea   : > { %14777 = vmatpush3.xpose.msra.mxu1 %v17080_v31  ;;  %14760 = vmatprep.subr.mxu0 %v17090_v13 }
 0x5ed   : > { %14779 = vmatmul.mubr.f32.vlgmr.msra.gmra.mxu1 %v17120_v63  ;;  %14761 = vmatpush3.xpose.msra.mxu0 %v17090_v13 }
 0x5ee   : > { %14781 = vmatprep.mubr.f32.mxu1 %v17123_v23  ;;  %14762 = vmatprep.subr.mxu0 %v17107_v53 }
 0x5f1   : > { %14782 = vmatmul.mubr.f32.gmra.mxu1 %v17130_v4  ;;  %14763 = vmatpush3.xpose.msra.mxu0 %v17107_v53 }
 0x5f4   : > { %14765 = vmatmul.mubr.f32.vlgmr.msra.gmra.mxu0 %v17120_v63 }
 0x5f5   : > { %14767 = vmatprep.mubr.f32.mxu0 %v17123_v23 }
 0x5f8   : > { %14768 = vmatmul.mubr.f32.gmra.mxu0 %v17130_v4 }
 0x66a   : > { %v14656_v8 = vpop.f32.mrf.mxu1 }
 0x66c   : > { %v17186_v9 = vpop.f32.mrf.mxu1 }
 0x66e   : > { %v14659_v36 = vpop.f32.mrf.mxu1 }
 0x670   : > { %v17188_v60 = vpop.f32.mrf.mxu1 }
 0x672   : > { %v14646_v62 = vpop.f32.mrf.mxu0  ;;  %v14676_v39 = vpop.f32.mrf.mxu1 }
 0x673   : > { %v4161_v22 = vadd.f32 %v14656_v8, %v14646_v62 }
 0x674   : > { %v17190_v24 = vpop.f32.mrf.mxu0  ;;  %v17192_v51 = vpop.f32.mrf.mxu1 }
 0x677   : > { %v14649_v28 = vpop.f32.mrf.mxu0  ;;  %v14679_v56 = vpop.f32.mrf.mxu1 }
 0x678   : > { %v4173_v10 = vadd.f32 %v14659_v36, %v14649_v28 }
 0x679   : > { %v17194_v14 = vpop.f32.mrf.mxu0  ;;  %v17198_v26 = vpop.f32.mrf.mxu1 }
 0x67b   : > { %v14666_v54 = vpop.f32.mrf.mxu0  ;;  %v14696_v27 = vpop.f32.mrf.mxu1 }
 0x67c   : > { %v4256_v50 = vadd.f32 %v14666_v54, %v4161_v22 }
 0x67d   : > { %v17196_v31 = vpop.f32.mrf.mxu0  ;;  %v17202_v18 = vpop.f32.mrf.mxu1 }
 0x67e   : > { %v4353_v11 = vadd.f32 %v14676_v39, %v4256_v50  ;;  %18905 = vst [vmem:[#allocation2_spill] sm:$0xff] %v17202_v18 }
 0x67f   : > { %v14699_v40 = vpop.f32.mrf.mxu1 }
 0x680   : > { %v14669_v25 = vpop.f32.mrf.mxu0 }
 0x681   : > { %v4270_v13 = vadd.f32 %v14669_v25, %v4173_v10  ;;  %v17210_v46 = vpop.f32.mrf.mxu1 }
 0x682   : > { %v17200_v2 = vpop.f32.mrf.mxu0  ;;  %18906 = vst [vmem:[#allocation3_spill] sm:$0xff] %v17210_v46 }
 0x683   : > { %v4369_v52 = vadd.f32 %v14679_v56, %v4270_v13 }
 0x684   : > { %v14686_v7 = vpop.f32.mrf.mxu0 }
 0x685   : > { %v4452_v17 = vadd.f32 %v14686_v7, %v4353_v11 }
 0x686   : > { %v17204_v53 = vpop.f32.mrf.mxu0 }
 0x687   : > { %v17206_v61 = vadd.f32 %v14696_v27, %v4452_v17 }
 0x688   : > { %v14689_v30 = vpop.f32.mrf.mxu0 }
 0x689   : > { %v4464_v21 = vadd.f32 %v14689_v30, %v4369_v52 }
 0x68a   : > { %v17212_v23 = vpop.f32.mrf.mxu0 }
 0x68b   : > { %v17208_v32 = vadd.f32 %v14699_v40, %v4464_v21  ;;  %18907 = vst [vmem:[#allocation4_spill] sm:$0xff] %v17212_v23 }
 0x68c   : > { %v14724_v63 = vpop.f32.mrf.mxu1 }
 0x68e   : > { %v4796_v37 = vpop.f32.mrf.mxu1 }
 0x690   : > { %v14727_v33 = vpop.f32.mrf.mxu1 }
 0x692   : > { %v4808_v4 = vpop.f32.mrf.mxu1 }
 0x694   : > { %v14710_v16 = vpop.f32.mrf.mxu0 }
 0x695   : > { %v4803_v5 = vadd.f32 %v14724_v63, %v14710_v16 }
 0x696   : > { %v4675_v55 = vpop.f32.mrf.mxu0 }
 0x697   : > { %v4797_v58 = vadd.f32 %v4796_v37, %v4675_v55 }
 0x698   : > { %v14713_v41 = vpop.f32.mrf.mxu0 }
 0x699   : > { %v4815_v36 = vadd.f32 %v14727_v33, %v14713_v41 }
 0x69a   : > { %v4695_v1 = vpop.f32.mrf.mxu0 }
 0x69b   : > { %v4809_v22 = vadd.f32 %v4808_v4, %v4695_v1 }
 0x69d   : > { %v14752_v34 = vpop.f32.mrf.mxu1 }
 0x69f   : > { %v4992_v20 = vpop.f32.mrf.mxu1 }
 0x6a1   : > { %v14755_v42 = vpop.f32.mrf.mxu1 }
 0x6a3   : > { %v5008_v12 = vpop.f32.mrf.mxu1 }
 0x6a4   : > { %v14738_v0 = vpop.f32.mrf.mxu0 }
 0x6a5   : > { %v4902_v45 = vadd.f32 %v14738_v0, %v4803_v5 }
 0x6a6   : > { %v4894_v49 = vpop.f32.mrf.mxu0 }
 0x6a7   : > { %v4895_v62 = vadd.f32 %v4894_v49, %v4797_v58  ;;  %v5001_v10 = vadd.f32 %v14752_v34, %v4902_v45 }
 0x6a8   : > { %v14741_v59 = vpop.f32.mrf.mxu0 }
 0x6a9   : > { %v4916_v28 = vadd.f32 %v14741_v59, %v4815_v36  ;;  %v4993_v25 = vadd.f32 %v4992_v20, %v4895_v62 }
 0x6aa   : > { %v4908_v39 = vpop.f32.mrf.mxu0 }
 0x6ab   : > { %v4909_v50 = vadd.f32 %v4908_v39, %v4809_v22  ;;  %v5017_v7 = vadd.f32 %v14755_v42, %v4916_v28 }
 0x6ad   : > { %v14780_v8 = vpop.f32.mrf.mxu1  ;;  %v5009_v40 = vadd.f32 %v5008_v12, %v4909_v50 }
 0x6af   : > { %v5192_v56 = vpop.f32.mrf.mxu1 }
 0x6b1   : > { %v14783_v17 = vpop.f32.mrf.mxu1 }
 0x6b3   : > { %v5204_v41 = vpop.f32.mrf.mxu1 }
 0x6b4   : > { %v14766_v54 = vpop.f32.mrf.mxu0 }
 0x6b5   : > { %v5106_v11 = vadd.f32 %v14766_v54, %v5001_v10 }
 0x6b6   : > { %v5099_v13 = vpop.f32.mrf.mxu0 }
 0x6b7   : > { %v5199_v27 = vadd.f32 %v14780_v8, %v5106_v11  ;;  %v5100_v52 = vadd.f32 %v5099_v13, %v4993_v25 }
 0x6b8   : > { %v14769_v30 = vpop.f32.mrf.mxu0 }
 0x6b9   : > { %v5118_v21 = vadd.f32 %v14769_v30, %v5017_v7  ;;  %v5215_v63 = vmul.f32 0.25, %v5199_v27  ;;  %v5193_v37 = vadd.f32 %v5192_v56, %v5100_v52 }
 0x6ba   : > { %v5111_v16 = vpop.f32.mrf.mxu0 }
 0x6bb   : > { %v5112_v33 = vadd.f32 %v5111_v16, %v5009_v40  ;;  %v5221_v55 = vsel %vm3285_vm2, %v5215_v63, -inf  ;;  %v5214_v4 = vmul.f32 0.25, %v5193_v37  ;;  %v5211_v34 = vadd.f32 %v14783_v17, %v5118_v21 }
 0x6bc   : > { %5222 = vmax.xlane.f32.xlu1 %v5221_v55 }
 0x6bd   : > { %v5218_v1 = vsel %vm3285_vm2, %v5214_v4, -inf  ;;  %v5205_v20 = vadd.f32 %v5204_v41, %v5112_v33  ;;  %v5217_v49 = vmul.f32 0.25, %v5211_v34 }
 0x6be   : > { %5219 = vmax.xlane.f32.xlu0 %v5218_v1 }
 0x6bf   : > { %v5216_v0 = vmul.f32 0.25, %v5205_v20  ;;  %v5227_v5 = vsel %vm3285_vm2, %v5217_v49, -inf }
 0x6c1   : > { %v5224_v42 = vsel %vm3285_vm2, %v5216_v0, -inf }
 0x6c2   : > { %5225 = vmax.xlane.f32.xlu0 %v5224_v42 }
 0x6c6   : > { %5228 = vmax.xlane.f32.xlu0 %v5227_v5 }
 0x745   : > { %v5223_v12 = vpop.xlane.xlu1 %5222 }
 0x746   : > { %v5231_v59 = vsub.f32 %v5215_v63, %v5223_v12 }
 0x747   : > { %v5220_v58 = vpop.xlane.xlu0 %5219 }
 0x748   : > { %v5236_v45 = vmul.f32 1.442695, %v5231_v59  ;;  %v5230_v8 = vsub.f32 %v5214_v4, %v5220_v58 }
 0x74a   : > { %15768 = vpow2.f32 %v5236_v45  ;;  %v5234_v36 = vmul.f32 1.442695, %v5230_v8 }
 0x74b   : > { %v5226_v62 = vpop.xlane.xlu0 %5225 }
 0x74c   : > { %15770 = vpow2.f32 %v5234_v36  ;;  %v5232_v39 = vsub.f32 %v5216_v0, %v5226_v62 }
 0x74e   : > { %v5238_v22 = vmul.f32 1.442695, %v5232_v39 }
 0x74f   : > { %v5229_v28 = vpop.xlane.xlu0 %5228 }
 0x750   : > { %15772 = vpow2.f32 %v5238_v22  ;;  %v5233_v10 = vsub.f32 %v5217_v49, %v5229_v28 }
 0x752   : > { %v5240_v56 = vmul.f32 1.442695, %v5233_v10 }
 0x754   : > { %15774 = vpow2.f32 %v5240_v56 }
 0x757   : > { %v15769_v54 = vpop.eup %15768 }
 0x758   : > { %v5245_v50 = vsel %vm3285_vm2, %v15769_v54, 0.0 }
 0x759   : > { %v15771_v11 = vpop.eup %15770  ;;  %5246 = vadd.xlane.f32.xlu1 %v5245_v50 }
 0x75a   : > { %v5242_v25 = vsel %vm3285_vm2, %v15771_v11, 0.0 }
 0x75b   : > { %5243 = vadd.xlane.f32.xlu0 %v5242_v25 }
 0x75d   : > { %v15773_v13 = vpop.eup %15772 }
 0x75e   : > { %v5248_v27 = vsel %vm3285_vm2, %v15773_v13, 0.0 }
 0x75f   : > { %5249 = vadd.xlane.f32.xlu0 %v5248_v27 }
 0x761   : > { %v17221_v52 = vpop.eup %15774 }
 0x762   : > { %v5251_v7 = vsel %vm3285_vm2, %v17221_v52, 0.0 }
 0x763   : > { %5252 = vadd.xlane.f32.xlu1 %v5251_v7 }
 0x774   : > { %5270 = vrot.lane.b32.xlu1 %v16855_v19, %s15869_s18 }
 0x775   : > { %5272 = vrot.lane.b32.xlu0 %v16848_v15, %s15869_s18 }
 0x778   : > { %5268 = vrot.lane.b32.xlu1 %v16834_v3, %s15869_s18 }
 0x779   : > { %6525 = vrot.lane.b32.xlu0 %v16717_v57, %s15870_s25 }
 0x77c   : > { %5266 = vrot.lane.b32.xlu1 %v16841_v6, %s15869_s18  ;;  %s15871_s18 = smov 80  }
 0x77d   : > { %6521 = vrot.lane.b32.xlu0 %v16704_v35, %s15870_s25 }
 0x780   : > { %6523 = vrot.lane.b32.xlu1 %v16727_v48, %s15870_s25 }
 0x781   : > { %6511 = vrot.lane.b32.xlu0 %v16690_v47, %s15870_s25 }
 0x784   : > { %6519 = vrot.lane.b32.xlu1 %v16711_v38, %s15870_s25 }
 0x785   : > { %6515 = vrot.lane.b32.xlu0 %v16707_v29, %s15870_s25 }
 0x788   : > { %6513 = vrot.lane.b32.xlu1 %v16688_v44, %s15870_s25 }
 0x78c   : > { %6517 = vrot.lane.b32.xlu1 %v16715_v43, %s15870_s25 }
 0x7e2   : > { %v5247_v17 = vpop.xlane.xlu1 %5246 }
 0x7e3   : > { %15776 = vrcp.f32 %v5247_v17 }
 0x7e4   : > { %v5244_v30 = vpop.xlane.xlu0 %5243 }
 0x7e5   : > { %15778 = vrcp.f32 %v5244_v30 }
 0x7e8   : > { %v5250_v21 = vpop.xlane.xlu0 %5249 }
 0x7e9   : > { %15780 = vrcp.f32 %v5250_v21 }
 0x7ec   : > { %v5253_v40 = vpop.xlane.xlu1 %5252  ;;  %v5273_v63 = vpop.permute.xlu0 %5272 }
 0x7ed   : > { %15782 = vrcp.f32 %v5253_v40  ;;  %v17249_v37 = vand.u32 4294901760, %v5273_v63 }
 0x7ef   : > { %v17252_v16 = vsub.f32 %v5273_v63, %v17249_v37  ;;  %14784 = vmatprep.subr.mxu0 %v17249_v37 }
 0x7f0   : > { %v15777_v33 = vpop.eup %15776  ;;  %v5271_v55 = vpop.permute.xlu1 %5270  ;;  %14785 = vmatpush3.msra.mxu0 %v17249_v37 }
 0x7f1   : > { %v5259_v4 = vmul.f32 %v15777_v33, %v15769_v54  ;;  %v17256_v41 = vand.u32 4294901760, %v5271_v55  ;;  %v17259_v34 = vand.u32 4294901760, %v17252_v16 }
 0x7f2   : > { %v15779_v1 = vpop.eup %15778 }
 0x7f3   : > { %v5282_v20 = vsel %vm3285_vm2, %v5259_v4, 0  ;;  %v5432_v0 = vsub.f32 %v5271_v55, %v17256_v41  ;;  %14786 = vmatprep.subr.mxu0 %v17256_v41  ;;  %v5427_v42 = vsub.f32 %v17252_v16, %v17259_v34  ;;  %v5258_v49 = vmul.f32 %v15779_v1, %v15771_v11 }
 0x7f4   : > { %v17266_v5 = vand.u32 4294901760, %v5282_v20  ;;  %v5269_v12 = vpop.permute.xlu1 %5268  ;;  %14787 = vmatpush3.msra.mxu0 %v17256_v41 }
 0x7f5   : > { %v17269_v59 = vand.u32 4294901760, %v5269_v12  ;;  %v5428_v58 = vand.u32 4294901760, %v5427_v42  ;;  %v5279_v45 = vsel %vm3285_vm2, %v5258_v49, 0  ;;  %v17274_v62 = vand.u32 4294901760, %v5432_v0 }
 0x7f6   : > { %v15781_v8 = vpop.eup %15780  ;;  %v17272_v36 = vand.u32 4294901760, %v5279_v45  ;;  %v17277_v39 = vsub.f32 %v5282_v20, %v17266_v5 }
 0x7f7   : > { %v5439_v22 = vsub.f32 %v5269_v12, %v17269_v59  ;;  %14788 = vmatprep.subr.mxu0 %v17269_v59  ;;  %14798 = vmatprep.subr.mxu1 %v5428_v58  ;;  %v5260_v28 = vmul.f32 %v15781_v8, %v15773_v13  ;;  %v5434_v56 = vsub.f32 %v5432_v0, %v17274_v62 }
 0x7f8   : > { %v5267_v10 = vpop.permute.xlu1 %5266  ;;  %14789 = vmatpush3.msra.mxu0 %v17269_v59  ;;  %14799 = vmatpush3.msra.mxu1 %v5428_v58  ;;  %v5360_v54 = vsub.f32 %v5279_v45, %v17272_v36  ;;  %v5371_v50 = vand.u32 4294901760, %v17277_v39 }
 0x7f9   : > { %v17285_v11 = vand.u32 4294901760, %v5267_v10  ;;  %14806 = vmatprep.mubr.f32.mxu1 %v17272_v36  ;;  %v17288_v25 = vand.u32 4294901760, %v5439_v22  ;;  %v5285_v27 = vsel %vm3285_vm2, %v5260_v28, 0  ;;  %v5435_v13 = vand.u32 4294901760, %v5434_v56 }
 0x7fa   : > { %v15783_v7 = vpop.eup %15782  ;;  %v5361_v17 = vand.u32 4294901760, %v5360_v54  ;;  %v5372_v30 = vsub.f32 %v17277_v39, %v5371_v50  ;;  %v17297_v63 = vand.u32 4294901760, %v5285_v27 }
 0x7fb   : > { %v5446_v21 = vsub.f32 %v5267_v10, %v17285_v11  ;;  %14790 = vmatprep.subr.mxu0 %v17285_v11  ;;  %v5441_v40 = vsub.f32 %v5439_v22, %v17288_v25  ;;  %v5261_v33 = vmul.f32 %v15783_v7, %v17221_v52  ;;  %14800 = vmatprep.subr.mxu1 %v5435_v13 }
 0x7fc   : > { %14791 = vmatpush3.msra.mxu0 %v17285_v11  ;;  %v5362_v55 = vsub.f32 %v5360_v54, %v5361_v17  ;;  %14801 = vmatpush3.msra.mxu1 %v5435_v13  ;;  %v5373_v42 = vand.u32 4294901760, %v5372_v30  ;;  %v5380_v12 = vsub.f32 %v5285_v27, %v17297_v63 }
 0x7fd   : > { %14812 = vmatprep.subr.mxu0 %v17252_v16  ;;  %v5442_v4 = vand.u32 4294901760, %v5441_v40  ;;  %v5447_v1 = vand.u32 4294901760, %v5446_v21  ;;  %v5288_v58 = vsel %vm3285_vm2, %v5261_v33, 0 }
 0x7fe   : > { %v5363_v20 = vand.u32 4294901760, %v5362_v55  ;;  %v5389_v52 = vand.u32 4294901760, %v5288_v58  ;;  %v5381_v8 = vand.u32 4294901760, %v5380_v12 }
 0x7ff   : > { %14802 = vmatprep.subr.mxu1 %v5442_v4  ;;  %v5448_v49 = vsub.f32 %v5446_v21, %v5447_v1 }
 0x800   : > { %14792 = vmatprep.mubr.f32.mxu0 %v5363_v20  ;;  %14803 = vmatpush3.msra.mxu1 %v5442_v4  ;;  %v5390_v28 = vsub.f32 %v5288_v58, %v5389_v52  ;;  %v5382_v10 = vsub.f32 %v5380_v12, %v5381_v8 }
 0x801   : > { %14793 = vmatmul.mubr.f32.vlgmr.msra.gmra.mxu0 %v5373_v42  ;;  %v5449_v45 = vand.u32 4294901760, %v5448_v49 }
 0x802   : > { %14813 = vmatpush3.msra.mxu0 %v17252_v16  ;;  %v5391_v56 = vand.u32 4294901760, %v5390_v28  ;;  %v5383_v7 = vand.u32 4294901760, %v5382_v10 }
 0x803   : > { %14814 = vmatprep.subr.mxu0 %v5432_v0  ;;  %14804 = vmatprep.subr.mxu1 %v5449_v45 }
 0x804   : > { %14815 = vmatpush3.msra.mxu0 %v5432_v0  ;;  %14805 = vmatpush3.msra.mxu1 %v5449_v45  ;;  %v5392_v27 = vsub.f32 %v5390_v28, %v5391_v56 }
 0x805   : > { %14816 = vmatprep.subr.mxu0 %v5439_v22  ;;  %14807 = vmatmul.mubr.f32.vlgmr.msra.gmra.mxu1 %v17266_v5 }
 0x806   : > { %14817 = vmatpush3.msra.mxu0 %v5439_v22  ;;  %14826 = vmatprep.subr.mxu1 %v17249_v37  ;;  %v5393_v16 = vand.u32 4294901760, %v5392_v27 }
 0x807   : > { %14795 = vmatprep.mubr.f32.mxu0 %v5383_v7  ;;  %14809 = vmatprep.mubr.f32.mxu1 %v17297_v63 }
 0x808   : > { %14818 = vmatprep.subr.mxu0 %v5446_v21  ;;  %14827 = vmatpush3.msra.mxu1 %v17249_v37 }
 0x809   : > { %14819 = vmatpush3.msra.mxu0 %v5446_v21  ;;  %14828 = vmatprep.subr.mxu1 %v17256_v41 }
 0x80a   : > { %14796 = vmatmul.mubr.f32.gmra.mxu0 %v5393_v16  ;;  %14829 = vmatpush3.msra.mxu1 %v17256_v41 }
 0x80b   : > { %14840 = vmatprep.subr.mxu0 %v17259_v34  ;;  %14810 = vmatmul.mubr.f32.gmra.mxu1 %v5389_v52 }
 0x80c   : > { %14820 = vmatprep.mubr.f32.mxu0 %v5360_v54  ;;  %14830 = vmatprep.subr.mxu1 %v17269_v59 }
 0x80d   : > { %14831 = vmatpush3.msra.mxu1 %v17269_v59  ;;  %14834 = vmatprep.mubr.f32.mxu1 %v5361_v17 }
 0x80e   : > { %14832 = vmatprep.subr.mxu1 %v17285_v11  ;;  %14821 = vmatmul.mubr.f32.vlgmr.msra.gmra.mxu0 %v17277_v39 }
 0x80f   : > { %14833 = vmatpush3.msra.mxu1 %v17285_v11  ;;  %14841 = vmatpush3.msra.mxu0 %v17259_v34  ;;  %v13113_v34 = vld [vmem:[%s18888_s4 + $0x10] sm:$0xff] }
 0x810   : > { %14823 = vmatprep.mubr.f32.mxu0 %v5380_v12  ;;  %14835 = vmatmul.mubr.f32.vlgmr.msra.gmra.mxu1 %v5371_v50 }
 0x811   : > { %14842 = vmatprep.subr.mxu0 %v17274_v62  ;;  %14854 = vmatprep.subr.mxu1 %v17249_v37 }
 0x812   : > { %14837 = vmatprep.mubr.f32.mxu1 %v5381_v8  ;;  %14843 = vmatpush3.msra.mxu0 %v17274_v62 }
 0x813   : > { %14855 = vmatpush3.msra.mxu1 %v17249_v37  ;;  %14844 = vmatprep.subr.mxu0 %v17288_v25  ;;  %v13114_v37 = vld [vmem:[%s18888_s4 + $0x18] sm:$0xff] }
 0x814   : > { %14856 = vmatprep.subr.mxu1 %v17256_v41  ;;  %14824 = vmatmul.mubr.f32.gmra.mxu0 %v5390_v28  ;;  %v6526_v28 = vpop.permute.xlu0 %6525 }
 0x815   : > { %14845 = vmatpush3.msra.mxu0 %v17288_v25  ;;  %14857 = vmatpush3.msra.mxu1 %v17256_v41  ;;  %v17341_v41 = vand.u32 4294901760, %v13114_v37 }
 0x816   : > { %14838 = vmatmul.mubr.f32.gmra.mxu1 %v5391_v56  ;;  %14846 = vmatprep.subr.mxu0 %v5447_v1 }
 0x817   : > { %14848 = vmatprep.mubr.f32.mxu0 %v17272_v36  ;;  %14858 = vmatprep.subr.mxu1 %v17269_v59  ;;  %v17347_v0 = vsub.f32 %v13114_v37, %v17341_v41  ;;  %v6541_v37 = vsel %vm2642_vm1, %v6526_v28, 0 }
 0x818   : > { %14847 = vmatpush3.msra.mxu0 %v5447_v1  ;;  %14859 = vmatpush3.msra.mxu1 %v17269_v59  ;;  %v17349_v59 = vand.u32 4294901760, %v13113_v34 }
 0x819   : > { %14862 = vmatprep.mubr.f32.mxu1 %v17272_v36  ;;  %14860 = vmatprep.subr.mxu1 %v17285_v11 }
 0x81a   : > { %14849 = vmatmul.mubr.f32.vlgmr.msra.gmra.mxu0 %v17266_v5  ;;  %14861 = vmatpush3.msra.mxu1 %v17285_v11  ;;  %v17357_v36 = vsub.f32 %v13113_v34, %v17349_v59 }
 0x81b   : > { %14851 = vmatprep.mubr.f32.mxu0 %v17297_v63  ;;  %14863 = vmatmul.mubr.f32.vlgmr.msra.gmra.mxu1 %v17266_v5  ;;  %v17354_v5 = vand.u32 4294901760, %v17347_v0 }
 0x81c   : > { %14865 = vmatprep.mubr.f32.mxu1 %v17297_v63  ;;  %14868 = vmatprep.subr.mxu0 %v17341_v41  ;;  %v17364_v39 = vand.u32 4294901760, %v17357_v36 }
 0x81d   : > { %14869 = vmatpush3.msra.mxu0 %v17341_v41  ;;  %v6058_v62 = vsub.f32 %v17347_v0, %v17354_v5 }
 0x81e   : > { %14852 = vmatmul.mubr.f32.gmra.mxu0 %v5389_v52  ;;  %14870 = vmatprep.subr.mxu0 %v17349_v59  ;;  %v6065_v54 = vsub.f32 %v17357_v36, %v17364_v39 }
 0x81f   : > { %14866 = vmatmul.mubr.f32.gmra.mxu1 %v5389_v52  ;;  %14871 = vmatpush3.msra.mxu0 %v17349_v59  ;;  %v6059_v22 = vand.u32 4294901760, %v6058_v62 }
 0x820   : > { %14888 = vmatprep.subr.mxu0 %v17347_v0  ;;  %v6066_v50 = vand.u32 4294901760, %v6065_v54 }
 0x821   : > { %14878 = vmatprep.subr.mxu1 %v6059_v22 }
 0x822   : > { %14879 = vmatpush3.msra.mxu1 %v6059_v22 }
 0x823   : > { %14880 = vmatprep.subr.mxu1 %v6066_v50 }
 0x824   : > { %14881 = vmatpush3.msra.mxu1 %v6066_v50 }
 0x825   : > { %14898 = vmatprep.subr.mxu1 %v17341_v41 }
 0x8c1   : > { %v14794_v11 = vpop.f32.mrf.mxu0 }
 0x8c3   : > { %v5365_v17 = vpop.f32.mrf.mxu0 }
 0x8c5   : > { %v14808_v25 = vpop.f32.mrf.mxu1 }
 0x8c6   : > { %v5493_v20 = vadd.f32 %v14808_v25, %v14794_v11 }
 0x8c7   : > { %v5486_v13 = vpop.f32.mrf.mxu1 }
 0x8c8   : > { %v5487_v49 = vadd.f32 %v5486_v13, %v5365_v17 }
 0x8ca   : > { %v14797_v30 = vpop.f32.mrf.mxu0 }
 0x8cb   : > { %v14811_v21 = vpop.f32.mrf.mxu1 }
 0x8cc   : > { %v5385_v40 = vpop.f32.mrf.mxu0  ;;  %v5505_v45 = vadd.f32 %v14811_v21, %v14797_v30 }
 0x8cd   : > { %v5498_v63 = vpop.f32.mrf.mxu1 }
 0x8ce   : > { %v14822_v33 = vpop.f32.mrf.mxu0  ;;  %v5499_v56 = vadd.f32 %v5498_v63, %v5385_v40 }
 0x8cf   : > { %v5592_v12 = vadd.f32 %v14822_v33, %v5493_v20  ;;  %v17371_v33 = vand.u32 4294901760, %v6541_v37 }
 0x8d0   : > { %v14836_v55 = vpop.f32.mrf.mxu1  ;;  %v5584_v4 = vpop.f32.mrf.mxu0 }
 0x8d1   : > { %v5585_v8 = vadd.f32 %v5584_v4, %v5487_v49  ;;  %v5691_v7 = vadd.f32 %v14836_v55, %v5592_v12  ;;  %v17383_v28 = vsub.f32 %v6541_v37, %v17371_v33 }
 0x8d2   : > { %v5682_v1 = vpop.f32.mrf.mxu1 }
 0x8d3   : > { %v5683_v34 = vadd.f32 %v5682_v1, %v5585_v8 }
 0x8d4   : > { %v14825_v42 = vpop.f32.mrf.mxu0 }
 0x8d5   : > { %v5606_v27 = vadd.f32 %v14825_v42, %v5505_v45  ;;  %v6524_v42 = vpop.permute.xlu1 %6523 }
 0x8d6   : > { %v14839_v58 = vpop.f32.mrf.mxu1  ;;  %v5598_v52 = vpop.f32.mrf.mxu0 }
 0x8d7   : > { %v5599_v62 = vadd.f32 %v5598_v52, %v5499_v56  ;;  %v5707_v11 = vadd.f32 %v14839_v58, %v5606_v27 }
 0x8d8   : > { %v5698_v10 = vpop.f32.mrf.mxu1 }
 0x8d9   : > { %v5699_v21 = vadd.f32 %v5698_v10, %v5599_v62  ;;  %v6522_v62 = vpop.permute.xlu0 %6521 }
 0x8da   : > { %v14850_v16 = vpop.f32.mrf.mxu0 }
 0x8db   : > { %v5796_v22 = vadd.f32 %v14850_v16, %v5691_v7  ;;  %v14864_v54 = vpop.f32.mrf.mxu1  ;;  %v6539_v7 = vsel %vm2642_vm1, %v6524_v42, 0 }
 0x8dc   : > { %v5789_v50 = vpop.f32.mrf.mxu0 }
 0x8dd   : > { %v5889_v25 = vadd.f32 %v14864_v54, %v5796_v22  ;;  %v5790_v13 = vadd.f32 %v5789_v50, %v5683_v34  ;;  %v5882_v17 = vpop.f32.mrf.mxu1 }
 0x8de   : > { %v14853_v30 = vpop.f32.mrf.mxu0 }
 0x8df   : > { %v5911_v40 = vsel %vm2642_vm1, %v5889_v25, 0  ;;  %v5883_v63 = vadd.f32 %v5882_v17, %v5790_v13  ;;  %v5808_v55 = vadd.f32 %v14853_v30, %v5707_v11  ;;  %v14867_v4 = vpop.f32.mrf.mxu1  ;;  %v17400_v11 = vand.u32 4294901760, %v6539_v7 }
 0x8e0   : > { %v17374_v20 = vand.u32 4294901760, %v5911_v40  ;;  %v5801_v1 = vpop.f32.mrf.mxu0  ;;  %v17405_v13 = vand.u32 4294901760, %v17383_v28  ;;  %v6537_v17 = vsel %vm2642_vm1, %v6522_v62, 0 }
 0x8e1   : > { %v5908_v49 = vsel %vm2642_vm1, %v5883_v63, 0  ;;  %v5901_v12 = vadd.f32 %v14867_v4, %v5808_v55  ;;  %v5802_v58 = vadd.f32 %v5801_v1, %v5699_v21  ;;  %v5894_v52 = vpop.f32.mrf.mxu1  ;;  %v6520_v63 = vpop.permute.xlu1 %6519  ;;  %v17414_v1 = vand.u32 4294901760, %v6537_v17 }
 0x8e2   : > { %v17378_v45 = vsub.f32 %v5911_v40, %v17374_v20  ;;  %v17380_v8 = vand.u32 4294901760, %v5908_v49  ;;  %v17417_v42 = vsub.f32 %v6539_v7, %v17400_v11 }
 0x8e3   : > { %v5917_v10 = vsel %vm2642_vm1, %v5901_v12, 0  ;;  %v5895_v56 = vadd.f32 %v5894_v52, %v5802_v58  ;;  %v6680_v12 = vsub.f32 %v17383_v28, %v17405_v13  ;;  %v17426_v7 = vsub.f32 %v6537_v17, %v17414_v1 }
 0x8e4   : > { %v5998_v27 = vand.u32 4294901760, %v17378_v45  ;;  %v5987_v16 = vsub.f32 %v5908_v49, %v17380_v8  ;;  %v17389_v34 = vand.u32 4294901760, %v5917_v10  ;;  %14882 = vmatprep.mubr.f32.mxu1 %v17380_v8 }
 0x8e5   : > { %v5914_v22 = vsel %vm2642_vm1, %v5895_v56, 0  ;;  %14883 = vmatmul.mubr.f32.vlgmr.msra.gmra.mxu1 %v17374_v20  ;;  %v6535_v56 = vsel %vm2642_vm1, %v6520_v63, 0  ;;  %v17443_v17 = vand.u32 4294901760, %v17426_v7  ;;  %v6514_v63 = vpop.permute.xlu1 %6513 }
 0x8e6   : > { %v17395_v37 = vsub.f32 %v5917_v10, %v17389_v34  ;;  %v17397_v54 = vand.u32 4294901760, %v5914_v22  ;;  %14899 = vmatpush3.msra.mxu1 %v17341_v41  ;;  %v5988_v50 = vand.u32 4294901760, %v5987_v16  ;;  %v5999_v25 = vsub.f32 %v17378_v45, %v5998_v27  ;;  %v6512_v10 = vpop.permute.xlu0 %6511 }
 0x8e7   : > { %14900 = vmatprep.subr.mxu1 %v17349_v59 }
 0x8e8   : > { %v6007_v30 = vsub.f32 %v5914_v22, %v17397_v54  ;;  %14885 = vmatprep.mubr.f32.mxu1 %v17397_v54  ;;  %14901 = vmatpush3.msra.mxu1 %v17349_v59  ;;  %v5989_v21 = vsub.f32 %v5987_v16, %v5988_v50  ;;  %v6018_v40 = vand.u32 4294901760, %v17395_v37  ;;  %v6000_v49 = vand.u32 4294901760, %v5999_v25 }
 0x8e9   : > { %14886 = vmatmul.mubr.f32.gmra.mxu1 %v17389_v34  ;;  %14918 = vmatprep.subr.mxu1 %v17341_v41  ;;  %v6681_v22 = vand.u32 4294901760, %v6680_v12  ;;  %v6527_v25 = vsel %vm2642_vm1, %v6512_v10, 0  ;;  %v6518_v12 = vpop.permute.xlu1 %6517 }
 0x8ea   : > { %14902 = vmatprep.mubr.f32.mxu1 %v5988_v50  ;;  %v5990_v55 = vand.u32 4294901760, %v5989_v21  ;;  %v6008_v4 = vand.u32 4294901760, %v6007_v30  ;;  %v6019_v52 = vsub.f32 %v17395_v37, %v6018_v40  ;;  %v17430_v50 = vand.u32 4294901760, %v17417_v42 }
 0x8eb   : > { %v17433_v21 = vand.u32 4294901760, %v6535_v56  ;;  %v6533_v10 = vsel %vm2642_vm1, %v6518_v12, 0 }
 0x8ec   : > { %14872 = vmatprep.mubr.f32.mxu0 %v5990_v55  ;;  %v6009_v58 = vsub.f32 %v6007_v30, %v6008_v4  ;;  %v6516_v55 = vpop.permute.xlu0 %6515 }
 0x8ed   : > { %14873 = vmatmul.mubr.f32.vlgmr.msra.gmra.mxu0 %v6000_v49  ;;  %14903 = vmatmul.mubr.f32.vlgmr.msra.gmra.mxu1 %v5998_v27  ;;  %v6687_v27 = vsub.f32 %v17417_v42, %v17430_v50  ;;  %v6531_v49 = vsel %vm2642_vm1, %v6516_v55, 0 }
 0x8ee   : > { %14889 = vmatpush3.msra.mxu0 %v17347_v0  ;;  %14919 = vmatpush3.msra.mxu1 %v17341_v41  ;;  %v6010_v62 = vand.u32 4294901760, %v6009_v58  ;;  %v6020_v0 = vand.u32 4294901760, %v6019_v52  ;;  %v17437_v41 = vand.u32 4294901760, %v6527_v25 }
 0x8ef   : > { %14905 = vmatprep.mubr.f32.mxu1 %v6008_v4  ;;  %14920 = vmatprep.subr.mxu1 %v17349_v59 }
 0x8f0   : > { %14921 = vmatpush3.msra.mxu1 %v17349_v59  ;;  %14875 = vmatprep.mubr.f32.mxu0 %v6010_v62  ;;  %v17446_v59 = vsub.f32 %v6535_v56, %v17433_v21  ;;  %v17483_v62 = vand.u32 4294901760, %v6533_v10 }
 0x8f1   : > { %14890 = vmatprep.subr.mxu0 %v17357_v36  ;;  %14942 = vmatprep.subr.mxu1 %v6681_v22 }
 0x8f2   : > { %14876 = vmatmul.mubr.f32.gmra.mxu0 %v6020_v0  ;;  %14906 = vmatmul.mubr.f32.gmra.mxu1 %v6018_v40  ;;  %v6694_v40 = vsub.f32 %v17426_v7, %v17443_v17  ;;  %v17460_v4 = vand.u32 4294901760, %v17446_v59  ;;  %v6643_v0 = vsub.f32 %v6533_v10, %v17483_v62 }
 0x8f3   : > { %14891 = vmatpush3.msra.mxu0 %v17357_v36  ;;  %14892 = vmatprep.mubr.f32.mxu0 %v5987_v16  ;;  %v17453_v36 = vsub.f32 %v6527_v25, %v17437_v41  ;;  %v6688_v16 = vand.u32 4294901760, %v6687_v27 }
 0x8f4   : > { %14922 = vmatprep.mubr.f32.mxu1 %v17380_v8  ;;  %14908 = vmatprep.subr.mxu0 %v17354_v5  ;;  %v6701_v58 = vsub.f32 %v17446_v59, %v17460_v4 }
 0x8f6   : > { %14893 = vmatmul.mubr.f32.vlgmr.msra.gmra.mxu0 %v17378_v45  ;;  %14923 = vmatmul.mubr.f32.vlgmr.msra.gmra.mxu1 %v17374_v20  ;;  %v6529_v45 = vsel %vm2642_vm1, %v6514_v63, 0 }
 0x8f7   : > { %14909 = vmatpush3.msra.mxu0 %v17354_v5  ;;  %14943 = vmatpush3.xpose.msra.mxu1 %v6681_v22  ;;  %v6614_v5 = vand.u32 4294901760, %v17453_v36  ;;  %v17473_v52 = vand.u32 4294901760, %v6529_v45 }
 0x8f8   : > { %14895 = vmatprep.mubr.f32.mxu0 %v6007_v30  ;;  %14910 = vmatprep.subr.mxu0 %v17364_v39  ;;  %v6695_v30 = vand.u32 4294901760, %v6694_v40 }
 0x8f9   : > { %14925 = vmatprep.mubr.f32.mxu1 %v17397_v54  ;;  %14944 = vmatprep.subr.mxu1 %v6688_v16  ;;  %v6623_v56 = vsub.f32 %v6529_v45, %v17473_v52 }
 0x8fa   : > { %14911 = vmatpush3.msra.mxu0 %v17364_v39  ;;  %14926 = vmatmul.mubr.f32.gmra.mxu1 %v17389_v34  ;;  %v17476_v39 = vand.u32 4294901760, %v6531_v49 }
 0x8fb   : > { %14928 = vmatprep.subr.mxu0 %v17371_v33  ;;  %14896 = vmatmul.mubr.f32.gmra.mxu0 %v17395_v37  ;;  %v6615_v37 = vsub.f32 %v17453_v36, %v6614_v5  ;;  %v6624_v25 = vand.u32 4294901760, %v6623_v56 }
 0x8fc   : > { %14945 = vmatpush3.xpose.msra.mxu1 %v6688_v16  ;;  %14912 = vmatprep.mubr.f32.mxu0 %v17380_v8  ;;  %v6702_v8 = vand.u32 4294901760, %v6701_v58  ;;  %v6633_v22 = vsub.f32 %v6531_v49, %v17476_v39 }
 0x8fd   : > { %14946 = vmatprep.subr.mxu1 %v6695_v30  ;;  %14950 = vmatprep.mubr.f32.mxu1 %v17437_v41 }
 0x8fe   : > { %v6634_v27 = vand.u32 4294901760, %v6633_v22 }
 0x8ff   : > { %14913 = vmatmul.mubr.f32.vlgmr.msra.gmra.mxu0 %v17374_v20  ;;  %v6616_v20 = vand.u32 4294901760, %v6615_v37 }
 0x900   : > { %14929 = vmatpush3.xpose.msra.mxu0 %v17371_v33  ;;  %14947 = vmatpush3.xpose.msra.mxu1 %v6695_v30  ;;  %v6635_v63 = vsub.f32 %v6633_v22, %v6634_v27 }
 0x901   : > { %14915 = vmatprep.mubr.f32.mxu0 %v17397_v54  ;;  %14930 = vmatprep.subr.mxu0 %v17400_v11  ;;  %v6644_v54 = vand.u32 4294901760, %v6643_v0 }
 0x902   : > { %14948 = vmatprep.subr.mxu1 %v6702_v8  ;;  %v6636_v55 = vand.u32 4294901760, %v6635_v63 }
 0x903   : > { %14916 = vmatmul.mubr.f32.gmra.mxu0 %v17389_v34  ;;  %v6625_v34 = vsub.f32 %v6623_v56, %v6624_v25  ;;  %v6645_v40 = vsub.f32 %v6643_v0, %v6644_v54 }
 0x904   : > { %14931 = vmatpush3.xpose.msra.mxu0 %v17400_v11  ;;  %14949 = vmatpush3.xpose.msra.mxu1 %v6702_v8  ;;  %v13112_v8 = vld [vmem:[%s18889_s5] ss:$0 sm:$0xff] }
 0x905   : > { %14932 = vmatprep.subr.mxu0 %v17414_v1  ;;  %14936 = vmatprep.mubr.f32.mxu0 %v6616_v20  ;;  %v6626_v16 = vand.u32 4294901760, %v6625_v34  ;;  %v6646_v45 = vand.u32 4294901760, %v6645_v40 }
 0x906   : > { %14970 = vmatprep.subr.mxu1 %v17371_v33 }
 0x907   : > { %14951 = vmatmul.mubr.f32.vlgmr.msra.gmra.mxu1 %v17473_v52 }
 0x908   : > { %14933 = vmatpush3.xpose.msra.mxu0 %v17414_v1  ;;  %14953 = vmatprep.mubr.f32.mxu1 %v17476_v39 }
 0x909   : > { %14971 = vmatpush3.xpose.msra.mxu1 %v17371_v33  ;;  %14934 = vmatprep.subr.mxu0 %v17433_v21 }
 0x90a   : > { %14972 = vmatprep.subr.mxu1 %v17400_v11 }
 0x90b   : > { %14954 = vmatmul.mubr.f32.gmra.mxu1 %v17483_v62 }
 0x90c   : > { %14935 = vmatpush3.xpose.msra.mxu0 %v17433_v21  ;;  %14978 = vmatprep.mubr.f32.mxu1 %v6614_v5 }
 0x90d   : > { %14973 = vmatpush3.xpose.msra.mxu1 %v17400_v11  ;;  %14956 = vmatprep.subr.mxu0 %v17383_v28 }
 0x90e   : > { %14974 = vmatprep.subr.mxu1 %v17414_v1 }
 0x90f   : > { %14937 = vmatmul.mubr.f32.vlgmr.msra.gmra.mxu0 %v6626_v16  ;;  %v4567_v16 = vadd.f32 %v13112_v8, %v17208_v32 }
 0x910   : > { %14939 = vmatprep.mubr.f32.mxu0 %v6636_v55  ;;  %14957 = vmatpush3.xpose.msra.mxu0 %v17383_v28 }
 0x911   : > { %14975 = vmatpush3.xpose.msra.mxu1 %v17414_v1  ;;  %14958 = vmatprep.subr.mxu0 %v17417_v42 }
 0x912   : > { %14976 = vmatprep.subr.mxu1 %v17433_v21 }
 0x913   : > { %14940 = vmatmul.mubr.f32.gmra.mxu0 %v6646_v45 }
 0x914   : > { %14959 = vmatpush3.xpose.msra.mxu0 %v17417_v42  ;;  %14964 = vmatprep.mubr.f32.mxu0 %v17453_v36 }
 0x915   : > { %14977 = vmatpush3.xpose.msra.mxu1 %v17433_v21  ;;  %14960 = vmatprep.subr.mxu0 %v17426_v7 }
 0x916   : > { %14998 = vmatprep.subr.mxu1 %v17371_v33 }
 0x918   : > { %14979 = vmatmul.mubr.f32.vlgmr.msra.gmra.mxu1 %v6624_v25  ;;  %14961 = vmatpush3.xpose.msra.mxu0 %v17426_v7  ;;  %v4565_v25 = vadd.f32 %v13112_v8, %v17206_v61 }
 0x919   : > { %14981 = vmatprep.mubr.f32.mxu1 %v6634_v27  ;;  %14999 = vmatpush3.xpose.msra.mxu1 %v17371_v33 }
 0x91a   : > { %14962 = vmatprep.subr.mxu0 %v17446_v59  ;;  %15000 = vmatprep.subr.mxu1 %v17400_v11 }
 0x91c   : > { %14982 = vmatmul.mubr.f32.gmra.mxu1 %v6644_v54  ;;  %14963 = vmatpush3.xpose.msra.mxu0 %v17446_v59 }
 0x91d   : > { %15001 = vmatpush3.xpose.msra.mxu1 %v17400_v11  ;;  %15006 = vmatprep.mubr.f32.mxu1 %v17437_v41 }
 0x91e   : > { %14984 = vmatprep.subr.mxu0 %v17405_v13  ;;  %15002 = vmatprep.subr.mxu1 %v17414_v1 }
 0x91f   : > { %14965 = vmatmul.mubr.f32.vlgmr.msra.gmra.mxu0 %v6623_v56 }
 0x920   : > { %14967 = vmatprep.mubr.f32.mxu0 %v6633_v22  ;;  %14985 = vmatpush3.xpose.msra.mxu0 %v17405_v13 }
 0x921   : > { %15003 = vmatpush3.xpose.msra.mxu1 %v17414_v1  ;;  %14986 = vmatprep.subr.mxu0 %v17430_v50 }
 0x922   : > { %15004 = vmatprep.subr.mxu1 %v17433_v21 }
 0x923   : > { %14968 = vmatmul.mubr.f32.gmra.mxu0 %v6643_v0 }
 0x924   : > { %14987 = vmatpush3.xpose.msra.mxu0 %v17430_v50  ;;  %14992 = vmatprep.mubr.f32.mxu0 %v17437_v41 }
 0x925   : > { %15005 = vmatpush3.xpose.msra.mxu1 %v17433_v21  ;;  %14988 = vmatprep.subr.mxu0 %v17443_v17 }
 0x928   : > { %15007 = vmatmul.mubr.f32.vlgmr.msra.gmra.mxu1 %v17473_v52  ;;  %14989 = vmatpush3.xpose.msra.mxu0 %v17443_v17 }
 0x929   : > { %15009 = vmatprep.mubr.f32.mxu1 %v17476_v39  ;;  %14990 = vmatprep.subr.mxu0 %v17460_v4 }
 0x92c   : > { %15010 = vmatmul.mubr.f32.gmra.mxu1 %v17483_v62  ;;  %14991 = vmatpush3.xpose.msra.mxu0 %v17460_v4 }
 0x92f   : > { %14993 = vmatmul.mubr.f32.vlgmr.msra.gmra.mxu0 %v17473_v52 }
 0x930   : > { %14995 = vmatprep.mubr.f32.mxu0 %v17476_v39 }
 0x933   : > { %14996 = vmatmul.mubr.f32.gmra.mxu0 %v17483_v62 }
 0x9a5   : > { %v14884_v33 = vpop.f32.mrf.mxu1 }
 0x9a7   : > { %v17539_v28 = vpop.f32.mrf.mxu1 }
 0x9a9   : > { %v14887_v11 = vpop.f32.mrf.mxu1 }
 0x9ab   : > { %v17541_v13 = vpop.f32.mrf.mxu1 }
 0x9ad   : > { %v14874_v1 = vpop.f32.mrf.mxu0  ;;  %v14904_v42 = vpop.f32.mrf.mxu1 }
 0x9ae   : > { %v6110_v7 = vadd.f32 %v14884_v33, %v14874_v1 }
 0x9af   : > { %v17543_v50 = vpop.f32.mrf.mxu0  ;;  %v17545_v21 = vpop.f32.mrf.mxu1 }
 0x9b2   : > { %v14877_v41 = vpop.f32.mrf.mxu0  ;;  %v14907_v36 = vpop.f32.mrf.mxu1 }
 0x9b3   : > { %v6122_v17 = vadd.f32 %v14887_v11, %v14877_v41 }
 0x9b4   : > { %v17547_v59 = vpop.f32.mrf.mxu0  ;;  %v17551_v12 = vpop.f32.mrf.mxu1 }
 0x9b5   : > { %18908 = vst [vmem:[#allocation5_spill] sm:$0xff] %v17551_v12 }
 0x9b6   : > { %v14894_v4 = vpop.f32.mrf.mxu0  ;;  %v14924_v39 = vpop.f32.mrf.mxu1 }
 0x9b7   : > { %v6205_v5 = vadd.f32 %v14894_v4, %v6110_v7 }
 0x9b8   : > { %v17549_v49 = vpop.f32.mrf.mxu0  ;;  %v17558_v22 = vpop.f32.mrf.mxu1 }
 0x9b9   : > { %v6302_v30 = vadd.f32 %v14904_v42, %v6205_v5  ;;  %18909 = vst [vmem:[#allocation6_spill] sm:$0xff] %v17558_v22 }
 0x9ba   : > { %v14927_v63 = vpop.f32.mrf.mxu1 }
 0x9bb   : > { %v14897_v58 = vpop.f32.mrf.mxu0 }
 0x9bc   : > { %v6219_v52 = vadd.f32 %v14897_v58, %v6122_v17  ;;  %v17568_v45 = vpop.f32.mrf.mxu1 }
 0x9bd   : > { %v17553_v10 = vpop.f32.mrf.mxu0  ;;  %18911 = vst [vmem:[#allocation8_spill] sm:$0xff] %v17568_v45 }
 0x9be   : > { %v6318_v37 = vadd.f32 %v14907_v36, %v6219_v52 }
 0x9bf   : > { %v14914_v56 = vpop.f32.mrf.mxu0 }
 0x9c0   : > { %v6401_v62 = vadd.f32 %v14914_v56, %v6302_v30 }
 0x9c1   : > { %v17560_v20 = vpop.f32.mrf.mxu0 }
 0x9c2   : > { %18910 = vst [vmem:[#allocation7_spill] sm:$0xff] %v17560_v20  ;;  %v6492_v0 = vadd.f32 %v14924_v39, %v6401_v62 }
 0x9c3   : > { %v14917_v27 = vpop.f32.mrf.mxu0 }
 0x9c4   : > { %v17563_v34 = vadd.f32 %v6492_v0, %v4565_v25  ;;  %v6413_v54 = vadd.f32 %v14917_v27, %v6318_v37 }
 0x9c5   : > { %v17570_v11 = vpop.f32.mrf.mxu0 }
 0x9c6   : > { %v6504_v40 = vadd.f32 %v14927_v63, %v6413_v54  ;;  %18912 = vst [vmem:[#allocation9_spill] sm:$0xff] %v17570_v11 }
 0x9c7   : > { %v14952_v33 = vpop.f32.mrf.mxu1 }
 0x9c8   : > { %v17566_v55 = vadd.f32 %v6504_v40, %v4567_v16 }
 0x9c9   : > { %v6739_v1 = vpop.f32.mrf.mxu1 }
 0x9cb   : > { %v14955_v7 = vpop.f32.mrf.mxu1 }
 0x9cd   : > { %v6751_v41 = vpop.f32.mrf.mxu1 }
 0x9cf   : > { %v14938_v42 = vpop.f32.mrf.mxu0 }
 0x9d0   : > { %v6746_v52 = vadd.f32 %v14952_v33, %v14938_v42 }
 0x9d1   : > { %v6618_v61 = vpop.f32.mrf.mxu0 }
 0x9d2   : > { %v6740_v8 = vadd.f32 %v6739_v1, %v6618_v61 }
 0x9d3   : > { %v14941_v17 = vpop.f32.mrf.mxu0 }
 0x9d4   : > { %v6758_v25 = vadd.f32 %v14955_v7, %v14941_v17 }
 0x9d5   : > { %v6638_v4 = vpop.f32.mrf.mxu0 }
 0x9d6   : > { %v6752_v54 = vadd.f32 %v6751_v41, %v6638_v4 }
 0x9d8   : > { %v14980_v36 = vpop.f32.mrf.mxu1 }
 0x9da   : > { %v6935_v5 = vpop.f32.mrf.mxu1 }
 0x9dc   : > { %v14983_v58 = vpop.f32.mrf.mxu1 }
 0x9de   : > { %v6951_v39 = vpop.f32.mrf.mxu1 }
 0x9df   : > { %v14966_v30 = vpop.f32.mrf.mxu0 }
 0x9e0   : > { %v6845_v56 = vadd.f32 %v14966_v30, %v6746_v52 }
 0x9e1   : > { %v6837_v32 = vpop.f32.mrf.mxu0 }
 0x9e2   : > { %v6838_v0 = vadd.f32 %v6837_v32, %v6740_v8  ;;  %v6944_v16 = vadd.f32 %v14980_v36, %v6845_v56 }
 0x9e3   : > { %v14969_v37 = vpop.f32.mrf.mxu0 }
 0x9e4   : > { %v6859_v63 = vadd.f32 %v14969_v37, %v6758_v25  ;;  %v6936_v22 = vadd.f32 %v6935_v5, %v6838_v0 }
 0x9e5   : > { %v6851_v27 = vpop.f32.mrf.mxu0 }
 0x9e6   : > { %v6852_v46 = vadd.f32 %v6851_v27, %v6752_v54  ;;  %v6960_v33 = vadd.f32 %v14983_v58, %v6859_v63 }
 0x9e8   : > { %v15008_v62 = vpop.f32.mrf.mxu1  ;;  %v6952_v61 = vadd.f32 %v6951_v39, %v6852_v46 }
 0x9ea   : > { %v7135_v40 = vpop.f32.mrf.mxu1 }
 0x9ec   : > { %v15011_v42 = vpop.f32.mrf.mxu1 }
 0x9ee   : > { %v7147_v4 = vpop.f32.mrf.mxu1 }
 0x9ef   : > { %v14994_v45 = vpop.f32.mrf.mxu0 }
 0x9f0   : > { %v7049_v11 = vadd.f32 %v14994_v45, %v6944_v16 }
 0x9f1   : > { %v7042_v12 = vpop.f32.mrf.mxu0 }
 0x9f2   : > { %v7142_v23 = vadd.f32 %v15008_v62, %v7049_v11  ;;  %v7043_v18 = vadd.f32 %v7042_v12, %v6936_v22 }
 0x9f3   : > { %v14997_v20 = vpop.f32.mrf.mxu0 }
 0x9f4   : > { %v7061_v1 = vadd.f32 %v14997_v20, %v6960_v33  ;;  %v7158_v30 = vmul.f32 0.25, %v7142_v23  ;;  %v7136_v7 = vadd.f32 %v7135_v40, %v7043_v18 }
 0x9f5   : > { %v7054_v17 = vpop.f32.mrf.mxu0 }
 0x9f6   : > { %v7055_v32 = vadd.f32 %v7054_v17, %v6952_v61  ;;  %v7164_v41 = vsel %vm3285_vm2, %v7158_v30, -inf  ;;  %v7157_v36 = vmul.f32 0.25, %v7136_v7  ;;  %v7154_v52 = vadd.f32 %v15011_v42, %v7061_v1 }
 0x9f7   : > { %7165 = vmax.xlane.f32.xlu1 %v7164_v41 }
 0x9f8   : > { %v7161_v45 = vsel %vm3285_vm2, %v7157_v36, -inf  ;;  %v7148_v5 = vadd.f32 %v7147_v4, %v7055_v32  ;;  %v7160_v11 = vmul.f32 0.25, %v7154_v52 }
 0x9f9   : > { %7162 = vmax.xlane.f32.xlu0 %v7161_v45 }
 0x9fa   : > { %v7159_v12 = vmul.f32 0.25, %v7148_v5  ;;  %v7170_v46 = vsel %vm3285_vm2, %v7160_v11, -inf }
 0x9fc   : > { %v7167_v22 = vsel %vm3285_vm2, %v7159_v12, -inf }
 0x9fd   : > { %7168 = vmax.xlane.f32.xlu0 %v7167_v22 }
 0xa01   : > { %7171 = vmax.xlane.f32.xlu0 %v7170_v46 }
 0xa80   : > { %v7166_v18 = vpop.xlane.xlu1 %7165 }
 0xa81   : > { %v7174_v23 = vsub.f32 %v7158_v30, %v7166_v18 }
 0xa82   : > { %v7163_v20 = vpop.xlane.xlu0 %7162 }
 0xa83   : > { %v7179_v58 = vmul.f32 1.442695, %v7174_v23  ;;  %v7173_v39 = vsub.f32 %v7157_v36, %v7163_v20 }
 0xa85   : > { %15784 = vpow2.f32 %v7179_v58  ;;  %v7177_v37 = vmul.f32 1.442695, %v7173_v39 }
 0xa86   : > { %v7169_v8 = vpop.xlane.xlu0 %7168 }
 0xa87   : > { %15786 = vpow2.f32 %v7177_v37  ;;  %v7175_v56 = vsub.f32 %v7159_v12, %v7169_v8 }
 0xa89   : > { %v7181_v62 = vmul.f32 1.442695, %v7175_v56 }
 0xa8a   : > { %v7172_v25 = vpop.xlane.xlu0 %7171 }
 0xa8b   : > { %15788 = vpow2.f32 %v7181_v62  ;;  %v7176_v0 = vsub.f32 %v7160_v11, %v7172_v25 }
 0xa8d   : > { %v7183_v27 = vmul.f32 1.442695, %v7176_v0 }
 0xa8f   : > { %15790 = vpow2.f32 %v7183_v27 }
 0xa92   : > { %v15785_v54 = vpop.eup %15784 }
 0xa93   : > { %v7188_v63 = vsel %vm3285_vm2, %v15785_v54, 0.0 }
 0xa94   : > { %v15787_v16 = vpop.eup %15786  ;;  %7189 = vadd.xlane.f32.xlu1 %v7188_v63 }
 0xa95   : > { %v7185_v40 = vsel %vm3285_vm2, %v15787_v16, 0.0 }
 0xa96   : > { %7186 = vadd.xlane.f32.xlu0 %v7185_v40 }
 0xa98   : > { %v15789_v33 = vpop.eup %15788 }
 0xa99   : > { %v7191_v42 = vsel %vm3285_vm2, %v15789_v33, 0.0 }
 0xa9a   : > { %7192 = vadd.xlane.f32.xlu0 %v7191_v42 }
 0xa9c   : > { %v17579_v1 = vpop.eup %15790 }
 0xa9d   : > { %v7194_v61 = vsel %vm3285_vm2, %v17579_v1, 0.0 }
 0xa9e   : > { %7195 = vadd.xlane.f32.xlu1 %v7194_v61 }
 0xaaf   : > { %7209 = vrot.lane.b32.xlu1 %v16855_v19, %s15870_s25 }
 0xab0   : > { %7211 = vrot.lane.b32.xlu0 %v16848_v15, %s15870_s25 }
 0xab3   : > { %7207 = vrot.lane.b32.xlu1 %v16834_v3, %s15870_s25 }
 0xab4   : > { %8464 = vrot.lane.b32.xlu0 %v16717_v57, %s15871_s18 }
 0xab7   : > { %7205 = vrot.lane.b32.xlu1 %v16841_v6, %s15870_s25 }
 0xab8   : > { %8460 = vrot.lane.b32.xlu0 %v16704_v35, %s15871_s18 }
 0xabb   : > { %8462 = vrot.lane.b32.xlu1 %v16727_v48, %s15871_s18 }
 0xabc   : > { %8450 = vrot.lane.b32.xlu0 %v16690_v47, %s15871_s18 }
 0xabf   : > { %8458 = vrot.lane.b32.xlu1 %v16711_v38, %s15871_s18 }
 0xac0   : > { %8454 = vrot.lane.b32.xlu0 %v16707_v29, %s15871_s18 }
 0xac3   : > { %8452 = vrot.lane.b32.xlu1 %v16688_v44, %s15871_s18 }
 0xac7   : > { %8456 = vrot.lane.b32.xlu1 %v16715_v43, %s15871_s18 }
 0xb1d   : > { %v7190_v57 = vpop.xlane.xlu1 %7189 }
 0xb1e   : > { %15792 = vrcp.f32 %v7190_v57 }
 0xb1f   : > { %v7187_v35 = vpop.xlane.xlu0 %7186 }
 0xb20   : > { %15794 = vrcp.f32 %v7187_v35 }
 0xb23   : > { %v7193_v48 = vpop.xlane.xlu0 %7192 }
 0xb24   : > { %15796 = vrcp.f32 %v7193_v48 }
 0xb27   : > { %v7196_v30 = vpop.xlane.xlu1 %7195  ;;  %v7212_v47 = vpop.permute.xlu0 %7211 }
 0xb28   : > { %15798 = vrcp.f32 %v7196_v30  ;;  %v17607_v7 = vand.u32 4294901760, %v7212_v47 }
 0xb2a   : > { %v17610_v38 = vsub.f32 %v7212_v47, %v17607_v7  ;;  %15012 = vmatprep.subr.mxu0 %v17607_v7 }
 0xb2b   : > { %v15793_v44 = vpop.eup %15792  ;;  %v7210_v29 = vpop.permute.xlu1 %7209  ;;  %15013 = vmatpush3.msra.mxu0 %v17607_v7 }
 0xb2c   : > { %v7202_v43 = vmul.f32 %v15793_v44, %v15785_v54  ;;  %v17614_v17 = vand.u32 4294901760, %v7210_v29  ;;  %v17617_v32 = vand.u32 4294901760, %v17610_v38 }
 0xb2d   : > { %v15795_v41 = vpop.eup %15794 }
 0xb2e   : > { %v7221_v36 = vsel %vm3285_vm2, %v7202_v43, 0  ;;  %v7371_v4 = vsub.f32 %v7210_v29, %v17614_v17  ;;  %15014 = vmatprep.subr.mxu0 %v17614_v17  ;;  %v7366_v52 = vsub.f32 %v17610_v38, %v17617_v32  ;;  %v7201_v45 = vmul.f32 %v15795_v41, %v15787_v16 }
 0xb2f   : > { %v17624_v5 = vand.u32 4294901760, %v7221_v36  ;;  %v7208_v12 = vpop.permute.xlu1 %7207  ;;  %15015 = vmatpush3.msra.mxu0 %v17614_v17 }
 0xb30   : > { %v17627_v22 = vand.u32 4294901760, %v7208_v12  ;;  %v7367_v11 = vand.u32 4294901760, %v7366_v52  ;;  %v7218_v46 = vsel %vm3285_vm2, %v7201_v45, 0  ;;  %v17635_v58 = vand.u32 4294901760, %v7371_v4 }
 0xb31   : > { %v15797_v18 = vpop.eup %15796  ;;  %v17631_v23 = vsub.f32 %v7221_v36, %v17624_v5  ;;  %v17633_v20 = vand.u32 4294901760, %v7218_v46 }
 0xb32   : > { %v7378_v39 = vsub.f32 %v7208_v12, %v17627_v22  ;;  %15016 = vmatprep.subr.mxu0 %v17627_v22  ;;  %15026 = vmatprep.subr.mxu1 %v7367_v11  ;;  %v7203_v37 = vmul.f32 %v15797_v18, %v15789_v33  ;;  %v7373_v56 = vsub.f32 %v7371_v4, %v17635_v58 }
 0xb33   : > { %v7206_v8 = vpop.permute.xlu1 %7205  ;;  %15017 = vmatpush3.msra.mxu0 %v17627_v22  ;;  %15027 = vmatpush3.msra.mxu1 %v7367_v11  ;;  %v7299_v62 = vsub.f32 %v7218_v46, %v17633_v20  ;;  %v7310_v25 = vand.u32 4294901760, %v17631_v23 }
 0xb34   : > { %v17643_v0 = vand.u32 4294901760, %v7206_v8  ;;  %15034 = vmatprep.mubr.f32.mxu1 %v17633_v20  ;;  %v17646_v27 = vand.u32 4294901760, %v7378_v39  ;;  %v7224_v54 = vsel %vm3285_vm2, %v7203_v37, 0  ;;  %v7374_v16 = vand.u32 4294901760, %v7373_v56 }
 0xb35   : > { %v15799_v63 = vpop.eup %15798  ;;  %v7300_v40 = vand.u32 4294901760, %v7299_v62  ;;  %v7311_v33 = vsub.f32 %v17631_v23, %v7310_v25  ;;  %v17656_v35 = vand.u32 4294901760, %v7224_v54 }
 0xb36   : > { %v7204_v42 = vmul.f32 %v15799_v63, %v17579_v1  ;;  %v7385_v61 = vsub.f32 %v7206_v8, %v17643_v0  ;;  %15018 = vmatprep.subr.mxu0 %v17643_v0  ;;  %v7380_v57 = vsub.f32 %v7378_v39, %v17646_v27  ;;  %15028 = vmatprep.subr.mxu1 %v7374_v16 }
 0xb37   : > { %15019 = vmatpush3.msra.mxu0 %v17643_v0  ;;  %v7301_v48 = vsub.f32 %v7299_v62, %v7300_v40  ;;  %15029 = vmatpush3.msra.mxu1 %v7374_v16  ;;  %v7312_v1 = vand.u32 4294901760, %v7311_v33  ;;  %v7319_v43 = vsub.f32 %v7224_v54, %v17656_v35 }
 0xb38   : > { %15040 = vmatprep.subr.mxu0 %v17610_v38  ;;  %v7381_v30 = vand.u32 4294901760, %v7380_v57  ;;  %v7386_v47 = vand.u32 4294901760, %v7385_v61  ;;  %v7227_v41 = vsel %vm3285_vm2, %v7204_v42, 0 }
 0xb39   : > { %v7302_v44 = vand.u32 4294901760, %v7301_v48  ;;  %v7328_v36 = vand.u32 4294901760, %v7227_v41  ;;  %v7320_v45 = vand.u32 4294901760, %v7319_v43 }
 0xb3a   : > { %15030 = vmatprep.subr.mxu1 %v7381_v30  ;;  %v7387_v29 = vsub.f32 %v7385_v61, %v7386_v47 }
 0xb3b   : > { %15020 = vmatprep.mubr.f32.mxu0 %v7302_v44  ;;  %15031 = vmatpush3.msra.mxu1 %v7381_v30  ;;  %v7329_v12 = vsub.f32 %v7227_v41, %v7328_v36  ;;  %v7321_v11 = vsub.f32 %v7319_v43, %v7320_v45  ;;  %v8465_v41 = vpop.permute.xlu0 %8464 }
 0xb3c   : > { %15021 = vmatmul.mubr.f32.vlgmr.msra.gmra.mxu0 %v7312_v1  ;;  %v7388_v52 = vand.u32 4294901760, %v7387_v29 }
 0xb3d   : > { %15041 = vmatpush3.msra.mxu0 %v17610_v38  ;;  %v7330_v46 = vand.u32 4294901760, %v7329_v12  ;;  %v7322_v18 = vand.u32 4294901760, %v7321_v11 }
 0xb3e   : > { %15042 = vmatprep.subr.mxu0 %v7371_v4  ;;  %15032 = vmatprep.subr.mxu1 %v7388_v52 }
 0xb3f   : > { %15043 = vmatpush3.msra.mxu0 %v7371_v4  ;;  %15033 = vmatpush3.msra.mxu1 %v7388_v52  ;;  %v7331_v37 = vsub.f32 %v7329_v12, %v7330_v46 }
 0xb40   : > { %15044 = vmatprep.subr.mxu0 %v7378_v39  ;;  %15035 = vmatmul.mubr.f32.vlgmr.msra.gmra.mxu1 %v17624_v5 }
 0xb41   : > { %15045 = vmatpush3.msra.mxu0 %v7378_v39  ;;  %15054 = vmatprep.subr.mxu1 %v17607_v7  ;;  %v7332_v38 = vand.u32 4294901760, %v7331_v37 }
 0xb42   : > { %15023 = vmatprep.mubr.f32.mxu0 %v7322_v18  ;;  %15037 = vmatprep.mubr.f32.mxu1 %v17656_v35 }
 0xb43   : > { %15046 = vmatprep.subr.mxu0 %v7385_v61  ;;  %15055 = vmatpush3.msra.mxu1 %v17607_v7 }
 0xb44   : > { %15047 = vmatpush3.msra.mxu0 %v7385_v61  ;;  %15056 = vmatprep.subr.mxu1 %v17614_v17 }
 0xb45   : > { %15024 = vmatmul.mubr.f32.gmra.mxu0 %v7332_v38  ;;  %15057 = vmatpush3.msra.mxu1 %v17614_v17 }
 0xb46   : > { %15068 = vmatprep.subr.mxu0 %v17617_v32  ;;  %15038 = vmatmul.mubr.f32.gmra.mxu1 %v7328_v36 }
 0xb47   : > { %15048 = vmatprep.mubr.f32.mxu0 %v7299_v62  ;;  %15058 = vmatprep.subr.mxu1 %v17627_v22 }
 0xb48   : > { %15059 = vmatpush3.msra.mxu1 %v17627_v22  ;;  %15062 = vmatprep.mubr.f32.mxu1 %v7300_v40 }
 0xb49   : > { %15060 = vmatprep.subr.mxu1 %v17643_v0  ;;  %15049 = vmatmul.mubr.f32.vlgmr.msra.gmra.mxu0 %v17631_v23 }
 0xb4a   : > { %15061 = vmatpush3.msra.mxu1 %v17643_v0  ;;  %15069 = vmatpush3.msra.mxu0 %v17617_v32  ;;  %v13115_v32 = vld [vmem:[%s18888_s4 + $0x20] sm:$0xff] }
 0xb4b   : > { %15051 = vmatprep.mubr.f32.mxu0 %v7319_v43  ;;  %15063 = vmatmul.mubr.f32.vlgmr.msra.gmra.mxu1 %v7310_v25 }
 0xb4c   : > { %15070 = vmatprep.subr.mxu0 %v17635_v58  ;;  %15082 = vmatprep.subr.mxu1 %v17607_v7 }
 0xb4d   : > { %15065 = vmatprep.mubr.f32.mxu1 %v7320_v45  ;;  %15071 = vmatpush3.msra.mxu0 %v17635_v58 }
 0xb4e   : > { %15083 = vmatpush3.msra.mxu1 %v17607_v7  ;;  %15072 = vmatprep.subr.mxu0 %v17646_v27  ;;  %v13116_v7 = vld [vmem:[%s18888_s4 + $0x28] sm:$0xff] }
 0xb4f   : > { %15084 = vmatprep.subr.mxu1 %v17614_v17  ;;  %15052 = vmatmul.mubr.f32.gmra.mxu0 %v7329_v12 }
 0xb50   : > { %15073 = vmatpush3.msra.mxu0 %v17646_v27  ;;  %15085 = vmatpush3.msra.mxu1 %v17614_v17  ;;  %v17699_v17 = vand.u32 4294901760, %v13116_v7 }
 0xb51   : > { %15066 = vmatmul.mubr.f32.gmra.mxu1 %v7330_v46  ;;  %15074 = vmatprep.subr.mxu0 %v7386_v47  ;;  %v8480_v46 = vsel %vm2642_vm1, %v8465_v41, 0 }
 0xb52   : > { %15076 = vmatprep.mubr.f32.mxu0 %v17633_v20  ;;  %15086 = vmatprep.subr.mxu1 %v17627_v22  ;;  %v17705_v4 = vsub.f32 %v13116_v7, %v17699_v17 }
 0xb53   : > { %15075 = vmatpush3.msra.mxu0 %v7386_v47  ;;  %15087 = vmatpush3.msra.mxu1 %v17627_v22  ;;  %v17707_v22 = vand.u32 4294901760, %v13115_v32 }
 0xb54   : > { %15090 = vmatprep.mubr.f32.mxu1 %v17633_v20  ;;  %15088 = vmatprep.subr.mxu1 %v17643_v0 }
 0xb55   : > { %15077 = vmatmul.mubr.f32.vlgmr.msra.gmra.mxu0 %v17624_v5  ;;  %15089 = vmatpush3.msra.mxu1 %v17643_v0  ;;  %v17715_v23 = vsub.f32 %v13115_v32, %v17707_v22 }
 0xb56   : > { %15079 = vmatprep.mubr.f32.mxu0 %v17656_v35  ;;  %15091 = vmatmul.mubr.f32.vlgmr.msra.gmra.mxu1 %v17624_v5  ;;  %v17712_v5 = vand.u32 4294901760, %v17705_v4 }
 0xb57   : > { %15093 = vmatprep.mubr.f32.mxu1 %v17656_v35  ;;  %15096 = vmatprep.subr.mxu0 %v17699_v17  ;;  %v17722_v58 = vand.u32 4294901760, %v17715_v23 }
 0xb58   : > { %15097 = vmatpush3.msra.mxu0 %v17699_v17  ;;  %v7997_v20 = vsub.f32 %v17705_v4, %v17712_v5 }
 0xb59   : > { %15080 = vmatmul.mubr.f32.gmra.mxu0 %v7328_v36  ;;  %15098 = vmatprep.subr.mxu0 %v17707_v22  ;;  %v8004_v8 = vsub.f32 %v17715_v23, %v17722_v58 }
 0xb5a   : > { %15094 = vmatmul.mubr.f32.gmra.mxu1 %v7328_v36  ;;  %15099 = vmatpush3.msra.mxu0 %v17707_v22  ;;  %v7998_v39 = vand.u32 4294901760, %v7997_v20 }
 0xb5b   : > { %15116 = vmatprep.subr.mxu0 %v17705_v4  ;;  %v8005_v56 = vand.u32 4294901760, %v8004_v8 }
 0xb5c   : > { %15106 = vmatprep.subr.mxu1 %v7998_v39 }
 0xb5d   : > { %15107 = vmatpush3.msra.mxu1 %v7998_v39 }
 0xb5e   : > { %15108 = vmatprep.subr.mxu1 %v8005_v56 }
 0xb5f   : > { %15109 = vmatpush3.msra.mxu1 %v8005_v56 }
 0xb60   : > { %15126 = vmatprep.subr.mxu1 %v17699_v17 }
 0xbfc   : > { %v15022_v62 = vpop.f32.mrf.mxu0 }
 0xbfe   : > { %v7304_v27 = vpop.f32.mrf.mxu0 }
 0xc00   : > { %v15036_v25 = vpop.f32.mrf.mxu1 }
 0xc01   : > { %v7432_v35 = vadd.f32 %v15036_v25, %v15022_v62  ;;  %v17729_v62 = vand.u32 4294901760, %v8480_v46 }
 0xc02   : > { %v7425_v0 = vpop.f32.mrf.mxu1 }
 0xc03   : > { %v7426_v30 = vadd.f32 %v7425_v0, %v7304_v27 }
 0xc05   : > { %v15025_v54 = vpop.f32.mrf.mxu0 }
 0xc06   : > { %v15039_v63 = vpop.f32.mrf.mxu1 }
 0xc07   : > { %v7324_v16 = vpop.f32.mrf.mxu0  ;;  %v7444_v29 = vadd.f32 %v15039_v63, %v15025_v54 }
 0xc08   : > { %v7437_v40 = vpop.f32.mrf.mxu1 }
 0xc09   : > { %v15050_v33 = vpop.f32.mrf.mxu0  ;;  %v7438_v52 = vadd.f32 %v7437_v40, %v7324_v16 }
 0xc0a   : > { %v7531_v47 = vadd.f32 %v15050_v33, %v7432_v35 }
 0xc0b   : > { %v15064_v42 = vpop.f32.mrf.mxu1  ;;  %v7523_v61 = vpop.f32.mrf.mxu0 }
 0xc0c   : > { %v7524_v43 = vadd.f32 %v7523_v61, %v7426_v30  ;;  %v7630_v45 = vadd.f32 %v15064_v42, %v7531_v47  ;;  %v8463_v42 = vpop.permute.xlu1 %8462 }
 0xc0d   : > { %v7621_v57 = vpop.f32.mrf.mxu1 }
 0xc0e   : > { %v7622_v18 = vadd.f32 %v7621_v57, %v7524_v43  ;;  %v8478_v43 = vsel %vm2642_vm1, %v8463_v42, 0 }
 0xc0f   : > { %v15053_v48 = vpop.f32.mrf.mxu0 }
 0xc10   : > { %v7545_v12 = vadd.f32 %v15053_v48, %v7444_v29 }
 0xc11   : > { %v15067_v44 = vpop.f32.mrf.mxu1  ;;  %v7537_v1 = vpop.f32.mrf.mxu0 }
 0xc12   : > { %v7538_v37 = vadd.f32 %v7537_v1, %v7438_v52  ;;  %v7646_v20 = vadd.f32 %v15067_v44, %v7545_v12  ;;  %v17741_v44 = vsub.f32 %v8480_v46, %v17729_v62 }
 0xc13   : > { %v7637_v36 = vpop.f32.mrf.mxu1 }
 0xc14   : > { %v7638_v0 = vadd.f32 %v7637_v36, %v7538_v37  ;;  %v17758_v37 = vand.u32 4294901760, %v8478_v43 }
 0xc15   : > { %v15078_v11 = vpop.f32.mrf.mxu0 }
 0xc16   : > { %v7735_v38 = vadd.f32 %v15078_v11, %v7630_v45  ;;  %v15092_v7 = vpop.f32.mrf.mxu1  ;;  %v8461_v45 = vpop.permute.xlu0 %8460 }
 0xc17   : > { %v7728_v32 = vpop.f32.mrf.mxu0 }
 0xc18   : > { %v7828_v39 = vadd.f32 %v15092_v7, %v7735_v38  ;;  %v7729_v8 = vadd.f32 %v7728_v32, %v7622_v18  ;;  %v7821_v56 = vpop.f32.mrf.mxu1  ;;  %v17763_v7 = vand.u32 4294901760, %v17741_v44  ;;  %v8476_v32 = vsel %vm2642_vm1, %v8461_v45, 0 }
 0xc19   : > { %v15081_v25 = vpop.f32.mrf.mxu0 }
 0xc1a   : > { %v7850_v27 = vsel %vm2642_vm1, %v7828_v39, 0  ;;  %v7822_v54 = vadd.f32 %v7821_v56, %v7729_v8  ;;  %v7747_v63 = vadd.f32 %v15081_v25, %v7646_v20  ;;  %v15095_v16 = vpop.f32.mrf.mxu1  ;;  %v8459_v56 = vpop.permute.xlu1 %8458 }
 0xc1b   : > { %v17732_v40 = vand.u32 4294901760, %v7850_v27  ;;  %v7740_v33 = vpop.f32.mrf.mxu0 }
 0xc1c   : > { %v7847_v61 = vsel %vm2642_vm1, %v7822_v54, 0  ;;  %v7840_v57 = vadd.f32 %v15095_v16, %v7747_v63  ;;  %v7741_v35 = vadd.f32 %v7740_v33, %v7638_v0  ;;  %v7833_v48 = vpop.f32.mrf.mxu1  ;;  %v17775_v54 = vsub.f32 %v8478_v43, %v17758_v37 }
 0xc1d   : > { %v17736_v30 = vsub.f32 %v7850_v27, %v17732_v40  ;;  %v17738_v47 = vand.u32 4294901760, %v7847_v61  ;;  %v17772_v27 = vand.u32 4294901760, %v8476_v32  ;;  %v8619_v16 = vsub.f32 %v17741_v44, %v17763_v7 }
 0xc1e   : > { %v7856_v1 = vsel %vm2642_vm1, %v7840_v57, 0  ;;  %v7834_v29 = vadd.f32 %v7833_v48, %v7741_v35  ;;  %v8474_v57 = vsel %vm2642_vm1, %v8459_v56, 0 }
 0xc1f   : > { %v7937_v41 = vand.u32 4294901760, %v17736_v30  ;;  %v7926_v36 = vsub.f32 %v7847_v61, %v17738_v47  ;;  %v17747_v52 = vand.u32 4294901760, %v7856_v1  ;;  %15110 = vmatprep.mubr.f32.mxu1 %v17738_v47  ;;  %v8451_v61 = vpop.permute.xlu0 %8450  ;;  %v17784_v48 = vsub.f32 %v8476_v32, %v17772_v27 }
 0xc20   : > { %v7853_v12 = vsel %vm2642_vm1, %v7834_v29, 0  ;;  %15111 = vmatmul.mubr.f32.vlgmr.msra.gmra.mxu1 %v17732_v40  ;;  %v17788_v29 = vand.u32 4294901760, %v17775_v54  ;;  %v8466_v43 = vsel %vm2642_vm1, %v8451_v61, 0  ;;  %v17791_v45 = vand.u32 4294901760, %v8474_v57 }
 0xc21   : > { %v17753_v11 = vsub.f32 %v7856_v1, %v17747_v52  ;;  %v17755_v46 = vand.u32 4294901760, %v7853_v12  ;;  %15127 = vmatpush3.msra.mxu1 %v17699_v17  ;;  %v7927_v18 = vand.u32 4294901760, %v7926_v36  ;;  %v7938_v38 = vsub.f32 %v17736_v30, %v7937_v41 }
 0xc22   : > { %15128 = vmatprep.subr.mxu1 %v17707_v22  ;;  %v8620_v1 = vand.u32 4294901760, %v8619_v16 }
 0xc23   : > { %v7957_v20 = vand.u32 4294901760, %v17753_v11  ;;  %v7946_v39 = vsub.f32 %v7853_v12, %v17755_v46  ;;  %15113 = vmatprep.mubr.f32.mxu1 %v17755_v46  ;;  %15129 = vmatpush3.msra.mxu1 %v17707_v22  ;;  %v7928_v8 = vsub.f32 %v7926_v36, %v7927_v18  ;;  %v7939_v63 = vand.u32 4294901760, %v7938_v38  ;;  %v8455_v32 = vpop.permute.xlu0 %8454 }
 0xc24   : > { %15114 = vmatmul.mubr.f32.gmra.mxu1 %v17747_v52  ;;  %15146 = vmatprep.subr.mxu1 %v17699_v17  ;;  %v17801_v12 = vand.u32 4294901760, %v17784_v48 }
 0xc25   : > { %15130 = vmatprep.mubr.f32.mxu1 %v7927_v18  ;;  %v7929_v25 = vand.u32 4294901760, %v7928_v8  ;;  %v7947_v0 = vand.u32 4294901760, %v7946_v39  ;;  %v7958_v42 = vsub.f32 %v17753_v11, %v7957_v20  ;;  %v8453_v18 = vpop.permute.xlu1 %8452  ;;  %v8470_v8 = vsel %vm2642_vm1, %v8455_v32, 0 }
 0xc26   : > { %v8633_v38 = vsub.f32 %v17784_v48, %v17801_v12 }
 0xc27   : > { %15100 = vmatprep.mubr.f32.mxu0 %v7929_v25  ;;  %v7948_v33 = vsub.f32 %v7946_v39, %v7947_v0 }
 0xc28   : > { %15101 = vmatmul.mubr.f32.vlgmr.msra.gmra.mxu0 %v7939_v63  ;;  %15131 = vmatmul.mubr.f32.vlgmr.msra.gmra.mxu1 %v7937_v41  ;;  %v8626_v41 = vsub.f32 %v17775_v54, %v17788_v29 }
 0xc29   : > { %15117 = vmatpush3.msra.mxu0 %v17705_v4  ;;  %15147 = vmatpush3.msra.mxu1 %v17699_v17  ;;  %v7949_v35 = vand.u32 4294901760, %v7948_v33  ;;  %v7959_v4 = vand.u32 4294901760, %v7958_v42  ;;  %v17795_v17 = vand.u32 4294901760, %v8466_v43  ;;  %v8457_v56 = vpop.permute.xlu1 %8456 }
 0xc2a   : > { %15133 = vmatprep.mubr.f32.mxu1 %v7947_v0  ;;  %15148 = vmatprep.subr.mxu1 %v17707_v22  ;;  %v8472_v63 = vsel %vm2642_vm1, %v8457_v56, 0 }
 0xc2b   : > { %15149 = vmatpush3.msra.mxu1 %v17707_v22  ;;  %15103 = vmatprep.mubr.f32.mxu0 %v7949_v35  ;;  %v17804_v22 = vsub.f32 %v8474_v57, %v17791_v45  ;;  %v17841_v33 = vand.u32 4294901760, %v8472_v63 }
 0xc2c   : > { %15118 = vmatprep.subr.mxu0 %v17715_v23  ;;  %15170 = vmatprep.subr.mxu1 %v8620_v1 }
 0xc2d   : > { %15104 = vmatmul.mubr.f32.gmra.mxu0 %v7959_v4  ;;  %15134 = vmatmul.mubr.f32.gmra.mxu1 %v7957_v20  ;;  %v17818_v20 = vand.u32 4294901760, %v17804_v22  ;;  %v8582_v57 = vsub.f32 %v8472_v63, %v17841_v33 }
 0xc2e   : > { %15119 = vmatpush3.msra.mxu0 %v17715_v23  ;;  %15120 = vmatprep.mubr.f32.mxu0 %v7926_v36  ;;  %v17811_v23 = vsub.f32 %v8466_v43, %v17795_v17  ;;  %v8627_v36 = vand.u32 4294901760, %v8626_v41 }
 0xc2f   : > { %15150 = vmatprep.mubr.f32.mxu1 %v17738_v47  ;;  %15136 = vmatprep.subr.mxu0 %v17712_v5  ;;  %v8640_v25 = vsub.f32 %v17804_v22, %v17818_v20 }
 0xc31   : > { %15121 = vmatmul.mubr.f32.vlgmr.msra.gmra.mxu0 %v17736_v30  ;;  %15151 = vmatmul.mubr.f32.vlgmr.msra.gmra.mxu1 %v17732_v40  ;;  %v8468_v30 = vsel %vm2642_vm1, %v8453_v18, 0 }
 0xc32   : > { %15137 = vmatpush3.msra.mxu0 %v17712_v5  ;;  %15171 = vmatpush3.xpose.msra.mxu1 %v8620_v1  ;;  %v8553_v5 = vand.u32 4294901760, %v17811_v23  ;;  %v17831_v0 = vand.u32 4294901760, %v8468_v30 }
 0xc33   : > { %15123 = vmatprep.mubr.f32.mxu0 %v7946_v39  ;;  %15138 = vmatprep.subr.mxu0 %v17722_v58  ;;  %v8634_v39 = vand.u32 4294901760, %v8633_v38 }
 0xc34   : > { %15153 = vmatprep.mubr.f32.mxu1 %v17755_v46  ;;  %15172 = vmatprep.subr.mxu1 %v8627_v36  ;;  %v8562_v16 = vsub.f32 %v8468_v30, %v17831_v0 }
 0xc35   : > { %15139 = vmatpush3.msra.mxu0 %v17722_v58  ;;  %15154 = vmatmul.mubr.f32.gmra.mxu1 %v17747_v52  ;;  %v17834_v58 = vand.u32 4294901760, %v8470_v8 }
 0xc36   : > { %15156 = vmatprep.subr.mxu0 %v17729_v62  ;;  %15124 = vmatmul.mubr.f32.gmra.mxu0 %v17753_v11  ;;  %v8554_v11 = vsub.f32 %v17811_v23, %v8553_v5  ;;  %v8563_v61 = vand.u32 4294901760, %v8562_v16 }
 0xc37   : > { %15173 = vmatpush3.xpose.msra.mxu1 %v8627_v36  ;;  %15140 = vmatprep.mubr.f32.mxu0 %v17738_v47  ;;  %v8641_v47 = vand.u32 4294901760, %v8640_v25  ;;  %v8572_v42 = vsub.f32 %v8470_v8, %v17834_v58 }
 0xc38   : > { %15174 = vmatprep.subr.mxu1 %v8634_v39  ;;  %15178 = vmatprep.mubr.f32.mxu1 %v17795_v17 }
 0xc39   : > { %v8573_v35 = vand.u32 4294901760, %v8572_v42 }
 0xc3a   : > { %15141 = vmatmul.mubr.f32.vlgmr.msra.gmra.mxu0 %v17732_v40  ;;  %v8555_v40 = vand.u32 4294901760, %v8554_v11 }
 0xc3b   : > { %15157 = vmatpush3.xpose.msra.mxu0 %v17729_v62  ;;  %15175 = vmatpush3.xpose.msra.mxu1 %v8634_v39  ;;  %v8574_v1 = vsub.f32 %v8572_v42, %v8573_v35 }
 0xc3c   : > { %15143 = vmatprep.mubr.f32.mxu0 %v17755_v46  ;;  %15158 = vmatprep.subr.mxu0 %v17758_v37  ;;  %v8583_v46 = vand.u32 4294901760, %v8582_v57 }
 0xc3d   : > { %15176 = vmatprep.subr.mxu1 %v8641_v47  ;;  %v8575_v41 = vand.u32 4294901760, %v8574_v1 }
 0xc3e   : > { %15144 = vmatmul.mubr.f32.gmra.mxu0 %v17747_v52  ;;  %v8564_v52 = vsub.f32 %v8562_v16, %v8563_v61  ;;  %v8584_v4 = vsub.f32 %v8582_v57, %v8583_v46 }
 0xc3f   : > { %15159 = vmatpush3.xpose.msra.mxu0 %v17758_v37  ;;  %15177 = vmatpush3.xpose.msra.mxu1 %v8641_v47 }
 0xc40   : > { %15160 = vmatprep.subr.mxu0 %v17772_v27  ;;  %15164 = vmatprep.mubr.f32.mxu0 %v8555_v40  ;;  %v8565_v43 = vand.u32 4294901760, %v8564_v52  ;;  %v8585_v18 = vand.u32 4294901760, %v8584_v4 }
 0xc41   : > { %15198 = vmatprep.subr.mxu1 %v17729_v62 }
 0xc42   : > { %15179 = vmatmul.mubr.f32.vlgmr.msra.gmra.mxu1 %v17831_v0 }
 0xc43   : > { %15161 = vmatpush3.xpose.msra.mxu0 %v17772_v27  ;;  %15181 = vmatprep.mubr.f32.mxu1 %v17834_v58 }
 0xc44   : > { %15199 = vmatpush3.xpose.msra.mxu1 %v17729_v62  ;;  %15162 = vmatprep.subr.mxu0 %v17791_v45 }
 0xc45   : > { %15200 = vmatprep.subr.mxu1 %v17758_v37 }
 0xc46   : > { %15182 = vmatmul.mubr.f32.gmra.mxu1 %v17841_v33 }
 0xc47   : > { %15163 = vmatpush3.xpose.msra.mxu0 %v17791_v45  ;;  %15206 = vmatprep.mubr.f32.mxu1 %v8553_v5 }
 0xc48   : > { %15201 = vmatpush3.xpose.msra.mxu1 %v17758_v37  ;;  %15184 = vmatprep.subr.mxu0 %v17741_v44 }
 0xc49   : > { %15202 = vmatprep.subr.mxu1 %v17772_v27 }
 0xc4a   : > { %15165 = vmatmul.mubr.f32.vlgmr.msra.gmra.mxu0 %v8565_v43 }
 0xc4b   : > { %15167 = vmatprep.mubr.f32.mxu0 %v8575_v41  ;;  %15185 = vmatpush3.xpose.msra.mxu0 %v17741_v44 }
 0xc4c   : > { %15203 = vmatpush3.xpose.msra.mxu1 %v17772_v27  ;;  %15186 = vmatprep.subr.mxu0 %v17775_v54 }
 0xc4d   : > { %15204 = vmatprep.subr.mxu1 %v17791_v45 }
 0xc4e   : > { %15168 = vmatmul.mubr.f32.gmra.mxu0 %v8585_v18 }
 0xc4f   : > { %15187 = vmatpush3.xpose.msra.mxu0 %v17775_v54  ;;  %15192 = vmatprep.mubr.f32.mxu0 %v17811_v23 }
 0xc50   : > { %15205 = vmatpush3.xpose.msra.mxu1 %v17791_v45  ;;  %15188 = vmatprep.subr.mxu0 %v17784_v48 }
 0xc51   : > { %15226 = vmatprep.subr.mxu1 %v17729_v62 }
 0xc53   : > { %15207 = vmatmul.mubr.f32.vlgmr.msra.gmra.mxu1 %v8563_v61  ;;  %15189 = vmatpush3.xpose.msra.mxu0 %v17784_v48 }
 0xc54   : > { %15209 = vmatprep.mubr.f32.mxu1 %v8573_v35  ;;  %15227 = vmatpush3.xpose.msra.mxu1 %v17729_v62 }
 0xc55   : > { %15190 = vmatprep.subr.mxu0 %v17804_v22  ;;  %15228 = vmatprep.subr.mxu1 %v17758_v37 }
 0xc57   : > { %15210 = vmatmul.mubr.f32.gmra.mxu1 %v8583_v46  ;;  %15191 = vmatpush3.xpose.msra.mxu0 %v17804_v22 }
 0xc58   : > { %15229 = vmatpush3.xpose.msra.mxu1 %v17758_v37  ;;  %15234 = vmatprep.mubr.f32.mxu1 %v17795_v17 }
 0xc59   : > { %15212 = vmatprep.subr.mxu0 %v17763_v7  ;;  %15230 = vmatprep.subr.mxu1 %v17772_v27 }
 0xc5a   : > { %15193 = vmatmul.mubr.f32.vlgmr.msra.gmra.mxu0 %v8562_v16 }
 0xc5b   : > { %15195 = vmatprep.mubr.f32.mxu0 %v8572_v42  ;;  %15213 = vmatpush3.xpose.msra.mxu0 %v17763_v7 }
 0xc5c   : > { %15231 = vmatpush3.xpose.msra.mxu1 %v17772_v27  ;;  %15214 = vmatprep.subr.mxu0 %v17788_v29 }
 0xc5d   : > { %15232 = vmatprep.subr.mxu1 %v17791_v45 }
 0xc5e   : > { %15196 = vmatmul.mubr.f32.gmra.mxu0 %v8582_v57 }
 0xc5f   : > { %15215 = vmatpush3.xpose.msra.mxu0 %v17788_v29  ;;  %15220 = vmatprep.mubr.f32.mxu0 %v17795_v17 }
 0xc60   : > { %15233 = vmatpush3.xpose.msra.mxu1 %v17791_v45  ;;  %15216 = vmatprep.subr.mxu0 %v17801_v12 }
 0xc63   : > { %15235 = vmatmul.mubr.f32.vlgmr.msra.gmra.mxu1 %v17831_v0  ;;  %15217 = vmatpush3.xpose.msra.mxu0 %v17801_v12 }
 0xc64   : > { %15237 = vmatprep.mubr.f32.mxu1 %v17834_v58  ;;  %15218 = vmatprep.subr.mxu0 %v17818_v20 }
 0xc67   : > { %15238 = vmatmul.mubr.f32.gmra.mxu1 %v17841_v33  ;;  %15219 = vmatpush3.xpose.msra.mxu0 %v17818_v20 }
 0xc6a   : > { %15221 = vmatmul.mubr.f32.vlgmr.msra.gmra.mxu0 %v17831_v0 }
 0xc6b   : > { %15223 = vmatprep.mubr.f32.mxu0 %v17834_v58 }
 0xc6e   : > { %15224 = vmatmul.mubr.f32.gmra.mxu0 %v17841_v33 }
 0xce0   : > { %v15112_v62 = vpop.f32.mrf.mxu1 }
 0xce2   : > { %v8042_v44 = vpop.f32.mrf.mxu1 }
 0xce4   : > { %v15115_v37 = vpop.f32.mrf.mxu1 }
 0xce6   : > { %v8054_v7 = vpop.f32.mrf.mxu1 }
 0xce8   : > { %v15102_v27 = vpop.f32.mrf.mxu0  ;;  %v15132_v54 = vpop.f32.mrf.mxu1 }
 0xce9   : > { %v8049_v48 = vadd.f32 %v15112_v62, %v15102_v27 }
 0xcea   : > { %v7931_v29 = vpop.f32.mrf.mxu0  ;;  %v8232_v45 = vpop.f32.mrf.mxu1 }
 0xceb   : > { %v8043_v17 = vadd.f32 %v8042_v44, %v7931_v29 }
 0xced   : > { %v15105_v12 = vpop.f32.mrf.mxu0  ;;  %v15135_v23 = vpop.f32.mrf.mxu1 }
 0xcee   : > { %v8061_v22 = vadd.f32 %v15115_v37, %v15105_v12 }
 0xcef   : > { %v7951_v36 = vpop.f32.mrf.mxu0  ;;  %v8248_v20 = vpop.f32.mrf.mxu1 }
 0xcf0   : > { %v8055_v38 = vadd.f32 %v8054_v7, %v7951_v36 }
 0xcf1   : > { %v15122_v32 = vpop.f32.mrf.mxu0  ;;  %v15152_v39 = vpop.f32.mrf.mxu1 }
 0xcf2   : > { %v8144_v30 = vadd.f32 %v15122_v32, %v8049_v48 }
 0xcf3   : > { %v8136_v5 = vpop.f32.mrf.mxu0  ;;  %v8424_v16 = vpop.f32.mrf.mxu1 }
 0xcf4   : > { %v8137_v8 = vadd.f32 %v8136_v5, %v8043_v17  ;;  %v8241_v56 = vadd.f32 %v15132_v54, %v8144_v30 }
 0xcf5   : > { %v15155_v52 = vpop.f32.mrf.mxu1 }
 0xcf6   : > { %v15125_v25 = vpop.f32.mrf.mxu0  ;;  %v8233_v0 = vadd.f32 %v8232_v45, %v8137_v8 }
 0xcf7   : > { %v8158_v58 = vadd.f32 %v15125_v25, %v8061_v22  ;;  %v8436_v44 = vpop.f32.mrf.mxu1 }
 0xcf8   : > { %v8150_v63 = vpop.f32.mrf.mxu0 }
 0xcf9   : > { %v8151_v11 = vadd.f32 %v8150_v63, %v8055_v38  ;;  %v8257_v47 = vadd.f32 %v15135_v23, %v8158_v58 }
 0xcfa   : > { %v15142_v33 = vpop.f32.mrf.mxu0 }
 0xcfb   : > { %v8340_v42 = vadd.f32 %v15142_v33, %v8241_v56  ;;  %v8249_v40 = vadd.f32 %v8248_v20, %v8151_v11 }
 0xcfc   : > { %v8333_v61 = vpop.f32.mrf.mxu0 }
 0xcfd   : > { %v8431_v57 = vadd.f32 %v15152_v39, %v8340_v42  ;;  %v8334_v35 = vadd.f32 %v8333_v61, %v8233_v0 }
 0xcfe   : > { %v15145_v46 = vpop.f32.mrf.mxu0 }
 0xcff   : > { %v17898_v1 = vadd.f32 %v8431_v57, %v17563_v34  ;;  %v17900_v43 = vadd.f32 %v8424_v16, %v8334_v35  ;;  %v8352_v4 = vadd.f32 %v15145_v46, %v8257_v47 }
 0xd00   : > { %v8345_v41 = vpop.f32.mrf.mxu0 }
 0xd01   : > { %v8443_v18 = vadd.f32 %v15155_v52, %v8352_v4  ;;  %v8346_v62 = vadd.f32 %v8345_v41, %v8249_v40 }
 0xd02   : > { %v15180_v27 = vpop.f32.mrf.mxu1 }
 0xd03   : > { %v17903_v37 = vadd.f32 %v8443_v18, %v17566_v55  ;;  %v17905_v7 = vadd.f32 %v8436_v44, %v8346_v62 }
 0xd04   : > { %v8678_v54 = vpop.f32.mrf.mxu1 }
 0xd06   : > { %v15183_v29 = vpop.f32.mrf.mxu1 }
 0xd08   : > { %v8690_v17 = vpop.f32.mrf.mxu1 }
 0xd0a   : > { %v15166_v48 = vpop.f32.mrf.mxu0 }
 0xd0b   : > { %v8685_v20 = vadd.f32 %v15180_v27, %v15166_v48 }
 0xd0c   : > { %v8557_v45 = vpop.f32.mrf.mxu0 }
 0xd0d   : > { %v8679_v55 = vadd.f32 %v8678_v54, %v8557_v45 }
 0xd0e   : > { %v15169_v34 = vpop.f32.mrf.mxu0 }
 0xd0f   : > { %v8697_v39 = vadd.f32 %v15183_v29, %v15169_v34 }
 0xd10   : > { %v8577_v22 = vpop.f32.mrf.mxu0 }
 0xd11   : > { %v8691_v58 = vadd.f32 %v8690_v17, %v8577_v22 }
 0xd13   : > { %v15208_v12 = vpop.f32.mrf.mxu1 }
 0xd15   : > { %v8874_v23 = vpop.f32.mrf.mxu1 }
 0xd17   : > { %v15211_v38 = vpop.f32.mrf.mxu1 }
 0xd19   : > { %v8890_v30 = vpop.f32.mrf.mxu1 }
 0xd1a   : > { %v15194_v36 = vpop.f32.mrf.mxu0 }
 0xd1b   : > { %v8784_v8 = vadd.f32 %v15194_v36, %v8685_v20 }
 0xd1c   : > { %v8776_v32 = vpop.f32.mrf.mxu0 }
 0xd1d   : > { %v8777_v25 = vadd.f32 %v8776_v32, %v8679_v55  ;;  %v8883_v11 = vadd.f32 %v15208_v12, %v8784_v8 }
 0xd1e   : > { %v15197_v5 = vpop.f32.mrf.mxu0 }
 0xd1f   : > { %v8798_v63 = vadd.f32 %v15197_v5, %v8697_v39  ;;  %v8875_v40 = vadd.f32 %v8874_v23, %v8777_v25 }
 0xd20   : > { %v8790_v0 = vpop.f32.mrf.mxu0 }
 0xd21   : > { %v8791_v33 = vadd.f32 %v8790_v0, %v8691_v58  ;;  %v8899_v52 = vadd.f32 %v15211_v38, %v8798_v63 }
 0xd23   : > { %v15236_v56 = vpop.f32.mrf.mxu1  ;;  %v8891_v62 = vadd.f32 %v8890_v30, %v8791_v33 }
 0xd25   : > { %v9074_v47 = vpop.f32.mrf.mxu1 }
 0xd27   : > { %v15239_v46 = vpop.f32.mrf.mxu1 }
 0xd29   : > { %v9086_v45 = vpop.f32.mrf.mxu1 }
 0xd2a   : > { %v15222_v16 = vpop.f32.mrf.mxu0 }
 0xd2b   : > { %v8988_v42 = vadd.f32 %v15222_v16, %v8883_v11 }
 0xd2c   : > { %v8981_v61 = vpop.f32.mrf.mxu0 }
 0xd2d   : > { %v9081_v57 = vadd.f32 %v15236_v56, %v8988_v42  ;;  %v8982_v35 = vadd.f32 %v8981_v61, %v8875_v40 }
 0xd2e   : > { %v15225_v4 = vpop.f32.mrf.mxu0 }
 0xd2f   : > { %v9075_v41 = vadd.f32 %v9074_v47, %v8982_v35  ;;  %v9000_v18 = vadd.f32 %v15225_v4, %v8899_v52  ;;  %v9097_v44 = vmul.f32 0.25, %v9081_v57 }
 0xd30   : > { %v8993_v27 = vpop.f32.mrf.mxu0 }
 0xd31   : > { %v8994_v54 = vadd.f32 %v8993_v27, %v8891_v62  ;;  %v9103_v48 = vsel %vm3285_vm2, %v9097_v44, -inf  ;;  %v9096_v29 = vmul.f32 0.25, %v9075_v41  ;;  %v9093_v17 = vadd.f32 %v15239_v46, %v9000_v18 }
 0xd32   : > { %9104 = vmax.xlane.f32.xlu1 %v9103_v48 }
 0xd33   : > { %v9087_v34 = vadd.f32 %v9086_v45, %v8994_v54  ;;  %v9100_v12 = vsel %vm3285_vm2, %v9096_v29, -inf  ;;  %v9099_v36 = vmul.f32 0.25, %v9093_v17 }
 0xd34   : > { %9101 = vmax.xlane.f32.xlu0 %v9100_v12 }
 0xd35   : > { %v9098_v22 = vmul.f32 0.25, %v9087_v34  ;;  %v9109_v38 = vsel %vm3285_vm2, %v9099_v36, -inf }
 0xd37   : > { %v9106_v23 = vsel %vm3285_vm2, %v9098_v22, -inf }
 0xd38   : > { %9107 = vmax.xlane.f32.xlu0 %v9106_v23 }
 0xd3c   : > { %9110 = vmax.xlane.f32.xlu0 %v9109_v38 }
 0xdbb   : > { %v9105_v32 = vpop.xlane.xlu1 %9104 }
 0xdbc   : > { %v9113_v20 = vsub.f32 %v9097_v44, %v9105_v32 }
 0xdbd   : > { %v9102_v30 = vpop.xlane.xlu0 %9101 }
 0xdbe   : > { %v9118_v5 = vmul.f32 1.442695, %v9113_v20  ;;  %v9112_v55 = vsub.f32 %v9096_v29, %v9102_v30 }
 0xdc0   : > { %15800 = vpow2.f32 %v9118_v5  ;;  %v9116_v8 = vmul.f32 1.442695, %v9112_v55 }
 0xdc1   : > { %v9108_v56 = vpop.xlane.xlu0 %9107 }
 0xdc2   : > { %15802 = vpow2.f32 %v9116_v8  ;;  %v9114_v39 = vsub.f32 %v9098_v22, %v9108_v56 }
 0xdc4   : > { %v9120_v25 = vmul.f32 1.442695, %v9114_v39 }
 0xdc5   : > { %v9111_v0 = vpop.xlane.xlu0 %9110 }
 0xdc6   : > { %15804 = vpow2.f32 %v9120_v25  ;;  %v9115_v58 = vsub.f32 %v9099_v36, %v9111_v0 }
 0xdc8   : > { %v9122_v63 = vmul.f32 1.442695, %v9115_v58 }
 0xdca   : > { %15806 = vpow2.f32 %v9122_v63 }
 0xdcd   : > { %v15801_v11 = vpop.eup %15800 }
 0xdce   : > { %v9127_v47 = vsel %vm3285_vm2, %v15801_v11, 0.0 }
 0xdcf   : > { %v15803_v16 = vpop.eup %15802  ;;  %9128 = vadd.xlane.f32.xlu1 %v9127_v47 }
 0xdd0   : > { %v9124_v33 = vsel %vm3285_vm2, %v15803_v16, 0.0 }
 0xdd1   : > { %9125 = vadd.xlane.f32.xlu0 %v9124_v33 }
 0xdd3   : > { %v15805_v42 = vpop.eup %15804 }
 0xdd4   : > { %v9130_v40 = vsel %vm3285_vm2, %v15805_v42, 0.0 }
 0xdd5   : > { %9131 = vadd.xlane.f32.xlu0 %v9130_v40 }
 0xdd7   : > { %v15807_v61 = vpop.eup %15806 }
 0xdd8   : > { %v9133_v57 = vsel %vm3285_vm2, %v15807_v61, 0.0 }
 0xdd9   : > { %9134 = vadd.xlane.f32.xlu1 %v9133_v57 }
 0xdea   : > { %9148 = vrot.lane.b32.xlu1 %v16855_v19, %s15871_s18 }
 0xdeb   : > { %9150 = vrot.lane.b32.xlu0 %v16848_v15, %s15871_s18 }
 0xdee   : > { %9146 = vrot.lane.b32.xlu1 %v16834_v3, %s15871_s18 }
 0xdf2   : > { %9144 = vrot.lane.b32.xlu1 %v16841_v6, %s15871_s18 }
 0xe58   : > { %v9129_v35 = vpop.xlane.xlu1 %9128 }
 0xe59   : > { %15808 = vrcp.f32 %v9129_v35 }
 0xe5a   : > { %v9126_v52 = vpop.xlane.xlu0 %9125 }
 0xe5b   : > { %15810 = vrcp.f32 %v9126_v52 }
 0xe5e   : > { %v9132_v46 = vpop.xlane.xlu0 %9131 }
 0xe5f   : > { %15812 = vrcp.f32 %v9132_v46 }
 0xe62   : > { %v9135_v4 = vpop.xlane.xlu1 %9134  ;;  %v9151_v41 = vpop.permute.xlu0 %9150 }
 0xe63   : > { %15814 = vrcp.f32 %v9135_v4  ;;  %v17923_v18 = vand.u32 4294901760, %v9151_v41 }
 0xe65   : > { %v17926_v19 = vsub.f32 %v9151_v41, %v17923_v18  ;;  %15240 = vmatprep.subr.mxu0 %v17923_v18 }
 0xe66   : > { %v15809_v3 = vpop.eup %15808  ;;  %v9149_v15 = vpop.permute.xlu1 %9148  ;;  %15241 = vmatpush3.msra.mxu0 %v17923_v18 }
 0xe67   : > { %v9141_v6 = vmul.f32 %v15809_v3, %v15801_v11  ;;  %v17930_v62 = vand.u32 4294901760, %v9149_v15  ;;  %v17933_v44 = vand.u32 4294901760, %v17926_v19 }
 0xe68   : > { %v15811_v27 = vpop.eup %15810 }
 0xe69   : > { %v9160_v54 = vsel %vm3285_vm2, %v9141_v6, 0  ;;  %v9310_v48 = vsub.f32 %v9149_v15, %v17930_v62  ;;  %15242 = vmatprep.subr.mxu0 %v17930_v62  ;;  %v9305_v29 = vsub.f32 %v17926_v19, %v17933_v44  ;;  %v9140_v45 = vmul.f32 %v15811_v27, %v15803_v16 }
 0xe6a   : > { %v17940_v17 = vand.u32 4294901760, %v9160_v54  ;;  %v9147_v34 = vpop.permute.xlu1 %9146  ;;  %15243 = vmatpush3.msra.mxu0 %v17930_v62 }
 0xe6b   : > { %v17943_v12 = vand.u32 4294901760, %v9147_v34  ;;  %v9306_v22 = vand.u32 4294901760, %v9305_v29  ;;  %v9157_v23 = vsel %vm3285_vm2, %v9140_v45, 0  ;;  %v17946_v36 = vand.u32 4294901760, %v9310_v48 }
 0xe6c   : > { %v15813_v38 = vpop.eup %15812  ;;  %v17949_v32 = vsub.f32 %v9160_v54, %v17940_v17  ;;  %v17951_v20 = vand.u32 4294901760, %v9157_v23 }
 0xe6d   : > { %v9317_v30 = vsub.f32 %v9147_v34, %v17943_v12  ;;  %15244 = vmatprep.subr.mxu0 %v17943_v12  ;;  %15254 = vmatprep.subr.mxu1 %v9306_v22  ;;  %v9312_v5 = vsub.f32 %v9310_v48, %v17946_v36  ;;  %v9142_v55 = vmul.f32 %v15813_v38, %v15805_v42 }
 0xe6e   : > { %v9145_v8 = vpop.permute.xlu1 %9144  ;;  %15245 = vmatpush3.msra.mxu0 %v17943_v12  ;;  %15255 = vmatpush3.msra.mxu1 %v9306_v22  ;;  %v9238_v56 = vsub.f32 %v9157_v23, %v17951_v20  ;;  %v9249_v39 = vand.u32 4294901760, %v17949_v32 }
 0xe6f   : > { %v17959_v25 = vand.u32 4294901760, %v9145_v8  ;;  %15262 = vmatprep.mubr.f32.mxu1 %v17951_v20  ;;  %v9313_v0 = vand.u32 4294901760, %v9312_v5  ;;  %v17962_v58 = vand.u32 4294901760, %v9317_v30  ;;  %v9163_v63 = vsel %vm3285_vm2, %v9142_v55, 0 }
 0xe70   : > { %v15815_v11 = vpop.eup %15814  ;;  %v9239_v47 = vand.u32 4294901760, %v9238_v56  ;;  %v9250_v16 = vsub.f32 %v17949_v32, %v9249_v39  ;;  %v17968_v33 = vand.u32 4294901760, %v9163_v63 }
 0xe71   : > { %v9143_v42 = vmul.f32 %v15815_v11, %v15807_v61  ;;  %v9324_v40 = vsub.f32 %v9145_v8, %v17959_v25  ;;  %15246 = vmatprep.subr.mxu0 %v17959_v25  ;;  %15256 = vmatprep.subr.mxu1 %v9313_v0  ;;  %v9319_v57 = vsub.f32 %v9317_v30, %v17962_v58 }
 0xe72   : > { %15247 = vmatpush3.msra.mxu0 %v17959_v25  ;;  %15257 = vmatpush3.msra.mxu1 %v9313_v0  ;;  %v9240_v35 = vsub.f32 %v9238_v56, %v9239_v47  ;;  %v9258_v52 = vsub.f32 %v9163_v63, %v17968_v33  ;;  %v9251_v6 = vand.u32 4294901760, %v9250_v16 }
 0xe73   : > { %15268 = vmatprep.subr.mxu0 %v17926_v19  ;;  %v9320_v46 = vand.u32 4294901760, %v9319_v57  ;;  %v9325_v4 = vand.u32 4294901760, %v9324_v40  ;;  %v9166_v41 = vsel %vm3285_vm2, %v9143_v42, 0 }
 0xe74   : > { %v9241_v61 = vand.u32 4294901760, %v9240_v35  ;;  %v9259_v3 = vand.u32 4294901760, %v9258_v52  ;;  %v17977_v15 = vand.u32 4294901760, %v9166_v41 }
 0xe75   : > { %15258 = vmatprep.subr.mxu1 %v9320_v46  ;;  %v9326_v27 = vsub.f32 %v9324_v40, %v9325_v4 }
 0xe76   : > { %15248 = vmatprep.mubr.f32.mxu0 %v9241_v61  ;;  %15259 = vmatpush3.msra.mxu1 %v9320_v46  ;;  %v9260_v54 = vsub.f32 %v9258_v52, %v9259_v3  ;;  %v9268_v29 = vsub.f32 %v9166_v41, %v17977_v15 }
 0xe77   : > { %15249 = vmatmul.mubr.f32.vlgmr.msra.gmra.mxu0 %v9251_v6  ;;  %v9327_v45 = vand.u32 4294901760, %v9326_v27 }
 0xe78   : > { %15269 = vmatpush3.msra.mxu0 %v17926_v19  ;;  %v9261_v34 = vand.u32 4294901760, %v9260_v54  ;;  %v9269_v22 = vand.u32 4294901760, %v9268_v29 }
 0xe79   : > { %15270 = vmatprep.subr.mxu0 %v9310_v48  ;;  %15260 = vmatprep.subr.mxu1 %v9327_v45 }
 0xe7a   : > { %15271 = vmatpush3.msra.mxu0 %v9310_v48  ;;  %15251 = vmatprep.mubr.f32.mxu0 %v9261_v34  ;;  %v9270_v23 = vsub.f32 %v9268_v29, %v9269_v22 }
 0xe7b   : > { %15261 = vmatpush3.msra.mxu1 %v9327_v45  ;;  %15272 = vmatprep.subr.mxu0 %v9317_v30 }
 0xe7c   : > { %15263 = vmatmul.mubr.f32.vlgmr.msra.gmra.mxu1 %v17940_v17  ;;  %15273 = vmatpush3.msra.mxu0 %v9317_v30  ;;  %v9271_v38 = vand.u32 4294901760, %v9270_v23 }
 0xe7d   : > { %15282 = vmatprep.subr.mxu1 %v17923_v18  ;;  %15265 = vmatprep.mubr.f32.mxu1 %v17968_v33 }
 0xe7e   : > { %15274 = vmatprep.subr.mxu0 %v9324_v40  ;;  %15283 = vmatpush3.msra.mxu1 %v17923_v18 }
 0xe7f   : > { %15275 = vmatpush3.msra.mxu0 %v9324_v40  ;;  %15284 = vmatprep.subr.mxu1 %v17930_v62 }
 0xe80   : > { %15252 = vmatmul.mubr.f32.gmra.mxu0 %v9271_v38  ;;  %15285 = vmatpush3.msra.mxu1 %v17930_v62 }
 0xe81   : > { %15296 = vmatprep.subr.mxu0 %v17933_v44  ;;  %15266 = vmatmul.mubr.f32.gmra.mxu1 %v17977_v15 }
 0xe82   : > { %15276 = vmatprep.mubr.f32.mxu0 %v9238_v56  ;;  %15286 = vmatprep.subr.mxu1 %v17943_v12 }
 0xe83   : > { %15287 = vmatpush3.msra.mxu1 %v17943_v12  ;;  %15290 = vmatprep.mubr.f32.mxu1 %v9239_v47 }
 0xe84   : > { %15288 = vmatprep.subr.mxu1 %v17959_v25  ;;  %15277 = vmatmul.mubr.f32.vlgmr.msra.gmra.mxu0 %v17949_v32 }
 0xe85   : > { %15289 = vmatpush3.msra.mxu1 %v17959_v25  ;;  %15297 = vmatpush3.msra.mxu0 %v17933_v44 }
 0xe86   : > { %15279 = vmatprep.mubr.f32.mxu0 %v9258_v52  ;;  %15291 = vmatmul.mubr.f32.vlgmr.msra.gmra.mxu1 %v9249_v39 }
 0xe87   : > { %15298 = vmatprep.subr.mxu0 %v17946_v36  ;;  %15310 = vmatprep.subr.mxu1 %v17923_v18 }
 0xe88   : > { %15293 = vmatprep.mubr.f32.mxu1 %v9259_v3  ;;  %15299 = vmatpush3.msra.mxu0 %v17946_v36 }
 0xe89   : > { %15311 = vmatpush3.msra.mxu1 %v17923_v18  ;;  %15300 = vmatprep.subr.mxu0 %v17962_v58  ;;  %v13118_v18 = vld [vmem:[%s18888_s4 + $0x38] sm:$0xff] }
 0xe8a   : > { %15312 = vmatprep.subr.mxu1 %v17930_v62  ;;  %15280 = vmatmul.mubr.f32.gmra.mxu0 %v9268_v29  ;;  %v18020_v19 = vand.u32 4294901760, %v13118_v18 }
 0xe8b   : > { %15301 = vmatpush3.msra.mxu0 %v17962_v58  ;;  %15313 = vmatpush3.msra.mxu1 %v17930_v62  ;;  %v13117_v62 = vld [vmem:[%s18888_s4 + $0x30] sm:$0xff] }
 0xe8c   : > { %15294 = vmatmul.mubr.f32.gmra.mxu1 %v9269_v22  ;;  %15302 = vmatprep.subr.mxu0 %v9325_v4  ;;  %v18026_v44 = vsub.f32 %v13118_v18, %v18020_v19  ;;  %v18028_v48 = vand.u32 4294901760, %v13117_v62 }
 0xe8d   : > { %15304 = vmatprep.mubr.f32.mxu0 %v17951_v20  ;;  %15314 = vmatprep.subr.mxu1 %v17943_v12 }
 0xe8e   : > { %15303 = vmatpush3.msra.mxu0 %v9325_v4  ;;  %15315 = vmatpush3.msra.mxu1 %v17943_v12  ;;  %v18036_v12 = vsub.f32 %v13117_v62, %v18028_v48 }
 0xe8f   : > { %15318 = vmatprep.mubr.f32.mxu1 %v17951_v20  ;;  %15316 = vmatprep.subr.mxu1 %v17959_v25 }
 0xe90   : > { %15305 = vmatmul.mubr.f32.vlgmr.msra.gmra.mxu0 %v17940_v17  ;;  %15317 = vmatpush3.msra.mxu1 %v17959_v25  ;;  %v18043_v32 = vand.u32 4294901760, %v18036_v12 }
 0xe91   : > { %15307 = vmatprep.mubr.f32.mxu0 %v17968_v33  ;;  %15319 = vmatmul.mubr.f32.vlgmr.msra.gmra.mxu1 %v17940_v17  ;;  %v18033_v17 = vand.u32 4294901760, %v18026_v44 }
 0xe92   : > { %15321 = vmatprep.mubr.f32.mxu1 %v17968_v33  ;;  %15324 = vmatprep.subr.mxu0 %v18020_v19  ;;  %v9943_v30 = vsub.f32 %v18036_v12, %v18043_v32 }
 0xe93   : > { %15325 = vmatpush3.msra.mxu0 %v18020_v19  ;;  %v9936_v36 = vsub.f32 %v18026_v44, %v18033_v17 }
 0xe94   : > { %15308 = vmatmul.mubr.f32.gmra.mxu0 %v17977_v15  ;;  %15326 = vmatprep.subr.mxu0 %v18028_v48  ;;  %v9944_v5 = vand.u32 4294901760, %v9943_v30 }
 0xe95   : > { %15322 = vmatmul.mubr.f32.gmra.mxu1 %v17977_v15  ;;  %15327 = vmatpush3.msra.mxu0 %v18028_v48  ;;  %v9937_v20 = vand.u32 4294901760, %v9936_v36 }
 0xe96   : > { %15344 = vmatprep.subr.mxu0 %v18026_v44 }
 0xe97   : > { %15334 = vmatprep.subr.mxu1 %v9937_v20 }
 0xe98   : > { %15335 = vmatpush3.msra.mxu1 %v9937_v20 }
 0xe99   : > { %15336 = vmatprep.subr.mxu1 %v9944_v5 }
 0xe9a   : > { %15337 = vmatpush3.msra.mxu1 %v9944_v5 }
 0xe9b   : > { %15354 = vmatprep.subr.mxu1 %v18020_v19 }
 0xf37   : > { %v15250_v55 = vpop.f32.mrf.mxu0 }
 0xf39   : > { %v9243_v56 = vpop.f32.mrf.mxu0 }
 0xf3c   : > { %v15264_v8 = vpop.f32.mrf.mxu1 }
 0xf3d   : > { %v9371_v42 = vadd.f32 %v15264_v8, %v15250_v55 }
 0xf3e   : > { %v9364_v39 = vpop.f32.mrf.mxu1 }
 0xf3f   : > { %v9365_v57 = vadd.f32 %v9364_v39, %v9243_v56 }
 0xf40   : > { %v15253_v25 = vpop.f32.mrf.mxu0 }
 0xf41   : > { %v15267_v0 = vpop.f32.mrf.mxu1 }
 0xf42   : > { %v9263_v58 = vpop.f32.mrf.mxu0  ;;  %v9383_v4 = vadd.f32 %v15267_v0, %v15253_v25 }
 0xf43   : > { %v9376_v63 = vpop.f32.mrf.mxu1 }
 0xf44   : > { %v15278_v11 = vpop.f32.mrf.mxu0  ;;  %v9377_v3 = vadd.f32 %v9376_v63, %v9263_v58 }
 0xf45   : > { %v9470_v35 = vadd.f32 %v15278_v11, %v9371_v42 }
 0xf46   : > { %v15292_v47 = vpop.f32.mrf.mxu1  ;;  %v9462_v16 = vpop.f32.mrf.mxu0 }
 0xf47   : > { %v9463_v41 = vadd.f32 %v9462_v16, %v9365_v57  ;;  %v9569_v15 = vadd.f32 %v15292_v47, %v9470_v35 }
 0xf48   : > { %v9560_v33 = vpop.f32.mrf.mxu1 }
 0xf49   : > { %v9561_v54 = vadd.f32 %v9560_v33, %v9463_v41 }
 0xf4a   : > { %v15281_v40 = vpop.f32.mrf.mxu0 }
 0xf4b   : > { %v9484_v6 = vadd.f32 %v15281_v40, %v9383_v4 }
 0xf4c   : > { %v15295_v52 = vpop.f32.mrf.mxu1  ;;  %v9476_v46 = vpop.f32.mrf.mxu0 }
 0xf4d   : > { %v9477_v29 = vadd.f32 %v9476_v46, %v9377_v3  ;;  %v9585_v23 = vadd.f32 %v15295_v52, %v9484_v6 }
 0xf4e   : > { %v9576_v61 = vpop.f32.mrf.mxu1 }
 0xf4f   : > { %v9577_v20 = vadd.f32 %v9576_v61, %v9477_v29 }
 0xf50   : > { %v15306_v27 = vpop.f32.mrf.mxu0 }
 0xf51   : > { %v9674_v45 = vadd.f32 %v15306_v27, %v9569_v15  ;;  %v15320_v34 = vpop.f32.mrf.mxu1 }
 0xf52   : > { %v9667_v22 = vpop.f32.mrf.mxu0 }
 0xf53   : > { %v9767_v38 = vadd.f32 %v15320_v34, %v9674_v45  ;;  %v9668_v18 = vadd.f32 %v9667_v22, %v9561_v54  ;;  %v9760_v62 = vpop.f32.mrf.mxu1 }
 0xf54   : > { %v15309_v36 = vpop.f32.mrf.mxu0 }
 0xf55   : > { %v9789_v30 = vsel %vm2642_vm1, %v9767_v38, 0  ;;  %v9761_v5 = vadd.f32 %v9760_v62, %v9668_v18  ;;  %v9686_v55 = vadd.f32 %v15309_v36, %v9585_v23  ;;  %v15323_v8 = vpop.f32.mrf.mxu1  ;;  %v4155_v23 = vadd.f32 %v17186_v9, %v17190_v24 }
 0xf56   : > { %v9874_v56 = vand.u32 4294901760, %v9789_v30  ;;  %v9679_v39 = vpop.f32.mrf.mxu0  ;;  %v6116_v24 = vadd.f32 %v17541_v13, %v17547_v59  ;;  %v18915_v13 = vld [vmem:[#allocation4_spill] sm:$0xff] }
 0xf57   : > { %v9786_v25 = vsel %vm2642_vm1, %v9761_v5, 0  ;;  %v9779_v0 = vadd.f32 %v15323_v8, %v9686_v55  ;;  %v9680_v58 = vadd.f32 %v9679_v39, %v9577_v20  ;;  %v9772_v63 = vpop.f32.mrf.mxu1  ;;  %v4249_v18 = vadd.f32 %v17196_v31, %v4155_v23 }
 0xf58   : > { %v9875_v11 = vsub.f32 %v9789_v30, %v9874_v56  ;;  %v9864_v47 = vand.u32 4294901760, %v9786_v25  ;;  %v4167_v20 = vadd.f32 %v17188_v60, %v17194_v14 }
 0xf59   : > { %v9795_v16 = vsel %vm2642_vm1, %v9779_v0, 0  ;;  %v9773_v33 = vadd.f32 %v9772_v63, %v9680_v58  ;;  %v4345_v9 = vadd.f32 %v17192_v51, %v4249_v18  ;;  %v18914_v63 = vld [vmem:[#allocation2_spill] sm:$0xff] }
 0xf5a   : > { %v9876_v42 = vand.u32 4294901760, %v9875_v11  ;;  %v9865_v40 = vsub.f32 %v9786_v25, %v9864_v47  ;;  %v9894_v57 = vand.u32 4294901760, %v9795_v16  ;;  %15338 = vmatprep.mubr.f32.mxu1 %v9864_v47  ;;  %v4263_v8 = vadd.f32 %v17200_v2, %v4167_v20  ;;  %v18913_v25 = vld [vmem:[#allocation7_spill] sm:$0xff] }
 0xf5b   : > { %v9792_v35 = vsel %vm2642_vm1, %v9773_v33, 0  ;;  %15339 = vmatmul.mubr.f32.vlgmr.msra.gmra.mxu1 %v9874_v56 }
 0xf5c   : > { %v9895_v52 = vsub.f32 %v9795_v16, %v9894_v57  ;;  %v9884_v46 = vand.u32 4294901760, %v9792_v35  ;;  %15355 = vmatpush3.msra.mxu1 %v18020_v19  ;;  %v9866_v4 = vand.u32 4294901760, %v9865_v40  ;;  %v9877_v41 = vsub.f32 %v9875_v11, %v9876_v42 }
 0xf5d   : > { %15356 = vmatprep.subr.mxu1 %v18028_v48 }
 0xf5e   : > { %v9896_v61 = vand.u32 4294901760, %v9895_v52  ;;  %v9885_v3 = vsub.f32 %v9792_v35, %v9884_v46  ;;  %15341 = vmatprep.mubr.f32.mxu1 %v9884_v46  ;;  %v9867_v15 = vsub.f32 %v9865_v40, %v9866_v4  ;;  %15357 = vmatpush3.msra.mxu1 %v18028_v48  ;;  %v9878_v54 = vand.u32 4294901760, %v9877_v41  ;;  %v15856_v41 = vld [vmem:[%s18889_s5] ss:$0 sm:$0xff] }
 0xf5f   : > { %15342 = vmatmul.mubr.f32.gmra.mxu1 %v9894_v57  ;;  %15374 = vmatprep.subr.mxu1 %v18020_v19 }
 0xf60   : > { %15358 = vmatprep.mubr.f32.mxu1 %v9866_v4  ;;  %v9868_v6 = vand.u32 4294901760, %v9867_v15  ;;  %v9886_v27 = vand.u32 4294901760, %v9885_v3  ;;  %v9897_v29 = vsub.f32 %v9895_v52, %v9896_v61 }
 0xf62   : > { %15328 = vmatprep.mubr.f32.mxu0 %v9868_v6  ;;  %v9887_v45 = vsub.f32 %v9885_v3, %v9886_v27  ;;  %v9898_v22 = vand.u32 4294901760, %v9897_v29 }
 0xf63   : > { %15329 = vmatmul.mubr.f32.vlgmr.msra.gmra.mxu0 %v9878_v54  ;;  %15359 = vmatmul.mubr.f32.vlgmr.msra.gmra.mxu1 %v9876_v42  ;;  %v18917_v42 = vld [vmem:[#allocation6_spill] sm:$0xff] }
 0xf64   : > { %15345 = vmatpush3.msra.mxu0 %v18026_v44  ;;  %15361 = vmatprep.mubr.f32.mxu1 %v9886_v27  ;;  %v9888_v34 = vand.u32 4294901760, %v9887_v45 }
 0xf65   : > { %15346 = vmatprep.subr.mxu0 %v18036_v12  ;;  %15375 = vmatpush3.msra.mxu1 %v18020_v19 }
 0xf66   : > { %15331 = vmatprep.mubr.f32.mxu0 %v9888_v34  ;;  %15347 = vmatpush3.msra.mxu0 %v18036_v12 }
 0xf67   : > { %15332 = vmatmul.mubr.f32.gmra.mxu0 %v9898_v22  ;;  %15362 = vmatmul.mubr.f32.gmra.mxu1 %v9896_v61  ;;  %v18920_v22 = vld [vmem:[#allocation8_spill] sm:$0xff] }
 0xf68   : > { %15348 = vmatprep.mubr.f32.mxu0 %v9865_v40  ;;  %15378 = vmatprep.mubr.f32.mxu1 %v9864_v47 }
 0xf69   : > { %15376 = vmatprep.subr.mxu1 %v18028_v48  ;;  %15364 = vmatprep.subr.mxu0 %v18033_v17 }
 0xf6a   : > { %15377 = vmatpush3.msra.mxu1 %v18028_v48 }
 0xf6b   : > { %15349 = vmatmul.mubr.f32.vlgmr.msra.gmra.mxu0 %v9875_v11  ;;  %15379 = vmatmul.mubr.f32.vlgmr.msra.gmra.mxu1 %v9874_v56 }
 0xf6c   : > { %15365 = vmatpush3.msra.mxu0 %v18033_v17  ;;  %15351 = vmatprep.mubr.f32.mxu0 %v9885_v3  ;;  %v18919_v3 = vld [vmem:[#allocation3_spill] sm:$0xff] }
 0xf6d   : > { %15381 = vmatprep.mubr.f32.mxu1 %v9884_v46  ;;  %15366 = vmatprep.subr.mxu0 %v18043_v32 }
 0xf6e   : > { %15367 = vmatpush3.msra.mxu0 %v18043_v32  ;;  %v6104_v32 = vadd.f32 %v17539_v28, %v17543_v50  ;;  %v6212_v28 = vadd.f32 %v17553_v10, %v6116_v24 }
 0xf6f   : > { %15352 = vmatmul.mubr.f32.gmra.mxu0 %v9895_v52  ;;  %15382 = vmatmul.mubr.f32.gmra.mxu1 %v9894_v57 }
 0xf70   : > { %15368 = vmatprep.mubr.f32.mxu0 %v9864_v47  ;;  %v6198_v30 = vadd.f32 %v17549_v49, %v6104_v32  ;;  %v4361_v49 = vadd.f32 %v17198_v26, %v4263_v8  ;;  %v18916_v47 = vld [vmem:[#allocation5_spill] sm:$0xff] }
 0xf72   : > { %v6294_v50 = vadd.f32 %v17545_v21, %v6198_v30  ;;  %v4458_v59 = vadd.f32 %v18915_v13, %v4361_v49 }
 0xf73   : > { %15369 = vmatmul.mubr.f32.vlgmr.msra.gmra.mxu0 %v9874_v56  ;;  %v4446_v56 = vadd.f32 %v17204_v53, %v4345_v9  ;;  %v6310_v53 = vadd.f32 %v18916_v47, %v6212_v28 }
 0xf74   : > { %15371 = vmatprep.mubr.f32.mxu0 %v9884_v46  ;;  %v6395_v0 = vadd.f32 %v18913_v25, %v6294_v50  ;;  %v4549_v15 = vadd.f32 %v18919_v3, %v4458_v59  ;;  %v10474_v3 = vld [vmem:[%s18892_s8 + $0x38] sm:$0xff] }
 0xf75   : > { %v4537_v11 = vadd.f32 %v18914_v63, %v4446_v56 }
 0xf76   : > { %v6486_v40 = vadd.f32 %v18917_v42, %v6395_v0  ;;  %v15859_v0 = vld [vmem:[%s15970_s28 + $0x10] sm:$0xff] }
 0xf77   : > { %15372 = vmatmul.mubr.f32.gmra.mxu0 %v9894_v57  ;;  %v18918_v57 = vld [vmem:[#allocation9_spill] sm:$0xff]  ;;  %v4564_v61 = vadd.f32 %v15856_v41, %v4537_v11 }
 0xf78   : > { %v6407_v35 = vadd.f32 %v18918_v57, %v6310_v53 }
 0xf79   : > { %v6507_v34 = vadd.f32 %v6486_v40, %v4564_v61 }
0x101b   : > { %v15340_v19 = vpop.f32.mrf.mxu1 }
0x101d   : > { %v9981_v44 = vpop.f32.mrf.mxu1 }
0x101f   : > { %v15343_v12 = vpop.f32.mrf.mxu1 }
0x1021   : > { %v9993_v48 = vpop.f32.mrf.mxu1 }
0x1023   : > { %v15330_v17 = vpop.f32.mrf.mxu0  ;;  %v15360_v38 = vpop.f32.mrf.mxu1 }
0x1024   : > { %v9988_v14 = vadd.f32 %v15340_v19, %v15330_v17  ;;  %v6498_v19 = vadd.f32 %v18920_v22, %v6407_v35  ;;  %v4566_v17 = vadd.f32 %v15856_v41, %v4549_v15  ;;  %v18129_v15 = vand.u32 4294901760, %v10474_v3 }
0x1025   : > { %v9870_v62 = vpop.f32.mrf.mxu0  ;;  %v10171_v36 = vpop.f32.mrf.mxu1 }
0x1026   : > { %v9982_v58 = vadd.f32 %v9981_v44, %v9870_v62  ;;  %15384 = vmatprep.subr.mxu0 %v18129_v15 }
0x1027   : > { %v15333_v5 = vpop.f32.mrf.mxu0  ;;  %v15363_v55 = vpop.f32.mrf.mxu1  ;;  %15385 = vmatpush3.msra.mxu0 %v18129_v15 }
0x1028   : > { %v10000_v33 = vadd.f32 %v15343_v12, %v15333_v5 }
0x1029   : > { %v9890_v31 = vpop.f32.mrf.mxu0  ;;  %v10187_v39 = vpop.f32.mrf.mxu1 }
0x102a   : > { %v9994_v52 = vadd.f32 %v9993_v48, %v9890_v31  ;;  %v15857_v31 = vld [vmem:[%s15970_s28 + $0x8] sm:$0xff] }
0x102b   : > { %v15350_v60 = vpop.f32.mrf.mxu0  ;;  %v15380_v16 = vpop.f32.mrf.mxu1 }
0x102c   : > { %v10083_v51 = vadd.f32 %v15350_v60, %v9988_v14  ;;  %v15858_v14 = vld [vmem:[%s15970_s28] sm:$0xff] }
0x102d   : > { %v10075_v2 = vpop.f32.mrf.mxu0  ;;  %v10363_v6 = vpop.f32.mrf.mxu1 }
0x102e   : > { %v10076_v21 = vadd.f32 %v10075_v2, %v9982_v58  ;;  %v10180_v4 = vadd.f32 %v15360_v38, %v10083_v51  ;;  %v8446_v38 = vadd.f32 %v17900_v43, %v6507_v34  ;;  %v15860_v51 = vld [vmem:[%s15970_s28 + $0x18] sm:$0xff] }
0x102f   : > { %v15353_v10 = vpop.f32.mrf.mxu0  ;;  %v15383_v18 = vpop.f32.mrf.mxu1 }
0x1030   : > { %v10097_v46 = vadd.f32 %v15353_v10, %v10000_v33  ;;  %v10172_v45 = vadd.f32 %v10171_v36, %v10076_v21  ;;  %v6509_v36 = vadd.f32 %v6498_v19, %v4566_v17  ;;  %v10471_v19 = vld [vmem:[%s18892_s8 + $0x20] sm:$0xff]  ;;  %v10470_v17 = vld [vmem:[%s18892_s8 + $0x18] sm:$0xff] }
0x1031   : > { %v10089_v26 = vpop.f32.mrf.mxu0  ;;  %v10375_v28 = vpop.f32.mrf.mxu1 }
0x1032   : > { %v10090_v54 = vadd.f32 %v10089_v26, %v9994_v52  ;;  %v10196_v23 = vadd.f32 %v15363_v55, %v10097_v46  ;;  %v8448_v43 = vadd.f32 %v17905_v7, %v6509_v36 }
0x1033   : > { %v15370_v27 = vpop.f32.mrf.mxu0 }
0x1034   : > { %v10279_v29 = vadd.f32 %v15370_v27, %v10180_v4  ;;  %v10188_v30 = vadd.f32 %v10187_v39, %v10090_v54  ;;  %v18135_v27 = vsub.f32 %v10474_v3, %v18129_v15 }
0x1035   : > { %v10272_v44 = vpop.f32.mrf.mxu0 }
0x1036   : > { %v10370_v12 = vadd.f32 %v15380_v16, %v10279_v29  ;;  %v10273_v48 = vadd.f32 %v10272_v44, %v10172_v45  ;;  %v10472_v29 = vld [vmem:[%s18892_s8 + $0x28] sm:$0xff]  ;;  %v18145_v45 = vand.u32 4294901760, %v18135_v27 }
0x1037   : > { %v15373_v32 = vpop.f32.mrf.mxu0  ;;  %v18150_v22 = vand.u32 4294901760, %v10472_v29 }
0x1038   : > { %v10364_v62 = vadd.f32 %v10363_v6, %v10273_v48  ;;  %v10291_v20 = vadd.f32 %v15373_v32, %v10196_v23  ;;  %v10386_v5 = vadd.f32 %v10370_v12, %v17898_v1  ;;  %v10473_v6 = vld [vmem:[%s18892_s8 + $0x30] sm:$0xff]  ;;  %v10627_v44 = vsub.f32 %v18135_v27, %v18145_v45 }
0x1039   : > { %v10284_v8 = vpop.f32.mrf.mxu0  ;;  %v18137_v54 = vand.u32 4294901760, %v10473_v6  ;;  %v18163_v48 = vsub.f32 %v10472_v29, %v18150_v22  ;;  %v18165_v23 = vand.u32 4294901760, %v10471_v19 }
0x103a   : > { %v10382_v9 = vadd.f32 %v15383_v18, %v10291_v20  ;;  %v10285_v24 = vadd.f32 %v10284_v8, %v10188_v30  ;;  %v10390_v56 = vadd.f32 %v15857_v31, %v10386_v5  ;;  %v10385_v55 = vadd.f32 %v10364_v62, %v8446_v38  ;;  %v10469_v30 = vld [vmem:[%s18892_s8 + $0x10] sm:$0xff]  ;;  %v10468_v31 = vld [vmem:[%s18892_s8 + $0x8] sm:$0xff] }
0x103b   : > { %v18148_v34 = vsub.f32 %v10473_v6, %v18137_v54  ;;  %15386 = vmatprep.subr.mxu0 %v18137_v54  ;;  %v10628_v38 = vand.u32 4294901760, %v10627_v44  ;;  %v18175_v32 = vand.u32 4294901760, %v18163_v48  ;;  %v18178_v62 = vsub.f32 %v10471_v19, %v18165_v23  ;;  %v13119_v6 = vld [vmem:[%s18890_s6] ss:$0 sm:$0xff] }
0x103c   : > { %v10376_v50 = vadd.f32 %v10375_v28, %v10285_v24  ;;  %v10398_v60 = vsel %vm531_vm0, %v10390_v56, 0.0  ;;  %v10389_v49 = vadd.f32 %v15858_v14, %v10385_v55  ;;  %v10388_v25 = vadd.f32 %v10382_v9, %v17903_v37  ;;  %15387 = vmatpush3.msra.mxu0 %v18137_v54  ;;  %v13120_v44 = vld [vmem:[%s18891_s7] ss:$0 sm:$0xff] }
0x103d   : > { %10399 = vadd.xlane.f32.xlu1 %v10398_v60  ;;  %v18160_v12 = vand.u32 4294901760, %v18148_v34  ;;  %15388 = vmatprep.subr.mxu0 %v18150_v22  ;;  %v18181_v20 = vand.u32 4294901760, %v10470_v17  ;;  %v10641_v36 = vsub.f32 %v18163_v48, %v18175_v32  ;;  %v18190_v8 = vand.u32 4294901760, %v18178_v62  ;;  %v10467_v60 = vld [vmem:[%s18892_s8] sm:$0xff] }
0x103e   : > { %v10395_v1 = vsel %vm531_vm0, %v10389_v49, 0.0  ;;  %v10387_v39 = vadd.f32 %v10376_v50, %v8448_v43  ;;  %v10392_v63 = vadd.f32 %v15860_v51, %v10388_v25  ;;  %15389 = vmatpush3.msra.mxu0 %v18150_v22  ;;  %15406 = vmatprep.subr.mxu1 %v10628_v38  ;;  %v18192_v9 = vand.u32 4294901760, %v10469_v30 }
0x103f   : > { %10396 = vadd.xlane.f32.xlu0 %v10395_v1  ;;  %v10634_v18 = vsub.f32 %v18148_v34, %v18160_v12  ;;  %15390 = vmatprep.subr.mxu0 %v18165_v23  ;;  %v18195_v24 = vsub.f32 %v10470_v17, %v18181_v20  ;;  %v10648_v55 = vsub.f32 %v18178_v62, %v18190_v8  ;;  %v18206_v43 = vand.u32 4294901760, %v10468_v31 }
0x1040   : > { %v10391_v2 = vadd.f32 %v15859_v0, %v10387_v39  ;;  %v10404_v7 = vsel %vm531_vm0, %v10392_v63, 0.0  ;;  %15391 = vmatpush3.msra.mxu0 %v18165_v23  ;;  %15407 = vmatpush3.msra.mxu1 %v10628_v38  ;;  %v18204_v28 = vsub.f32 %v10469_v30, %v18192_v9  ;;  %v18222_v39 = vand.u32 4294901760, %v10467_v60 }
0x1041   : > { %v10635_v5 = vand.u32 4294901760, %v10634_v18  ;;  %15392 = vmatprep.subr.mxu0 %v18181_v20  ;;  %v18210_v50 = vand.u32 4294901760, %v18195_v24  ;;  %v10649_v14 = vand.u32 4294901760, %v10648_v55  ;;  %v18220_v1 = vsub.f32 %v10468_v31, %v18206_v43 }
0x1042   : > { %v10401_v58 = vsel %vm531_vm0, %v10391_v2, 0.0  ;;  %15393 = vmatpush3.msra.mxu0 %v18181_v20 }
0x1043   : > { %10402 = vadd.xlane.f32.xlu0 %v10401_v58  ;;  %15408 = vmatprep.subr.mxu1 %v10635_v5  ;;  %v10655_v25 = vsub.f32 %v18195_v24, %v18210_v50  ;;  %v18234_v58 = vsub.f32 %v10467_v60, %v18222_v39 }
0x1044   : > { %15409 = vmatpush3.msra.mxu1 %v10635_v5  ;;  %15394 = vmatprep.subr.mxu0 %v18192_v9 }
0x1045   : > { %15395 = vmatpush3.msra.mxu0 %v18192_v9  ;;  %v10656_v51 = vand.u32 4294901760, %v10655_v25 }
0x1046   : > { %15396 = vmatprep.subr.mxu0 %v18206_v43 }
0x1047   : > { %10405 = vadd.xlane.f32.xlu0 %v10404_v7  ;;  %15397 = vmatpush3.msra.mxu0 %v18206_v43 }
0x1048   : > { %15398 = vmatprep.subr.mxu0 %v18222_v39 }
0x1049   : > { %15399 = vmatpush3.msra.mxu0 %v18222_v39 }
0x104a   : > { %15428 = vmatprep.subr.mxu0 %v18135_v27 }
0x10c6   : > { %v10400_v11 = vpop.xlane.xlu1 %10399 }
0x10c7   : > { %v10408_v13 = vmul.f32 0.015625, %v10400_v11  ;;  %v18241_v11 = vand.u32 4294901760, %v18234_v58 }
0x10c8   : > { %v10397_v59 = vpop.xlane.xlu0 %10396 }
0x10c9   : > { %v18106_v47 = vsub.f32 %v10390_v56, %v10408_v13  ;;  %v10407_v53 = vmul.f32 0.015625, %v10397_v59  ;;  %v10642_v56 = vand.u32 4294901760, %v10641_v36  ;;  %v10676_v59 = vsub.f32 %v18234_v58, %v18241_v11 }
0x10cb   : > { %v18108_v16 = vsub.f32 %v10389_v49, %v10407_v53  ;;  %v10416_v37 = vmul.f32 %v18106_v47, %v18106_v47  ;;  %15410 = vmatprep.subr.mxu1 %v10642_v56  ;;  %v18217_v49 = vand.u32 4294901760, %v18204_v28  ;;  %v10677_v53 = vand.u32 4294901760, %v10676_v59 }
0x10cc   : > { %v10403_v10 = vpop.xlane.xlu0 %10402  ;;  %15411 = vmatpush3.msra.mxu1 %v10642_v56 }
0x10cd   : > { %v10409_v33 = vmul.f32 0.015625, %v10403_v10  ;;  %v10422_v21 = vsel %vm531_vm0, %v10416_v37, 0.0  ;;  %v10415_v42 = vmul.f32 %v18108_v16, %v18108_v16  ;;  %15412 = vmatprep.subr.mxu1 %v10649_v14  ;;  %v10662_v0 = vsub.f32 %v18204_v28, %v18217_v49 }
0x10ce   : > { %10423 = vadd.xlane.f32.xlu1 %v10422_v21  ;;  %15413 = vmatpush3.msra.mxu1 %v10649_v14 }
0x10cf   : > { %v18115_v40 = vsub.f32 %v10391_v2, %v10409_v33  ;;  %v10419_v57 = vsel %vm531_vm0, %v10415_v42, 0.0  ;;  %v18231_v2 = vand.u32 4294901760, %v18220_v1  ;;  %15414 = vmatprep.subr.mxu1 %v10656_v51 }
0x10d0   : > { %10420 = vadd.xlane.f32.xlu0 %v10419_v57  ;;  %v10406_v35 = vpop.xlane.xlu0 %10405  ;;  %15415 = vmatpush3.msra.mxu1 %v10656_v51 }
0x10d1   : > { %v10410_v26 = vmul.f32 0.015625, %v10406_v35  ;;  %v10417_v52 = vmul.f32 %v18115_v40, %v18115_v40  ;;  %v10669_v7 = vsub.f32 %v18220_v1, %v18231_v2 }
0x10d3   : > { %v18120_v46 = vsub.f32 %v10392_v63, %v10410_v26  ;;  %v10425_v4 = vsel %vm531_vm0, %v10417_v52, 0.0  ;;  %v10663_v63 = vand.u32 4294901760, %v10662_v0  ;;  %v10670_v13 = vand.u32 4294901760, %v10669_v7 }
0x10d4   : > { %10426 = vadd.xlane.f32.xlu0 %v10425_v4 }
0x10d5   : > { %v10418_v41 = vmul.f32 %v18120_v46, %v18120_v46  ;;  %15416 = vmatprep.subr.mxu1 %v10663_v63 }
0x10d6   : > { %15417 = vmatpush3.msra.mxu1 %v10663_v63 }
0x10d7   : > { %v10428_v61 = vsel %vm531_vm0, %v10418_v41, 0.0  ;;  %15418 = vmatprep.subr.mxu1 %v10670_v13 }
0x10d8   : > { %10429 = vadd.xlane.f32.xlu1 %v10428_v61  ;;  %15419 = vmatpush3.msra.mxu1 %v10670_v13 }
0x10d9   : > { %15420 = vmatprep.subr.mxu1 %v10677_v53 }
0x10da   : > { %15421 = vmatpush3.msra.mxu1 %v10677_v53 }
0x10db   : > { %15450 = vmatprep.subr.mxu1 %v18129_v15 }
0x1157   : > { %v10424_v37 = vpop.xlane.xlu1 %10423 }
0x1158   : > { %v10432_v10 = vmul.f32 0.015625, %v10424_v37 }
0x1159   : > { %v10421_v33 = vpop.xlane.xlu0 %10420 }
0x115a   : > { %v10436_v21 = vadd.f32 1e-05, %v10432_v10  ;;  %v10431_v42 = vmul.f32 0.015625, %v10421_v33 }
0x115c   : > { %15816 = vrsqrt.f32 %v10436_v21  ;;  %v10435_v57 = vadd.f32 1e-05, %v10431_v42 }
0x115d   : > { %v10427_v35 = vpop.xlane.xlu0 %10426 }
0x115e   : > { %15818 = vrsqrt.f32 %v10435_v57  ;;  %v10433_v26 = vmul.f32 0.015625, %v10427_v35 }
0x1160   : > { %v10437_v52 = vadd.f32 1e-05, %v10433_v26 }
0x1161   : > { %v10430_v4 = vpop.xlane.xlu1 %10429 }
0x1162   : > { %15820 = vrsqrt.f32 %v10437_v52  ;;  %v10434_v41 = vmul.f32 0.015625, %v10430_v4 }
0x1164   : > { %v10438_v61 = vadd.f32 1e-05, %v10434_v41 }
0x1166   : > { %15822 = vrsqrt.f32 %v10438_v61 }
0x1169   : > { %v15817_v3 = vpop.eup %15816 }
0x116a   : > { %v10444_v29 = vmul.f32 %v15817_v3, %v18106_v47 }
0x116b   : > { %v15819_v19 = vpop.eup %15818 }
0x116c   : > { %v10443_v17 = vmul.f32 %v15819_v19, %v18108_v16  ;;  %v10454_v38 = vmul.f32 %v13119_v6, %v10444_v29 }
0x116e   : > { %v10453_v18 = vmul.f32 %v13119_v6, %v10443_v17  ;;  %v10464_v30 = vadd.f32 %v13120_v44, %v10454_v38 }
0x116f   : > { %v15821_v5 = vpop.eup %15820 }
0x1170   : > { %v10463_v36 = vadd.f32 %v13120_v44, %v10453_v18  ;;  %v10486_v31 = vsel %vm531_vm0, %v10464_v30, 0  ;;  %v10445_v56 = vmul.f32 %v15821_v5, %v18115_v40 }
0x1171   : > { %v18258_v55 = vand.u32 4294901760, %v10486_v31 }
0x1172   : > { %v10483_v47 = vsel %vm531_vm0, %v10463_v36, 0  ;;  %v10455_v60 = vmul.f32 %v13119_v6, %v10445_v56 }
0x1173   : > { %v15823_v14 = vpop.eup %15822  ;;  %v18261_v25 = vand.u32 4294901760, %v10483_v47  ;;  %v18264_v0 = vsub.f32 %v10486_v31, %v18258_v55 }
0x1174   : > { %v10465_v16 = vadd.f32 %v13120_v44, %v10455_v60  ;;  %v10446_v51 = vmul.f32 %v15823_v14, %v18120_v46 }
0x1175   : > { %15422 = vmatprep.mubr.f32.mxu1 %v18261_v25  ;;  %v10568_v63 = vsub.f32 %v10483_v47, %v18261_v25  ;;  %v10579_v40 = vand.u32 4294901760, %v18264_v0 }
0x1176   : > { %15423 = vmatmul.mubr.f32.vlgmr.msra.gmra.mxu1 %v18258_v55  ;;  %v10489_v7 = vsel %vm531_vm0, %v10465_v16, 0  ;;  %v10456_v13 = vmul.f32 %v13119_v6, %v10446_v51 }
0x1177   : > { %15451 = vmatpush3.msra.mxu1 %v18129_v15  ;;  %v18273_v59 = vand.u32 4294901760, %v10489_v7  ;;  %v10569_v53 = vand.u32 4294901760, %v10568_v63  ;;  %v10580_v10 = vsub.f32 %v18264_v0, %v10579_v40 }
0x1178   : > { %15452 = vmatprep.subr.mxu1 %v18137_v54  ;;  %v10466_v37 = vadd.f32 %v13120_v44, %v10456_v13 }
0x1179   : > { %15453 = vmatpush3.msra.mxu1 %v18137_v54  ;;  %15425 = vmatprep.mubr.f32.mxu1 %v18273_v59  ;;  %v10570_v46 = vsub.f32 %v10568_v63, %v10569_v53  ;;  %v10588_v33 = vsub.f32 %v10489_v7, %v18273_v59  ;;  %v10581_v52 = vand.u32 4294901760, %v10580_v10 }
0x117a   : > { %15454 = vmatprep.subr.mxu1 %v18150_v22  ;;  %v10492_v21 = vsel %vm531_vm0, %v10466_v37, 0 }
0x117b   : > { %15455 = vmatpush3.msra.mxu1 %v18150_v22  ;;  %v10571_v42 = vand.u32 4294901760, %v10570_v46  ;;  %v18283_v57 = vand.u32 4294901760, %v10492_v21  ;;  %v10589_v35 = vand.u32 4294901760, %v10588_v33 }
0x117c   : > { %15456 = vmatprep.subr.mxu1 %v18165_v23 }
0x117d   : > { %15457 = vmatpush3.msra.mxu1 %v18165_v23  ;;  %15400 = vmatprep.mubr.f32.mxu0 %v10571_v42  ;;  %v10598_v26 = vsub.f32 %v10492_v21, %v18283_v57  ;;  %v10590_v4 = vsub.f32 %v10588_v33, %v10589_v35 }
0x117e   : > { %15426 = vmatmul.mubr.f32.gmra.mxu1 %v18283_v57  ;;  %15458 = vmatprep.subr.mxu1 %v18181_v20 }
0x117f   : > { %15401 = vmatmul.mubr.f32.vlgmr.msra.gmra.mxu0 %v10581_v52  ;;  %15459 = vmatpush3.msra.mxu1 %v18181_v20  ;;  %v10591_v41 = vand.u32 4294901760, %v10590_v4  ;;  %v10599_v61 = vand.u32 4294901760, %v10598_v26 }
0x1180   : > { %15429 = vmatpush3.msra.mxu0 %v18135_v27  ;;  %15466 = vmatprep.mubr.f32.mxu1 %v10569_v53 }
0x1181   : > { %15430 = vmatprep.subr.mxu0 %v18148_v34  ;;  %15460 = vmatprep.subr.mxu1 %v18192_v9  ;;  %v10600_v3 = vsub.f32 %v10598_v26, %v10599_v61 }
0x1182   : > { %15431 = vmatpush3.msra.mxu0 %v18148_v34  ;;  %15461 = vmatpush3.msra.mxu1 %v18192_v9 }
0x1183   : > { %15403 = vmatprep.mubr.f32.mxu0 %v10591_v41  ;;  %15432 = vmatprep.subr.mxu0 %v18163_v48  ;;  %v10601_v6 = vand.u32 4294901760, %v10600_v3 }
0x1184   : > { %15462 = vmatprep.subr.mxu1 %v18206_v43  ;;  %15433 = vmatpush3.msra.mxu0 %v18163_v48 }
0x1185   : > { %15463 = vmatpush3.msra.mxu1 %v18206_v43  ;;  %15434 = vmatprep.subr.mxu0 %v18178_v62 }
0x1186   : > { %15464 = vmatprep.subr.mxu1 %v18222_v39  ;;  %15435 = vmatpush3.msra.mxu0 %v18178_v62  ;;  %v13121_v62 = vld [vmem:[%s18893_s9] ss:$0 sm:$0xff] }
0x1187   : > { %15465 = vmatpush3.msra.mxu1 %v18222_v39  ;;  %15404 = vmatmul.mubr.f32.gmra.mxu0 %v10601_v6 }
0x1188   : > { %15436 = vmatprep.subr.mxu0 %v18195_v24  ;;  %15467 = vmatmul.mubr.f32.vlgmr.msra.gmra.mxu1 %v10579_v40 }
0x1189   : > { %15494 = vmatprep.subr.mxu1 %v18129_v15  ;;  %15437 = vmatpush3.msra.mxu0 %v18195_v24 }
0x118a   : > { %15444 = vmatprep.mubr.f32.mxu0 %v10568_v63  ;;  %15469 = vmatprep.mubr.f32.mxu1 %v10589_v35 }
0x118b   : > { %15495 = vmatpush3.msra.mxu1 %v18129_v15  ;;  %15438 = vmatprep.subr.mxu0 %v18204_v28 }
0x118c   : > { %15496 = vmatprep.subr.mxu1 %v18137_v54  ;;  %15439 = vmatpush3.msra.mxu0 %v18204_v28 }
0x118d   : > { %15497 = vmatpush3.msra.mxu1 %v18137_v54  ;;  %15440 = vmatprep.subr.mxu0 %v18220_v1 }
0x118e   : > { %15470 = vmatmul.mubr.f32.gmra.mxu1 %v10599_v61  ;;  %15498 = vmatprep.subr.mxu1 %v18150_v22 }
0x118f   : > { %15441 = vmatpush3.msra.mxu0 %v18220_v1  ;;  %15499 = vmatpush3.msra.mxu1 %v18150_v22 }
0x1190   : > { %15510 = vmatprep.mubr.f32.mxu1 %v18261_v25  ;;  %15442 = vmatprep.subr.mxu0 %v18234_v58 }
0x1191   : > { %15500 = vmatprep.subr.mxu1 %v18165_v23  ;;  %15443 = vmatpush3.msra.mxu0 %v18234_v58 }
0x1192   : > { %15501 = vmatpush3.msra.mxu1 %v18165_v23  ;;  %15445 = vmatmul.mubr.f32.vlgmr.msra.gmra.mxu0 %v18264_v0 }
0x1193   : > { %15472 = vmatprep.subr.mxu0 %v18145_v45  ;;  %15502 = vmatprep.subr.mxu1 %v18181_v20 }
0x1194   : > { %15447 = vmatprep.mubr.f32.mxu0 %v10588_v33  ;;  %15473 = vmatpush3.msra.mxu0 %v18145_v45 }
0x1195   : > { %15503 = vmatpush3.msra.mxu1 %v18181_v20  ;;  %15474 = vmatprep.subr.mxu0 %v18160_v12 }
0x1196   : > { %15504 = vmatprep.subr.mxu1 %v18192_v9  ;;  %15475 = vmatpush3.msra.mxu0 %v18160_v12 }
0x1197   : > { %15505 = vmatpush3.msra.mxu1 %v18192_v9  ;;  %15448 = vmatmul.mubr.f32.gmra.mxu0 %v10598_v26 }
0x1198   : > { %15476 = vmatprep.subr.mxu0 %v18175_v32  ;;  %15506 = vmatprep.subr.mxu1 %v18206_v43 }
0x1199   : > { %15477 = vmatpush3.msra.mxu0 %v18175_v32  ;;  %15488 = vmatprep.mubr.f32.mxu0 %v18261_v25 }
0x119a   : > { %15507 = vmatpush3.msra.mxu1 %v18206_v43  ;;  %15478 = vmatprep.subr.mxu0 %v18190_v8 }
0x119b   : > { %15508 = vmatprep.subr.mxu1 %v18222_v39  ;;  %15479 = vmatpush3.msra.mxu0 %v18190_v8 }
0x119c   : > { %15509 = vmatpush3.msra.mxu1 %v18222_v39  ;;  %15480 = vmatprep.subr.mxu0 %v18210_v50 }
0x119d   : > { %15511 = vmatmul.mubr.f32.vlgmr.msra.gmra.mxu1 %v18258_v55  ;;  %15481 = vmatpush3.msra.mxu0 %v18210_v50 }
0x119e   : > { %15513 = vmatprep.mubr.f32.mxu1 %v18273_v59  ;;  %15482 = vmatprep.subr.mxu0 %v18217_v49 }
0x119f   : > { %15483 = vmatpush3.msra.mxu0 %v18217_v49 }
0x11a0   : > { %15484 = vmatprep.subr.mxu0 %v18231_v2 }
0x11a1   : > { %15514 = vmatmul.mubr.f32.gmra.mxu1 %v18283_v57  ;;  %15485 = vmatpush3.msra.mxu0 %v18231_v2 }
0x11a2   : > { %15486 = vmatprep.subr.mxu0 %v18241_v11 }
0x11a3   : > { %15487 = vmatpush3.msra.mxu0 %v18241_v11 }
0x11a4   : > { %15489 = vmatmul.mubr.f32.vlgmr.msra.gmra.mxu0 %v18258_v55 }
0x11a5   : > { %15491 = vmatprep.mubr.f32.mxu0 %v18273_v59 }
0x11a8   : > { %15492 = vmatmul.mubr.f32.gmra.mxu0 %v18283_v57 }
0x1236   : > { %v15424_v15 = vpop.f32.mrf.mxu1 }
0x1238   : > { %v10714_v54 = vpop.f32.mrf.mxu1 }
0x123e   : > { %v15427_v34 = vpop.f32.mrf.mxu1 }
0x123f   : > { %v15402_v27 = vpop.f32.mrf.mxu0 }
0x1240   : > { %v10726_v12 = vpop.f32.mrf.mxu1  ;;  %v10584_v24 = vadd.f32 %v15402_v27, %v13121_v62 }
0x1241   : > { %v10573_v45 = vpop.f32.mrf.mxu0 }
0x1242   : > { %v10574_v9 = vadd.f32 %v13121_v62, %v10573_v45  ;;  %v10721_v1 = vadd.f32 %v15424_v15, %v10584_v24 }
0x1244   : > { %v10715_v50 = vadd.f32 %v10714_v54, %v10574_v9 }
0x1247   : > { %v15405_v22 = vpop.f32.mrf.mxu0 }
0x1248   : > { %v15468_v23 = vpop.f32.mrf.mxu1  ;;  %v10604_v44 = vadd.f32 %v15405_v22, %v13121_v62 }
0x1249   : > { %v10593_v48 = vpop.f32.mrf.mxu0 }
0x124a   : > { %v10922_v20 = vpop.f32.mrf.mxu1  ;;  %v10594_v49 = vadd.f32 %v13121_v62, %v10593_v48  ;;  %v10733_v55 = vadd.f32 %v15427_v34, %v10604_v44 }
0x124c   : > { %v10727_v17 = vadd.f32 %v10726_v12, %v10594_v49 }
0x124e   : > { %v15471_v28 = vpop.f32.mrf.mxu1 }
0x1250   : > { %v10938_v2 = vpop.f32.mrf.mxu1 }
0x1252   : > { %v15446_v32 = vpop.f32.mrf.mxu0 }
0x1253   : > { %v10828_v11 = vadd.f32 %v15446_v32, %v10721_v1 }
0x1254   : > { %v10820_v8 = vpop.f32.mrf.mxu0 }
0x1255   : > { %v10821_v39 = vadd.f32 %v10820_v8, %v10715_v50  ;;  %v10931_v5 = vadd.f32 %v15468_v23, %v10828_v11 }
0x1257   : > { %v15449_v43 = vpop.f32.mrf.mxu0  ;;  %v10923_v38 = vadd.f32 %v10922_v20, %v10821_v39 }
0x1258   : > { %v10842_v25 = vadd.f32 %v15449_v43, %v10733_v55 }
0x1259   : > { %v10834_v58 = vpop.f32.mrf.mxu0 }
0x125a   : > { %v10835_v30 = vadd.f32 %v10834_v58, %v10727_v17  ;;  %v10947_v40 = vadd.f32 %v15471_v28, %v10842_v25  ;;  %v11330_v25 = vld [vmem:[%s18896_s12 + $0x18] sm:$0xff] }
0x125c   : > { %v10939_v0 = vadd.f32 %v10938_v2, %v10835_v30 }
0x125d   : > { %v15512_v29 = vpop.f32.mrf.mxu1 }
0x125f   : > { %v11138_v31 = vpop.f32.mrf.mxu1 }
0x1261   : > { %v15515_v16 = vpop.f32.mrf.mxu1 }
0x1263   : > { %v11150_v7 = vpop.f32.mrf.mxu1 }
0x1264   : > { %v15490_v19 = vpop.f32.mrf.mxu0 }
0x1265   : > { %v11048_v47 = vadd.f32 %v15490_v19, %v10931_v5 }
0x1266   : > { %v11041_v18 = vpop.f32.mrf.mxu0 }
0x1267   : > { %v11042_v36 = vadd.f32 %v11041_v18, %v10923_v38  ;;  %v11145_v51 = vadd.f32 %v15512_v29, %v11048_v47 }
0x1268   : > { %v15493_v56 = vpop.f32.mrf.mxu0 }
0x1269   : > { %v11139_v60 = vadd.f32 %v11138_v31, %v11042_v36  ;;  %v11060_v13 = vadd.f32 %v15493_v56, %v10947_v40 }
0x126a   : > { %v11053_v14 = vpop.f32.mrf.mxu0 }
0x126b   : > { %11160 = vxpose.xlu0.b32.start [1/4] (short) (narrow) %v11139_v60, 64  ;;  %v11054_v63 = vadd.f32 %v11053_v14, %v10939_v0  ;;  %v11157_v53 = vadd.f32 %v15515_v16, %v11060_v13  ;;  %v18436_v0 = vand.u32 4294901760, %v11330_v25  ;;  %v11328_v13 = vld [vmem:[%s18896_s12 + $0x8] sm:$0xff] }
0x126d   : > { %v11151_v59 = vadd.f32 %v11150_v7, %v11054_v63  ;;  %v18444_v63 = vsub.f32 %v11330_v25, %v18436_v0  ;;  %15516 = vmatprep.subr.mxu0 %v18436_v0 }
0x126e   : > { %15517 = vmatpush3.msra.mxu0 %v18436_v0 }
0x126f   : > { %11161 = vxpose.xlu0.b32.cont [2/4] (short) (narrow) %v11145_v51, 64  ;;  %v11329_v51 = vld [vmem:[%s18896_s12 + $0x10] sm:$0xff] }
0x1270   : > { %v18446_v40 = vand.u32 4294901760, %v11329_v51 }
0x1272   : > { %15518 = vmatprep.subr.mxu0 %v18446_v40 }
0x1273   : > { %11162 = vxpose.xlu0.b32.cont [3/4] (short) (narrow) %v11151_v59, 64  ;;  %v18455_v59 = vand.u32 4294901760, %v18444_v63  ;;  %15519 = vmatpush3.msra.mxu0 %v18446_v40 }
0x1277   : > { %11163 = vxpose.xlu0.b32.end [4/4] (short) (narrow) %v11157_v53, 64  ;;  %v18458_v53 = vsub.f32 %v11329_v51, %v18446_v40 }
0x12e7   : > { %v18356_v37 = vpop.trf.xlu0 }
0x12e8   : > { %v11194_v46 = vsel %vm3285_vm2, %v18356_v37, 0.0 }
0x12e9   : > { %11195 = vadd.xlane.f32.xlu1 %v11194_v46  ;;  %v18460_v46 = vand.u32 4294901760, %v11328_v13 }
0x12eb   : > { %v18360_v10 = vpop.trf.xlu0  ;;  %15520 = vmatprep.subr.mxu0 %v18460_v46 }
0x12ec   : > { %v11197_v33 = vsel %vm3285_vm2, %v18360_v10, 0.0  ;;  %15521 = vmatpush3.msra.mxu0 %v18460_v46 }
0x12ed   : > { %11198 = vadd.xlane.f32.xlu1 %v11197_v33  ;;  %v11327_v33 = vld [vmem:[%s18896_s12] sm:$0xff] }
0x12ef   : > { %v18364_v21 = vpop.trf.xlu0 }
0x12f0   : > { %v11200_v42 = vsel %vm3285_vm2, %v18364_v21, 0.0 }
0x12f1   : > { %11201 = vadd.xlane.f32.xlu1 %v11200_v42  ;;  %v11539_v42 = vsub.f32 %v18444_v63, %v18455_v59 }
0x12f3   : > { %v18368_v57 = vpop.trf.xlu0 }
0x12f4   : > { %v11203_v35 = vsel %vm3285_vm2, %v18368_v57, 0.0 }
0x12f5   : > { %11204 = vadd.xlane.f32.xlu1 %v11203_v35  ;;  %v18470_v35 = vand.u32 4294901760, %v18458_v53 }
0x12f7   : > { %v18372_v26 = vpop.trf.xlu0 }
0x12f8   : > { %v11206_v52 = vsel %vm3285_vm2, %v18372_v26, 0.0 }
0x12f9   : > { %11207 = vadd.xlane.f32.xlu1 %v11206_v52  ;;  %v18473_v52 = vsub.f32 %v11328_v13, %v18460_v46 }
0x12fb   : > { %v18376_v4 = vpop.trf.xlu0 }
0x12fc   : > { %v11209_v41 = vsel %vm3285_vm2, %v18376_v4, 0.0 }
0x12fd   : > { %11210 = vadd.xlane.f32.xlu1 %v11209_v41  ;;  %v18475_v41 = vand.u32 4294901760, %v11327_v33 }
0x12ff   : > { %v18380_v61 = vpop.trf.xlu0  ;;  %15522 = vmatprep.subr.mxu0 %v18475_v41 }
0x1300   : > { %18921 = vst [vmem:[#allocation7_spill] sm:$0xff] %v18380_v61  ;;  %v11212_v3 = vsel %vm3285_vm2, %v18380_v61, 0.0  ;;  %15523 = vmatpush3.msra.mxu0 %v18475_v41 }
0x1301   : > { %11213 = vadd.xlane.f32.xlu1 %v11212_v3  ;;  %v11540_v3 = vand.u32 4294901760, %v11539_v42  ;;  %15556 = vmatprep.subr.mxu0 %v18444_v63 }
0x1303   : > { %v18384_v6 = vpop.trf.xlu0  ;;  %15536 = vmatprep.subr.mxu1 %v11540_v3 }
0x1304   : > { %18922 = vst [vmem:[#allocation2_spill] sm:$0xff] %v18384_v6  ;;  %v11215_v15 = vsel %vm3285_vm2, %v18384_v6, 0.0  ;;  %15537 = vmatpush3.msra.mxu1 %v11540_v3 }
0x1305   : > { %11216 = vadd.xlane.f32.xlu1 %v11215_v15  ;;  %v11546_v15 = vsub.f32 %v18458_v53, %v18470_v35 }
0x1372   : > { %v11196_v27 = vpop.xlane.xlu1 %11195 }
0x1373   : > { %v11219_v54 = vmul.f32 0.03125, %v11196_v27  ;;  %v18482_v27 = vand.u32 4294901760, %v18473_v52 }
0x1375   : > { %v18389_v45 = vsub.f32 %v18356_v37, %v11219_v54  ;;  %v18485_v54 = vsub.f32 %v11327_v33, %v18475_v41 }
0x1376   : > { %v11199_v34 = vpop.xlane.xlu1 %11198 }
0x1377   : > { %v11220_v22 = vmul.f32 0.03125, %v11199_v34  ;;  %v11235_v12 = vmul.f32 %v18389_v45, %v18389_v45  ;;  %v11547_v34 = vand.u32 4294901760, %v11546_v15 }
0x1379   : > { %v18394_v48 = vsub.f32 %v18360_v10, %v11220_v22  ;;  %v11243_v23 = vsel %vm3285_vm2, %v11235_v12, 0.0  ;;  %v11553_v22 = vsub.f32 %v18473_v52, %v18482_v27  ;;  %v18492_v12 = vand.u32 4294901760, %v18485_v54  ;;  %15538 = vmatprep.subr.mxu1 %v11547_v34 }
0x137a   : > { %v11202_v32 = vpop.xlane.xlu1 %11201  ;;  %11244 = vadd.xlane.f32.xlu1 %v11243_v23  ;;  %15539 = vmatpush3.msra.mxu1 %v11547_v34 }
0x137b   : > { %v11221_v62 = vmul.f32 0.03125, %v11202_v32  ;;  %v11236_v20 = vmul.f32 %v18394_v48, %v18394_v48  ;;  %v11554_v23 = vand.u32 4294901760, %v11553_v22  ;;  %v11560_v32 = vsub.f32 %v18485_v54, %v18492_v12 }
0x137d   : > { %v18400_v8 = vsub.f32 %v18364_v21, %v11221_v62  ;;  %v11246_v9 = vsel %vm3285_vm2, %v11236_v20, 0.0  ;;  %15540 = vmatprep.subr.mxu1 %v11554_v23  ;;  %v11561_v62 = vand.u32 4294901760, %v11560_v32 }
0x137e   : > { %v11205_v24 = vpop.xlane.xlu1 %11204  ;;  %11247 = vadd.xlane.f32.xlu1 %v11246_v9  ;;  %15541 = vmatpush3.msra.mxu1 %v11554_v23 }
0x137f   : > { %v11222_v28 = vmul.f32 0.03125, %v11205_v24  ;;  %v11237_v43 = vmul.f32 %v18400_v8, %v18400_v8  ;;  %15542 = vmatprep.subr.mxu1 %v11561_v62 }
0x1380   : > { %15543 = vmatpush3.msra.mxu1 %v11561_v62 }
0x1381   : > { %v18406_v50 = vsub.f32 %v18368_v57, %v11222_v28  ;;  %v11249_v49 = vsel %vm3285_vm2, %v11237_v43, 0.0  ;;  %15576 = vmatprep.subr.mxu1 %v18436_v0 }
0x1382   : > { %v11208_v1 = vpop.xlane.xlu1 %11207  ;;  %11250 = vadd.xlane.f32.xlu1 %v11249_v49 }
0x1383   : > { %v11223_v39 = vmul.f32 0.03125, %v11208_v1  ;;  %v11238_v2 = vmul.f32 %v18406_v50, %v18406_v50 }
0x1385   : > { %v18412_v58 = vsub.f32 %v18372_v26, %v11223_v39  ;;  %v11252_v11 = vsel %vm3285_vm2, %v11238_v2, 0.0 }
0x1386   : > { %v11211_v29 = vpop.xlane.xlu1 %11210  ;;  %11253 = vadd.xlane.f32.xlu1 %v11252_v11 }
0x1387   : > { %v11224_v19 = vmul.f32 0.03125, %v11211_v29  ;;  %v11239_v44 = vmul.f32 %v18412_v58, %v18412_v58 }
0x1389   : > { %v18418_v17 = vsub.f32 %v18376_v4, %v11224_v19  ;;  %v11255_v38 = vsel %vm3285_vm2, %v11239_v44, 0.0 }
0x138a   : > { %v11214_v18 = vpop.xlane.xlu1 %11213  ;;  %11256 = vadd.xlane.f32.xlu1 %v11255_v38 }
0x138b   : > { %v11225_v30 = vmul.f32 0.03125, %v11214_v18  ;;  %v11240_v5 = vmul.f32 %v18418_v17, %v18418_v17 }
0x138d   : > { %v18424_v36 = vsub.f32 %v18380_v61, %v11225_v30  ;;  %v11258_v31 = vsel %vm3285_vm2, %v11240_v5, 0.0  ;;  %v18501_v30 = vld [vmem:[%s18894_s10] ss:$0 sm:$0xff] }
0x138e   : > { %11259 = vadd.xlane.f32.xlu1 %v11258_v31  ;;  %v11217_v56 = vpop.xlane.xlu1 %11216 }
0x138f   : > { %v11226_v55 = vmul.f32 0.03125, %v11217_v56  ;;  %v11241_v47 = vmul.f32 %v18424_v36, %v18424_v36  ;;  %v18507_v56 = vld [vmem:[%s18895_s11] ss:$0 sm:$0xff] }
0x1391   : > { %v18430_v60 = vsub.f32 %v18384_v6, %v11226_v55  ;;  %v11261_v14 = vsel %vm3285_vm2, %v11241_v47, 0.0 }
0x1392   : > { %11262 = vadd.xlane.f32.xlu1 %v11261_v14 }
0x1393   : > { %v11242_v16 = vmul.f32 %v18430_v60, %v18430_v60 }
0x1395   : > { %v11264_v7 = vsel %vm3285_vm2, %v11242_v16, 0.0 }
0x1396   : > { %11265 = vadd.xlane.f32.xlu0 %v11264_v7 }
0x1403   : > { %v11245_v20 = vpop.xlane.xlu1 %11244 }
0x1404   : > { %v11267_v9 = vmul.f32 0.03125, %v11245_v20 }
0x1406   : > { %v11275_v24 = vadd.f32 1e-05, %v11267_v9 }
0x1407   : > { %v11248_v28 = vpop.xlane.xlu1 %11247 }
0x1408   : > { %15824 = vrsqrt.f32 %v11275_v24  ;;  %v11268_v43 = vmul.f32 0.03125, %v11248_v28 }
0x140a   : > { %v11276_v49 = vadd.f32 1e-05, %v11268_v43 }
0x140b   : > { %v11251_v1 = vpop.xlane.xlu1 %11250 }
0x140c   : > { %15826 = vrsqrt.f32 %v11276_v49  ;;  %v11269_v39 = vmul.f32 0.03125, %v11251_v1 }
0x140e   : > { %v11277_v2 = vadd.f32 1e-05, %v11269_v39 }
0x140f   : > { %v11254_v11 = vpop.xlane.xlu1 %11253 }
0x1410   : > { %15828 = vrsqrt.f32 %v11277_v2  ;;  %v11270_v29 = vmul.f32 0.03125, %v11254_v11 }
0x1412   : > { %v11278_v19 = vadd.f32 1e-05, %v11270_v29 }
0x1413   : > { %v11257_v44 = vpop.xlane.xlu1 %11256 }
0x1414   : > { %15830 = vrsqrt.f32 %v11278_v19  ;;  %v11271_v38 = vmul.f32 0.03125, %v11257_v44 }
0x1415   : > { %v15825_v18 = vpop.eup %15824 }
0x1416   : > { %v11279_v5 = vadd.f32 1e-05, %v11271_v38  ;;  %v11291_v31 = vmul.f32 %v15825_v18, %v18389_v45 }
0x1417   : > { %v11260_v55 = vpop.xlane.xlu1 %11259 }
0x1418   : > { %15832 = vrsqrt.f32 %v11279_v5  ;;  %v11272_v47 = vmul.f32 0.03125, %v11260_v55  ;;  %v11305_v14 = vmul.f32 %v18501_v30, %v11291_v31 }
0x1419   : > { %v15827_v25 = vpop.eup %15826 }
0x141a   : > { %v11292_v16 = vmul.f32 %v15827_v25, %v18394_v48  ;;  %v11280_v51 = vadd.f32 1e-05, %v11272_v47  ;;  %v11319_v7 = vadd.f32 %v18507_v56, %v11305_v14 }
0x141b   : > { %v11263_v13 = vpop.xlane.xlu1 %11262 }
0x141c   : > { %v11306_v33 = vmul.f32 %v18501_v30, %v11292_v16  ;;  %15834 = vrsqrt.f32 %v11280_v51  ;;  %v11273_v45 = vmul.f32 0.03125, %v11263_v13  ;;  %v11339_v42 = vsel %vm3285_vm2, %v11319_v7, 0 }
0x141d   : > { %v15829_v3 = vpop.eup %15828  ;;  %v18514_v15 = vand.u32 4294901760, %v11339_v42 }
0x141e   : > { %v11320_v34 = vadd.f32 %v18507_v56, %v11306_v33  ;;  %v11281_v22 = vadd.f32 1e-05, %v11273_v45  ;;  %v11293_v23 = vmul.f32 %v15829_v3, %v18400_v8 }
0x141f   : > { %v11266_v32 = vpop.xlane.xlu0 %11265  ;;  %15544 = vmatprep.mubr.f32.mxu1 %v18514_v15  ;;  %v18520_v48 = vsub.f32 %v11339_v42, %v18514_v15 }
0x1420   : > { %15836 = vrsqrt.f32 %v11281_v22  ;;  %v11274_v62 = vmul.f32 0.03125, %v11266_v32  ;;  %v11342_v20 = vsel %vm3285_vm2, %v11320_v34, 0  ;;  %v11307_v9 = vmul.f32 %v18501_v30, %v11293_v23 }
0x1421   : > { %v15831_v24 = vpop.eup %15830  ;;  %v18524_v28 = vand.u32 4294901760, %v11342_v20  ;;  %v11433_v43 = vand.u32 4294901760, %v18520_v48 }
0x1422   : > { %v11282_v49 = vadd.f32 1e-05, %v11274_v62  ;;  %v11321_v8 = vadd.f32 %v18507_v56, %v11307_v9  ;;  %v11294_v1 = vmul.f32 %v15831_v24, %v18406_v50 }
0x1423   : > { %v18530_v39 = vsub.f32 %v11342_v20, %v18524_v28  ;;  %15545 = vmatmul.mubr.f32.vlgmr.msra.gmra.mxu1 %v18524_v28  ;;  %v11434_v2 = vsub.f32 %v18520_v48, %v11433_v43 }
0x1424   : > { %15838 = vrsqrt.f32 %v11282_v49  ;;  %v11345_v11 = vsel %vm3285_vm2, %v11321_v8, 0  ;;  %v11308_v29 = vmul.f32 %v18501_v30, %v11294_v1  ;;  %15577 = vmatpush3.msra.mxu1 %v18436_v0 }
0x1425   : > { %v15833_v19 = vpop.eup %15832  ;;  %v11435_v44 = vand.u32 4294901760, %v11434_v2  ;;  %v18539_v38 = vand.u32 4294901760, %v11345_v11  ;;  %v11443_v50 = vand.u32 4294901760, %v18530_v39  ;;  %15578 = vmatprep.subr.mxu1 %v18446_v40 }
0x1426   : > { %v11322_v18 = vadd.f32 %v18507_v56, %v11308_v29  ;;  %v11295_v5 = vmul.f32 %v15833_v19, %v18412_v58  ;;  %15579 = vmatpush3.msra.mxu1 %v18446_v40 }
0x1427   : > { %15524 = vmatprep.mubr.f32.mxu0 %v11435_v44  ;;  %15547 = vmatprep.mubr.f32.mxu1 %v18539_v38  ;;  %v11444_v31 = vsub.f32 %v18530_v39, %v11443_v50  ;;  %v18551_v55 = vsub.f32 %v11345_v11, %v18539_v38 }
0x1428   : > { %v11348_v47 = vsel %vm3285_vm2, %v11322_v18, 0  ;;  %v11309_v14 = vmul.f32 %v18501_v30, %v11295_v5  ;;  %15580 = vmatprep.subr.mxu1 %v18460_v46 }
0x1429   : > { %v15835_v25 = vpop.eup %15834  ;;  %v11445_v58 = vand.u32 4294901760, %v11444_v31  ;;  %v18556_v16 = vand.u32 4294901760, %v11348_v47  ;;  %v11453_v51 = vand.u32 4294901760, %v18551_v55  ;;  %15581 = vmatpush3.msra.mxu1 %v18460_v46 }
0x142a   : > { %v11323_v7 = vadd.f32 %v18507_v56, %v11309_v14  ;;  %v11296_v13 = vmul.f32 %v15835_v25, %v18418_v17  ;;  %15582 = vmatprep.subr.mxu1 %v18475_v41 }
0x142b   : > { %15525 = vmatmul.mubr.f32.vlgmr.msra.gmra.mxu0 %v11445_v58  ;;  %v18564_v33 = vsub.f32 %v11348_v47, %v18556_v16  ;;  %15548 = vmatmul.mubr.f32.gmra.mxu1 %v18556_v16  ;;  %v11454_v45 = vsub.f32 %v18551_v55, %v11453_v51 }
0x142c   : > { %v11351_v42 = vsel %vm3285_vm2, %v11323_v7, 0  ;;  %v11310_v3 = vmul.f32 %v18501_v30, %v11296_v13  ;;  %15557 = vmatpush3.msra.mxu0 %v18444_v63  ;;  %15583 = vmatpush3.msra.mxu1 %v18475_v41 }
0x142d   : > { %v15837_v17 = vpop.eup %15836  ;;  %v11455_v34 = vand.u32 4294901760, %v11454_v45  ;;  %v18574_v22 = vand.u32 4294901760, %v11351_v42  ;;  %v11463_v23 = vand.u32 4294901760, %v18564_v33  ;;  %15558 = vmatprep.subr.mxu0 %v18458_v53  ;;  %15616 = vmatprep.subr.mxu1 %v18436_v0 }
0x142e   : > { %v11324_v32 = vadd.f32 %v18507_v56, %v11310_v3  ;;  %v11297_v62 = vmul.f32 %v15837_v17, %v18424_v36  ;;  %15559 = vmatpush3.msra.mxu0 %v18458_v53 }
0x142f   : > { %15527 = vmatprep.mubr.f32.mxu0 %v11455_v34  ;;  %15550 = vmatprep.mubr.f32.mxu1 %v18574_v22  ;;  %v11464_v63 = vsub.f32 %v18564_v33, %v11463_v23  ;;  %v11472_v20 = vsub.f32 %v11351_v42, %v18574_v22 }
0x1430   : > { %v11354_v9 = vsel %vm3285_vm2, %v11324_v32, 0  ;;  %v11311_v24 = vmul.f32 %v18501_v30, %v11297_v62  ;;  %15560 = vmatprep.subr.mxu0 %v18473_v52 }
0x1431   : > { %v15839_v49 = vpop.eup %15838  ;;  %v11465_v8 = vand.u32 4294901760, %v11464_v63  ;;  %v18588_v1 = vand.u32 4294901760, %v11354_v9  ;;  %v11473_v36 = vand.u32 4294901760, %v11472_v20  ;;  %15561 = vmatpush3.msra.mxu0 %v18473_v52 }
0x1432   : > { %v11325_v53 = vadd.f32 %v18507_v56, %v11311_v24  ;;  %v11298_v2 = vmul.f32 %v15839_v49, %v18430_v60  ;;  %15562 = vmatprep.subr.mxu0 %v18485_v54 }
0x1433   : > { %15528 = vmatmul.mubr.f32.gmra.mxu0 %v11465_v8  ;;  %v11482_v11 = vsub.f32 %v11354_v9, %v18588_v1  ;;  %15551 = vmatmul.mubr.f32.gmra.mxu1 %v18588_v1  ;;  %v11474_v29 = vsub.f32 %v11472_v20, %v11473_v36 }
0x1434   : > { %v11357_v19 = vsel %vm3285_vm2, %v11325_v53, 0  ;;  %v11312_v44 = vmul.f32 %v18501_v30, %v11298_v2  ;;  %15563 = vmatpush3.msra.mxu0 %v18485_v54  ;;  %v13124_v53 = vld [vmem:[%s18897_s13] ss:$0 sm:$0xff] }
0x1435   : > { %v11475_v18 = vand.u32 4294901760, %v11474_v29  ;;  %v18599_v52 = vand.u32 4294901760, %v11357_v19  ;;  %v11483_v5 = vand.u32 4294901760, %v11482_v11  ;;  %15596 = vmatprep.subr.mxu0 %v18455_v59 }
0x1436   : > { %v11326_v60 = vadd.f32 %v18507_v56, %v11312_v44 }
0x1437   : > { %15530 = vmatprep.mubr.f32.mxu0 %v11475_v18  ;;  %15553 = vmatprep.mubr.f32.mxu1 %v18599_v52  ;;  %v11484_v31 = vsub.f32 %v11482_v11, %v11483_v5  ;;  %v11492_v47 = vsub.f32 %v11357_v19, %v18599_v52 }
0x1438   : > { %v11360_v14 = vsel %vm3285_vm2, %v11326_v60, 0 }
0x1439   : > { %v11485_v25 = vand.u32 4294901760, %v11484_v31  ;;  %v11501_v30 = vand.u32 4294901760, %v11360_v14  ;;  %v11493_v58 = vand.u32 4294901760, %v11492_v47 }
0x143b   : > { %15531 = vmatmul.mubr.f32.gmra.mxu0 %v11485_v25  ;;  %v11502_v54 = vsub.f32 %v11360_v14, %v11501_v30  ;;  %15554 = vmatmul.mubr.f32.gmra.mxu1 %v11501_v30  ;;  %v11494_v7 = vsub.f32 %v11492_v47, %v11493_v58 }
0x143c   : > { %15584 = vmatprep.mubr.f32.mxu1 %v11433_v43 }
0x143d   : > { %v11495_v13 = vand.u32 4294901760, %v11494_v7  ;;  %v11503_v56 = vand.u32 4294901760, %v11502_v54 }
0x143f   : > { %15533 = vmatprep.mubr.f32.mxu0 %v11495_v13  ;;  %15585 = vmatmul.mubr.f32.vlgmr.msra.gmra.mxu1 %v11443_v50  ;;  %v11504_v45 = vsub.f32 %v11502_v54, %v11503_v56 }
0x1440   : > { %15587 = vmatprep.mubr.f32.mxu1 %v11453_v51  ;;  %15617 = vmatpush3.msra.mxu1 %v18436_v0  ;;  %v12221_v0 = vld [vmem:[%s18898_s14 + $0x8] sm:$0xff] }
0x1441   : > { %v11505_v42 = vand.u32 4294901760, %v11504_v45  ;;  %15618 = vmatprep.subr.mxu1 %v18446_v40 }
0x1442   : > { %15619 = vmatpush3.msra.mxu1 %v18446_v40  ;;  %v18647_v40 = vand.u32 4294901760, %v12221_v0 }
0x1443   : > { %15534 = vmatmul.mubr.f32.gmra.mxu0 %v11505_v42  ;;  %15588 = vmatmul.mubr.f32.gmra.mxu1 %v11463_v23 }
0x1444   : > { %15564 = vmatprep.mubr.f32.mxu0 %v18520_v48  ;;  %15590 = vmatprep.mubr.f32.mxu1 %v11473_v36 }
0x1445   : > { %15620 = vmatprep.subr.mxu1 %v18460_v46 }
0x1446   : > { %15621 = vmatpush3.msra.mxu1 %v18460_v46  ;;  %v18654_v46 = vsub.f32 %v12221_v0, %v18647_v40 }
0x1447   : > { %15565 = vmatmul.mubr.f32.vlgmr.msra.gmra.mxu0 %v18530_v39  ;;  %15591 = vmatmul.mubr.f32.gmra.mxu1 %v11483_v5 }
0x1448   : > { %15597 = vmatpush3.msra.mxu0 %v18455_v59  ;;  %15567 = vmatprep.mubr.f32.mxu0 %v18551_v55  ;;  %v12220_v59 = vld [vmem:[%s18898_s14] sm:$0xff] }
0x1449   : > { %15593 = vmatprep.mubr.f32.mxu1 %v11493_v58  ;;  %15598 = vmatprep.subr.mxu0 %v18470_v35 }
0x144a   : > { %15599 = vmatpush3.msra.mxu0 %v18470_v35  ;;  %15622 = vmatprep.subr.mxu1 %v18475_v41  ;;  %v18656_v35 = vand.u32 4294901760, %v12220_v59 }
0x144b   : > { %15568 = vmatmul.mubr.f32.gmra.mxu0 %v18564_v33  ;;  %15594 = vmatmul.mubr.f32.gmra.mxu1 %v11503_v56 }
0x144c   : > { %15570 = vmatprep.mubr.f32.mxu0 %v11472_v20  ;;  %15624 = vmatprep.mubr.f32.mxu1 %v18514_v15 }
0x144d   : > { %15600 = vmatprep.subr.mxu0 %v18482_v27  ;;  %15623 = vmatpush3.msra.mxu1 %v18475_v41  ;;  %v18660_v41 = vand.u32 4294901760, %v18654_v46 }
0x144e   : > { %15601 = vmatpush3.msra.mxu0 %v18482_v27  ;;  %v18663_v27 = vsub.f32 %v12220_v59, %v18656_v35 }
0x144f   : > { %15571 = vmatmul.mubr.f32.gmra.mxu0 %v11482_v11  ;;  %15625 = vmatmul.mubr.f32.vlgmr.msra.gmra.mxu1 %v18524_v28 }
0x1450   : > { %15573 = vmatprep.mubr.f32.mxu0 %v11492_v47  ;;  %15627 = vmatprep.mubr.f32.mxu1 %v18539_v38 }
0x1451   : > { %15602 = vmatprep.subr.mxu0 %v18492_v12 }
0x1452   : > { %15603 = vmatpush3.msra.mxu0 %v18492_v12  ;;  %v12432_v12 = vsub.f32 %v18654_v46, %v18660_v41 }
0x1453   : > { %15574 = vmatmul.mubr.f32.gmra.mxu0 %v11502_v54  ;;  %15628 = vmatmul.mubr.f32.gmra.mxu1 %v18556_v16 }
0x1454   : > { %15604 = vmatprep.mubr.f32.mxu0 %v18514_v15  ;;  %15630 = vmatprep.mubr.f32.mxu1 %v18574_v22  ;;  %v18670_v15 = vand.u32 4294901760, %v18663_v27  ;;  %v12433_v48 = vand.u32 4294901760, %v12432_v12 }
0x1455   : > { %15636 = vmatprep.subr.mxu0 %v18647_v40 }
0x1456   : > { %15652 = vmatprep.subr.mxu1 %v12433_v48 }
0x1457   : > { %15605 = vmatmul.mubr.f32.vlgmr.msra.gmra.mxu0 %v18524_v28  ;;  %15631 = vmatmul.mubr.f32.gmra.mxu1 %v18588_v1  ;;  %v12439_v28 = vsub.f32 %v18663_v27, %v18670_v15 }
0x1458   : > { %15607 = vmatprep.mubr.f32.mxu0 %v18539_v38  ;;  %15633 = vmatprep.mubr.f32.mxu1 %v18599_v52 }
0x1459   : > { %15637 = vmatpush3.msra.mxu0 %v18647_v40  ;;  %v12440_v43 = vand.u32 4294901760, %v12439_v28  ;;  %15653 = vmatpush3.msra.mxu1 %v12433_v48 }
0x145a   : > { %15638 = vmatprep.subr.mxu0 %v18656_v35 }
0x145b   : > { %15608 = vmatmul.mubr.f32.gmra.mxu0 %v18556_v16  ;;  %15634 = vmatmul.mubr.f32.gmra.mxu1 %v11501_v30 }
0x145c   : > { %15610 = vmatprep.mubr.f32.mxu0 %v18574_v22  ;;  %15639 = vmatpush3.msra.mxu0 %v18656_v35 }
0x145d   : > { %15668 = vmatprep.subr.mxu0 %v18654_v46  ;;  %15654 = vmatprep.subr.mxu1 %v12440_v43 }
0x145e   : > { %15655 = vmatpush3.msra.mxu1 %v12440_v43 }
0x145f   : > { %15611 = vmatmul.mubr.f32.gmra.mxu0 %v18588_v1  ;;  %15684 = vmatprep.subr.mxu1 %v18647_v40 }
0x1460   : > { %15613 = vmatprep.mubr.f32.mxu0 %v18599_v52 }
0x1463   : > { %15614 = vmatmul.mubr.f32.gmra.mxu0 %v11501_v30 }
0x14e3   : > { %v15546_v39 = vpop.f32.mrf.mxu1 }
0x14e5   : > { %v11598_v38 = vpop.f32.mrf.mxu1 }
0x14eb   : > { %v15549_v50 = vpop.f32.mrf.mxu1  ;;  %v15526_v55 = vpop.f32.mrf.mxu0 }
0x14ec   : > { %v11448_v44 = vadd.f32 %v15526_v55, %v13124_v53 }
0x14ed   : > { %v11610_v16 = vpop.f32.mrf.mxu1  ;;  %v11437_v51 = vpop.f32.mrf.mxu0 }
0x14ee   : > { %v11438_v5 = vadd.f32 %v13124_v53, %v11437_v51  ;;  %v11605_v14 = vadd.f32 %v15546_v39, %v11448_v44 }
0x14f0   : > { %v11599_v7 = vadd.f32 %v11598_v38, %v11438_v5 }
0x14f3   : > { %v15552_v33 = vpop.f32.mrf.mxu1  ;;  %v15529_v3 = vpop.f32.mrf.mxu0 }
0x14f4   : > { %v11468_v47 = vadd.f32 %v15529_v3, %v13124_v53 }
0x14f5   : > { %v11622_v17 = vpop.f32.mrf.mxu1  ;;  %v11457_v34 = vpop.f32.mrf.mxu0 }
0x14f6   : > { %v11458_v58 = vadd.f32 %v13124_v53, %v11457_v34  ;;  %v11617_v45 = vadd.f32 %v15549_v50, %v11468_v47 }
0x14f8   : > { %v11611_v48 = vadd.f32 %v11610_v16, %v11458_v58 }
0x14fb   : > { %v15555_v22 = vpop.f32.mrf.mxu1  ;;  %v15532_v23 = vpop.f32.mrf.mxu0 }
0x14fc   : > { %v11488_v0 = vadd.f32 %v15532_v23, %v13124_v53 }
0x14fd   : > { %v18676_v32 = vpop.f32.mrf.mxu1  ;;  %v11477_v63 = vpop.f32.mrf.mxu0 }
0x14fe   : > { %v11478_v43 = vadd.f32 %v13124_v53, %v11477_v63  ;;  %v11629_v6 = vadd.f32 %v15552_v33, %v11488_v0 }
0x14ff   : > { %v15586_v62 = vpop.f32.mrf.mxu1 }
0x1500   : > { %v11623_v23 = vadd.f32 %v11622_v17, %v11478_v43 }
0x1501   : > { %v11846_v20 = vpop.f32.mrf.mxu1 }
0x1503   : > { %v15535_v9 = vpop.f32.mrf.mxu0  ;;  %v15589_v24 = vpop.f32.mrf.mxu1 }
0x1504   : > { %v11508_v44 = vadd.f32 %v15535_v9, %v13124_v53 }
0x1505   : > { %v11497_v49 = vpop.f32.mrf.mxu0  ;;  %v11862_v8 = vpop.f32.mrf.mxu1 }
0x1506   : > { %v11498_v50 = vadd.f32 %v13124_v53, %v11497_v49 }
0x1507   : > { %v15566_v1 = vpop.f32.mrf.mxu0  ;;  %v15592_v36 = vpop.f32.mrf.mxu1 }
0x1508   : > { %v11728_v54 = vadd.f32 %v15566_v1, %v11605_v14  ;;  %v11635_v17 = vadd.f32 %v18676_v32, %v11498_v50 }
0x1509   : > { %v11720_v2 = vpop.f32.mrf.mxu0  ;;  %v18681_v11 = vpop.f32.mrf.mxu1 }
0x150a   : > { %v11721_v56 = vadd.f32 %v11720_v2, %v11599_v7  ;;  %v11855_v28 = vadd.f32 %v15586_v62, %v11728_v54 }
0x150b   : > { %v15569_v29 = vpop.f32.mrf.mxu0  ;;  %v18683_v19 = vpop.f32.mrf.mxu1 }
0x150c   : > { %v11742_v12 = vadd.f32 %v15569_v29, %v11617_v45  ;;  %v11847_v39 = vadd.f32 %v11846_v20, %v11721_v56  ;;  %v11641_v20 = vadd.f32 %v15555_v22, %v11508_v44 }
0x150d   : > { %v11734_v18 = vpop.f32.mrf.mxu0  ;;  %v18685_v52 = vpop.f32.mrf.mxu1 }
0x150e   : > { %v11735_v51 = vadd.f32 %v11734_v18, %v11611_v48  ;;  %v11871_v2 = vadd.f32 %v15589_v24, %v11742_v12 }
0x150f   : > { %v15572_v60 = vpop.f32.mrf.mxu0  ;;  %v15626_v31 = vpop.f32.mrf.mxu1 }
0x1510   : > { %v11756_v5 = vadd.f32 %v15572_v60, %v11629_v6  ;;  %v11863_v18 = vadd.f32 %v11862_v8, %v11735_v51 }
0x1511   : > { %v11748_v25 = vpop.f32.mrf.mxu0  ;;  %v12102_v30 = vpop.f32.mrf.mxu1 }
0x1512   : > { %v11749_v14 = vadd.f32 %v11748_v25, %v11623_v23  ;;  %v11887_v49 = vadd.f32 %v15592_v36, %v11756_v5 }
0x1513   : > { %v15575_v13 = vpop.f32.mrf.mxu0  ;;  %v15629_v42 = vpop.f32.mrf.mxu1 }
0x1514   : > { %v11770_v6 = vadd.f32 %v15575_v13, %v11641_v20  ;;  %v11879_v56 = vadd.f32 %v18681_v11, %v11749_v14 }
0x1515   : > { %v11762_v59 = vpop.f32.mrf.mxu0  ;;  %v12114_v61 = vpop.f32.mrf.mxu1 }
0x1516   : > { %v11763_v54 = vadd.f32 %v11762_v59, %v11635_v17  ;;  %v11903_v48 = vadd.f32 %v18683_v19, %v11770_v6 }
0x1517   : > { %v15606_v55 = vpop.f32.mrf.mxu0  ;;  %v15632_v62 = vpop.f32.mrf.mxu1 }
0x1518   : > { %v11992_v3 = vadd.f32 %v15606_v55, %v11855_v28  ;;  %v11895_v44 = vadd.f32 %v18685_v52, %v11763_v54 }
0x1519   : > { %v11985_v34 = vpop.f32.mrf.mxu0  ;;  %v12126_v8 = vpop.f32.mrf.mxu1 }
0x151a   : > { %v18687_v1 = vadd.f32 %v15626_v31, %v11992_v3  ;;  %v11986_v38 = vadd.f32 %v11985_v34, %v11847_v39 }
0x151b   : > { %v15609_v47 = vpop.f32.mrf.mxu0  ;;  %v15635_v43 = vpop.f32.mrf.mxu1 }
0x151c   : > { %v12157_v16 = vmul.f32 0.044715, %v18687_v1  ;;  %v18690_v63 = vadd.f32 %v12102_v30, %v11986_v38  ;;  %v12004_v29 = vadd.f32 %v15609_v47, %v11871_v2 }
0x151d   : > { %v11997_v9 = vpop.f32.mrf.mxu0 }
0x151e   : > { %v12165_v33 = vmul.f32 %v12157_v16, %v18687_v1  ;;  %v12156_v31 = vmul.f32 0.044715, %v18690_v63  ;;  %v18694_v58 = vadd.f32 %v15629_v42, %v12004_v29  ;;  %v11998_v24 = vadd.f32 %v11997_v9, %v11863_v18  ;;  %v12138_v29 = vpop.f32.mrf.mxu1 }
0x151f   : > { %v15612_v53 = vpop.f32.mrf.mxu0 }
0x1520   : > { %v12173_v60 = vmul.f32 %v12165_v33, %v18687_v1  ;;  %v12164_v30 = vmul.f32 %v12156_v31, %v18690_v63  ;;  %v12159_v22 = vmul.f32 0.044715, %v18694_v58  ;;  %v18700_v25 = vadd.f32 %v12114_v61, %v11998_v24 }
0x1521   : > { %v12016_v7 = vadd.f32 %v15612_v53, %v11887_v49  ;;  %v12009_v45 = vpop.f32.mrf.mxu0 }
0x1522   : > { %v12181_v13 = vadd.f32 %v12173_v60, %v18687_v1  ;;  %v12172_v32 = vmul.f32 %v12164_v30, %v18690_v63  ;;  %v12167_v36 = vmul.f32 %v12159_v22, %v18694_v58  ;;  %v12158_v42 = vmul.f32 0.044715, %v18700_v25 }
0x1523   : > { %v18707_v0 = vadd.f32 %v15632_v62, %v12016_v7  ;;  %v12010_v12 = vadd.f32 %v12009_v45, %v11879_v56  ;;  %v15615_v61 = vpop.f32.mrf.mxu0 }
0x1524   : > { %v12189_v28 = vmul.f32 0.7978846, %v12181_v13  ;;  %v12180_v59 = vadd.f32 %v12172_v32, %v18690_v63  ;;  %v12175_v11 = vmul.f32 %v12167_v36, %v18694_v58  ;;  %v12166_v55 = vmul.f32 %v12158_v42, %v18700_v25 }
0x1525   : > { %v12161_v51 = vmul.f32 0.044715, %v18707_v0  ;;  %v18714_v3 = vadd.f32 %v12126_v8, %v12010_v12  ;;  %v12028_v39 = vadd.f32 %v15615_v61, %v11903_v48  ;;  %v12021_v34 = vpop.f32.mrf.mxu0  ;;  %v12149_v13 = vmul.f32 0.5, %v18687_v1 }
0x1526   : > { %15840 = vtanh.f32 %v12189_v28  ;;  %v12188_v38 = vmul.f32 0.7978846, %v12180_v59  ;;  %v12183_v19 = vadd.f32 %v12175_v11, %v18694_v58  ;;  %v12174_v2 = vmul.f32 %v12166_v55, %v18700_v25 }
0x1527   : > { %v12169_v50 = vmul.f32 %v12161_v51, %v18707_v0  ;;  %v12160_v5 = vmul.f32 0.044715, %v18714_v3  ;;  %v18721_v23 = vadd.f32 %v15635_v43, %v12028_v39  ;;  %v12022_v47 = vadd.f32 %v12021_v34, %v11895_v44 }
0x1528   : > { %v12191_v16 = vmul.f32 0.7978846, %v12183_v19  ;;  %v12182_v62 = vadd.f32 %v12174_v2, %v18700_v25  ;;  %15842 = vtanh.f32 %v12188_v38  ;;  %v12148_v12 = vmul.f32 0.5, %v18690_v63 }
0x1529   : > { %v12177_v52 = vmul.f32 %v12169_v50, %v18707_v0  ;;  %v12168_v18 = vmul.f32 %v12160_v5, %v18714_v3  ;;  %v12163_v14 = vmul.f32 0.044715, %v18721_v23  ;;  %v18727_v20 = vadd.f32 %v12138_v29, %v12022_v47 }
0x152a   : > { %v12190_v9 = vmul.f32 0.7978846, %v12182_v62  ;;  %15844 = vtanh.f32 %v12191_v16  ;;  %v12151_v11 = vmul.f32 0.5, %v18694_v58  ;;  %v12150_v1 = vmul.f32 0.5, %v18700_v25 }
0x152b   : > { %v12185_v33 = vadd.f32 %v12177_v52, %v18707_v0  ;;  %v12176_v31 = vmul.f32 %v12168_v18, %v18714_v3  ;;  %v12171_v24 = vmul.f32 %v12163_v14, %v18721_v23  ;;  %v12162_v6 = vmul.f32 0.044715, %v18727_v20 }
0x152c   : > { %15846 = vtanh.f32 %v12190_v9  ;;  %v12152_v29 = vmul.f32 0.5, %v18714_v3  ;;  %v12153_v52 = vmul.f32 0.5, %v18707_v0 }
0x152d   : > { %v12193_v17 = vmul.f32 0.7978846, %v12185_v33  ;;  %v12184_v49 = vadd.f32 %v12176_v31, %v18714_v3  ;;  %v12179_v53 = vmul.f32 %v12171_v24, %v18721_v23  ;;  %v12170_v60 = vmul.f32 %v12162_v6, %v18727_v20 }
0x152e   : > { %v12155_v3 = vmul.f32 0.5, %v18721_v23 }
0x152f   : > { %v12192_v30 = vmul.f32 0.7978846, %v12184_v49  ;;  %v12187_v8 = vadd.f32 %v12179_v53, %v18721_v23  ;;  %v12178_v22 = vmul.f32 %v12170_v60, %v18727_v20  ;;  %15848 = vtanh.f32 %v12193_v17 }
0x1531   : > { %v12195_v54 = vmul.f32 0.7978846, %v12187_v8  ;;  %v12186_v7 = vadd.f32 %v12178_v22, %v18727_v20  ;;  %15850 = vtanh.f32 %v12192_v30  ;;  %v12154_v8 = vmul.f32 0.5, %v18727_v20 }
0x1533   : > { %v15841_v56 = vpop.eup %15840  ;;  %v12194_v45 = vmul.f32 0.7978846, %v12186_v7  ;;  %15852 = vtanh.f32 %v12195_v54 }
0x1534   : > { %v12205_v32 = vadd.f32 1.0, %v15841_v56 }
0x1535   : > { %v15843_v36 = vpop.eup %15842  ;;  %15854 = vtanh.f32 %v12194_v45 }
0x1536   : > { %v12213_v42 = vmul.f32 %v12205_v32, %v12149_v13  ;;  %v12204_v48 = vadd.f32 1.0, %v15843_v36 }
0x1537   : > { %v15845_v61 = vpop.eup %15844 }
0x1538   : > { %v12212_v28 = vmul.f32 %v12204_v48, %v12148_v12  ;;  %v12233_v59 = vsel %vm2642_vm1, %v12213_v42, 0  ;;  %v12207_v43 = vadd.f32 1.0, %v15845_v61 }
0x1539   : > { %v15847_v55 = vpop.eup %15846  ;;  %v18743_v51 = vand.u32 4294901760, %v12233_v59 }
0x153a   : > { %v12230_v39 = vsel %vm2642_vm1, %v12212_v28, 0  ;;  %v12206_v44 = vadd.f32 1.0, %v15847_v55  ;;  %v12215_v34 = vmul.f32 %v12207_v43, %v12151_v11 }
0x153b   : > { %v18747_v38 = vand.u32 4294901760, %v12230_v39  ;;  %v18750_v63 = vsub.f32 %v12233_v59, %v18743_v51 }
0x153c   : > { %v15849_v19 = vpop.eup %15848  ;;  %v12214_v2 = vmul.f32 %v12206_v44, %v12150_v1  ;;  %v12239_v50 = vsel %vm2642_vm1, %v12215_v34, 0 }
0x153d   : > { %15656 = vmatprep.mubr.f32.mxu1 %v18747_v38  ;;  %v18754_v58 = vand.u32 4294901760, %v12239_v50  ;;  %v18757_v5 = vsub.f32 %v12230_v39, %v18747_v38  ;;  %v12332_v25 = vand.u32 4294901760, %v18750_v63  ;;  %v12209_v47 = vadd.f32 1.0, %v15849_v19 }
0x153e   : > { %v15851_v16 = vpop.eup %15850  ;;  %15657 = vmatmul.mubr.f32.vlgmr.msra.gmra.mxu1 %v18743_v51  ;;  %v12236_v62 = vsel %vm2642_vm1, %v12214_v2, 0 }
0x153f   : > { %v18764_v18 = vand.u32 4294901760, %v12236_v62  ;;  %v18767_v14 = vsub.f32 %v12239_v50, %v18754_v58  ;;  %v12322_v9 = vand.u32 4294901760, %v18757_v5  ;;  %v12208_v33 = vadd.f32 1.0, %v15851_v16  ;;  %15685 = vmatpush3.msra.mxu1 %v18647_v40 }
0x1540   : > { %v15853_v31 = vpop.eup %15852  ;;  %v12333_v24 = vsub.f32 %v18750_v63, %v12332_v25  ;;  %v12217_v6 = vmul.f32 %v12209_v47, %v12153_v52  ;;  %15686 = vmatprep.subr.mxu1 %v18656_v35 }
0x1541   : > { %15659 = vmatprep.mubr.f32.mxu1 %v18764_v18  ;;  %v12323_v0 = vsub.f32 %v18757_v5, %v12322_v9  ;;  %v12216_v17 = vmul.f32 %v12208_v33, %v12152_v29  ;;  %v18779_v49 = vsub.f32 %v12236_v62, %v18764_v18  ;;  %v12352_v53 = vand.u32 4294901760, %v18767_v14  ;;  %15687 = vmatpush3.msra.mxu1 %v18656_v35 }
0x1542   : > { %v15855_v60 = vpop.eup %15854  ;;  %15660 = vmatmul.mubr.f32.gmra.mxu1 %v18754_v58  ;;  %v12334_v30 = vand.u32 4294901760, %v12333_v24  ;;  %v12245_v23 = vsel %vm2642_vm1, %v12217_v6, 0  ;;  %v12211_v22 = vadd.f32 1.0, %v15853_v31  ;;  %15716 = vmatprep.subr.mxu1 %v18647_v40 }
0x1543   : > { %v12324_v54 = vand.u32 4294901760, %v12323_v0  ;;  %v12242_v7 = vsel %vm2642_vm1, %v12216_v17, 0  ;;  %v18788_v56 = vand.u32 4294901760, %v12245_v23  ;;  %v12342_v45 = vand.u32 4294901760, %v18779_v49 }
0x1544   : > { %v18791_v13 = vand.u32 4294901760, %v12242_v7  ;;  %v12210_v32 = vadd.f32 1.0, %v15855_v60  ;;  %v12353_v36 = vsub.f32 %v18767_v14, %v12352_v53  ;;  %v12219_v42 = vmul.f32 %v12211_v22, %v12155_v3 }
0x1545   : > { %15640 = vmatprep.mubr.f32.mxu0 %v12324_v54  ;;  %v12371_v12 = vsub.f32 %v12245_v23, %v18788_v56  ;;  %v12343_v20 = vsub.f32 %v18779_v49, %v12342_v45 }
0x1546   : > { %15662 = vmatprep.mubr.f32.mxu1 %v18791_v13  ;;  %15641 = vmatmul.mubr.f32.vlgmr.msra.gmra.mxu0 %v12334_v30  ;;  %v12218_v48 = vmul.f32 %v12210_v32, %v12154_v8  ;;  %v12251_v61 = vsel %vm2642_vm1, %v12219_v42, 0  ;;  %v12361_v28 = vsub.f32 %v12242_v7, %v18791_v13  ;;  %v12354_v39 = vand.u32 4294901760, %v12353_v36  ;;  %v13125_v30 = vld [vmem:[%s18899_s15] ss:$0 sm:$0xff] }
0x1547   : > { %15663 = vmatmul.mubr.f32.gmra.mxu1 %v18788_v56  ;;  %15669 = vmatpush3.msra.mxu0 %v18654_v46  ;;  %v12344_v59 = vand.u32 4294901760, %v12343_v20  ;;  %v18801_v11 = vand.u32 4294901760, %v12251_v61  ;;  %v12372_v43 = vand.u32 4294901760, %v12371_v12 }
0x1548   : > { %v12248_v55 = vsel %vm2642_vm1, %v12218_v48, 0  ;;  %v12362_v1 = vand.u32 4294901760, %v12361_v28  ;;  %15670 = vmatprep.subr.mxu0 %v18663_v27 }
0x1549   : > { %15643 = vmatprep.mubr.f32.mxu0 %v12344_v59  ;;  %v12380_v44 = vand.u32 4294901760, %v12248_v55  ;;  %v12391_v34 = vsub.f32 %v12251_v61, %v18801_v11  ;;  %v12373_v19 = vsub.f32 %v12371_v12, %v12372_v43  ;;  %15671 = vmatpush3.msra.mxu0 %v18663_v27 }
0x154a   : > { %15644 = vmatmul.mubr.f32.gmra.mxu0 %v12354_v39  ;;  %v12363_v2 = vsub.f32 %v12361_v28, %v12362_v1  ;;  %15700 = vmatprep.subr.mxu0 %v18660_v41 }
0x154b   : > { %15665 = vmatprep.mubr.f32.mxu1 %v12380_v44  ;;  %v12381_v46 = vsub.f32 %v12248_v55, %v12380_v44  ;;  %v12392_v50 = vand.u32 4294901760, %v12391_v34  ;;  %v12374_v16 = vand.u32 4294901760, %v12373_v19 }
0x154c   : > { %15666 = vmatmul.mubr.f32.gmra.mxu1 %v18801_v11  ;;  %v12364_v47 = vand.u32 4294901760, %v12363_v2 }
0x154d   : > { %15688 = vmatprep.mubr.f32.mxu1 %v12322_v9  ;;  %v12382_v62 = vand.u32 4294901760, %v12381_v46  ;;  %v12393_v29 = vsub.f32 %v12391_v34, %v12392_v50 }
0x154e   : > { %15646 = vmatprep.mubr.f32.mxu0 %v12364_v47 }
0x154f   : > { %15647 = vmatmul.mubr.f32.gmra.mxu0 %v12374_v16  ;;  %v12383_v52 = vsub.f32 %v12381_v46, %v12382_v62  ;;  %v12394_v33 = vand.u32 4294901760, %v12393_v29 }
0x1550   : > { %15689 = vmatmul.mubr.f32.vlgmr.msra.gmra.mxu1 %v12332_v25 }
0x1551   : > { %15691 = vmatprep.mubr.f32.mxu1 %v12342_v45  ;;  %v12384_v27 = vand.u32 4294901760, %v12383_v52  ;;  %15717 = vmatpush3.msra.mxu1 %v18647_v40 }
0x1552   : > { %15718 = vmatprep.subr.mxu1 %v18656_v35 }
0x1553   : > { %15649 = vmatprep.mubr.f32.mxu0 %v12384_v27  ;;  %15719 = vmatpush3.msra.mxu1 %v18656_v35 }
0x1554   : > { %15650 = vmatmul.mubr.f32.gmra.mxu0 %v12394_v33  ;;  %15692 = vmatmul.mubr.f32.gmra.mxu1 %v12352_v53 }
0x1555   : > { %15672 = vmatprep.mubr.f32.mxu0 %v18757_v5  ;;  %15694 = vmatprep.mubr.f32.mxu1 %v12362_v1 }
0x1558   : > { %15673 = vmatmul.mubr.f32.vlgmr.msra.gmra.mxu0 %v18750_v63  ;;  %15695 = vmatmul.mubr.f32.gmra.mxu1 %v12372_v43 }
0x1559   : > { %15701 = vmatpush3.msra.mxu0 %v18660_v41  ;;  %15675 = vmatprep.mubr.f32.mxu0 %v18779_v49 }
0x155a   : > { %15697 = vmatprep.mubr.f32.mxu1 %v12382_v62  ;;  %15702 = vmatprep.subr.mxu0 %v18670_v15 }
0x155b   : > { %15703 = vmatpush3.msra.mxu0 %v18670_v15 }
0x155c   : > { %15676 = vmatmul.mubr.f32.gmra.mxu0 %v18767_v14  ;;  %15698 = vmatmul.mubr.f32.gmra.mxu1 %v12392_v50 }
0x155d   : > { %15678 = vmatprep.mubr.f32.mxu0 %v12361_v28  ;;  %15720 = vmatprep.mubr.f32.mxu1 %v18747_v38 }
0x1560   : > { %15679 = vmatmul.mubr.f32.gmra.mxu0 %v12371_v12  ;;  %15721 = vmatmul.mubr.f32.vlgmr.msra.gmra.mxu1 %v18743_v51 }
0x1561   : > { %15681 = vmatprep.mubr.f32.mxu0 %v12381_v46  ;;  %15723 = vmatprep.mubr.f32.mxu1 %v18764_v18 }
0x1564   : > { %15682 = vmatmul.mubr.f32.gmra.mxu0 %v12391_v34  ;;  %15724 = vmatmul.mubr.f32.gmra.mxu1 %v18754_v58 }
0x1565   : > { %15704 = vmatprep.mubr.f32.mxu0 %v18747_v38  ;;  %15726 = vmatprep.mubr.f32.mxu1 %v18791_v13 }
0x1568   : > { %15705 = vmatmul.mubr.f32.vlgmr.msra.gmra.mxu0 %v18743_v51  ;;  %15727 = vmatmul.mubr.f32.gmra.mxu1 %v18788_v56 }
0x1569   : > { %15707 = vmatprep.mubr.f32.mxu0 %v18764_v18  ;;  %15729 = vmatprep.mubr.f32.mxu1 %v12380_v44 }
0x156c   : > { %15708 = vmatmul.mubr.f32.gmra.mxu0 %v18754_v58  ;;  %15730 = vmatmul.mubr.f32.gmra.mxu1 %v18801_v11 }
0x156d   : > { %15710 = vmatprep.mubr.f32.mxu0 %v18791_v13 }
0x1570   : > { %15711 = vmatmul.mubr.f32.gmra.mxu0 %v18788_v56 }
0x1571   : > { %15713 = vmatprep.mubr.f32.mxu0 %v12380_v44 }
0x1574   : > { %15714 = vmatmul.mubr.f32.gmra.mxu0 %v18801_v11 }
0x15fe   : > { %v15658_v40 = vpop.f32.mrf.mxu1 }
0x1600   : > { %v12477_v35 = vpop.f32.mrf.mxu1 }
0x1602   : > { %v15661_v41 = vpop.f32.mrf.mxu1 }
0x1604   : > { %v12489_v15 = vpop.f32.mrf.mxu1 }
0x1606   : > { %v15642_v51 = vpop.f32.mrf.mxu0 }
0x1607   : > { %v15664_v38 = vpop.f32.mrf.mxu1  ;;  %v12337_v7 = vadd.f32 %v15642_v51, %v13125_v30 }
0x1608   : > { %v12326_v63 = vpop.f32.mrf.mxu0 }
0x1609   : > { %v12501_v5 = vpop.f32.mrf.mxu1  ;;  %v12327_v13 = vadd.f32 %v13125_v30, %v12326_v63  ;;  %v12484_v12 = vadd.f32 %v15658_v40, %v12337_v7 }
0x160a   : > { %v15645_v25 = vpop.f32.mrf.mxu0 }
0x160b   : > { %v12357_v42 = vadd.f32 %v15645_v25, %v13125_v30  ;;  %v12478_v59 = vadd.f32 %v12477_v35, %v12327_v13 }
0x160c   : > { %v15667_v18 = vpop.f32.mrf.mxu1  ;;  %v12346_v58 = vpop.f32.mrf.mxu0 }
0x160d   : > { %v12347_v61 = vadd.f32 %v13125_v30, %v12346_v58  ;;  %v12496_v1 = vadd.f32 %v15661_v41, %v12357_v42 }
0x160e   : > { %v18835_v14 = vpop.f32.mrf.mxu1 }
0x160f   : > { %v15648_v9 = vpop.f32.mrf.mxu0  ;;  %v12490_v2 = vadd.f32 %v12489_v15, %v12347_v61 }
0x1610   : > { %v15690_v31 = vpop.f32.mrf.mxu1  ;;  %v12377_v11 = vadd.f32 %v15648_v9, %v13125_v30 }
0x1611   : > { %v12366_v24 = vpop.f32.mrf.mxu0 }
0x1612   : > { %v12719_v6 = vpop.f32.mrf.mxu1  ;;  %v12367_v44 = vadd.f32 %v13125_v30, %v12366_v24  ;;  %v12508_v47 = vadd.f32 %v15664_v38, %v12377_v11 }
0x1614   : > { %v15651_v3 = vpop.f32.mrf.mxu0  ;;  %v15693_v0 = vpop.f32.mrf.mxu1  ;;  %v12502_v35 = vadd.f32 %v12501_v5, %v12367_v44 }
0x1615   : > { %v12397_v50 = vadd.f32 %v15651_v3, %v13125_v30 }
0x1616   : > { %v12386_v17 = vpop.f32.mrf.mxu0  ;;  %v12735_v49 = vpop.f32.mrf.mxu1 }
0x1617   : > { %v12387_v33 = vadd.f32 %v13125_v30, %v12386_v17  ;;  %v12520_v9 = vadd.f32 %v15667_v18, %v12397_v50 }
0x1618   : > { %v15674_v53 = vpop.f32.mrf.mxu0  ;;  %v15696_v60 = vpop.f32.mrf.mxu1 }
0x1619   : > { %v12603_v28 = vadd.f32 %v15674_v53, %v12484_v12  ;;  %v12514_v3 = vadd.f32 %v18835_v14, %v12387_v33 }
0x161a   : > { %v12595_v23 = vpop.f32.mrf.mxu0  ;;  %v18840_v8 = vpop.f32.mrf.mxu1 }
0x161b   : > { %v12596_v39 = vadd.f32 %v12595_v23, %v12478_v59  ;;  %v12728_v46 = vadd.f32 %v15690_v31, %v12603_v28 }
0x161c   : > { %v15677_v22 = vpop.f32.mrf.mxu0  ;;  %v18842_v54 = vpop.f32.mrf.mxu1 }
0x161d   : > { %v12617_v19 = vadd.f32 %v15677_v22, %v12496_v1  ;;  %v12720_v27 = vadd.f32 %v12719_v6, %v12596_v39 }
0x161e   : > { %v12609_v56 = vpop.f32.mrf.mxu0  ;;  %v18844_v45 = vpop.f32.mrf.mxu1 }
0x161f   : > { %v12610_v29 = vadd.f32 %v12609_v56, %v12490_v2  ;;  %v12744_v25 = vadd.f32 %v15693_v0, %v12617_v19 }
0x1620   : > { %v15680_v32 = vpop.f32.mrf.mxu0  ;;  %v15722_v36 = vpop.f32.mrf.mxu1 }
0x1621   : > { %v12631_v40 = vadd.f32 %v15680_v32, %v12508_v47  ;;  %v12736_v5 = vadd.f32 %v12735_v49, %v12610_v29 }
0x1622   : > { %v12623_v20 = vpop.f32.mrf.mxu0  ;;  %v12967_v48 = vpop.f32.mrf.mxu1 }
0x1623   : > { %v12624_v58 = vadd.f32 %v12623_v20, %v12502_v35  ;;  %v12760_v0 = vadd.f32 %v15696_v60, %v12631_v40 }
0x1624   : > { %v15683_v43 = vpop.f32.mrf.mxu0  ;;  %v15725_v55 = vpop.f32.mrf.mxu1 }
0x1625   : > { %v12645_v18 = vadd.f32 %v15683_v43, %v12520_v9  ;;  %v18923_v43 = vld [vmem:[#allocation2_spill] sm:$0xff] }
0x1626   : > { %v12637_v34 = vpop.f32.mrf.mxu0  ;;  %v12979_v16 = vpop.f32.mrf.mxu1 }
0x1627   : > { %v12638_v56 = vadd.f32 %v12637_v34, %v12514_v3  ;;  %v12776_v42 = vadd.f32 %v18842_v54, %v12645_v18 }
0x1628   : > { %v15706_v62 = vpop.f32.mrf.mxu0  ;;  %v15728_v15 = vpop.f32.mrf.mxu1 }
0x1629   : > { %v12859_v52 = vadd.f32 %v15706_v62, %v12728_v46  ;;  %v12768_v61 = vadd.f32 %v18844_v45, %v12638_v56 }
0x162a   : > { %v12852_v51 = vpop.f32.mrf.mxu0  ;;  %v12991_v22 = vpop.f32.mrf.mxu1 }
0x162b   : > { %v12974_v63 = vadd.f32 %v15722_v36, %v12859_v52  ;;  %v12853_v41 = vadd.f32 %v12852_v51, %v12720_v27 }
0x162c   : > { %v15709_v38 = vpop.f32.mrf.mxu0  ;;  %v15731_v12 = vpop.f32.mrf.mxu1 }
0x162d   : > { %v13014_v31 = vadd.f32 %v12974_v63, %v18360_v10  ;;  %v12968_v24 = vadd.f32 %v12967_v48, %v12853_v41  ;;  %v12871_v6 = vadd.f32 %v15709_v38, %v12744_v25  ;;  %v12752_v10 = vadd.f32 %v18840_v8, %v12624_v58 }
0x162e   : > { %v12864_v17 = vpop.f32.mrf.mxu0  ;;  %v13003_v54 = vpop.f32.mrf.mxu1 }
0x162f   : > { %13022 = vst.msk [vmem:[%s18851_s24 + $0x8] sm:$0xff] %vm3285_vm2, %v13014_v31  ;;  %v13013_v53 = vadd.f32 %v12968_v24, %v18356_v37  ;;  %v12986_v30 = vadd.f32 %v15725_v55, %v12871_v6  ;;  %v12865_v23 = vadd.f32 %v12864_v17, %v12736_v5 }
0x1630   : > { %v15712_v7 = vpop.f32.mrf.mxu0 }
0x1631   : > { %13021 = vst.msk [vmem:[%s18851_s24] sm:$0xff] %vm3285_vm2, %v13013_v53  ;;  %v13016_v14 = vadd.f32 %v12986_v30, %v18368_v57  ;;  %v12980_v49 = vadd.f32 %v12979_v16, %v12865_v23  ;;  %v12883_v60 = vadd.f32 %v15712_v7, %v12760_v0 }
0x1632   : > { %v12876_v13 = vpop.f32.mrf.mxu0 }
0x1633   : > { %13024 = vst.msk [vmem:[%s18851_s24 + $0x18] sm:$0xff] %vm3285_vm2, %v13016_v14  ;;  %v13015_v37 = vadd.f32 %v12980_v49, %v18364_v21  ;;  %v12998_v32 = vadd.f32 %v15728_v15, %v12883_v60  ;;  %v12877_v36 = vadd.f32 %v12876_v13, %v12752_v10 }
0x1634   : > { %v15715_v8 = vpop.f32.mrf.mxu0 }
0x1635   : > { %13023 = vst.msk [vmem:[%s18851_s24 + $0x10] sm:$0xff] %vm3285_vm2, %v13015_v37  ;;  %v13018_v57 = vadd.f32 %v12998_v32, %v18376_v4  ;;  %v12992_v20 = vadd.f32 %v12991_v22, %v12877_v36  ;;  %v12895_v48 = vadd.f32 %v15715_v8, %v12776_v42  ;;  %v18924_v4 = vld [vmem:[#allocation7_spill] sm:$0xff] }
0x1636   : > { %v12888_v28 = vpop.f32.mrf.mxu0 }
0x1637   : > { %13026 = vst.msk [vmem:[%s18851_s24 + $0x28] sm:$0xff] %vm3285_vm2, %v13018_v57  ;;  %v13017_v21 = vadd.f32 %v12992_v20, %v18372_v26  ;;  %v13010_v59 = vadd.f32 %v15731_v12, %v12895_v48  ;;  %v12889_v11 = vadd.f32 %v12888_v28, %v12768_v61 }
0x1639   : > { %13025 = vst.msk [vmem:[%s18851_s24 + $0x20] sm:$0xff] %vm3285_vm2, %v13017_v21  ;;  %v13020_v55 = vadd.f32 %v13010_v59, %v18923_v43  ;;  %v13004_v39 = vadd.f32 %v13003_v54, %v12889_v11 }
0x163b   : > { %13028 = vst.msk [vmem:[%s18851_s24 + $0x38] sm:$0xff] %vm3285_vm2, %v13020_v55  ;;  %v13019_v1 = vadd.f32 %v13004_v39, %v18924_v4 }
0x163d   : > { %13027 = vst.msk [vmem:[%s18851_s24 + $0x30] sm:$0xff] %vm3285_vm2, %v13019_v1 }
0x163e PF: > { %s26_s21 = sadd.s32 1, %s15867_s21  }
0x163f   : > { %p23_p5 = scmp.ge.s32.totalorder %s26_s21, 4  }
0x1641   :  { %25 = sbr.rel (!%p23_p5) target bundleno = 2 (0x2), region = 119 }

</bundles_post_ra>
